<compile_context>
chip_gen: v6e
topology: v6e:2x2x1
jax: 0.10.0
libtpu: 0.0.40
codegen_flags: <defaults>
</compile_context>

<pallas_src>
import numpy as np
import jax
import jax.numpy as jnp
from jax.experimental import pallas as pl
from jax.experimental.pallas import tpu as pltpu


# ----------------------------------------------------------------------------
# Host-side constant matrices (upsample + conv-tap shift, zero-pad folded in).
# ----------------------------------------------------------------------------
def _upsample_matrix(n_in, fac):
    """nn.Upsample(mode='bilinear', align_corners=False) along one axis."""
    n_out = n_in * fac
    U = np.zeros((n_out, n_in), np.float32)
    for d in range(n_out):
        src = (d + 0.5) / fac - 0.5
        src = max(src, 0.0)
        i0 = min(int(np.floor(src)), n_in - 1)
        lam = src - i0
        i1 = min(i0 + 1, n_in - 1)
        U[d, i0] += 1.0 - lam
        U[d, i1] += lam
    return U


def _shift_matrix(n, off):
    """(S @ v)[i] = v[i + off] if in range else 0 (zero-padding semantics)."""
    S = np.zeros((n, n), np.float32)
    for i in range(n):
        j = i + off
        if 0 <= j < n:
            S[i, j] = 1.0
    return S


def _compiler_params():
    # batch axis is parallel (covers both v7x TensorCores for B >= 2);
    # explicit VMEM budget per the v7x guidance.
    return pltpu.CompilerParams(
        dimension_semantics=("parallel",),
        vmem_limit_bytes=32 * 1024 * 1024,
    )


# ----------------------------------------------------------------------------
# Stage 1: bilinear upsample + 3x3 tap shifts, batched MXU matmuls.
# ----------------------------------------------------------------------------
def _make_upsample_taps_kernel(Cin, H2, W2, W):
    def kernel(x_ref, a_ref, b_ref, o_ref):
        # x_ref: (1, H, Cin*W)   a_ref: (3*H2, H)   b_ref: (W, 3*W2)
        # o_ref: (1, Cin*9, H2, W2)
        # One row-transform matmul covers all dy taps and all channels.
        t = jnp.dot(a_ref[...], x_ref[0],
                    preferred_element_type=jnp.float32)        # (3*H2, Cin*W)
        for c in range(Cin):
            for dy in range(3):
                t_cd = t[dy * H2:(dy + 1) * H2, c * W:(c + 1) * W]   # (H2, W)
                # One column-transform matmul covers all dx taps.
                q = jnp.dot(t_cd, b_ref[...],
                            preferred_element_type=jnp.float32)      # (H2, 3*W2)
                for dx in range(3):
                    o_ref[0, (c * 3 + dy) * 3 + dx] = q[:, dx * W2:(dx + 1) * W2]
    return kernel


# ----------------------------------------------------------------------------
# Stage 2: 3x3-conv reduction as one lane-dense MXU matmul (+ bias, ReLU,
#          fused channel-concat with the skip tensor).
# ----------------------------------------------------------------------------
def _make_conv_bn_relu_kernel(Cout, Cskip):
    if Cskip == 0:
        def kernel(p_ref, w_ref, b_ref, o_ref):
            # p_ref: (1, K, S)  w_ref: (Cout, K)  b_ref: (Cout, 1)  o_ref: (1, Cout, S)
            y = jnp.dot(w_ref[...], p_ref[0],
                        preferred_element_type=jnp.float32)
            o_ref[0] = jnp.maximum(y + b_ref[...], 0.0)
    else:
        def kernel(p_ref, w_ref, b_ref, x2_ref, o_ref):
            # o_ref: (1, Cout + Cskip, S); the concat is fused into this block.
            y = jnp.dot(w_ref[...], p_ref[0],
                        preferred_element_type=jnp.float32)
            o_ref[0, pl.ds(0, Cout)] = jnp.maximum(y + b_ref[...], 0.0)
            o_ref[0, pl.ds(Cout, Cskip)] = x2_ref[0]
    return kernel


def _make_conv1x1_kernel():
    def kernel(x_ref, w_ref, b_ref, o_ref):
        # x_ref: (1, C, S)  w_ref: (n_classes, C)  b_ref: (n_classes, 1)
        o_ref[0] = jnp.dot(w_ref[...], x_ref[0],
                           preferred_element_type=jnp.float32) + b_ref[...]
    return kernel


# ----------------------------------------------------------------------------
# UpSkip layer wrapper.
# ----------------------------------------------------------------------------
def upskip_forward(x1, x2, conv_w, conv_b, gamma, beta, run_mean, run_var,
                   fac=2, eps=1e-5):
    B, Cin, H, W = x1.shape
    Cout = conv_w.shape[0]
    Cskip = x2.shape[1]
    H2, W2 = H * fac, W * fac
    S = H2 * W2
    K = Cin * 9

    # Fold eval-mode BatchNorm into the conv weight / bias (tiny, host/XLA side).
    scale = gamma / jnp.sqrt(run_var + eps)
    w_fold = conv_w * scale[:, None, None, None]                 # (Cout, Cin, 3, 3)
    b_fold = scale * (conv_b - run_mean) + beta                  # (Cout,)
    w_mat = w_fold.reshape(Cout, K).astype(jnp.float32)          # k = c*9 + dy*3 + dx
    b_mat = b_fold.reshape(Cout, 1).astype(jnp.float32)

    # Upsample + tap-shift matrices (conv zero-pad folded in), batched over taps.
    U_h = _upsample_matrix(H, fac)                               # (H2, H)
    U_wT = _upsample_matrix(W, fac).T                            # (W, W2)
    A_cat = np.concatenate([_shift_matrix(H2, dy - 1) @ U_h for dy in range(3)],
                           axis=0)                               # (3*H2, H)
    B_cat = np.concatenate([U_wT @ _shift_matrix(W2, dx - 1).T for dx in range(3)],
                           axis=1)                               # (W, 3*W2)

    # Layout prep so the row transform covers all channels in one matmul.
    x_hw = jnp.transpose(x1, (0, 2, 1, 3)).reshape(B, H, Cin * W).astype(jnp.float32)

    taps = pl.pallas_call(
        _make_upsample_taps_kernel(Cin, H2, W2, W),
        out_shape=jax.ShapeDtypeStruct((B, K, H2, W2), jnp.float32),
        grid=(B,),
        in_specs=[
            pl.BlockSpec((1, H, Cin * W), lambda b: (b, 0, 0)),
            pl.BlockSpec((3 * H2, H), lambda b: (0, 0)),
            pl.BlockSpec((W, 3 * W2), lambda b: (0, 0)),
        ],
        out_specs=pl.BlockSpec((1, K, H2, W2), lambda b: (b, 0, 0, 0)),
        compiler_params=_compiler_params(),
    )(x_hw, jnp.asarray(A_cat, dtype=jnp.float32), jnp.asarray(B_cat, dtype=jnp.float32))

    # Free row-major reshape: rows of `p` are flattened, lane-dense tap planes.
    p = taps.reshape(B, K, S)

    dH = x2.shape[2] - H2
    dW = x2.shape[3] - W2
    if dH == 0 and dW == 0:
        # Common UNet case: concat is fused into the conv kernel's output block.
        x2f = x2.reshape(B, Cskip, S).astype(jnp.float32)
        out = pl.pallas_call(
            _make_conv_bn_relu_kernel(Cout, Cskip),
            out_shape=jax.ShapeDtypeStruct((B, Cout + Cskip, S), jnp.float32),
            grid=(B,),
            in_specs=[
                pl.BlockSpec((1, K, S), lambda b: (b, 0, 0)),
                pl.BlockSpec((Cout, K), lambda b: (0, 0)),
                pl.BlockSpec((Cout, 1), lambda b: (0, 0)),
                pl.BlockSpec((1, Cskip, S), lambda b: (b, 0, 0)),
            ],
            out_specs=pl.BlockSpec((1, Cout + Cskip, S), lambda b: (b, 0, 0)),
            compiler_params=_compiler_params(),
        )(p, w_mat, b_mat, x2f)
        return out.reshape(B, Cout + Cskip, H2, W2)

    # Rare mismatched-size case: pad_diff + concat in the wrapper.
    y = pl.pallas_call(
        _make_conv_bn_relu_kernel(Cout, 0),
        out_shape=jax.ShapeDtypeStruct((B, Cout, S), jnp.float32),
        grid=(B,),
        in_specs=[
            pl.BlockSpec((1, K, S), lambda b: (b, 0, 0)),
            pl.BlockSpec((Cout, K), lambda b: (0, 0)),
            pl.BlockSpec((Cout, 1), lambda b: (0, 0)),
        ],
        out_specs=pl.BlockSpec((1, Cout, S), lambda b: (b, 0, 0)),
        compiler_params=_compiler_params(),
    )(p, w_mat, b_mat)
    y = y.reshape(B, Cout, H2, W2)
    y = jnp.pad(y, ((0, 0), (0, 0),
                    (dH // 2, dH - dH // 2),
                    (dW // 2, dW - dW // 2)))
    return jnp.concatenate([y, x2], axis=1)


def conv1x1_forward(x, w, b):
    B, C, H, W = x.shape
    n = w.shape[0]
    S = H * W
    xf = x.reshape(B, C, S).astype(jnp.float32)
    wm = w.reshape(n, C).astype(jnp.float32)
    bm = b.reshape(n, 1).astype(jnp.float32)
    y = pl.pallas_call(
        _make_conv1x1_kernel(),
        out_shape=jax.ShapeDtypeStruct((B, n, S), jnp.float32),
        grid=(B,),
        in_specs=[
            pl.BlockSpec((1, C, S), lambda i: (i, 0, 0)),
            pl.BlockSpec((n, C), lambda i: (0, 0)),
            pl.BlockSpec((n, 1), lambda i: (0, 0)),
        ],
        out_specs=pl.BlockSpec((1, n, S), lambda i: (i, 0, 0)),
        compiler_params=_compiler_params(),
    )(xf, wm, bm)
    return y.reshape(B, n, H, W)


def decoder_forward(x, dn_latents, up_params, outc_w, outc_b, fac=2):
    for (cw, cb, g, be, mu, var), z in zip(up_params, dn_latents[::-1]):
        x = upskip_forward(x, z, cw, cb, g, be, mu, var, fac=fac)
    return conv1x1_forward(x, outc_w, outc_b)


# ----------------------------------------------------------------------------
# Pure-JAX reference (same math, standard XLA ops) for the correctness check.
# ----------------------------------------------------------------------------
def upskip_reference(x1, x2, conv_w, conv_b, gamma, beta, run_mean, run_var,
                     fac=2, eps=1e-5):
    B, Cin, H, W = x1.shape
    U_h = jnp.asarray(_upsample_matrix(H, fac))
    U_wT = jnp.asarray(_upsample_matrix(W, fac).T)
    up = jnp.einsum('ph,bchw,wq->bcpq', U_h, x1, U_wT)
    y = jax.lax.conv_general_dilated(up, conv_w, (1, 1), ((1, 1), (1, 1)),
                                     dimension_numbers=('NCHW', 'OIHW', 'NCHW'))
    y = y + conv_b[None, :, None, None]
    scale = gamma / jnp.sqrt(run_var + eps)
    y = (y - run_mean[None, :, None, None]) * scale[None, :, None, None] \
        + beta[None, :, None, None]
    y = jnp.maximum(y, 0.0)
    dH = x2.shape[2] - y.shape[2]
    dW = x2.shape[3] - y.shape[3]
    y = jnp.pad(y, ((0, 0), (0, 0),
                    (dH // 2, dH - dH // 2),
                    (dW // 2, dW - dW // 2)))
    return jnp.concatenate([y, x2], axis=1)


def decoder_reference(x, dn_latents, up_params, outc_w, outc_b, fac=2):
    for (cw, cb, g, be, mu, var), z in zip(up_params, dn_latents[::-1]):
        x = upskip_reference(x, z, cw, cb, g, be, mu, var, fac=fac)
    out = jnp.einsum('oc,bchw->bohw', outc_w[:, :, 0, 0], x)
    return out + outc_b[None, :, None, None]


# ----------------------------------------------------------------------------
if __name__ == "__main__":
    key = jax.random.PRNGKey(0)
    B = 2
    n_classes = 3
    dims = [4, 8, 16]          # encoder dims; Decoder sees them reversed
    fac = 2
    H0, W0 = 4, 4              # spatial size of the deepest feature map

    rdims = dims[::-1]         # [16, 8, 4]
    d_in0 = rdims[0]
    skip_dims = rdims[1:]      # [8, 4]

    keys = iter(jax.random.split(key, 64))
    x = jax.random.normal(next(keys), (B, d_in0, H0, W0), jnp.float32)

    # dn_latents in encoder order: shallowest first (largest spatial).
    dn_latents = []
    s = H0 * (fac ** len(skip_dims))
    for d in dims[:-1]:        # channel counts [4, 8]
        dn_latents.append(jax.random.normal(next(keys), (B, d, s, s), jnp.float32))
        s //= fac

    up_params = []
    cur_in = d_in0
    for d_skip in skip_dims:
        d_out = d_skip
        conv_w = 0.1 * jax.random.normal(next(keys), (d_out, cur_in, 3, 3), jnp.float32)
        conv_b = 0.1 * jax.random.normal(next(keys), (d_out,), jnp.float32)
        gamma = 0.5 + jax.random.uniform(next(keys), (d_out,), jnp.float32)
        beta = 0.1 * jax.random.normal(next(keys), (d_out,), jnp.float32)
        mean = 0.1 * jax.random.normal(next(keys), (d_out,), jnp.float32)
        var = 0.5 + jax.random.uniform(next(keys), (d_out,), jnp.float32)
        up_params.append((conv_w, conv_b, gamma, beta, mean, var))
        cur_in = d_out + d_skip

    outc_w = 0.1 * jax.random.normal(next(keys), (n_classes, cur_in, 1, 1), jnp.float32)
    outc_b = 0.1 * jax.random.normal(next(keys), (n_classes,), jnp.float32)

    decoder_jit = jax.jit(decoder_forward, static_argnames=("fac",))
    out = decoder_jit(x, dn_latents, up_params, outc_w, outc_b, fac=fac)
    out = jax.block_until_ready(out)

    ref = decoder_reference(x, dn_latents, up_params, outc_w, outc_b, fac=fac)
    assert out.shape == (B, n_classes, H0 * fac ** 2, W0 * fac ** 2), out.shape
    # f32 end-to-end; tolerance covers MXU accumulation-order differences
    # across the two stacked UpSkip layers.
    np.testing.assert_allclose(np.asarray(out), np.asarray(ref),
                               rtol=3e-4, atol=3e-4)
    print("KERNEL_OK")
</pallas_src>

<mosaic_0001>
module attributes {stable_mosaic.version = 11 : i64} {
  func.func @kernel(%arg0: i32, %arg1: memref<1x144x64xf32, #tpu.memory_space<vmem>>, %arg2: memref<8x144xf32, #tpu.memory_space<vmem>>, %arg3: memref<8x1xf32, #tpu.memory_space<vmem>>, %arg4: memref<1x8x64xf32, #tpu.memory_space<vmem>>, %arg5: memref<1x16x64xf32, #tpu.memory_space<vmem>>) attributes {dimension_semantics = [#tpu.dimension_semantics<parallel>], iteration_bounds = array<i64: 2>, scalar_prefetch = 0 : i64, scratch_operands = 0 : i64, tpu.core_type = #tpu.core_type<tc>, window_params = [{transform_indices = @transform_0, window_bounds = array<i64: 1, 144, 64>}, {pipeline_mode = #tpu.pipeline_mode<synchronous>, transform_indices = @transform_1, window_bounds = array<i64: 8, 144>}, {pipeline_mode = #tpu.pipeline_mode<synchronous>, transform_indices = @transform_2, window_bounds = array<i64: 8, 1>}, {transform_indices = @transform_3, window_bounds = array<i64: 1, 8, 64>}, {transform_indices = @transform_4, window_bounds = array<i64: 1, 16, 64>}]} {
    %c0 = arith.constant 0 : index
    %c0_0 = arith.constant 0 : index
    %0 = vector.load %arg2[%c0, %c0_0] : memref<8x144xf32, #tpu.memory_space<vmem>>, vector<8x144xf32>
    %c0_1 = arith.constant 0 : index
    %c0_2 = arith.constant 0 : index
    %c0_3 = arith.constant 0 : index
    %1 = vector.load %arg1[%c0_1, %c0_2, %c0_3] : memref<1x144x64xf32, #tpu.memory_space<vmem>>, vector<1x144x64xf32>
    %2 = vector.shape_cast %1 : vector<1x144x64xf32> to vector<144x64xf32>
    %cst = arith.constant dense<0.000000e+00> : vector<8x64xf32>
    %3 = tpu.matmul %0, %2, %cst {dimension_numbers = #tpu.dot_dimension_numbers<[1], [0], [0], [1], [0, 0, 1, 1], [], []>} : vector<8x144xf32>, vector<144x64xf32>, vector<8x64xf32> -> vector<8x64xf32>
    %c0_4 = arith.constant 0 : index
    %c0_5 = arith.constant 0 : index
    %4 = vector.load %arg3[%c0_4, %c0_5] : memref<8x1xf32, #tpu.memory_space<vmem>>, vector<8x1xf32>
    %5 = vector.broadcast %4 : vector<8x1xf32> to vector<8x64xf32>
    %6 = arith.addf %3, %5 : vector<8x64xf32>
    %cst_6 = arith.constant 0.000000e+00 : f32
    %7 = vector.broadcast %cst_6 : f32 to vector<8x64xf32>
    %8 = arith.maximumf %6, %7 : vector<8x64xf32>
    %c0_7 = arith.constant 0 : index
    %c0_8 = arith.constant 0 : index
    %c0_9 = arith.constant 0 : index
    %9 = vector.load %arg5[%c0_7, %c0_8, %c0_9] : memref<1x16x64xf32, #tpu.memory_space<vmem>>, vector<1x8x64xf32>
    %10 = vector.shape_cast %9 : vector<1x8x64xf32> to vector<8x64xf32>
    %11 = vector.shape_cast %8 : vector<8x64xf32> to vector<1x8x64xf32>
    tpu.vector_store %arg5[%c0_7, %c0_8, %c0_9], %11 {strides = array<i32>} : memref<1x16x64xf32, #tpu.memory_space<vmem>>, vector<1x8x64xf32>,
    %c0_10 = arith.constant 0 : index
    %c0_11 = arith.constant 0 : index
    %c0_12 = arith.constant 0 : index
    %12 = vector.load %arg4[%c0_10, %c0_11, %c0_12] : memref<1x8x64xf32, #tpu.memory_space<vmem>>, vector<1x8x64xf32>
    %13 = vector.shape_cast %12 : vector<1x8x64xf32> to vector<8x64xf32>
    %c0_13 = arith.constant 0 : index
    %c8 = arith.constant 8 : index
    %c0_14 = arith.constant 0 : index
    %14 = vector.load %arg5[%c0_13, %c8, %c0_14] : memref<1x16x64xf32, #tpu.memory_space<vmem>>, vector<1x8x64xf32>
    %15 = vector.shape_cast %14 : vector<1x8x64xf32> to vector<8x64xf32>
    %16 = vector.shape_cast %13 : vector<8x64xf32> to vector<1x8x64xf32>
    tpu.vector_store %arg5[%c0_13, %c8, %c0_14], %16 {strides = array<i32>} : memref<1x16x64xf32, #tpu.memory_space<vmem>>, vector<1x8x64xf32>,
    return
  }
  func.func @transform_0(%arg0: i32) -> (i32, i32, i32) {
    %c0_i32 = arith.constant 0 : i32
    %c0_i32_0 = arith.constant 0 : i32
    %c0_i32_1 = arith.constant 0 : i32
    return %arg0, %c0_i32, %c0_i32_0 : i32, i32, i32
  }
  func.func @transform_1(%arg0: i32) -> (i32, i32) {
    %c0_i32 = arith.constant 0 : i32
    %c0_i32_0 = arith.constant 0 : i32
    %c0_i32_1 = arith.constant 0 : i32
    return %c0_i32, %c0_i32_0 : i32, i32
  }
  func.func @transform_2(%arg0: i32) -> (i32, i32) {
    %c0_i32 = arith.constant 0 : i32
    %c0_i32_0 = arith.constant 0 : i32
    %c0_i32_1 = arith.constant 0 : i32
    return %c0_i32, %c0_i32_0 : i32, i32
  }
  func.func @transform_3(%arg0: i32) -> (i32, i32, i32) {
    %c0_i32 = arith.constant 0 : i32
    %c0_i32_0 = arith.constant 0 : i32
    %c0_i32_1 = arith.constant 0 : i32
    return %arg0, %c0_i32, %c0_i32_0 : i32, i32, i32
  }
  func.func @transform_4(%arg0: i32) -> (i32, i32, i32) {
    %c0_i32 = arith.constant 0 : i32
    %c0_i32_0 = arith.constant 0 : i32
    %c0_i32_1 = arith.constant 0 : i32
    return %arg0, %c0_i32, %c0_i32_0 : i32, i32, i32
  }
}

module attributes {stable_mosaic.version = 11 : i64} {
  func.func @kernel(%arg0: i32, %arg1: memref<1x4x64xf32, #tpu.memory_space<vmem>>, %arg2: memref<24x4xf32, #tpu.memory_space<vmem>>, %arg3: memref<4x24xf32, #tpu.memory_space<vmem>>, %arg4: memref<1x144x8x8xf32, #tpu.memory_space<vmem>>) attributes {dimension_semantics = [#tpu.dimension_semantics<parallel>], iteration_bounds = array<i64: 2>, scalar_prefetch = 0 : i64, scratch_operands = 0 : i64, tpu.core_type = #tpu.core_type<tc>, window_params = [{transform_indices = @transform_0, window_bounds = array<i64: 1, 4, 64>}, {pipeline_mode = #tpu.pipeline_mode<synchronous>, transform_indices = @transform_1, window_bounds = array<i64: 24, 4>}, {pipeline_mode = #tpu.pipeline_mode<synchronous>, transform_indices = @transform_2, window_bounds = array<i64: 4, 24>}, {transform_indices = @transform_3, window_bounds = array<i64: 1, 144, 8, 8>}]} {
    %c0 = arith.constant 0 : index
    %c0_0 = arith.constant 0 : index
    %0 = vector.load %arg2[%c0, %c0_0] : memref<24x4xf32, #tpu.memory_space<vmem>>, vector<24x4xf32>
    %c0_1 = arith.constant 0 : index
    %c0_2 = arith.constant 0 : index
    %c0_3 = arith.constant 0 : index
    %1 = vector.load %arg1[%c0_1, %c0_2, %c0_3] : memref<1x4x64xf32, #tpu.memory_space<vmem>>, vector<1x4x64xf32>
    %2 = vector.shape_cast %1 : vector<1x4x64xf32> to vector<4x64xf32>
    %cst = arith.constant dense<0.000000e+00> : vector<24x64xf32>
    %3 = tpu.matmul %0, %2, %cst {dimension_numbers = #tpu.dot_dimension_numbers<[1], [0], [0], [1], [0, 0, 1, 1], [], []>} : vector<24x4xf32>, vector<4x64xf32>, vector<24x64xf32> -> vector<24x64xf32>
    %4 = vector.extract_strided_slice %3 {offsets = [0, 0], sizes = [8, 4], strides = [1, 1]} : vector<24x64xf32> to vector<8x4xf32>
    %c0_4 = arith.constant 0 : index
    %c0_5 = arith.constant 0 : index
    %5 = vector.load %arg3[%c0_4, %c0_5] : memref<4x24xf32, #tpu.memory_space<vmem>>, vector<4x24xf32>
    %cst_6 = arith.constant dense<0.000000e+00> : vector<8x24xf32>
    %6 = tpu.matmul %4, %5, %cst_6 {dimension_numbers = #tpu.dot_dimension_numbers<[1], [0], [0], [1], [0, 0, 1, 1], [], []>} : vector<8x4xf32>, vector<4x24xf32>, vector<8x24xf32> -> vector<8x24xf32>
    %7 = vector.extract_strided_slice %6 {offsets = [0, 0], sizes = [8, 8], strides = [1, 1]} : vector<8x24xf32> to vector<8x8xf32>
    %c0_7 = arith.constant 0 : index
    %c0_8 = arith.constant 0 : index
    %c0_9 = arith.constant 0 : index
    %c0_10 = arith.constant 0 : index
    %8 = vector.load %arg4[%c0_7, %c0_8, %c0_9, %c0_10] : memref<1x144x8x8xf32, #tpu.memory_space<vmem>>, vector<1x1x8x8xf32>
    %9 = vector.shape_cast %8 : vector<1x1x8x8xf32> to vector<8x8xf32>
    %10 = vector.shape_cast %7 : vector<8x8xf32> to vector<1x1x8x8xf32>
    tpu.vector_store %arg4[%c0_7, %c0_8, %c0_9, %c0_10], %10 {strides = array<i32>} : memref<1x144x8x8xf32, #tpu.memory_space<vmem>>, vector<1x1x8x8xf32>,
    %11 = vector.extract_strided_slice %6 {offsets = [0, 8], sizes = [8, 8], strides = [1, 1]} : vector<8x24xf32> to vector<8x8xf32>
    %c0_11 = arith.constant 0 : index
    %c1 = arith.constant 1 : index
    %c0_12 = arith.constant 0 : index
    %c0_13 = arith.constant 0 : index
    %12 = vector.load %arg4[%c0_11, %c1, %c0_12, %c0_13] : memref<1x144x8x8xf32, #tpu.memory_space<vmem>>, vector<1x1x8x8xf32>
    %13 = vector.shape_cast %12 : vector<1x1x8x8xf32> to vector<8x8xf32>
    %14 = vector.shape_cast %11 : vector<8x8xf32> to vector<1x1x8x8xf32>
    tpu.vector_store %arg4[%c0_11, %c1, %c0_12, %c0_13], %14 {strides = array<i32>} : memref<1x144x8x8xf32, #tpu.memory_space<vmem>>, vector<1x1x8x8xf32>,
    %15 = vector.extract_strided_slice %6 {offsets = [0, 16], sizes = [8, 8], strides = [1, 1]} : vector<8x24xf32> to vector<8x8xf32>
    %c0_14 = arith.constant 0 : index
    %c2 = arith.constant 2 : index
    %c0_15 = arith.constant 0 : index
    %c0_16 = arith.constant 0 : index
    %16 = vector.load %arg4[%c0_14, %c2, %c0_15, %c0_16] : memref<1x144x8x8xf32, #tpu.memory_space<vmem>>, vector<1x1x8x8xf32>
    %17 = vector.shape_cast %16 : vector<1x1x8x8xf32> to vector<8x8xf32>
    %18 = vector.shape_cast %15 : vector<8x8xf32> to vector<1x1x8x8xf32>
    tpu.vector_store %arg4[%c0_14, %c2, %c0_15, %c0_16], %18 {strides = array<i32>} : memref<1x144x8x8xf32, #tpu.memory_space<vmem>>, vector<1x1x8x8xf32>,
    %19 = vector.extract_strided_slice %3 {offsets = [8, 0], sizes = [8, 4], strides = [1, 1]} : vector<24x64xf32> to vector<8x4xf32>
    %c0_17 = arith.constant 0 : index
    %c0_18 = arith.constant 0 : index
    %20 = vector.load %arg3[%c0_17, %c0_18] : memref<4x24xf32, #tpu.memory_space<vmem>>, vector<4x24xf32>
    %cst_19 = arith.constant dense<0.000000e+00> : vector<8x24xf32>
    %21 = tpu.matmul %19, %20, %cst_19 {dimension_numbers = #tpu.dot_dimension_numbers<[1], [0], [0], [1], [0, 0, 1, 1], [], []>} : vector<8x4xf32>, vector<4x24xf32>, vector<8x24xf32> -> vector<8x24xf32>
    %22 = vector.extract_strided_slice %21 {offsets = [0, 0], sizes = [8, 8], strides = [1, 1]} : vector<8x24xf32> to vector<8x8xf32>
    %c0_20 = arith.constant 0 : index
    %c3 = arith.constant 3 : index
    %c0_21 = arith.constant 0 : index
    %c0_22 = arith.constant 0 : index
    %23 = vector.load %arg4[%c0_20, %c3, %c0_21, %c0_22] : memref<1x144x8x8xf32, #tpu.memory_space<vmem>>, vector<1x1x8x8xf32>
    %24 = vector.shape_cast %23 : vector<1x1x8x8xf32> to vector<8x8xf32>
    %25 = vector.shape_cast %22 : vector<8x8xf32> to vector<1x1x8x8xf32>
    tpu.vector_store %arg4[%c0_20, %c3, %c0_21, %c0_22], %25 {strides = array<i32>} : memref<1x144x8x8xf32, #tpu.memory_space<vmem>>, vector<1x1x8x8xf32>,
    %26 = vector.extract_strided_slice %21 {offsets = [0, 8], sizes = [8, 8], strides = [1, 1]} : vector<8x24xf32> to vector<8x8xf32>
    %c0_23 = arith.constant 0 : index
    %c4 = arith.constant 4 : index
    %c0_24 = arith.constant 0 : index
    %c0_25 = arith.constant 0 : index
    %27 = vector.load %arg4[%c0_23, %c4, %c0_24, %c0_25] : memref<1x144x8x8xf32, #tpu.memory_space<vmem>>, vector<1x1x8x8xf32>
    %28 = vector.shape_cast %27 : vector<1x1x8x8xf32> to vector<8x8xf32>
    %29 = vector.shape_cast %26 : vector<8x8xf32> to vector<1x1x8x8xf32>
    tpu.vector_store %arg4[%c0_23, %c4, %c0_24, %c0_25], %29 {strides = array<i32>} : memref<1x144x8x8xf32, #tpu.memory_space<vmem>>, vector<1x1x8x8xf32>,
    %30 = vector.extract_strided_slice %21 {offsets = [0, 16], sizes = [8, 8], strides = [1, 1]} : vector<8x24xf32> to vector<8x8xf32>
    %c0_26 = arith.constant 0 : index
    %c5 = arith.constant 5 : index
    %c0_27 = arith.constant 0 : index
    %c0_28 = arith.constant 0 : index
    %31 = vector.load %arg4[%c0_26, %c5, %c0_27, %c0_28] : memref<1x144x8x8xf32, #tpu.memory_space<vmem>>, vector<1x1x8x8xf32>
    %32 = vector.shape_cast %31 : vector<1x1x8x8xf32> to vector<8x8xf32>
    %33 = vector.shape_cast %30 : vector<8x8xf32> to vector<1x1x8x8xf32>
    tpu.vector_store %arg4[%c0_26, %c5, %c0_27, %c0_28], %33 {strides = array<i32>} : memref<1x144x8x8xf32, #tpu.memory_space<vmem>>, vector<1x1x8x8xf32>,
    %34 = vector.extract_strided_slice %3 {offsets = [16, 0], sizes = [8, 4], strides = [1, 1]} : vector<24x64xf32> to vector<8x4xf32>
    %c0_29 = arith.constant 0 : index
    %c0_30 = arith.constant 0 : index
    %35 = vector.load %arg3[%c0_29, %c0_30] : memref<4x24xf32, #tpu.memory_space<vmem>>, vector<4x24xf32>
    %cst_31 = arith.constant dense<0.000000e+00> : vector<8x24xf32>
    %36 = tpu.matmul %34, %35, %cst_31 {dimension_numbers = #tpu.dot_dimension_numbers<[1], [0], [0], [1], [0, 0, 1, 1], [], []>} : vector<8x4xf32>, vector<4x24xf32>, vector<8x24xf32> -> vector<8x24xf32>
    %37 = vector.extract_strided_slice %36 {offsets = [0, 0], sizes = [8, 8], strides = [1, 1]} : vector<8x24xf32> to vector<8x8xf32>
    %c0_32 = arith.constant 0 : index
    %c6 = arith.constant 6 : index
    %c0_33 = arith.constant 0 : index
    %c0_34 = arith.constant 0 : index
    %38 = vector.load %arg4[%c0_32, %c6, %c0_33, %c0_34] : memref<1x144x8x8xf32, #tpu.memory_space<vmem>>, vector<1x1x8x8xf32>
    %39 = vector.shape_cast %38 : vector<1x1x8x8xf32> to vector<8x8xf32>
    %40 = vector.shape_cast %37 : vector<8x8xf32> to vector<1x1x8x8xf32>
    tpu.vector_store %arg4[%c0_32, %c6, %c0_33, %c0_34], %40 {strides = array<i32>} : memref<1x144x8x8xf32, #tpu.memory_space<vmem>>, vector<1x1x8x8xf32>,
    %41 = vector.extract_strided_slice %36 {offsets = [0, 8], sizes = [8, 8], strides = [1, 1]} : vector<8x24xf32> to vector<8x8xf32>
    %c0_35 = arith.constant 0 : index
    %c7 = arith.constant 7 : index
    %c0_36 = arith.constant 0 : index
    %c0_37 = arith.constant 0 : index
    %42 = vector.load %arg4[%c0_35, %c7, %c0_36, %c0_37] : memref<1x144x8x8xf32, #tpu.memory_space<vmem>>, vector<1x1x8x8xf32>
    %43 = vector.shape_cast %42 : vector<1x1x8x8xf32> to vector<8x8xf32>
    %44 = vector.shape_cast %41 : vector<8x8xf32> to vector<1x1x8x8xf32>
    tpu.vector_store %arg4[%c0_35, %c7, %c0_36, %c0_37], %44 {strides = array<i32>} : memref<1x144x8x8xf32, #tpu.memory_space<vmem>>, vector<1x1x8x8xf32>,
    %45 = vector.extract_strided_slice %36 {offsets = [0, 16], sizes = [8, 8], strides = [1, 1]} : vector<8x24xf32> to vector<8x8xf32>
    %c0_38 = arith.constant 0 : index
    %c8 = arith.constant 8 : index
    %c0_39 = arith.constant 0 : index
    %c0_40 = arith.constant 0 : index
    %46 = vector.load %arg4[%c0_38, %c8, %c0_39, %c0_40] : memref<1x144x8x8xf32, #tpu.memory_space<vmem>>, vector<1x1x8x8xf32>
    %47 = vector.shape_cast %46 : vector<1x1x8x8xf32> to vector<8x8xf32>
    %48 = vector.shape_cast %45 : vector<8x8xf32> to vector<1x1x8x8xf32>
    tpu.vector_store %arg4[%c0_38, %c8, %c0_39, %c0_40], %48 {strides = array<i32>} : memref<1x144x8x8xf32, #tpu.memory_space<vmem>>, vector<1x1x8x8xf32>,
    %49 = vector.extract_strided_slice %3 {offsets = [0, 4], sizes = [8, 4], strides = [1, 1]} : vector<24x64xf32> to vector<8x4xf32>
    %c0_41 = arith.constant 0 : index
    %c0_42 = arith.constant 0 : index
    %50 = vector.load %arg3[%c0_41, %c0_42] : memref<4x24xf32, #tpu.memory_space<vmem>>, vector<4x24xf32>
    %cst_43 = arith.constant dense<0.000000e+00> : vector<8x24xf32>
    %51 = tpu.matmul %49, %50, %cst_43 {dimension_numbers = #tpu.dot_dimension_numbers<[1], [0], [0], [1], [0, 0, 1, 1], [], []>} : vector<8x4xf32>, vector<4x24xf32>, vector<8x24xf32> -> vector<8x24xf32>
    %52 = vector.extract_strided_slice %51 {offsets = [0, 0], sizes = [8, 8], strides = [1, 1]} : vector<8x24xf32> to vector<8x8xf32>
    %c0_44 = arith.constant 0 : index
    %c9 = arith.constant 9 : index
    %c0_45 = arith.constant 0 : index
    %c0_46 = arith.constant 0 : index
    %53 = vector.load %arg4[%c0_44, %c9, %c0_45, %c0_46] : memref<1x144x8x8xf32, #tpu.memory_space<vmem>>, vector<1x1x8x8xf32>
    %54 = vector.shape_cast %53 : vector<1x1x8x8xf32> to vector<8x8xf32>
    %55 = vector.shape_cast %52 : vector<8x8xf32> to vector<1x1x8x8xf32>
    tpu.vector_store %arg4[%c0_44, %c9, %c0_45, %c0_46], %55 {strides = array<i32>} : memref<1x144x8x8xf32, #tpu.memory_space<vmem>>, vector<1x1x8x8xf32>,
    %56 = vector.extract_strided_slice %51 {offsets = [0, 8], sizes = [8, 8], strides = [1, 1]} : vector<8x24xf32> to vector<8x8xf32>
    %c0_47 = arith.constant 0 : index
    %c10 = arith.constant 10 : index
    %c0_48 = arith.constant 0 : index
    %c0_49 = arith.constant 0 : index
    %57 = vector.load %arg4[%c0_47, %c10, %c0_48, %c0_49] : memref<1x144x8x8xf32, #tpu.memory_space<vmem>>, vector<1x1x8x8xf32>
    %58 = vector.shape_cast %57 : vector<1x1x8x8xf32> to vector<8x8xf32>
    %59 = vector.shape_cast %56 : vector<8x8xf32> to vector<1x1x8x8xf32>
    tpu.vector_store %arg4[%c0_47, %c10, %c0_48, %c0_49], %59 {strides = array<i32>} : memref<1x144x8x8xf32, #tpu.memory_space<vmem>>, vector<1x1x8x8xf32>,
    %60 = vector.extract_strided_slice %51 {offsets = [0, 16], sizes = [8, 8], strides = [1, 1]} : vector<8x24xf32> to vector<8x8xf32>
    %c0_50 = arith.constant 0 : index
    %c11 = arith.constant 11 : index
    %c0_51 = arith.constant 0 : index
    %c0_52 = arith.constant 0 : index
    %61 = vector.load %arg4[%c0_50, %c11, %c0_51, %c0_52] : memref<1x144x8x8xf32, #tpu.memory_space<vmem>>, vector<1x1x8x8xf32>
    %62 = vector.shape_cast %61 : vector<1x1x8x8xf32> to vector<8x8xf32>
    %63 = vector.shape_cast %60 : vector<8x8xf32> to vector<1x1x8x8xf32>
    tpu.vector_store %arg4[%c0_50, %c11, %c0_51, %c0_52], %63 {strides = array<i32>} : memref<1x144x8x8xf32, #tpu.memory_space<vmem>>, vector<1x1x8x8xf32>,
    %64 = vector.extract_strided_slice %3 {offsets = [8, 4], sizes = [8, 4], strides = [1, 1]} : vector<24x64xf32> to vector<8x4xf32>
    %c0_53 = arith.constant 0 : index
    %c0_54 = arith.constant 0 : index
    %65 = vector.load %arg3[%c0_53, %c0_54] : memref<4x24xf32, #tpu.memory_space<vmem>>, vector<4x24xf32>
    %cst_55 = arith.constant dense<0.000000e+00> : vector<8x24xf32>
    %66 = tpu.matmul %64, %65, %cst_55 {dimension_numbers = #tpu.dot_dimension_numbers<[1], [0], [0], [1], [0, 0, 1, 1], [], []>} : vector<8x4xf32>, vector<4x24xf32>, vector<8x24xf32> -> vector<8x24xf32>
    %67 = vector.extract_strided_slice %66 {offsets = [0, 0], sizes = [8, 8], strides = [1, 1]} : vector<8x24xf32> to vector<8x8xf32>
    %c0_56 = arith.constant 0 : index
    %c12 = arith.constant 12 : index
    %c0_57 = arith.constant 0 : index
    %c0_58 = arith.constant 0 : index
    %68 = vector.load %arg4[%c0_56, %c12, %c0_57, %c0_58] : memref<1x144x8x8xf32, #tpu.memory_space<vmem>>, vector<1x1x8x8xf32>
    %69 = vector.shape_cast %68 : vector<1x1x8x8xf32> to vector<8x8xf32>
    %70 = vector.shape_cast %67 : vector<8x8xf32> to vector<1x1x8x8xf32>
    tpu.vector_store %arg4[%c0_56, %c12, %c0_57, %c0_58], %70 {strides = array<i32>} : memref<1x144x8x8xf32, #tpu.memory_space<vmem>>, vector<1x1x8x8xf32>,
    %71 = vector.extract_strided_slice %66 {offsets = [0, 8], sizes = [8, 8], strides = [1, 1]} : vector<8x24xf32> to vector<8x8xf32>
    %c0_59 = arith.constant 0 : index
    %c13 = arith.constant 13 : index
    %c0_60 = arith.constant 0 : index
    %c0_61 = arith.constant 0 : index
    %72 = vector.load %arg4[%c0_59, %c13, %c0_60, %c0_61] : memref<1x144x8x8xf32, #tpu.memory_space<vmem>>, vector<1x1x8x8xf32>
    %73 = vector.shape_cast %72 : vector<1x1x8x8xf32> to vector<8x8xf32>
    %74 = vector.shape_cast %71 : vector<8x8xf32> to vector<1x1x8x8xf32>
    tpu.vector_store %arg4[%c0_59, %c13, %c0_60, %c0_61], %74 {strides = array<i32>} : memref<1x144x8x8xf32, #tpu.memory_space<vmem>>, vector<1x1x8x8xf32>,
    %75 = vector.extract_strided_slice %66 {offsets = [0, 16], sizes = [8, 8], strides = [1, 1]} : vector<8x24xf32> to vector<8x8xf32>
    %c0_62 = arith.constant 0 : index
    %c14 = arith.constant 14 : index
    %c0_63 = arith.constant 0 : index
    %c0_64 = arith.constant 0 : index
    %76 = vector.load %arg4[%c0_62, %c14, %c0_63, %c0_64] : memref<1x144x8x8xf32, #tpu.memory_space<vmem>>, vector<1x1x8x8xf32>
    %77 = vector.shape_cast %76 : vector<1x1x8x8xf32> to vector<8x8xf32>
    %78 = vector.shape_cast %75 : vector<8x8xf32> to vector<1x1x8x8xf32>
    tpu.vector_store %arg4[%c0_62, %c14, %c0_63, %c0_64], %78 {strides = array<i32>} : memref<1x144x8x8xf32, #tpu.memory_space<vmem>>, vector<1x1x8x8xf32>,
    %79 = vector.extract_strided_slice %3 {offsets = [16, 4], sizes = [8, 4], strides = [1, 1]} : vector<24x64xf32> to vector<8x4xf32>
    %c0_65 = arith.constant 0 : index
    %c0_66 = arith.constant 0 : index
    %80 = vector.load %arg3[%c0_65, %c0_66] : memref<4x24xf32, #tpu.memory_space<vmem>>, vector<4x24xf32>
    %cst_67 = arith.constant dense<0.000000e+00> : vector<8x24xf32>
    %81 = tpu.matmul %79, %80, %cst_67 {dimension_numbers = #tpu.dot_dimension_numbers<[1], [0], [0], [1], [0, 0, 1, 1], [], []>} : vector<8x4xf32>, vector<4x24xf32>, vector<8x24xf32> -> vector<8x24xf32>
    %82 = vector.extract_strided_slice %81 {offsets = [0, 0], sizes = [8, 8], strides = [1, 1]} : vector<8x24xf32> to vector<8x8xf32>
    %c0_68 = arith.constant 0 : index
    %c15 = arith.constant 15 : index
    %c0_69 = arith.constant 0 : index
    %c0_70 = arith.constant 0 : index
    %83 = vector.load %arg4[%c0_68, %c15, %c0_69, %c0_70] : memref<1x144x8x8xf32, #tpu.memory_space<vmem>>, vector<1x1x8x8xf32>
    %84 = vector.shape_cast %83 : vector<1x1x8x8xf32> to vector<8x8xf32>
    %85 = vector.shape_cast %82 : vector<8x8xf32> to vector<1x1x8x8xf32>
    tpu.vector_store %arg4[%c0_68, %c15, %c0_69, %c0_70], %85 {strides = array<i32>} : memref<1x144x8x8xf32, #tpu.memory_space<vmem>>, vector<1x1x8x8xf32>,
    %86 = vector.extract_strided_slice %81 {offsets = [0, 8], sizes = [8, 8], strides = [1, 1]} : vector<8x24xf32> to vector<8x8xf32>
    %c0_71 = arith.constant 0 : index
    %c16 = arith.constant 16 : index
    %c0_72 = arith.constant 0 : index
    %c0_73 = arith.constant 0 : index
    %87 = vector.load %arg4[%c0_71, %c16, %c0_72, %c0_73] : memref<1x144x8x8xf32, #tpu.memory_space<vmem>>, vector<1x1x8x8xf32>
    %88 = vector.shape_cast %87 : vector<1x1x8x8xf32> to vector<8x8xf32>
    %89 = vector.shape_cast %86 : vector<8x8xf32> to vector<1x1x8x8xf32>
    tpu.vector_store %arg4[%c0_71, %c16, %c0_72, %c0_73], %89 {strides = array<i32>} : memref<1x144x8x8xf32, #tpu.memory_space<vmem>>, vector<1x1x8x8xf32>,
    %90 = vector.extract_strided_slice %81 {offsets = [0, 16], sizes = [8, 8], strides = [1, 1]} : vector<8x24xf32> to vector<8x8xf32>
    %c0_74 = arith.constant 0 : index
    %c17 = arith.constant 17 : index
    %c0_75 = arith.constant 0 : index
    %c0_76 = arith.constant 0 : index
    %91 = vector.load %arg4[%c0_74, %c17, %c0_75, %c0_76] : memref<1x144x8x8xf32, #tpu.memory_space<vmem>>, vector<1x1x8x8xf32>
    %92 = vector.shape_cast %91 : vector<1x1x8x8xf32> to vector<8x8xf32>
    %93 = vector.shape_cast %90 : vector<8x8xf32> to vector<1x1x8x8xf32>
    tpu.vector_store %arg4[%c0_74, %c17, %c0_75, %c0_76], %93 {strides = array<i32>} : memref<1x144x8x8xf32, #tpu.memory_space<vmem>>, vector<1x1x8x8xf32>,
    %94 = vector.extract_strided_slice %3 {offsets = [0, 8], sizes = [8, 4], strides = [1, 1]} : vector<24x64xf32> to vector<8x4xf32>
    %c0_77 = arith.constant 0 : index
    %c0_78 = arith.constant 0 : index
    %95 = vector.load %arg3[%c0_77, %c0_78] : memref<4x24xf32, #tpu.memory_space<vmem>>, vector<4x24xf32>
    %cst_79 = arith.constant dense<0.000000e+00> : vector<8x24xf32>
    %96 = tpu.matmul %94, %95, %cst_79 {dimension_numbers = #tpu.dot_dimension_numbers<[1], [0], [0], [1], [0, 0, 1, 1], [], []>} : vector<8x4xf32>, vector<4x24xf32>, vector<8x24xf32> -> vector<8x24xf32>
    %97 = vector.extract_strided_slice %96 {offsets = [0, 0], sizes = [8, 8], strides = [1, 1]} : vector<8x24xf32> to vector<8x8xf32>
    %c0_80 = arith.constant 0 : index
    %c18 = arith.constant 18 : index
    %c0_81 = arith.constant 0 : index
    %c0_82 = arith.constant 0 : index
    %98 = vector.load %arg4[%c0_80, %c18, %c0_81, %c0_82] : memref<1x144x8x8xf32, #tpu.memory_space<vmem>>, vector<1x1x8x8xf32>
    %99 = vector.shape_cast %98 : vector<1x1x8x8xf32> to vector<8x8xf32>
    %100 = vector.shape_cast %97 : vector<8x8xf32> to vector<1x1x8x8xf32>
    tpu.vector_store %arg4[%c0_80, %c18, %c0_81, %c0_82], %100 {strides = array<i32>} : memref<1x144x8x8xf32, #tpu.memory_space<vmem>>, vector<1x1x8x8xf32>,
    %101 = vector.extract_strided_slice %96 {offsets = [0, 8], sizes = [8, 8], strides = [1, 1]} : vector<8x24xf32> to vector<8x8xf32>
    %c0_83 = arith.constant 0 : index
    %c19 = arith.constant 19 : index
    %c0_84 = arith.constant 0 : index
    %c0_85 = arith.constant 0 : index
    %102 = vector.load %arg4[%c0_83, %c19, %c0_84, %c0_85] : memref<1x144x8x8xf32, #tpu.memory_space<vmem>>, vector<1x1x8x8xf32>
    %103 = vector.shape_cast %102 : vector<1x1x8x8xf32> to vector<8x8xf32>
    %104 = vector.shape_cast %101 : vector<8x8xf32> to vector<1x1x8x8xf32>
    tpu.vector_store %arg4[%c0_83, %c19, %c0_84, %c0_85], %104 {strides = array<i32>} : memref<1x144x8x8xf32, #tpu.memory_space<vmem>>, vector<1x1x8x8xf32>,
    %105 = vector.extract_strided_slice %96 {offsets = [0, 16], sizes = [8, 8], strides = [1, 1]} : vector<8x24xf32> to vector<8x8xf32>
    %c0_86 = arith.constant 0 : index
    %c20 = arith.constant 20 : index
    %c0_87 = arith.constant 0 : index
    %c0_88 = arith.constant 0 : index
    %106 = vector.load %arg4[%c0_86, %c20, %c0_87, %c0_88] : memref<1x144x8x8xf32, #tpu.memory_space<vmem>>, vector<1x1x8x8xf32>
    %107 = vector.shape_cast %106 : vector<1x1x8x8xf32> to vector<8x8xf32>
    %108 = vector.shape_cast %105 : vector<8x8xf32> to vector<1x1x8x8xf32>
    tpu.vector_store %arg4[%c0_86, %c20, %c0_87, %c0_88], %108 {strides = array<i32>} : memref<1x144x8x8xf32, #tpu.memory_space<vmem>>, vector<1x1x8x8xf32>,
    %109 = vector.extract_strided_slice %3 {offsets = [8, 8], sizes = [8, 4], strides = [1, 1]} : vector<24x64xf32> to vector<8x4xf32>
    %c0_89 = arith.constant 0 : index
    %c0_90 = arith.constant 0 : index
    %110 = vector.load %arg3[%c0_89, %c0_90] : memref<4x24xf32, #tpu.memory_space<vmem>>, vector<4x24xf32>
    %cst_91 = arith.constant dense<0.000000e+00> : vector<8x24xf32>
    %111 = tpu.matmul %109, %110, %cst_91 {dimension_numbers = #tpu.dot_dimension_numbers<[1], [0], [0], [1], [0, 0, 1, 1], [], []>} : vector<8x4xf32>, vector<4x24xf32>, vector<8x24xf32> -> vector<8x24xf32>
    %112 = vector.extract_strided_slice %111 {offsets = [0, 0], sizes = [8, 8], strides = [1, 1]} : vector<8x24xf32> to vector<8x8xf32>
    %c0_92 = arith.constant 0 : index
    %c21 = arith.constant 21 : index
    %c0_93 = arith.constant 0 : index
    %c0_94 = arith.constant 0 : index
    %113 = vector.load %arg4[%c0_92, %c21, %c0_93, %c0_94] : memref<1x144x8x8xf32, #tpu.memory_space<vmem>>, vector<1x1x8x8xf32>
    %114 = vector.shape_cast %113 : vector<1x1x8x8xf32> to vector<8x8xf32>
    %115 = vector.shape_cast %112 : vector<8x8xf32> to vector<1x1x8x8xf32>
    tpu.vector_store %arg4[%c0_92, %c21, %c0_93, %c0_94], %115 {strides = array<i32>} : memref<1x144x8x8xf32, #tpu.memory_space<vmem>>, vector<1x1x8x8xf32>,
    %116 = vector.extract_strided_slice %111 {offsets = [0, 8], sizes = [8, 8], strides = [1, 1]} : vector<8x24xf32> to vector<8x8xf32>
    %c0_95 = arith.constant 0 : index
    %c22 = arith.constant 22 : index
    %c0_96 = arith.constant 0 : index
    %c0_97 = arith.constant 0 : index
    %117 = vector.load %arg4[%c0_95, %c22, %c0_96, %c0_97] : memref<1x144x8x8xf32, #tpu.memory_space<vmem>>, vector<1x1x8x8xf32>
    %118 = vector.shape_cast %117 : vector<1x1x8x8xf32> to vector<8x8xf32>
    %119 = vector.shape_cast %116 : vector<8x8xf32> to vector<1x1x8x8xf32>
    tpu.vector_store %arg4[%c0_95, %c22, %c0_96, %c0_97], %119 {strides = array<i32>} : memref<1x144x8x8xf32, #tpu.memory_space<vmem>>, vector<1x1x8x8xf32>,
    %120 = vector.extract_strided_slice %111 {offsets = [0, 16], sizes = [8, 8], strides = [1, 1]} : vector<8x24xf32> to vector<8x8xf32>
    %c0_98 = arith.constant 0 : index
    %c23 = arith.constant 23 : index
    %c0_99 = arith.constant 0 : index
    %c0_100 = arith.constant 0 : index
    %121 = vector.load %arg4[%c0_98, %c23, %c0_99, %c0_100] : memref<1x144x8x8xf32, #tpu.memory_space<vmem>>, vector<1x1x8x8xf32>
    %122 = vector.shape_cast %121 : vector<1x1x8x8xf32> to vector<8x8xf32>
    %123 = vector.shape_cast %120 : vector<8x8xf32> to vector<1x1x8x8xf32>
    tpu.vector_store %arg4[%c0_98, %c23, %c0_99, %c0_100], %123 {strides = array<i32>} : memref<1x144x8x8xf32, #tpu.memory_space<vmem>>, vector<1x1x8x8xf32>,
    %124 = vector.extract_strided_slice %3 {offsets = [16, 8], sizes = [8, 4], strides = [1, 1]} : vector<24x64xf32> to vector<8x4xf32>
    %c0_101 = arith.constant 0 : index
    %c0_102 = arith.constant 0 : index
    %125 = vector.load %arg3[%c0_101, %c0_102] : memref<4x24xf32, #tpu.memory_space<vmem>>, vector<4x24xf32>
    %cst_103 = arith.constant dense<0.000000e+00> : vector<8x24xf32>
    %126 = tpu.matmul %124, %125, %cst_103 {dimension_numbers = #tpu.dot_dimension_numbers<[1], [0], [0], [1], [0, 0, 1, 1], [], []>} : vector<8x4xf32>, vector<4x24xf32>, vector<8x24xf32> -> vector<8x24xf32>
    %127 = vector.extract_strided_slice %126 {offsets = [0, 0], sizes = [8, 8], strides = [1, 1]} : vector<8x24xf32> to vector<8x8xf32>
    %c0_104 = arith.constant 0 : index
    %c24 = arith.constant 24 : index
    %c0_105 = arith.constant 0 : index
    %c0_106 = arith.constant 0 : index
    %128 = vector.load %arg4[%c0_104, %c24, %c0_105, %c0_106] : memref<1x144x8x8xf32, #tpu.memory_space<vmem>>, vector<1x1x8x8xf32>
    %129 = vector.shape_cast %128 : vector<1x1x8x8xf32> to vector<8x8xf32>
    %130 = vector.shape_cast %127 : vector<8x8xf32> to vector<1x1x8x8xf32>
    tpu.vector_store %arg4[%c0_104, %c24, %c0_105, %c0_106], %130 {strides = array<i32>} : memref<1x144x8x8xf32, #tpu.memory_space<vmem>>, vector<1x1x8x8xf32>,
    %131 = vector.extract_strided_slice %126 {offsets = [0, 8], sizes = [8, 8], strides = [1, 1]} : vector<8x24xf32> to vector<8x8xf32>
    %c0_107 = arith.constant 0 : index
    %c25 = arith.constant 25 : index
    %c0_108 = arith.constant 0 : index
    %c0_109 = arith.constant 0 : index
    %132 = vector.load %arg4[%c0_107, %c25, %c0_108, %c0_109] : memref<1x144x8x8xf32, #tpu.memory_space<vmem>>, vector<1x1x8x8xf32>
    %133 = vector.shape_cast %132 : vector<1x1x8x8xf32> to vector<8x8xf32>
    %134 = vector.shape_cast %131 : vector<8x8xf32> to vector<1x1x8x8xf32>
    tpu.vector_store %arg4[%c0_107, %c25, %c0_108, %c0_109], %134 {strides = array<i32>} : memref<1x144x8x8xf32, #tpu.memory_space<vmem>>, vector<1x1x8x8xf32>,
    %135 = vector.extract_strided_slice %126 {offsets = [0, 16], sizes = [8, 8], strides = [1, 1]} : vector<8x24xf32> to vector<8x8xf32>
    %c0_110 = arith.constant 0 : index
    %c26 = arith.constant 26 : index
    %c0_111 = arith.constant 0 : index
    %c0_112 = arith.constant 0 : index
    %136 = vector.load %arg4[%c0_110, %c26, %c0_111, %c0_112] : memref<1x144x8x8xf32, #tpu.memory_space<vmem>>, vector<1x1x8x8xf32>
    %137 = vector.shape_cast %136 : vector<1x1x8x8xf32> to vector<8x8xf32>
    %138 = vector.shape_cast %135 : vector<8x8xf32> to vector<1x1x8x8xf32>
    tpu.vector_store %arg4[%c0_110, %c26, %c0_111, %c0_112], %138 {strides = array<i32>} : memref<1x144x8x8xf32, #tpu.memory_space<vmem>>, vector<1x1x8x8xf32>,
    %139 = vector.extract_strided_slice %3 {offsets = [0, 12], sizes = [8, 4], strides = [1, 1]} : vector<24x64xf32> to vector<8x4xf32>
    %c0_113 = arith.constant 0 : index
    %c0_114 = arith.constant 0 : index
    %140 = vector.load %arg3[%c0_113, %c0_114] : memref<4x24xf32, #tpu.memory_space<vmem>>, vector<4x24xf32>
    %cst_115 = arith.constant dense<0.000000e+00> : vector<8x24xf32>
    %141 = tpu.matmul %139, %140, %cst_115 {dimension_numbers = #tpu.dot_dimension_numbers<[1], [0], [0], [1], [0, 0, 1, 1], [], []>} : vector<8x4xf32>, vector<4x24xf32>, vector<8x24xf32> -> vector<8x24xf32>
    %142 = vector.extract_strided_slice %141 {offsets = [0, 0], sizes = [8, 8], strides = [1, 1]} : vector<8x24xf32> to vector<8x8xf32>
    %c0_116 = arith.constant 0 : index
    %c27 = arith.constant 27 : index
    %c0_117 = arith.constant 0 : index
    %c0_118 = arith.constant 0 : index
    %143 = vector.load %arg4[%c0_116, %c27, %c0_117, %c0_118] : memref<1x144x8x8xf32, #tpu.memory_space<vmem>>, vector<1x1x8x8xf32>
    %144 = vector.shape_cast %143 : vector<1x1x8x8xf32> to vector<8x8xf32>
    %145 = vector.shape_cast %142 : vector<8x8xf32> to vector<1x1x8x8xf32>
    tpu.vector_store %arg4[%c0_116, %c27, %c0_117, %c0_118], %145 {strides = array<i32>} : memref<1x144x8x8xf32, #tpu.memory_space<vmem>>, vector<1x1x8x8xf32>,
    %146 = vector.extract_strided_slice %141 {offsets = [0, 8], sizes = [8, 8], strides = [1, 1]} : vector<8x24xf32> to vector<8x8xf32>
    %c0_119 = arith.constant 0 : index
    %c28 = arith.constant 28 : index
    %c0_120 = arith.constant 0 : index
    %c0_121 = arith.constant 0 : index
    %147 = vector.load %arg4[%c0_119, %c28, %c0_120, %c0_121] : memref<1x144x8x8xf32, #tpu.memory_space<vmem>>, vector<1x1x8x8xf32>
    %148 = vector.shape_cast %147 : vector<1x1x8x8xf32> to vector<8x8xf32>
    %149 = vector.shape_cast %146 : vector<8x8xf32> to vector<1x1x8x8xf32>
    tpu.vector_store %arg4[%c0_119, %c28, %c0_120, %c0_121], %149 {strides = array<i32>} : memref<1x144x8x8xf32, #tpu.memory_space<vmem>>, vector<1x1x8x8xf32>,
    %150 = vector.extract_strided_slice %141 {offsets = [0, 16], sizes = [8, 8], strides = [1, 1]} : vector<8x24xf32> to vector<8x8xf32>
    %c0_122 = arith.constant 0 : index
    %c29 = arith.constant 29 : index
    %c0_123 = arith.constant 0 : index
    %c0_124 = arith.constant 0 : index
    %151 = vector.load %arg4[%c0_122, %c29, %c0_123, %c0_124] : memref<1x144x8x8xf32, #tpu.memory_space<vmem>>, vector<1x1x8x8xf32>
    %152 = vector.shape_cast %151 : vector<1x1x8x8xf32> to vector<8x8xf32>
    %153 = vector.shape_cast %150 : vector<8x8xf32> to vector<1x1x8x8xf32>
    tpu.vector_store %arg4[%c0_122, %c29, %c0_123, %c0_124], %153 {strides = array<i32>} : memref<1x144x8x8xf32, #tpu.memory_space<vmem>>, vector<1x1x8x8xf32>,
    %154 = vector.extract_strided_slice %3 {offsets = [8, 12], sizes = [8, 4], strides = [1, 1]} : vector<24x64xf32> to vector<8x4xf32>
    %c0_125 = arith.constant 0 : index
    %c0_126 = arith.constant 0 : index
    %155 = vector.load %arg3[%c0_125, %c0_126] : memref<4x24xf32, #tpu.memory_space<vmem>>, vector<4x24xf32>
    %cst_127 = arith.constant dense<0.000000e+00> : vector<8x24xf32>
    %156 = tpu.matmul %154, %155, %cst_127 {dimension_numbers = #tpu.dot_dimension_numbers<[1], [0], [0], [1], [0, 0, 1, 1], [], []>} : vector<8x4xf32>, vector<4x24xf32>, vector<8x24xf32> -> vector<8x24xf32>
    %157 = vector.extract_strided_slice %156 {offsets = [0, 0], sizes = [8, 8], strides = [1, 1]} : vector<8x24xf32> to vector<8x8xf32>
    %c0_128 = arith.constant 0 : index
    %c30 = arith.constant 30 : index
    %c0_129 = arith.constant 0 : index
    %c0_130 = arith.constant 0 : index
    %158 = vector.load %arg4[%c0_128, %c30, %c0_129, %c0_130] : memref<1x144x8x8xf32, #tpu.memory_space<vmem>>, vector<1x1x8x8xf32>
    %159 = vector.shape_cast %158 : vector<1x1x8x8xf32> to vector<8x8xf32>
    %160 = vector.shape_cast %157 : vector<8x8xf32> to vector<1x1x8x8xf32>
    tpu.vector_store %arg4[%c0_128, %c30, %c0_129, %c0_130], %160 {strides = array<i32>} : memref<1x144x8x8xf32, #tpu.memory_space<vmem>>, vector<1x1x8x8xf32>,
    %161 = vector.extract_strided_slice %156 {offsets = [0, 8], sizes = [8, 8], strides = [1, 1]} : vector<8x24xf32> to vector<8x8xf32>
    %c0_131 = arith.constant 0 : index
    %c31 = arith.constant 31 : index
    %c0_132 = arith.constant 0 : index
    %c0_133 = arith.constant 0 : index
    %162 = vector.load %arg4[%c0_131, %c31, %c0_132, %c0_133] : memref<1x144x8x8xf32, #tpu.memory_space<vmem>>, vector<1x1x8x8xf32>
    %163 = vector.shape_cast %162 : vector<1x1x8x8xf32> to vector<8x8xf32>
    %164 = vector.shape_cast %161 : vector<8x8xf32> to vector<1x1x8x8xf32>
    tpu.vector_store %arg4[%c0_131, %c31, %c0_132, %c0_133], %164 {strides = array<i32>} : memref<1x144x8x8xf32, #tpu.memory_space<vmem>>, vector<1x1x8x8xf32>,
    %165 = vector.extract_strided_slice %156 {offsets = [0, 16], sizes = [8, 8], strides = [1, 1]} : vector<8x24xf32> to vector<8x8xf32>
    %c0_134 = arith.constant 0 : index
    %c32 = arith.constant 32 : index
    %c0_135 = arith.constant 0 : index
    %c0_136 = arith.constant 0 : index
    %166 = vector.load %arg4[%c0_134, %c32, %c0_135, %c0_136] : memref<1x144x8x8xf32, #tpu.memory_space<vmem>>, vector<1x1x8x8xf32>
    %167 = vector.shape_cast %166 : vector<1x1x8x8xf32> to vector<8x8xf32>
    %168 = vector.shape_cast %165 : vector<8x8xf32> to vector<1x1x8x8xf32>
    tpu.vector_store %arg4[%c0_134, %c32, %c0_135, %c0_136], %168 {strides = array<i32>} : memref<1x144x8x8xf32, #tpu.memory_space<vmem>>, vector<1x1x8x8xf32>,
    %169 = vector.extract_strided_slice %3 {offsets = [16, 12], sizes = [8, 4], strides = [1, 1]} : vector<24x64xf32> to vector<8x4xf32>
    %c0_137 = arith.constant 0 : index
    %c0_138 = arith.constant 0 : index
    %170 = vector.load %arg3[%c0_137, %c0_138] : memref<4x24xf32, #tpu.memory_space<vmem>>, vector<4x24xf32>
    %cst_139 = arith.constant dense<0.000000e+00> : vector<8x24xf32>
    %171 = tpu.matmul %169, %170, %cst_139 {dimension_numbers = #tpu.dot_dimension_numbers<[1], [0], [0], [1], [0, 0, 1, 1], [], []>} : vector<8x4xf32>, vector<4x24xf32>, vector<8x24xf32> -> vector<8x24xf32>
    %172 = vector.extract_strided_slice %171 {offsets = [0, 0], sizes = [8, 8], strides = [1, 1]} : vector<8x24xf32> to vector<8x8xf32>
    %c0_140 = arith.constant 0 : index
    %c33 = arith.constant 33 : index
    %c0_141 = arith.constant 0 : index
    %c0_142 = arith.constant 0 : index
    %173 = vector.load %arg4[%c0_140, %c33, %c0_141, %c0_142] : memref<1x144x8x8xf32, #tpu.memory_space<vmem>>, vector<1x1x8x8xf32>
    %174 = vector.shape_cast %173 : vector<1x1x8x8xf32> to vector<8x8xf32>
    %175 = vector.shape_cast %172 : vector<8x8xf32> to vector<1x1x8x8xf32>
    tpu.vector_store %arg4[%c0_140, %c33, %c0_141, %c0_142], %175 {strides = array<i32>} : memref<1x144x8x8xf32, #tpu.memory_space<vmem>>, vector<1x1x8x8xf32>,
    %176 = vector.extract_strided_slice %171 {offsets = [0, 8], sizes = [8, 8], strides = [1, 1]} : vector<8x24xf32> to vector<8x8xf32>
    %c0_143 = arith.constant 0 : index
    %c34 = arith.constant 34 : index
    %c0_144 = arith.constant 0 : index
    %c0_145 = arith.constant 0 : index
    %177 = vector.load %arg4[%c0_143, %c34, %c0_144, %c0_145] : memref<1x144x8x8xf32, #tpu.memory_space<vmem>>, vector<1x1x8x8xf32>
    %178 = vector.shape_cast %177 : vector<1x1x8x8xf32> to vector<8x8xf32>
    %179 = vector.shape_cast %176 : vector<8x8xf32> to vector<1x1x8x8xf32>
    tpu.vector_store %arg4[%c0_143, %c34, %c0_144, %c0_145], %179 {strides = array<i32>} : memref<1x144x8x8xf32, #tpu.memory_space<vmem>>, vector<1x1x8x8xf32>,
    %180 = vector.extract_strided_slice %171 {offsets = [0, 16], sizes = [8, 8], strides = [1, 1]} : vector<8x24xf32> to vector<8x8xf32>
    %c0_146 = arith.constant 0 : index
    %c35 = arith.constant 35 : index
    %c0_147 = arith.constant 0 : index
    %c0_148 = arith.constant 0 : index
    %181 = vector.load %arg4[%c0_146, %c35, %c0_147, %c0_148] : memref<1x144x8x8xf32, #tpu.memory_space<vmem>>, vector<1x1x8x8xf32>
    %182 = vector.shape_cast %181 : vector<1x1x8x8xf32> to vector<8x8xf32>
    %183 = vector.shape_cast %180 : vector<8x8xf32> to vector<1x1x8x8xf32>
    tpu.vector_store %arg4[%c0_146, %c35, %c0_147, %c0_148], %183 {strides = array<i32>} : memref<1x144x8x8xf32, #tpu.memory_space<vmem>>, vector<1x1x8x8xf32>,
    %184 = vector.extract_strided_slice %3 {offsets = [0, 16], sizes = [8, 4], strides = [1, 1]} : vector<24x64xf32> to vector<8x4xf32>
    %c0_149 = arith.constant 0 : index
    %c0_150 = arith.constant 0 : index
    %185 = vector.load %arg3[%c0_149, %c0_150] : memref<4x24xf32, #tpu.memory_space<vmem>>, vector<4x24xf32>
    %cst_151 = arith.constant dense<0.000000e+00> : vector<8x24xf32>
    %186 = tpu.matmul %184, %185, %cst_151 {dimension_numbers = #tpu.dot_dimension_numbers<[1], [0], [0], [1], [0, 0, 1, 1], [], []>} : vector<8x4xf32>, vector<4x24xf32>, vector<8x24xf32> -> vector<8x24xf32>
    %187 = vector.extract_strided_slice %186 {offsets = [0, 0], sizes = [8, 8], strides = [1, 1]} : vector<8x24xf32> to vector<8x8xf32>
    %c0_152 = arith.constant 0 : index
    %c36 = arith.constant 36 : index
    %c0_153 = arith.constant 0 : index
    %c0_154 = arith.constant 0 : index
    %188 = vector.load %arg4[%c0_152, %c36, %c0_153, %c0_154] : memref<1x144x8x8xf32, #tpu.memory_space<vmem>>, vector<1x1x8x8xf32>
    %189 = vector.shape_cast %188 : vector<1x1x8x8xf32> to vector<8x8xf32>
    %190 = vector.shape_cast %187 : vector<8x8xf32> to vector<1x1x8x8xf32>
    tpu.vector_store %arg4[%c0_152, %c36, %c0_153, %c0_154], %190 {strides = array<i32>} : memref<1x144x8x8xf32, #tpu.memory_space<vmem>>, vector<1x1x8x8xf32>,
    %191 = vector.extract_strided_slice %186 {offsets = [0, 8], sizes = [8, 8], strides = [1, 1]} : vector<8x24xf32> to vector<8x8xf32>
    %c0_155 = arith.constant 0 : index
    %c37 = arith.constant 37 : index
    %c0_156 = arith.constant 0 : index
    %c0_157 = arith.constant 0 : index
    %192 = vector.load %arg4[%c0_155, %c37, %c0_156, %c0_157] : memref<1x144x8x8xf32, #tpu.memory_space<vmem>>, vector<1x1x8x8xf32>
    %193 = vector.shape_cast %192 : vector<1x1x8x8xf32> to vector<8x8xf32>
    %194 = vector.shape_cast %191 : vector<8x8xf32> to vector<1x1x8x8xf32>
    tpu.vector_store %arg4[%c0_155, %c37, %c0_156, %c0_157], %194 {strides = array<i32>} : memref<1x144x8x8xf32, #tpu.memory_space<vmem>>, vector<1x1x8x8xf32>,
    %195 = vector.extract_strided_slice %186 {offsets = [0, 16], sizes = [8, 8], strides = [1, 1]} : vector<8x24xf32> to vector<8x8xf32>
    %c0_158 = arith.constant 0 : index
    %c38 = arith.constant 38 : index
    %c0_159 = arith.constant 0 : index
    %c0_160 = arith.constant 0 : index
    %196 = vector.load %arg4[%c0_158, %c38, %c0_159, %c0_160] : memref<1x144x8x8xf32, #tpu.memory_space<vmem>>, vector<1x1x8x8xf32>
    %197 = vector.shape_cast %196 : vector<1x1x8x8xf32> to vector<8x8xf32>
    %198 = vector.shape_cast %195 : vector<8x8xf32> to vector<1x1x8x8xf32>
    tpu.vector_store %arg4[%c0_158, %c38, %c0_159, %c0_160], %198 {strides = array<i32>} : memref<1x144x8x8xf32, #tpu.memory_space<vmem>>, vector<1x1x8x8xf32>,
    %199 = vector.extract_strided_slice %3 {offsets = [8, 16], sizes = [8, 4], strides = [1, 1]} : vector<24x64xf32> to vector<8x4xf32>
    %c0_161 = arith.constant 0 : index
    %c0_162 = arith.constant 0 : index
    %200 = vector.load %arg3[%c0_161, %c0_162] : memref<4x24xf32, #tpu.memory_space<vmem>>, vector<4x24xf32>
    %cst_163 = arith.constant dense<0.000000e+00> : vector<8x24xf32>
    %201 = tpu.matmul %199, %200, %cst_163 {dimension_numbers = #tpu.dot_dimension_numbers<[1], [0], [0], [1], [0, 0, 1, 1], [], []>} : vector<8x4xf32>, vector<4x24xf32>, vector<8x24xf32> -> vector<8x24xf32>
    %202 = vector.extract_strided_slice %201 {offsets = [0, 0], sizes = [8, 8], strides = [1, 1]} : vector<8x24xf32> to vector<8x8xf32>
    %c0_164 = arith.constant 0 : index
    %c39 = arith.constant 39 : index
    %c0_165 = arith.constant 0 : index
    %c0_166 = arith.constant 0 : index
    %203 = vector.load %arg4[%c0_164, %c39, %c0_165, %c0_166] : memref<1x144x8x8xf32, #tpu.memory_space<vmem>>, vector<1x1x8x8xf32>
    %204 = vector.shape_cast %203 : vector<1x1x8x8xf32> to vector<8x8xf32>
    %205 = vector.shape_cast %202 : vector<8x8xf32> to vector<1x1x8x8xf32>
    tpu.vector_store %arg4[%c0_164, %c39, %c0_165, %c0_166], %205 {strides = array<i32>} : memref<1x144x8x8xf32, #tpu.memory_space<vmem>>, vector<1x1x8x8xf32>,
    %206 = vector.extract_strided_slice %201 {offsets = [0, 8], sizes = [8, 8], strides = [1, 1]} : vector<8x24xf32> to vector<8x8xf32>
    %c0_167 = arith.constant 0 : index
    %c40 = arith.constant 40 : index
    %c0_168 = arith.constant 0 : index
    %c0_169 = arith.constant 0 : index
    %207 = vector.load %arg4[%c0_167, %c40, %c0_168, %c0_169] : memref<1x144x8x8xf32, #tpu.memory_space<vmem>>, vector<1x1x8x8xf32>
    %208 = vector.shape_cast %207 : vector<1x1x8x8xf32> to vector<8x8xf32>
    %209 = vector.shape_cast %206 : vector<8x8xf32> to vector<1x1x8x8xf32>
    tpu.vector_store %arg4[%c0_167, %c40, %c0_168, %c0_169], %209 {strides = array<i32>} : memref<1x144x8x8xf32, #tpu.memory_space<vmem>>, vector<1x1x8x8xf32>,
    %210 = vector.extract_strided_slice %201 {offsets = [0, 16], sizes = [8, 8], strides = [1, 1]} : vector<8x24xf32> to vector<8x8xf32>
    %c0_170 = arith.constant 0 : index
    %c41 = arith.constant 41 : index
    %c0_171 = arith.constant 0 : index
    %c0_172 = arith.constant 0 : index
    %211 = vector.load %arg4[%c0_170, %c41, %c0_171, %c0_172] : memref<1x144x8x8xf32, #tpu.memory_space<vmem>>, vector<1x1x8x8xf32>
    %212 = vector.shape_cast %211 : vector<1x1x8x8xf32> to vector<8x8xf32>
    %213 = vector.shape_cast %210 : vector<8x8xf32> to vector<1x1x8x8xf32>
    tpu.vector_store %arg4[%c0_170, %c41, %c0_171, %c0_172], %213 {strides = array<i32>} : memref<1x144x8x8xf32, #tpu.memory_space<vmem>>, vector<1x1x8x8xf32>,
    %214 = vector.extract_strided_slice %3 {offsets = [16, 16], sizes = [8, 4], strides = [1, 1]} : vector<24x64xf32> to vector<8x4xf32>
    %c0_173 = arith.constant 0 : index
    %c0_174 = arith.constant 0 : index
    %215 = vector.load %arg3[%c0_173, %c0_174] : memref<4x24xf32, #tpu.memory_space<vmem>>, vector<4x24xf32>
    %cst_175 = arith.constant dense<0.000000e+00> : vector<8x24xf32>
    %216 = tpu.matmul %214, %215, %cst_175 {dimension_numbers = #tpu.dot_dimension_numbers<[1], [0], [0], [1], [0, 0, 1, 1], [], []>} : vector<8x4xf32>, vector<4x24xf32>, vector<8x24xf32> -> vector<8x24xf32>
    %217 = vector.extract_strided_slice %216 {offsets = [0, 0], sizes = [8, 8], strides = [1, 1]} : vector<8x24xf32> to vector<8x8xf32>
    %c0_176 = arith.constant 0 : index
    %c42 = arith.constant 42 : index
    %c0_177 = arith.constant 0 : index
    %c0_178 = arith.constant 0 : index
    %218 = vector.load %arg4[%c0_176, %c42, %c0_177, %c0_178] : memref<1x144x8x8xf32, #tpu.memory_space<vmem>>, vector<1x1x8x8xf32>
    %219 = vector.shape_cast %218 : vector<1x1x8x8xf32> to vector<8x8xf32>
    %220 = vector.shape_cast %217 : vector<8x8xf32> to vector<1x1x8x8xf32>
    tpu.vector_store %arg4[%c0_176, %c42, %c0_177, %c0_178], %220 {strides = array<i32>} : memref<1x144x8x8xf32, #tpu.memory_space<vmem>>, vector<1x1x8x8xf32>,
    %221 = vector.extract_strided_slice %216 {offsets = [0, 8], sizes = [8, 8], strides = [1, 1]} : vector<8x24xf32> to vector<8x8xf32>
    %c0_179 = arith.constant 0 : index
    %c43 = arith.constant 43 : index
    %c0_180 = arith.constant 0 : index
    %c0_181 = arith.constant 0 : index
    %222 = vector.load %arg4[%c0_179, %c43, %c0_180, %c0_181] : memref<1x144x8x8xf32, #tpu.memory_space<vmem>>, vector<1x1x8x8xf32>
    %223 = vector.shape_cast %222 : vector<1x1x8x8xf32> to vector<8x8xf32>
    %224 = vector.shape_cast %221 : vector<8x8xf32> to vector<1x1x8x8xf32>
    tpu.vector_store %arg4[%c0_179, %c43, %c0_180, %c0_181], %224 {strides = array<i32>} : memref<1x144x8x8xf32, #tpu.memory_space<vmem>>, vector<1x1x8x8xf32>,
    %225 = vector.extract_strided_slice %216 {offsets = [0, 16], sizes = [8, 8], strides = [1, 1]} : vector<8x24xf32> to vector<8x8xf32>
    %c0_182 = arith.constant 0 : index
    %c44 = arith.constant 44 : index
    %c0_183 = arith.constant 0 : index
    %c0_184 = arith.constant 0 : index
    %226 = vector.load %arg4[%c0_182, %c44, %c0_183, %c0_184] : memref<1x144x8x8xf32, #tpu.memory_space<vmem>>, vector<1x1x8x8xf32>
    %227 = vector.shape_cast %226 : vector<1x1x8x8xf32> to vector<8x8xf32>
    %228 = vector.shape_cast %225 : vector<8x8xf32> to vector<1x1x8x8xf32>
    tpu.vector_store %arg4[%c0_182, %c44, %c0_183, %c0_184], %228 {strides = array<i32>} : memref<1x144x8x8xf32, #tpu.memory_space<vmem>>, vector<1x1x8x8xf32>,
    %229 = vector.extract_strided_slice %3 {offsets = [0, 20], sizes = [8, 4], strides = [1, 1]} : vector<24x64xf32> to vector<8x4xf32>
    %c0_185 = arith.constant 0 : index
    %c0_186 = arith.constant 0 : index
    %230 = vector.load %arg3[%c0_185, %c0_186] : memref<4x24xf32, #tpu.memory_space<vmem>>, vector<4x24xf32>
    %cst_187 = arith.constant dense<0.000000e+00> : vector<8x24xf32>
    %231 = tpu.matmul %229, %230, %cst_187 {dimension_numbers = #tpu.dot_dimension_numbers<[1], [0], [0], [1], [0, 0, 1, 1], [], []>} : vector<8x4xf32>, vector<4x24xf32>, vector<8x24xf32> -> vector<8x24xf32>
    %232 = vector.extract_strided_slice %231 {offsets = [0, 0], sizes = [8, 8], strides = [1, 1]} : vector<8x24xf32> to vector<8x8xf32>
    %c0_188 = arith.constant 0 : index
    %c45 = arith.constant 45 : index
    %c0_189 = arith.constant 0 : index
    %c0_190 = arith.constant 0 : index
    %233 = vector.load %arg4[%c0_188, %c45, %c0_189, %c0_190] : memref<1x144x8x8xf32, #tpu.memory_space<vmem>>, vector<1x1x8x8xf32>
    %234 = vector.shape_cast %233 : vector<1x1x8x8xf32> to vector<8x8xf32>
    %235 = vector.shape_cast %232 : vector<8x8xf32> to vector<1x1x8x8xf32>
    tpu.vector_store %arg4[%c0_188, %c45, %c0_189, %c0_190], %235 {strides = array<i32>} : memref<1x144x8x8xf32, #tpu.memory_space<vmem>>, vector<1x1x8x8xf32>,
    %236 = vector.extract_strided_slice %231 {offsets = [0, 8], sizes = [8, 8], strides = [1, 1]} : vector<8x24xf32> to vector<8x8xf32>
    %c0_191 = arith.constant 0 : index
    %c46 = arith.constant 46 : index
    %c0_192 = arith.constant 0 : index
    %c0_193 = arith.constant 0 : index
    %237 = vector.load %arg4[%c0_191, %c46, %c0_192, %c0_193] : memref<1x144x8x8xf32, #tpu.memory_space<vmem>>, vector<1x1x8x8xf32>
    %238 = vector.shape_cast %237 : vector<1x1x8x8xf32> to vector<8x8xf32>
    %239 = vector.shape_cast %236 : vector<8x8xf32> to vector<1x1x8x8xf32>
    tpu.vector_store %arg4[%c0_191, %c46, %c0_192, %c0_193], %239 {strides = array<i32>} : memref<1x144x8x8xf32, #tpu.memory_space<vmem>>, vector<1x1x8x8xf32>,
    %240 = vector.extract_strided_slice %231 {offsets = [0, 16], sizes = [8, 8], strides = [1, 1]} : vector<8x24xf32> to vector<8x8xf32>
    %c0_194 = arith.constant 0 : index
    %c47 = arith.constant 47 : index
    %c0_195 = arith.constant 0 : index
    %c0_196 = arith.constant 0 : index
    %241 = vector.load %arg4[%c0_194, %c47, %c0_195, %c0_196] : memref<1x144x8x8xf32, #tpu.memory_space<vmem>>, vector<1x1x8x8xf32>
    %242 = vector.shape_cast %241 : vector<1x1x8x8xf32> to vector<8x8xf32>
    %243 = vector.shape_cast %240 : vector<8x8xf32> to vector<1x1x8x8xf32>
    tpu.vector_store %arg4[%c0_194, %c47, %c0_195, %c0_196], %243 {strides = array<i32>} : memref<1x144x8x8xf32, #tpu.memory_space<vmem>>, vector<1x1x8x8xf32>,
    %244 = vector.extract_strided_slice %3 {offsets = [8, 20], sizes = [8, 4], strides = [1, 1]} : vector<24x64xf32> to vector<8x4xf32>
    %c0_197 = arith.constant 0 : index
    %c0_198 = arith.constant 0 : index
    %245 = vector.load %arg3[%c0_197, %c0_198] : memref<4x24xf32, #tpu.memory_space<vmem>>, vector<4x24xf32>
    %cst_199 = arith.constant dense<0.000000e+00> : vector<8x24xf32>
    %246 = tpu.matmul %244, %245, %cst_199 {dimension_numbers = #tpu.dot_dimension_numbers<[1], [0], [0], [1], [0, 0, 1, 1], [], []>} : vector<8x4xf32>, vector<4x24xf32>, vector<8x24xf32> -> vector<8x24xf32>
    %247 = vector.extract_strided_slice %246 {offsets = [0, 0], sizes = [8, 8], strides = [1, 1]} : vector<8x24xf32> to vector<8x8xf32>
    %c0_200 = arith.constant 0 : index
    %c48 = arith.constant 48 : index
    %c0_201 = arith.constant 0 : index
    %c0_202 = arith.constant 0 : index
    %248 = vector.load %arg4[%c0_200, %c48, %c0_201, %c0_202] : memref<1x144x8x8xf32, #tpu.memory_space<vmem>>, vector<1x1x8x8xf32>
    %249 = vector.shape_cast %248 : vector<1x1x8x8xf32> to vector<8x8xf32>
    %250 = vector.shape_cast %247 : vector<8x8xf32> to vector<1x1x8x8xf32>
    tpu.vector_store %arg4[%c0_200, %c48, %c0_201, %c0_202], %250 {strides = array<i32>} : memref<1x144x8x8xf32, #tpu.memory_space<vmem>>, vector<1x1x8x8xf32>,
    %251 = vector.extract_strided_slice %246 {offsets = [0, 8], sizes = [8, 8], strides = [1, 1]} : vector<8x24xf32> to vector<8x8xf32>
    %c0_203 = arith.constant 0 : index
    %c49 = arith.constant 49 : index
    %c0_204 = arith.constant 0 : index
    %c0_205 = arith.constant 0 : index
    %252 = vector.load %arg4[%c0_203, %c49, %c0_204, %c0_205] : memref<1x144x8x8xf32, #tpu.memory_space<vmem>>, vector<1x1x8x8xf32>
    %253 = vector.shape_cast %252 : vector<1x1x8x8xf32> to vector<8x8xf32>
    %254 = vector.shape_cast %251 : vector<8x8xf32> to vector<1x1x8x8xf32>
    tpu.vector_store %arg4[%c0_203, %c49, %c0_204, %c0_205], %254 {strides = array<i32>} : memref<1x144x8x8xf32, #tpu.memory_space<vmem>>, vector<1x1x8x8xf32>,
    %255 = vector.extract_strided_slice %246 {offsets = [0, 16], sizes = [8, 8], strides = [1, 1]} : vector<8x24xf32> to vector<8x8xf32>
    %c0_206 = arith.constant 0 : index
    %c50 = arith.constant 50 : index
    %c0_207 = arith.constant 0 : index
    %c0_208 = arith.constant 0 : index
    %256 = vector.load %arg4[%c0_206, %c50, %c0_207, %c0_208] : memref<1x144x8x8xf32, #tpu.memory_space<vmem>>, vector<1x1x8x8xf32>
    %257 = vector.shape_cast %256 : vector<1x1x8x8xf32> to vector<8x8xf32>
    %258 = vector.shape_cast %255 : vector<8x8xf32> to vector<1x1x8x8xf32>
    tpu.vector_store %arg4[%c0_206, %c50, %c0_207, %c0_208], %258 {strides = array<i32>} : memref<1x144x8x8xf32, #tpu.memory_space<vmem>>, vector<1x1x8x8xf32>,
    %259 = vector.extract_strided_slice %3 {offsets = [16, 20], sizes = [8, 4], strides = [1, 1]} : vector<24x64xf32> to vector<8x4xf32>
    %c0_209 = arith.constant 0 : index
    %c0_210 = arith.constant 0 : index
    %260 = vector.load %arg3[%c0_209, %c0_210] : memref<4x24xf32, #tpu.memory_space<vmem>>, vector<4x24xf32>
    %cst_211 = arith.constant dense<0.000000e+00> : vector<8x24xf32>
    %261 = tpu.matmul %259, %260, %cst_211 {dimension_numbers = #tpu.dot_dimension_numbers<[1], [0], [0], [1], [0, 0, 1, 1], [], []>} : vector<8x4xf32>, vector<4x24xf32>, vector<8x24xf32> -> vector<8x24xf32>
    %262 = vector.extract_strided_slice %261 {offsets = [0, 0], sizes = [8, 8], strides = [1, 1]} : vector<8x24xf32> to vector<8x8xf32>
    %c0_212 = arith.constant 0 : index
    %c51 = arith.constant 51 : index
    %c0_213 = arith.constant 0 : index
    %c0_214 = arith.constant 0 : index
    %263 = vector.load %arg4[%c0_212, %c51, %c0_213, %c0_214] : memref<1x144x8x8xf32, #tpu.memory_space<vmem>>, vector<1x1x8x8xf32>
    %264 = vector.shape_cast %263 : vector<1x1x8x8xf32> to vector<8x8xf32>
    %265 = vector.shape_cast %262 : vector<8x8xf32> to vector<1x1x8x8xf32>
    tpu.vector_store %arg4[%c0_212, %c51, %c0_213, %c0_214], %265 {strides = array<i32>} : memref<1x144x8x8xf32, #tpu.memory_space<vmem>>, vector<1x1x8x8xf32>,
    %266 = vector.extract_strided_slice %261 {offsets = [0, 8], sizes = [8, 8], strides = [1, 1]} : vector<8x24xf32> to vector<8x8xf32>
    %c0_215 = arith.constant 0 : index
    %c52 = arith.constant 52 : index
    %c0_216 = arith.constant 0 : index
    %c0_217 = arith.constant 0 : index
    %267 = vector.load %arg4[%c0_215, %c52, %c0_216, %c0_217] : memref<1x144x8x8xf32, #tpu.memory_space<vmem>>, vector<1x1x8x8xf32>
    %268 = vector.shape_cast %267 : vector<1x1x8x8xf32> to vector<8x8xf32>
    %269 = vector.shape_cast %266 : vector<8x8xf32> to vector<1x1x8x8xf32>
    tpu.vector_store %arg4[%c0_215, %c52, %c0_216, %c0_217], %269 {strides = array<i32>} : memref<1x144x8x8xf32, #tpu.memory_space<vmem>>, vector<1x1x8x8xf32>,
    %270 = vector.extract_strided_slice %261 {offsets = [0, 16], sizes = [8, 8], strides = [1, 1]} : vector<8x24xf32> to vector<8x8xf32>
    %c0_218 = arith.constant 0 : index
    %c53 = arith.constant 53 : index
    %c0_219 = arith.constant 0 : index
    %c0_220 = arith.constant 0 : index
    %271 = vector.load %arg4[%c0_218, %c53, %c0_219, %c0_220] : memref<1x144x8x8xf32, #tpu.memory_space<vmem>>, vector<1x1x8x8xf32>
    %272 = vector.shape_cast %271 : vector<1x1x8x8xf32> to vector<8x8xf32>
    %273 = vector.shape_cast %270 : vector<8x8xf32> to vector<1x1x8x8xf32>
    tpu.vector_store %arg4[%c0_218, %c53, %c0_219, %c0_220], %273 {strides = array<i32>} : memref<1x144x8x8xf32, #tpu.memory_space<vmem>>, vector<1x1x8x8xf32>,
    %274 = vector.extract_strided_slice %3 {offsets = [0, 24], sizes = [8, 4], strides = [1, 1]} : vector<24x64xf32> to vector<8x4xf32>
    %c0_221 = arith.constant 0 : index
    %c0_222 = arith.constant 0 : index
    %275 = vector.load %arg3[%c0_221, %c0_222] : memref<4x24xf32, #tpu.memory_space<vmem>>, vector<4x24xf32>
    %cst_223 = arith.constant dense<0.000000e+00> : vector<8x24xf32>
    %276 = tpu.matmul %274, %275, %cst_223 {dimension_numbers = #tpu.dot_dimension_numbers<[1], [0], [0], [1], [0, 0, 1, 1], [], []>} : vector<8x4xf32>, vector<4x24xf32>, vector<8x24xf32> -> vector<8x24xf32>
    %277 = vector.extract_strided_slice %276 {offsets = [0, 0], sizes = [8, 8], strides = [1, 1]} : vector<8x24xf32> to vector<8x8xf32>
    %c0_224 = arith.constant 0 : index
    %c54 = arith.constant 54 : index
    %c0_225 = arith.constant 0 : index
    %c0_226 = arith.constant 0 : index
    %278 = vector.load %arg4[%c0_224, %c54, %c0_225, %c0_226] : memref<1x144x8x8xf32, #tpu.memory_space<vmem>>, vector<1x1x8x8xf32>
    %279 = vector.shape_cast %278 : vector<1x1x8x8xf32> to vector<8x8xf32>
    %280 = vector.shape_cast %277 : vector<8x8xf32> to vector<1x1x8x8xf32>
    tpu.vector_store %arg4[%c0_224, %c54, %c0_225, %c0_226], %280 {strides = array<i32>} : memref<1x144x8x8xf32, #tpu.memory_space<vmem>>, vector<1x1x8x8xf32>,
    %281 = vector.extract_strided_slice %276 {offsets = [0, 8], sizes = [8, 8], strides = [1, 1]} : vector<8x24xf32> to vector<8x8xf32>
    %c0_227 = arith.constant 0 : index
    %c55 = arith.constant 55 : index
    %c0_228 = arith.constant 0 : index
    %c0_229 = arith.constant 0 : index
    %282 = vector.load %arg4[%c0_227, %c55, %c0_228, %c0_229] : memref<1x144x8x8xf32, #tpu.memory_space<vmem>>, vector<1x1x8x8xf32>
    %283 = vector.shape_cast %282 : vector<1x1x8x8xf32> to vector<8x8xf32>
    %284 = vector.shape_cast %281 : vector<8x8xf32> to vector<1x1x8x8xf32>
    tpu.vector_store %arg4[%c0_227, %c55, %c0_228, %c0_229], %284 {strides = array<i32>} : memref<1x144x8x8xf32, #tpu.memory_space<vmem>>, vector<1x1x8x8xf32>,
    %285 = vector.extract_strided_slice %276 {offsets = [0, 16], sizes = [8, 8], strides = [1, 1]} : vector<8x24xf32> to vector<8x8xf32>
    %c0_230 = arith.constant 0 : index
    %c56 = arith.constant 56 : index
    %c0_231 = arith.constant 0 : index
    %c0_232 = arith.constant 0 : index
    %286 = vector.load %arg4[%c0_230, %c56, %c0_231, %c0_232] : memref<1x144x8x8xf32, #tpu.memory_space<vmem>>, vector<1x1x8x8xf32>
    %287 = vector.shape_cast %286 : vector<1x1x8x8xf32> to vector<8x8xf32>
    %288 = vector.shape_cast %285 : vector<8x8xf32> to vector<1x1x8x8xf32>
    tpu.vector_store %arg4[%c0_230, %c56, %c0_231, %c0_232], %288 {strides = array<i32>} : memref<1x144x8x8xf32, #tpu.memory_space<vmem>>, vector<1x1x8x8xf32>,
    %289 = vector.extract_strided_slice %3 {offsets = [8, 24], sizes = [8, 4], strides = [1, 1]} : vector<24x64xf32> to vector<8x4xf32>
    %c0_233 = arith.constant 0 : index
    %c0_234 = arith.constant 0 : index
    %290 = vector.load %arg3[%c0_233, %c0_234] : memref<4x24xf32, #tpu.memory_space<vmem>>, vector<4x24xf32>
    %cst_235 = arith.constant dense<0.000000e+00> : vector<8x24xf32>
    %291 = tpu.matmul %289, %290, %cst_235 {dimension_numbers = #tpu.dot_dimension_numbers<[1], [0], [0], [1], [0, 0, 1, 1], [], []>} : vector<8x4xf32>, vector<4x24xf32>, vector<8x24xf32> -> vector<8x24xf32>
    %292 = vector.extract_strided_slice %291 {offsets = [0, 0], sizes = [8, 8], strides = [1, 1]} : vector<8x24xf32> to vector<8x8xf32>
    %c0_236 = arith.constant 0 : index
    %c57 = arith.constant 57 : index
    %c0_237 = arith.constant 0 : index
    %c0_238 = arith.constant 0 : index
    %293 = vector.load %arg4[%c0_236, %c57, %c0_237, %c0_238] : memref<1x144x8x8xf32, #tpu.memory_space<vmem>>, vector<1x1x8x8xf32>
    %294 = vector.shape_cast %293 : vector<1x1x8x8xf32> to vector<8x8xf32>
    %295 = vector.shape_cast %292 : vector<8x8xf32> to vector<1x1x8x8xf32>
    tpu.vector_store %arg4[%c0_236, %c57, %c0_237, %c0_238], %295 {strides = array<i32>} : memref<1x144x8x8xf32, #tpu.memory_space<vmem>>, vector<1x1x8x8xf32>,
    %296 = vector.extract_strided_slice %291 {offsets = [0, 8], sizes = [8, 8], strides = [1, 1]} : vector<8x24xf32> to vector<8x8xf32>
    %c0_239 = arith.constant 0 : index
    %c58 = arith.constant 58 : index
    %c0_240 = arith.constant 0 : index
    %c0_241 = arith.constant 0 : index
    %297 = vector.load %arg4[%c0_239, %c58, %c0_240, %c0_241] : memref<1x144x8x8xf32, #tpu.memory_space<vmem>>, vector<1x1x8x8xf32>
    %298 = vector.shape_cast %297 : vector<1x1x8x8xf32> to vector<8x8xf32>
    %299 = vector.shape_cast %296 : vector<8x8xf32> to vector<1x1x8x8xf32>
    tpu.vector_store %arg4[%c0_239, %c58, %c0_240, %c0_241], %299 {strides = array<i32>} : memref<1x144x8x8xf32, #tpu.memory_space<vmem>>, vector<1x1x8x8xf32>,
    %300 = vector.extract_strided_slice %291 {offsets = [0, 16], sizes = [8, 8], strides = [1, 1]} : vector<8x24xf32> to vector<8x8xf32>
    %c0_242 = arith.constant 0 : index
    %c59 = arith.constant 59 : index
    %c0_243 = arith.constant 0 : index
    %c0_244 = arith.constant 0 : index
    %301 = vector.load %arg4[%c0_242, %c59, %c0_243, %c0_244] : memref<1x144x8x8xf32, #tpu.memory_space<vmem>>, vector<1x1x8x8xf32>
    %302 = vector.shape_cast %301 : vector<1x1x8x8xf32> to vector<8x8xf32>
    %303 = vector.shape_cast %300 : vector<8x8xf32> to vector<1x1x8x8xf32>
    tpu.vector_store %arg4[%c0_242, %c59, %c0_243, %c0_244], %303 {strides = array<i32>} : memref<1x144x8x8xf32, #tpu.memory_space<vmem>>, vector<1x1x8x8xf32>,
    %304 = vector.extract_strided_slice %3 {offsets = [16, 24], sizes = [8, 4], strides = [1, 1]} : vector<24x64xf32> to vector<8x4xf32>
    %c0_245 = arith.constant 0 : index
    %c0_246 = arith.constant 0 : index
    %305 = vector.load %arg3[%c0_245, %c0_246] : memref<4x24xf32, #tpu.memory_space<vmem>>, vector<4x24xf32>
    %cst_247 = arith.constant dense<0.000000e+00> : vector<8x24xf32>
    %306 = tpu.matmul %304, %305, %cst_247 {dimension_numbers = #tpu.dot_dimension_numbers<[1], [0], [0], [1], [0, 0, 1, 1], [], []>} : vector<8x4xf32>, vector<4x24xf32>, vector<8x24xf32> -> vector<8x24xf32>
    %307 = vector.extract_strided_slice %306 {offsets = [0, 0], sizes = [8, 8], strides = [1, 1]} : vector<8x24xf32> to vector<8x8xf32>
    %c0_248 = arith.constant 0 : index
    %c60 = arith.constant 60 : index
    %c0_249 = arith.constant 0 : index
    %c0_250 = arith.constant 0 : index
    %308 = vector.load %arg4[%c0_248, %c60, %c0_249, %c0_250] : memref<1x144x8x8xf32, #tpu.memory_space<vmem>>, vector<1x1x8x8xf32>
    %309 = vector.shape_cast %308 : vector<1x1x8x8xf32> to vector<8x8xf32>
    %310 = vector.shape_cast %307 : vector<8x8xf32> to vector<1x1x8x8xf32>
    tpu.vector_store %arg4[%c0_248, %c60, %c0_249, %c0_250], %310 {strides = array<i32>} : memref<1x144x8x8xf32, #tpu.memory_space<vmem>>, vector<1x1x8x8xf32>,
    %311 = vector.extract_strided_slice %306 {offsets = [0, 8], sizes = [8, 8], strides = [1, 1]} : vector<8x24xf32> to vector<8x8xf32>
    %c0_251 = arith.constant 0 : index
    %c61 = arith.constant 61 : index
    %c0_252 = arith.constant 0 : index
    %c0_253 = arith.constant 0 : index
    %312 = vector.load %arg4[%c0_251, %c61, %c0_252, %c0_253] : memref<1x144x8x8xf32, #tpu.memory_space<vmem>>, vector<1x1x8x8xf32>
    %313 = vector.shape_cast %312 : vector<1x1x8x8xf32> to vector<8x8xf32>
    %314 = vector.shape_cast %311 : vector<8x8xf32> to vector<1x1x8x8xf32>
    tpu.vector_store %arg4[%c0_251, %c61, %c0_252, %c0_253], %314 {strides = array<i32>} : memref<1x144x8x8xf32, #tpu.memory_space<vmem>>, vector<1x1x8x8xf32>,
    %315 = vector.extract_strided_slice %306 {offsets = [0, 16], sizes = [8, 8], strides = [1, 1]} : vector<8x24xf32> to vector<8x8xf32>
    %c0_254 = arith.constant 0 : index
    %c62 = arith.constant 62 : index
    %c0_255 = arith.constant 0 : index
    %c0_256 = arith.constant 0 : index
    %316 = vector.load %arg4[%c0_254, %c62, %c0_255, %c0_256] : memref<1x144x8x8xf32, #tpu.memory_space<vmem>>, vector<1x1x8x8xf32>
    %317 = vector.shape_cast %316 : vector<1x1x8x8xf32> to vector<8x8xf32>
    %318 = vector.shape_cast %315 : vector<8x8xf32> to vector<1x1x8x8xf32>
    tpu.vector_store %arg4[%c0_254, %c62, %c0_255, %c0_256], %318 {strides = array<i32>} : memref<1x144x8x8xf32, #tpu.memory_space<vmem>>, vector<1x1x8x8xf32>,
    %319 = vector.extract_strided_slice %3 {offsets = [0, 28], sizes = [8, 4], strides = [1, 1]} : vector<24x64xf32> to vector<8x4xf32>
    %c0_257 = arith.constant 0 : index
    %c0_258 = arith.constant 0 : index
    %320 = vector.load %arg3[%c0_257, %c0_258] : memref<4x24xf32, #tpu.memory_space<vmem>>, vector<4x24xf32>
    %cst_259 = arith.constant dense<0.000000e+00> : vector<8x24xf32>
    %321 = tpu.matmul %319, %320, %cst_259 {dimension_numbers = #tpu.dot_dimension_numbers<[1], [0], [0], [1], [0, 0, 1, 1], [], []>} : vector<8x4xf32>, vector<4x24xf32>, vector<8x24xf32> -> vector<8x24xf32>
    %322 = vector.extract_strided_slice %321 {offsets = [0, 0], sizes = [8, 8], strides = [1, 1]} : vector<8x24xf32> to vector<8x8xf32>
    %c0_260 = arith.constant 0 : index
    %c63 = arith.constant 63 : index
    %c0_261 = arith.constant 0 : index
    %c0_262 = arith.constant 0 : index
    %323 = vector.load %arg4[%c0_260, %c63, %c0_261, %c0_262] : memref<1x144x8x8xf32, #tpu.memory_space<vmem>>, vector<1x1x8x8xf32>
    %324 = vector.shape_cast %323 : vector<1x1x8x8xf32> to vector<8x8xf32>
    %325 = vector.shape_cast %322 : vector<8x8xf32> to vector<1x1x8x8xf32>
    tpu.vector_store %arg4[%c0_260, %c63, %c0_261, %c0_262], %325 {strides = array<i32>} : memref<1x144x8x8xf32, #tpu.memory_space<vmem>>, vector<1x1x8x8xf32>,
    %326 = vector.extract_strided_slice %321 {offsets = [0, 8], sizes = [8, 8], strides = [1, 1]} : vector<8x24xf32> to vector<8x8xf32>
    %c0_263 = arith.constant 0 : index
    %c64 = arith.constant 64 : index
    %c0_264 = arith.constant 0 : index
    %c0_265 = arith.constant 0 : index
    %327 = vector.load %arg4[%c0_263, %c64, %c0_264, %c0_265] : memref<1x144x8x8xf32, #tpu.memory_space<vmem>>, vector<1x1x8x8xf32>
    %328 = vector.shape_cast %327 : vector<1x1x8x8xf32> to vector<8x8xf32>
    %329 = vector.shape_cast %326 : vector<8x8xf32> to vector<1x1x8x8xf32>
    tpu.vector_store %arg4[%c0_263, %c64, %c0_264, %c0_265], %329 {strides = array<i32>} : memref<1x144x8x8xf32, #tpu.memory_space<vmem>>, vector<1x1x8x8xf32>,
    %330 = vector.extract_strided_slice %321 {offsets = [0, 16], sizes = [8, 8], strides = [1, 1]} : vector<8x24xf32> to vector<8x8xf32>
    %c0_266 = arith.constant 0 : index
    %c65 = arith.constant 65 : index
    %c0_267 = arith.constant 0 : index
    %c0_268 = arith.constant 0 : index
    %331 = vector.load %arg4[%c0_266, %c65, %c0_267, %c0_268] : memref<1x144x8x8xf32, #tpu.memory_space<vmem>>, vector<1x1x8x8xf32>
    %332 = vector.shape_cast %331 : vector<1x1x8x8xf32> to vector<8x8xf32>
    %333 = vector.shape_cast %330 : vector<8x8xf32> to vector<1x1x8x8xf32>
    tpu.vector_store %arg4[%c0_266, %c65, %c0_267, %c0_268], %333 {strides = array<i32>} : memref<1x144x8x8xf32, #tpu.memory_space<vmem>>, vector<1x1x8x8xf32>,
    %334 = vector.extract_strided_slice %3 {offsets = [8, 28], sizes = [8, 4], strides = [1, 1]} : vector<24x64xf32> to vector<8x4xf32>
    %c0_269 = arith.constant 0 : index
    %c0_270 = arith.constant 0 : index
    %335 = vector.load %arg3[%c0_269, %c0_270] : memref<4x24xf32, #tpu.memory_space<vmem>>, vector<4x24xf32>
    %cst_271 = arith.constant dense<0.000000e+00> : vector<8x24xf32>
    %336 = tpu.matmul %334, %335, %cst_271 {dimension_numbers = #tpu.dot_dimension_numbers<[1], [0], [0], [1], [0, 0, 1, 1], [], []>} : vector<8x4xf32>, vector<4x24xf32>, vector<8x24xf32> -> vector<8x24xf32>
    %337 = vector.extract_strided_slice %336 {offsets = [0, 0], sizes = [8, 8], strides = [1, 1]} : vector<8x24xf32> to vector<8x8xf32>
    %c0_272 = arith.constant 0 : index
    %c66 = arith.constant 66 : index
    %c0_273 = arith.constant 0 : index
    %c0_274 = arith.constant 0 : index
    %338 = vector.load %arg4[%c0_272, %c66, %c0_273, %c0_274] : memref<1x144x8x8xf32, #tpu.memory_space<vmem>>, vector<1x1x8x8xf32>
    %339 = vector.shape_cast %338 : vector<1x1x8x8xf32> to vector<8x8xf32>
    %340 = vector.shape_cast %337 : vector<8x8xf32> to vector<1x1x8x8xf32>
    tpu.vector_store %arg4[%c0_272, %c66, %c0_273, %c0_274], %340 {strides = array<i32>} : memref<1x144x8x8xf32, #tpu.memory_space<vmem>>, vector<1x1x8x8xf32>,
    %341 = vector.extract_strided_slice %336 {offsets = [0, 8], sizes = [8, 8], strides = [1, 1]} : vector<8x24xf32> to vector<8x8xf32>
    %c0_275 = arith.constant 0 : index
    %c67 = arith.constant 67 : index
    %c0_276 = arith.constant 0 : index
    %c0_277 = arith.constant 0 : index
    %342 = vector.load %arg4[%c0_275, %c67, %c0_276, %c0_277] : memref<1x144x8x8xf32, #tpu.memory_space<vmem>>, vector<1x1x8x8xf32>
    %343 = vector.shape_cast %342 : vector<1x1x8x8xf32> to vector<8x8xf32>
    %344 = vector.shape_cast %341 : vector<8x8xf32> to vector<1x1x8x8xf32>
    tpu.vector_store %arg4[%c0_275, %c67, %c0_276, %c0_277], %344 {strides = array<i32>} : memref<1x144x8x8xf32, #tpu.memory_space<vmem>>, vector<1x1x8x8xf32>,
    %345 = vector.extract_strided_slice %336 {offsets = [0, 16], sizes = [8, 8], strides = [1, 1]} : vector<8x24xf32> to vector<8x8xf32>
    %c0_278 = arith.constant 0 : index
    %c68 = arith.constant 68 : index
    %c0_279 = arith.constant 0 : index
    %c0_280 = arith.constant 0 : index
    %346 = vector.load %arg4[%c0_278, %c68, %c0_279, %c0_280] : memref<1x144x8x8xf32, #tpu.memory_space<vmem>>, vector<1x1x8x8xf32>
    %347 = vector.shape_cast %346 : vector<1x1x8x8xf32> to vector<8x8xf32>
    %348 = vector.shape_cast %345 : vector<8x8xf32> to vector<1x1x8x8xf32>
    tpu.vector_store %arg4[%c0_278, %c68, %c0_279, %c0_280], %348 {strides = array<i32>} : memref<1x144x8x8xf32, #tpu.memory_space<vmem>>, vector<1x1x8x8xf32>,
    %349 = vector.extract_strided_slice %3 {offsets = [16, 28], sizes = [8, 4], strides = [1, 1]} : vector<24x64xf32> to vector<8x4xf32>
    %c0_281 = arith.constant 0 : index
    %c0_282 = arith.constant 0 : index
    %350 = vector.load %arg3[%c0_281, %c0_282] : memref<4x24xf32, #tpu.memory_space<vmem>>, vector<4x24xf32>
    %cst_283 = arith.constant dense<0.000000e+00> : vector<8x24xf32>
    %351 = tpu.matmul %349, %350, %cst_283 {dimension_numbers = #tpu.dot_dimension_numbers<[1], [0], [0], [1], [0, 0, 1, 1], [], []>} : vector<8x4xf32>, vector<4x24xf32>, vector<8x24xf32> -> vector<8x24xf32>
    %352 = vector.extract_strided_slice %351 {offsets = [0, 0], sizes = [8, 8], strides = [1, 1]} : vector<8x24xf32> to vector<8x8xf32>
    %c0_284 = arith.constant 0 : index
    %c69 = arith.constant 69 : index
    %c0_285 = arith.constant 0 : index
    %c0_286 = arith.constant 0 : index
    %353 = vector.load %arg4[%c0_284, %c69, %c0_285, %c0_286] : memref<1x144x8x8xf32, #tpu.memory_space<vmem>>, vector<1x1x8x8xf32>
    %354 = vector.shape_cast %353 : vector<1x1x8x8xf32> to vector<8x8xf32>
    %355 = vector.shape_cast %352 : vector<8x8xf32> to vector<1x1x8x8xf32>
    tpu.vector_store %arg4[%c0_284, %c69, %c0_285, %c0_286], %355 {strides = array<i32>} : memref<1x144x8x8xf32, #tpu.memory_space<vmem>>, vector<1x1x8x8xf32>,
    %356 = vector.extract_strided_slice %351 {offsets = [0, 8], sizes = [8, 8], strides = [1, 1]} : vector<8x24xf32> to vector<8x8xf32>
    %c0_287 = arith.constant 0 : index
    %c70 = arith.constant 70 : index
    %c0_288 = arith.constant 0 : index
    %c0_289 = arith.constant 0 : index
    %357 = vector.load %arg4[%c0_287, %c70, %c0_288, %c0_289] : memref<1x144x8x8xf32, #tpu.memory_space<vmem>>, vector<1x1x8x8xf32>
    %358 = vector.shape_cast %357 : vector<1x1x8x8xf32> to vector<8x8xf32>
    %359 = vector.shape_cast %356 : vector<8x8xf32> to vector<1x1x8x8xf32>
    tpu.vector_store %arg4[%c0_287, %c70, %c0_288, %c0_289], %359 {strides = array<i32>} : memref<1x144x8x8xf32, #tpu.memory_space<vmem>>, vector<1x1x8x8xf32>,
    %360 = vector.extract_strided_slice %351 {offsets = [0, 16], sizes = [8, 8], strides = [1, 1]} : vector<8x24xf32> to vector<8x8xf32>
    %c0_290 = arith.constant 0 : index
    %c71 = arith.constant 71 : index
    %c0_291 = arith.constant 0 : index
    %c0_292 = arith.constant 0 : index
    %361 = vector.load %arg4[%c0_290, %c71, %c0_291, %c0_292] : memref<1x144x8x8xf32, #tpu.memory_space<vmem>>, vector<1x1x8x8xf32>
    %362 = vector.shape_cast %361 : vector<1x1x8x8xf32> to vector<8x8xf32>
    %363 = vector.shape_cast %360 : vector<8x8xf32> to vector<1x1x8x8xf32>
    tpu.vector_store %arg4[%c0_290, %c71, %c0_291, %c0_292], %363 {strides = array<i32>} : memref<1x144x8x8xf32, #tpu.memory_space<vmem>>, vector<1x1x8x8xf32>,
    %364 = vector.extract_strided_slice %3 {offsets = [0, 32], sizes = [8, 4], strides = [1, 1]} : vector<24x64xf32> to vector<8x4xf32>
    %c0_293 = arith.constant 0 : index
    %c0_294 = arith.constant 0 : index
    %365 = vector.load %arg3[%c0_293, %c0_294] : memref<4x24xf32, #tpu.memory_space<vmem>>, vector<4x24xf32>
    %cst_295 = arith.constant dense<0.000000e+00> : vector<8x24xf32>
    %366 = tpu.matmul %364, %365, %cst_295 {dimension_numbers = #tpu.dot_dimension_numbers<[1], [0], [0], [1], [0, 0, 1, 1], [], []>} : vector<8x4xf32>, vector<4x24xf32>, vector<8x24xf32> -> vector<8x24xf32>
    %367 = vector.extract_strided_slice %366 {offsets = [0, 0], sizes = [8, 8], strides = [1, 1]} : vector<8x24xf32> to vector<8x8xf32>
    %c0_296 = arith.constant 0 : index
    %c72 = arith.constant 72 : index
    %c0_297 = arith.constant 0 : index
    %c0_298 = arith.constant 0 : index
    %368 = vector.load %arg4[%c0_296, %c72, %c0_297, %c0_298] : memref<1x144x8x8xf32, #tpu.memory_space<vmem>>, vector<1x1x8x8xf32>
    %369 = vector.shape_cast %368 : vector<1x1x8x8xf32> to vector<8x8xf32>
    %370 = vector.shape_cast %367 : vector<8x8xf32> to vector<1x1x8x8xf32>
    tpu.vector_store %arg4[%c0_296, %c72, %c0_297, %c0_298], %370 {strides = array<i32>} : memref<1x144x8x8xf32, #tpu.memory_space<vmem>>, vector<1x1x8x8xf32>,
    %371 = vector.extract_strided_slice %366 {offsets = [0, 8], sizes = [8, 8], strides = [1, 1]} : vector<8x24xf32> to vector<8x8xf32>
    %c0_299 = arith.constant 0 : index
    %c73 = arith.constant 73 : index
    %c0_300 = arith.constant 0 : index
    %c0_301 = arith.constant 0 : index
    %372 = vector.load %arg4[%c0_299, %c73, %c0_300, %c0_301] : memref<1x144x8x8xf32, #tpu.memory_space<vmem>>, vector<1x1x8x8xf32>
    %373 = vector.shape_cast %372 : vector<1x1x8x8xf32> to vector<8x8xf32>
    %374 = vector.shape_cast %371 : vector<8x8xf32> to vector<1x1x8x8xf32>
    tpu.vector_store %arg4[%c0_299, %c73, %c0_300, %c0_301], %374 {strides = array<i32>} : memref<1x144x8x8xf32, #tpu.memory_space<vmem>>, vector<1x1x8x8xf32>,
    %375 = vector.extract_strided_slice %366 {offsets = [0, 16], sizes = [8, 8], strides = [1, 1]} : vector<8x24xf32> to vector<8x8xf32>
    %c0_302 = arith.constant 0 : index
    %c74 = arith.constant 74 : index
    %c0_303 = arith.constant 0 : index
    %c0_304 = arith.constant 0 : index
    %376 = vector.load %arg4[%c0_302, %c74, %c0_303, %c0_304] : memref<1x144x8x8xf32, #tpu.memory_space<vmem>>, vector<1x1x8x8xf32>
    %377 = vector.shape_cast %376 : vector<1x1x8x8xf32> to vector<8x8xf32>
    %378 = vector.shape_cast %375 : vector<8x8xf32> to vector<1x1x8x8xf32>
    tpu.vector_store %arg4[%c0_302, %c74, %c0_303, %c0_304], %378 {strides = array<i32>} : memref<1x144x8x8xf32, #tpu.memory_space<vmem>>, vector<1x1x8x8xf32>,
    %379 = vector.extract_strided_slice %3 {offsets = [8, 32], sizes = [8, 4], strides = [1, 1]} : vector<24x64xf32> to vector<8x4xf32>
    %c0_305 = arith.constant 0 : index
    %c0_306 = arith.constant 0 : index
    %380 = vector.load %arg3[%c0_305, %c0_306] : memref<4x24xf32, #tpu.memory_space<vmem>>, vector<4x24xf32>
    %cst_307 = arith.constant dense<0.000000e+00> : vector<8x24xf32>
    %381 = tpu.matmul %379, %380, %cst_307 {dimension_numbers = #tpu.dot_dimension_numbers<[1], [0], [0], [1], [0, 0, 1, 1], [], []>} : vector<8x4xf32>, vector<4x24xf32>, vector<8x24xf32> -> vector<8x24xf32>
    %382 = vector.extract_strided_slice %381 {offsets = [0, 0], sizes = [8, 8], strides = [1, 1]} : vector<8x24xf32> to vector<8x8xf32>
    %c0_308 = arith.constant 0 : index
    %c75 = arith.constant 75 : index
    %c0_309 = arith.constant 0 : index
    %c0_310 = arith.constant 0 : index
    %383 = vector.load %arg4[%c0_308, %c75, %c0_309, %c0_310] : memref<1x144x8x8xf32, #tpu.memory_space<vmem>>, vector<1x1x8x8xf32>
    %384 = vector.shape_cast %383 : vector<1x1x8x8xf32> to vector<8x8xf32>
    %385 = vector.shape_cast %382 : vector<8x8xf32> to vector<1x1x8x8xf32>
    tpu.vector_store %arg4[%c0_308, %c75, %c0_309, %c0_310], %385 {strides = array<i32>} : memref<1x144x8x8xf32, #tpu.memory_space<vmem>>, vector<1x1x8x8xf32>,
    %386 = vector.extract_strided_slice %381 {offsets = [0, 8], sizes = [8, 8], strides = [1, 1]} : vector<8x24xf32> to vector<8x8xf32>
    %c0_311 = arith.constant 0 : index
    %c76 = arith.constant 76 : index
    %c0_312 = arith.constant 0 : index
    %c0_313 = arith.constant 0 : index
    %387 = vector.load %arg4[%c0_311, %c76, %c0_312, %c0_313] : memref<1x144x8x8xf32, #tpu.memory_space<vmem>>, vector<1x1x8x8xf32>
    %388 = vector.shape_cast %387 : vector<1x1x8x8xf32> to vector<8x8xf32>
    %389 = vector.shape_cast %386 : vector<8x8xf32> to vector<1x1x8x8xf32>
    tpu.vector_store %arg4[%c0_311, %c76, %c0_312, %c0_313], %389 {strides = array<i32>} : memref<1x144x8x8xf32, #tpu.memory_space<vmem>>, vector<1x1x8x8xf32>,
    %390 = vector.extract_strided_slice %381 {offsets = [0, 16], sizes = [8, 8], strides = [1, 1]} : vector<8x24xf32> to vector<8x8xf32>
    %c0_314 = arith.constant 0 : index
    %c77 = arith.constant 77 : index
    %c0_315 = arith.constant 0 : index
    %c0_316 = arith.constant 0 : index
    %391 = vector.load %arg4[%c0_314, %c77, %c0_315, %c0_316] : memref<1x144x8x8xf32, #tpu.memory_space<vmem>>, vector<1x1x8x8xf32>
    %392 = vector.shape_cast %391 : vector<1x1x8x8xf32> to vector<8x8xf32>
    %393 = vector.shape_cast %390 : vector<8x8xf32> to vector<1x1x8x8xf32>
    tpu.vector_store %arg4[%c0_314, %c77, %c0_315, %c0_316], %393 {strides = array<i32>} : memref<1x144x8x8xf32, #tpu.memory_space<vmem>>, vector<1x1x8x8xf32>,
    %394 = vector.extract_strided_slice %3 {offsets = [16, 32], sizes = [8, 4], strides = [1, 1]} : vector<24x64xf32> to vector<8x4xf32>
    %c0_317 = arith.constant 0 : index
    %c0_318 = arith.constant 0 : index
    %395 = vector.load %arg3[%c0_317, %c0_318] : memref<4x24xf32, #tpu.memory_space<vmem>>, vector<4x24xf32>
    %cst_319 = arith.constant dense<0.000000e+00> : vector<8x24xf32>
    %396 = tpu.matmul %394, %395, %cst_319 {dimension_numbers = #tpu.dot_dimension_numbers<[1], [0], [0], [1], [0, 0, 1, 1], [], []>} : vector<8x4xf32>, vector<4x24xf32>, vector<8x24xf32> -> vector<8x24xf32>
    %397 = vector.extract_strided_slice %396 {offsets = [0, 0], sizes = [8, 8], strides = [1, 1]} : vector<8x24xf32> to vector<8x8xf32>
    %c0_320 = arith.constant 0 : index
    %c78 = arith.constant 78 : index
    %c0_321 = arith.constant 0 : index
    %c0_322 = arith.constant 0 : index
    %398 = vector.load %arg4[%c0_320, %c78, %c0_321, %c0_322] : memref<1x144x8x8xf32, #tpu.memory_space<vmem>>, vector<1x1x8x8xf32>
    %399 = vector.shape_cast %398 : vector<1x1x8x8xf32> to vector<8x8xf32>
    %400 = vector.shape_cast %397 : vector<8x8xf32> to vector<1x1x8x8xf32>
    tpu.vector_store %arg4[%c0_320, %c78, %c0_321, %c0_322], %400 {strides = array<i32>} : memref<1x144x8x8xf32, #tpu.memory_space<vmem>>, vector<1x1x8x8xf32>,
    %401 = vector.extract_strided_slice %396 {offsets = [0, 8], sizes = [8, 8], strides = [1, 1]} : vector<8x24xf32> to vector<8x8xf32>
    %c0_323 = arith.constant 0 : index
    %c79 = arith.constant 79 : index
    %c0_324 = arith.constant 0 : index
    %c0_325 = arith.constant 0 : index
    %402 = vector.load %arg4[%c0_323, %c79, %c0_324, %c0_325] : memref<1x144x8x8xf32, #tpu.memory_space<vmem>>, vector<1x1x8x8xf32>
    %403 = vector.shape_cast %402 : vector<1x1x8x8xf32> to vector<8x8xf32>
    %404 = vector.shape_cast %401 : vector<8x8xf32> to vector<1x1x8x8xf32>
    tpu.vector_store %arg4[%c0_323, %c79, %c0_324, %c0_325], %404 {strides = array<i32>} : memref<1x144x8x8xf32, #tpu.memory_space<vmem>>, vector<1x1x8x8xf32>,
    %405 = vector.extract_strided_slice %396 {offsets = [0, 16], sizes = [8, 8], strides = [1, 1]} : vector<8x24xf32> to vector<8x8xf32>
    %c0_326 = arith.constant 0 : index
    %c80 = arith.constant 80 : index
    %c0_327 = arith.constant 0 : index
    %c0_328 = arith.constant 0 : index
    %406 = vector.load %arg4[%c0_326, %c80, %c0_327, %c0_328] : memref<1x144x8x8xf32, #tpu.memory_space<vmem>>, vector<1x1x8x8xf32>
    %407 = vector.shape_cast %406 : vector<1x1x8x8xf32> to vector<8x8xf32>
    %408 = vector.shape_cast %405 : vector<8x8xf32> to vector<1x1x8x8xf32>
    tpu.vector_store %arg4[%c0_326, %c80, %c0_327, %c0_328], %408 {strides = array<i32>} : memref<1x144x8x8xf32, #tpu.memory_space<vmem>>, vector<1x1x8x8xf32>,
    %409 = vector.extract_strided_slice %3 {offsets = [0, 36], sizes = [8, 4], strides = [1, 1]} : vector<24x64xf32> to vector<8x4xf32>
    %c0_329 = arith.constant 0 : index
    %c0_330 = arith.constant 0 : index
    %410 = vector.load %arg3[%c0_329, %c0_330] : memref<4x24xf32, #tpu.memory_space<vmem>>, vector<4x24xf32>
    %cst_331 = arith.constant dense<0.000000e+00> : vector<8x24xf32>
    %411 = tpu.matmul %409, %410, %cst_331 {dimension_numbers = #tpu.dot_dimension_numbers<[1], [0], [0], [1], [0, 0, 1, 1], [], []>} : vector<8x4xf32>, vector<4x24xf32>, vector<8x24xf32> -> vector<8x24xf32>
    %412 = vector.extract_strided_slice %411 {offsets = [0, 0], sizes = [8, 8], strides = [1, 1]} : vector<8x24xf32> to vector<8x8xf32>
    %c0_332 = arith.constant 0 : index
    %c81 = arith.constant 81 : index
    %c0_333 = arith.constant 0 : index
    %c0_334 = arith.constant 0 : index
    %413 = vector.load %arg4[%c0_332, %c81, %c0_333, %c0_334] : memref<1x144x8x8xf32, #tpu.memory_space<vmem>>, vector<1x1x8x8xf32>
    %414 = vector.shape_cast %413 : vector<1x1x8x8xf32> to vector<8x8xf32>
    %415 = vector.shape_cast %412 : vector<8x8xf32> to vector<1x1x8x8xf32>
    tpu.vector_store %arg4[%c0_332, %c81, %c0_333, %c0_334], %415 {strides = array<i32>} : memref<1x144x8x8xf32, #tpu.memory_space<vmem>>, vector<1x1x8x8xf32>,
    %416 = vector.extract_strided_slice %411 {offsets = [0, 8], sizes = [8, 8], strides = [1, 1]} : vector<8x24xf32> to vector<8x8xf32>
    %c0_335 = arith.constant 0 : index
    %c82 = arith.constant 82 : index
    %c0_336 = arith.constant 0 : index
    %c0_337 = arith.constant 0 : index
    %417 = vector.load %arg4[%c0_335, %c82, %c0_336, %c0_337] : memref<1x144x8x8xf32, #tpu.memory_space<vmem>>, vector<1x1x8x8xf32>
    %418 = vector.shape_cast %417 : vector<1x1x8x8xf32> to vector<8x8xf32>
    %419 = vector.shape_cast %416 : vector<8x8xf32> to vector<1x1x8x8xf32>
    tpu.vector_store %arg4[%c0_335, %c82, %c0_336, %c0_337], %419 {strides = array<i32>} : memref<1x144x8x8xf32, #tpu.memory_space<vmem>>, vector<1x1x8x8xf32>,
    %420 = vector.extract_strided_slice %411 {offsets = [0, 16], sizes = [8, 8], strides = [1, 1]} : vector<8x24xf32> to vector<8x8xf32>
    %c0_338 = arith.constant 0 : index
    %c83 = arith.constant 83 : index
    %c0_339 = arith.constant 0 : index
    %c0_340 = arith.constant 0 : index
    %421 = vector.load %arg4[%c0_338, %c83, %c0_339, %c0_340] : memref<1x144x8x8xf32, #tpu.memory_space<vmem>>, vector<1x1x8x8xf32>
    %422 = vector.shape_cast %421 : vector<1x1x8x8xf32> to vector<8x8xf32>
    %423 = vector.shape_cast %420 : vector<8x8xf32> to vector<1x1x8x8xf32>
    tpu.vector_store %arg4[%c0_338, %c83, %c0_339, %c0_340], %423 {strides = array<i32>} : memref<1x144x8x8xf32, #tpu.memory_space<vmem>>, vector<1x1x8x8xf32>,
    %424 = vector.extract_strided_slice %3 {offsets = [8, 36], sizes = [8, 4], strides = [1, 1]} : vector<24x64xf32> to vector<8x4xf32>
    %c0_341 = arith.constant 0 : index
    %c0_342 = arith.constant 0 : index
    %425 = vector.load %arg3[%c0_341, %c0_342] : memref<4x24xf32, #tpu.memory_space<vmem>>, vector<4x24xf32>
    %cst_343 = arith.constant dense<0.000000e+00> : vector<8x24xf32>
    %426 = tpu.matmul %424, %425, %cst_343 {dimension_numbers = #tpu.dot_dimension_numbers<[1], [0], [0], [1], [0, 0, 1, 1], [], []>} : vector<8x4xf32>, vector<4x24xf32>, vector<8x24xf32> -> vector<8x24xf32>
    %427 = vector.extract_strided_slice %426 {offsets = [0, 0], sizes = [8, 8], strides = [1, 1]} : vector<8x24xf32> to vector<8x8xf32>
    %c0_344 = arith.constant 0 : index
    %c84 = arith.constant 84 : index
    %c0_345 = arith.constant 0 : index
    %c0_346 = arith.constant 0 : index
    %428 = vector.load %arg4[%c0_344, %c84, %c0_345, %c0_346] : memref<1x144x8x8xf32, #tpu.memory_space<vmem>>, vector<1x1x8x8xf32>
    %429 = vector.shape_cast %428 : vector<1x1x8x8xf32> to vector<8x8xf32>
    %430 = vector.shape_cast %427 : vector<8x8xf32> to vector<1x1x8x8xf32>
    tpu.vector_store %arg4[%c0_344, %c84, %c0_345, %c0_346], %430 {strides = array<i32>} : memref<1x144x8x8xf32, #tpu.memory_space<vmem>>, vector<1x1x8x8xf32>,
    %431 = vector.extract_strided_slice %426 {offsets = [0, 8], sizes = [8, 8], strides = [1, 1]} : vector<8x24xf32> to vector<8x8xf32>
    %c0_347 = arith.constant 0 : index
    %c85 = arith.constant 85 : index
    %c0_348 = arith.constant 0 : index
    %c0_349 = arith.constant 0 : index
    %432 = vector.load %arg4[%c0_347, %c85, %c0_348, %c0_349] : memref<1x144x8x8xf32, #tpu.memory_space<vmem>>, vector<1x1x8x8xf32>
    %433 = vector.shape_cast %432 : vector<1x1x8x8xf32> to vector<8x8xf32>
    %434 = vector.shape_cast %431 : vector<8x8xf32> to vector<1x1x8x8xf32>
    tpu.vector_store %arg4[%c0_347, %c85, %c0_348, %c0_349], %434 {strides = array<i32>} : memref<1x144x8x8xf32, #tpu.memory_space<vmem>>, vector<1x1x8x8xf32>,
    %435 = vector.extract_strided_slice %426 {offsets = [0, 16], sizes = [8, 8], strides = [1, 1]} : vector<8x24xf32> to vector<8x8xf32>
    %c0_350 = arith.constant 0 : index
    %c86 = arith.constant 86 : index
    %c0_351 = arith.constant 0 : index
    %c0_352 = arith.constant 0 : index
    %436 = vector.load %arg4[%c0_350, %c86, %c0_351, %c0_352] : memref<1x144x8x8xf32, #tpu.memory_space<vmem>>, vector<1x1x8x8xf32>
    %437 = vector.shape_cast %436 : vector<1x1x8x8xf32> to vector<8x8xf32>
    %438 = vector.shape_cast %435 : vector<8x8xf32> to vector<1x1x8x8xf32>
    tpu.vector_store %arg4[%c0_350, %c86, %c0_351, %c0_352], %438 {strides = array<i32>} : memref<1x144x8x8xf32, #tpu.memory_space<vmem>>, vector<1x1x8x8xf32>,
    %439 = vector.extract_strided_slice %3 {offsets = [16, 36], sizes = [8, 4], strides = [1, 1]} : vector<24x64xf32> to vector<8x4xf32>
    %c0_353 = arith.constant 0 : index
    %c0_354 = arith.constant 0 : index
    %440 = vector.load %arg3[%c0_353, %c0_354] : memref<4x24xf32, #tpu.memory_space<vmem>>, vector<4x24xf32>
    %cst_355 = arith.constant dense<0.000000e+00> : vector<8x24xf32>
    %441 = tpu.matmul %439, %440, %cst_355 {dimension_numbers = #tpu.dot_dimension_numbers<[1], [0], [0], [1], [0, 0, 1, 1], [], []>} : vector<8x4xf32>, vector<4x24xf32>, vector<8x24xf32> -> vector<8x24xf32>
    %442 = vector.extract_strided_slice %441 {offsets = [0, 0], sizes = [8, 8], strides = [1, 1]} : vector<8x24xf32> to vector<8x8xf32>
    %c0_356 = arith.constant 0 : index
    %c87 = arith.constant 87 : index
    %c0_357 = arith.constant 0 : index
    %c0_358 = arith.constant 0 : index
    %443 = vector.load %arg4[%c0_356, %c87, %c0_357, %c0_358] : memref<1x144x8x8xf32, #tpu.memory_space<vmem>>, vector<1x1x8x8xf32>
    %444 = vector.shape_cast %443 : vector<1x1x8x8xf32> to vector<8x8xf32>
    %445 = vector.shape_cast %442 : vector<8x8xf32> to vector<1x1x8x8xf32>
    tpu.vector_store %arg4[%c0_356, %c87, %c0_357, %c0_358], %445 {strides = array<i32>} : memref<1x144x8x8xf32, #tpu.memory_space<vmem>>, vector<1x1x8x8xf32>,
    %446 = vector.extract_strided_slice %441 {offsets = [0, 8], sizes = [8, 8], strides = [1, 1]} : vector<8x24xf32> to vector<8x8xf32>
    %c0_359 = arith.constant 0 : index
    %c88 = arith.constant 88 : index
    %c0_360 = arith.constant 0 : index
    %c0_361 = arith.constant 0 : index
    %447 = vector.load %arg4[%c0_359, %c88, %c0_360, %c0_361] : memref<1x144x8x8xf32, #tpu.memory_space<vmem>>, vector<1x1x8x8xf32>
    %448 = vector.shape_cast %447 : vector<1x1x8x8xf32> to vector<8x8xf32>
    %449 = vector.shape_cast %446 : vector<8x8xf32> to vector<1x1x8x8xf32>
    tpu.vector_store %arg4[%c0_359, %c88, %c0_360, %c0_361], %449 {strides = array<i32>} : memref<1x144x8x8xf32, #tpu.memory_space<vmem>>, vector<1x1x8x8xf32>,
    %450 = vector.extract_strided_slice %441 {offsets = [0, 16], sizes = [8, 8], strides = [1, 1]} : vector<8x24xf32> to vector<8x8xf32>
    %c0_362 = arith.constant 0 : index
    %c89 = arith.constant 89 : index
    %c0_363 = arith.constant 0 : index
    %c0_364 = arith.constant 0 : index
    %451 = vector.load %arg4[%c0_362, %c89, %c0_363, %c0_364] : memref<1x144x8x8xf32, #tpu.memory_space<vmem>>, vector<1x1x8x8xf32>
    %452 = vector.shape_cast %451 : vector<1x1x8x8xf32> to vector<8x8xf32>
    %453 = vector.shape_cast %450 : vector<8x8xf32> to vector<1x1x8x8xf32>
    tpu.vector_store %arg4[%c0_362, %c89, %c0_363, %c0_364], %453 {strides = array<i32>} : memref<1x144x8x8xf32, #tpu.memory_space<vmem>>, vector<1x1x8x8xf32>,
    %454 = vector.extract_strided_slice %3 {offsets = [0, 40], sizes = [8, 4], strides = [1, 1]} : vector<24x64xf32> to vector<8x4xf32>
    %c0_365 = arith.constant 0 : index
    %c0_366 = arith.constant 0 : index
    %455 = vector.load %arg3[%c0_365, %c0_366] : memref<4x24xf32, #tpu.memory_space<vmem>>, vector<4x24xf32>
    %cst_367 = arith.constant dense<0.000000e+00> : vector<8x24xf32>
    %456 = tpu.matmul %454, %455, %cst_367 {dimension_numbers = #tpu.dot_dimension_numbers<[1], [0], [0], [1], [0, 0, 1, 1], [], []>} : vector<8x4xf32>, vector<4x24xf32>, vector<8x24xf32> -> vector<8x24xf32>
    %457 = vector.extract_strided_slice %456 {offsets = [0, 0], sizes = [8, 8], strides = [1, 1]} : vector<8x24xf32> to vector<8x8xf32>
    %c0_368 = arith.constant 0 : index
    %c90 = arith.constant 90 : index
    %c0_369 = arith.constant 0 : index
    %c0_370 = arith.constant 0 : index
    %458 = vector.load %arg4[%c0_368, %c90, %c0_369, %c0_370] : memref<1x144x8x8xf32, #tpu.memory_space<vmem>>, vector<1x1x8x8xf32>
    %459 = vector.shape_cast %458 : vector<1x1x8x8xf32> to vector<8x8xf32>
    %460 = vector.shape_cast %457 : vector<8x8xf32> to vector<1x1x8x8xf32>
    tpu.vector_store %arg4[%c0_368, %c90, %c0_369, %c0_370], %460 {strides = array<i32>} : memref<1x144x8x8xf32, #tpu.memory_space<vmem>>, vector<1x1x8x8xf32>,
    %461 = vector.extract_strided_slice %456 {offsets = [0, 8], sizes = [8, 8], strides = [1, 1]} : vector<8x24xf32> to vector<8x8xf32>
    %c0_371 = arith.constant 0 : index
    %c91 = arith.constant 91 : index
    %c0_372 = arith.constant 0 : index
    %c0_373 = arith.constant 0 : index
    %462 = vector.load %arg4[%c0_371, %c91, %c0_372, %c0_373] : memref<1x144x8x8xf32, #tpu.memory_space<vmem>>, vector<1x1x8x8xf32>
    %463 = vector.shape_cast %462 : vector<1x1x8x8xf32> to vector<8x8xf32>
    %464 = vector.shape_cast %461 : vector<8x8xf32> to vector<1x1x8x8xf32>
    tpu.vector_store %arg4[%c0_371, %c91, %c0_372, %c0_373], %464 {strides = array<i32>} : memref<1x144x8x8xf32, #tpu.memory_space<vmem>>, vector<1x1x8x8xf32>,
    %465 = vector.extract_strided_slice %456 {offsets = [0, 16], sizes = [8, 8], strides = [1, 1]} : vector<8x24xf32> to vector<8x8xf32>
    %c0_374 = arith.constant 0 : index
    %c92 = arith.constant 92 : index
    %c0_375 = arith.constant 0 : index
    %c0_376 = arith.constant 0 : index
    %466 = vector.load %arg4[%c0_374, %c92, %c0_375, %c0_376] : memref<1x144x8x8xf32, #tpu.memory_space<vmem>>, vector<1x1x8x8xf32>
    %467 = vector.shape_cast %466 : vector<1x1x8x8xf32> to vector<8x8xf32>
    %468 = vector.shape_cast %465 : vector<8x8xf32> to vector<1x1x8x8xf32>
    tpu.vector_store %arg4[%c0_374, %c92, %c0_375, %c0_376], %468 {strides = array<i32>} : memref<1x144x8x8xf32, #tpu.memory_space<vmem>>, vector<1x1x8x8xf32>,
    %469 = vector.extract_strided_slice %3 {offsets = [8, 40], sizes = [8, 4], strides = [1, 1]} : vector<24x64xf32> to vector<8x4xf32>
    %c0_377 = arith.constant 0 : index
    %c0_378 = arith.constant 0 : index
    %470 = vector.load %arg3[%c0_377, %c0_378] : memref<4x24xf32, #tpu.memory_space<vmem>>, vector<4x24xf32>
    %cst_379 = arith.constant dense<0.000000e+00> : vector<8x24xf32>
    %471 = tpu.matmul %469, %470, %cst_379 {dimension_numbers = #tpu.dot_dimension_numbers<[1], [0], [0], [1], [0, 0, 1, 1], [], []>} : vector<8x4xf32>, vector<4x24xf32>, vector<8x24xf32> -> vector<8x24xf32>
    %472 = vector.extract_strided_slice %471 {offsets = [0, 0], sizes = [8, 8], strides = [1, 1]} : vector<8x24xf32> to vector<8x8xf32>
    %c0_380 = arith.constant 0 : index
    %c93 = arith.constant 93 : index
    %c0_381 = arith.constant 0 : index
    %c0_382 = arith.constant 0 : index
    %473 = vector.load %arg4[%c0_380, %c93, %c0_381, %c0_382] : memref<1x144x8x8xf32, #tpu.memory_space<vmem>>, vector<1x1x8x8xf32>
    %474 = vector.shape_cast %473 : vector<1x1x8x8xf32> to vector<8x8xf32>
    %475 = vector.shape_cast %472 : vector<8x8xf32> to vector<1x1x8x8xf32>
    tpu.vector_store %arg4[%c0_380, %c93, %c0_381, %c0_382], %475 {strides = array<i32>} : memref<1x144x8x8xf32, #tpu.memory_space<vmem>>, vector<1x1x8x8xf32>,
    %476 = vector.extract_strided_slice %471 {offsets = [0, 8], sizes = [8, 8], strides = [1, 1]} : vector<8x24xf32> to vector<8x8xf32>
    %c0_383 = arith.constant 0 : index
    %c94 = arith.constant 94 : index
    %c0_384 = arith.constant 0 : index
    %c0_385 = arith.constant 0 : index
    %477 = vector.load %arg4[%c0_383, %c94, %c0_384, %c0_385] : memref<1x144x8x8xf32, #tpu.memory_space<vmem>>, vector<1x1x8x8xf32>
    %478 = vector.shape_cast %477 : vector<1x1x8x8xf32> to vector<8x8xf32>
    %479 = vector.shape_cast %476 : vector<8x8xf32> to vector<1x1x8x8xf32>
    tpu.vector_store %arg4[%c0_383, %c94, %c0_384, %c0_385], %479 {strides = array<i32>} : memref<1x144x8x8xf32, #tpu.memory_space<vmem>>, vector<1x1x8x8xf32>,
    %480 = vector.extract_strided_slice %471 {offsets = [0, 16], sizes = [8, 8], strides = [1, 1]} : vector<8x24xf32> to vector<8x8xf32>
    %c0_386 = arith.constant 0 : index
    %c95 = arith.constant 95 : index
    %c0_387 = arith.constant 0 : index
    %c0_388 = arith.constant 0 : index
    %481 = vector.load %arg4[%c0_386, %c95, %c0_387, %c0_388] : memref<1x144x8x8xf32, #tpu.memory_space<vmem>>, vector<1x1x8x8xf32>
    %482 = vector.shape_cast %481 : vector<1x1x8x8xf32> to vector<8x8xf32>
    %483 = vector.shape_cast %480 : vector<8x8xf32> to vector<1x1x8x8xf32>
    tpu.vector_store %arg4[%c0_386, %c95, %c0_387, %c0_388], %483 {strides = array<i32>} : memref<1x144x8x8xf32, #tpu.memory_space<vmem>>, vector<1x1x8x8xf32>,
    %484 = vector.extract_strided_slice %3 {offsets = [16, 40], sizes = [8, 4], strides = [1, 1]} : vector<24x64xf32> to vector<8x4xf32>
    %c0_389 = arith.constant 0 : index
    %c0_390 = arith.constant 0 : index
    %485 = vector.load %arg3[%c0_389, %c0_390] : memref<4x24xf32, #tpu.memory_space<vmem>>, vector<4x24xf32>
    %cst_391 = arith.constant dense<0.000000e+00> : vector<8x24xf32>
    %486 = tpu.matmul %484, %485, %cst_391 {dimension_numbers = #tpu.dot_dimension_numbers<[1], [0], [0], [1], [0, 0, 1, 1], [], []>} : vector<8x4xf32>, vector<4x24xf32>, vector<8x24xf32> -> vector<8x24xf32>
    %487 = vector.extract_strided_slice %486 {offsets = [0, 0], sizes = [8, 8], strides = [1, 1]} : vector<8x24xf32> to vector<8x8xf32>
    %c0_392 = arith.constant 0 : index
    %c96 = arith.constant 96 : index
    %c0_393 = arith.constant 0 : index
    %c0_394 = arith.constant 0 : index
    %488 = vector.load %arg4[%c0_392, %c96, %c0_393, %c0_394] : memref<1x144x8x8xf32, #tpu.memory_space<vmem>>, vector<1x1x8x8xf32>
    %489 = vector.shape_cast %488 : vector<1x1x8x8xf32> to vector<8x8xf32>
    %490 = vector.shape_cast %487 : vector<8x8xf32> to vector<1x1x8x8xf32>
    tpu.vector_store %arg4[%c0_392, %c96, %c0_393, %c0_394], %490 {strides = array<i32>} : memref<1x144x8x8xf32, #tpu.memory_space<vmem>>, vector<1x1x8x8xf32>,
    %491 = vector.extract_strided_slice %486 {offsets = [0, 8], sizes = [8, 8], strides = [1, 1]} : vector<8x24xf32> to vector<8x8xf32>
    %c0_395 = arith.constant 0 : index
    %c97 = arith.constant 97 : index
    %c0_396 = arith.constant 0 : index
    %c0_397 = arith.constant 0 : index
    %492 = vector.load %arg4[%c0_395, %c97, %c0_396, %c0_397] : memref<1x144x8x8xf32, #tpu.memory_space<vmem>>, vector<1x1x8x8xf32>
    %493 = vector.shape_cast %492 : vector<1x1x8x8xf32> to vector<8x8xf32>
    %494 = vector.shape_cast %491 : vector<8x8xf32> to vector<1x1x8x8xf32>
    tpu.vector_store %arg4[%c0_395, %c97, %c0_396, %c0_397], %494 {strides = array<i32>} : memref<1x144x8x8xf32, #tpu.memory_space<vmem>>, vector<1x1x8x8xf32>,
    %495 = vector.extract_strided_slice %486 {offsets = [0, 16], sizes = [8, 8], strides = [1, 1]} : vector<8x24xf32> to vector<8x8xf32>
    %c0_398 = arith.constant 0 : index
    %c98 = arith.constant 98 : index
    %c0_399 = arith.constant 0 : index
    %c0_400 = arith.constant 0 : index
    %496 = vector.load %arg4[%c0_398, %c98, %c0_399, %c0_400] : memref<1x144x8x8xf32, #tpu.memory_space<vmem>>, vector<1x1x8x8xf32>
    %497 = vector.shape_cast %496 : vector<1x1x8x8xf32> to vector<8x8xf32>
    %498 = vector.shape_cast %495 : vector<8x8xf32> to vector<1x1x8x8xf32>
    tpu.vector_store %arg4[%c0_398, %c98, %c0_399, %c0_400], %498 {strides = array<i32>} : memref<1x144x8x8xf32, #tpu.memory_space<vmem>>, vector<1x1x8x8xf32>,
    %499 = vector.extract_strided_slice %3 {offsets = [0, 44], sizes = [8, 4], strides = [1, 1]} : vector<24x64xf32> to vector<8x4xf32>
    %c0_401 = arith.constant 0 : index
    %c0_402 = arith.constant 0 : index
    %500 = vector.load %arg3[%c0_401, %c0_402] : memref<4x24xf32, #tpu.memory_space<vmem>>, vector<4x24xf32>
    %cst_403 = arith.constant dense<0.000000e+00> : vector<8x24xf32>
    %501 = tpu.matmul %499, %500, %cst_403 {dimension_numbers = #tpu.dot_dimension_numbers<[1], [0], [0], [1], [0, 0, 1, 1], [], []>} : vector<8x4xf32>, vector<4x24xf32>, vector<8x24xf32> -> vector<8x24xf32>
    %502 = vector.extract_strided_slice %501 {offsets = [0, 0], sizes = [8, 8], strides = [1, 1]} : vector<8x24xf32> to vector<8x8xf32>
    %c0_404 = arith.constant 0 : index
    %c99 = arith.constant 99 : index
    %c0_405 = arith.constant 0 : index
    %c0_406 = arith.constant 0 : index
    %503 = vector.load %arg4[%c0_404, %c99, %c0_405, %c0_406] : memref<1x144x8x8xf32, #tpu.memory_space<vmem>>, vector<1x1x8x8xf32>
    %504 = vector.shape_cast %503 : vector<1x1x8x8xf32> to vector<8x8xf32>
    %505 = vector.shape_cast %502 : vector<8x8xf32> to vector<1x1x8x8xf32>
    tpu.vector_store %arg4[%c0_404, %c99, %c0_405, %c0_406], %505 {strides = array<i32>} : memref<1x144x8x8xf32, #tpu.memory_space<vmem>>, vector<1x1x8x8xf32>,
    %506 = vector.extract_strided_slice %501 {offsets = [0, 8], sizes = [8, 8], strides = [1, 1]} : vector<8x24xf32> to vector<8x8xf32>
    %c0_407 = arith.constant 0 : index
    %c100 = arith.constant 100 : index
    %c0_408 = arith.constant 0 : index
    %c0_409 = arith.constant 0 : index
    %507 = vector.load %arg4[%c0_407, %c100, %c0_408, %c0_409] : memref<1x144x8x8xf32, #tpu.memory_space<vmem>>, vector<1x1x8x8xf32>
    %508 = vector.shape_cast %507 : vector<1x1x8x8xf32> to vector<8x8xf32>
    %509 = vector.shape_cast %506 : vector<8x8xf32> to vector<1x1x8x8xf32>
    tpu.vector_store %arg4[%c0_407, %c100, %c0_408, %c0_409], %509 {strides = array<i32>} : memref<1x144x8x8xf32, #tpu.memory_space<vmem>>, vector<1x1x8x8xf32>,
    %510 = vector.extract_strided_slice %501 {offsets = [0, 16], sizes = [8, 8], strides = [1, 1]} : vector<8x24xf32> to vector<8x8xf32>
    %c0_410 = arith.constant 0 : index
    %c101 = arith.constant 101 : index
    %c0_411 = arith.constant 0 : index
    %c0_412 = arith.constant 0 : index
    %511 = vector.load %arg4[%c0_410, %c101, %c0_411, %c0_412] : memref<1x144x8x8xf32, #tpu.memory_space<vmem>>, vector<1x1x8x8xf32>
    %512 = vector.shape_cast %511 : vector<1x1x8x8xf32> to vector<8x8xf32>
    %513 = vector.shape_cast %510 : vector<8x8xf32> to vector<1x1x8x8xf32>
    tpu.vector_store %arg4[%c0_410, %c101, %c0_411, %c0_412], %513 {strides = array<i32>} : memref<1x144x8x8xf32, #tpu.memory_space<vmem>>, vector<1x1x8x8xf32>,
    %514 = vector.extract_strided_slice %3 {offsets = [8, 44], sizes = [8, 4], strides = [1, 1]} : vector<24x64xf32> to vector<8x4xf32>
    %c0_413 = arith.constant 0 : index
    %c0_414 = arith.constant 0 : index
    %515 = vector.load %arg3[%c0_413, %c0_414] : memref<4x24xf32, #tpu.memory_space<vmem>>, vector<4x24xf32>
    %cst_415 = arith.constant dense<0.000000e+00> : vector<8x24xf32>
    %516 = tpu.matmul %514, %515, %cst_415 {dimension_numbers = #tpu.dot_dimension_numbers<[1], [0], [0], [1], [0, 0, 1, 1], [], []>} : vector<8x4xf32>, vector<4x24xf32>, vector<8x24xf32> -> vector<8x24xf32>
    %517 = vector.extract_strided_slice %516 {offsets = [0, 0], sizes = [8, 8], strides = [1, 1]} : vector<8x24xf32> to vector<8x8xf32>
    %c0_416 = arith.constant 0 : index
    %c102 = arith.constant 102 : index
    %c0_417 = arith.constant 0 : index
    %c0_418 = arith.constant 0 : index
    %518 = vector.load %arg4[%c0_416, %c102, %c0_417, %c0_418] : memref<1x144x8x8xf32, #tpu.memory_space<vmem>>, vector<1x1x8x8xf32>
    %519 = vector.shape_cast %518 : vector<1x1x8x8xf32> to vector<8x8xf32>
    %520 = vector.shape_cast %517 : vector<8x8xf32> to vector<1x1x8x8xf32>
    tpu.vector_store %arg4[%c0_416, %c102, %c0_417, %c0_418], %520 {strides = array<i32>} : memref<1x144x8x8xf32, #tpu.memory_space<vmem>>, vector<1x1x8x8xf32>,
    %521 = vector.extract_strided_slice %516 {offsets = [0, 8], sizes = [8, 8], strides = [1, 1]} : vector<8x24xf32> to vector<8x8xf32>
    %c0_419 = arith.constant 0 : index
    %c103 = arith.constant 103 : index
    %c0_420 = arith.constant 0 : index
    %c0_421 = arith.constant 0 : index
    %522 = vector.load %arg4[%c0_419, %c103, %c0_420, %c0_421] : memref<1x144x8x8xf32, #tpu.memory_space<vmem>>, vector<1x1x8x8xf32>
    %523 = vector.shape_cast %522 : vector<1x1x8x8xf32> to vector<8x8xf32>
    %524 = vector.shape_cast %521 : vector<8x8xf32> to vector<1x1x8x8xf32>
    tpu.vector_store %arg4[%c0_419, %c103, %c0_420, %c0_421], %524 {strides = array<i32>} : memref<1x144x8x8xf32, #tpu.memory_space<vmem>>, vector<1x1x8x8xf32>,
    %525 = vector.extract_strided_slice %516 {offsets = [0, 16], sizes = [8, 8], strides = [1, 1]} : vector<8x24xf32> to vector<8x8xf32>
    %c0_422 = arith.constant 0 : index
    %c104 = arith.constant 104 : index
    %c0_423 = arith.constant 0 : index
    %c0_424 = arith.constant 0 : index
    %526 = vector.load %arg4[%c0_422, %c104, %c0_423, %c0_424] : memref<1x144x8x8xf32, #tpu.memory_space<vmem>>, vector<1x1x8x8xf32>
    %527 = vector.shape_cast %526 : vector<1x1x8x8xf32> to vector<8x8xf32>
    %528 = vector.shape_cast %525 : vector<8x8xf32> to vector<1x1x8x8xf32>
    tpu.vector_store %arg4[%c0_422, %c104, %c0_423, %c0_424], %528 {strides = array<i32>} : memref<1x144x8x8xf32, #tpu.memory_space<vmem>>, vector<1x1x8x8xf32>,
    %529 = vector.extract_strided_slice %3 {offsets = [16, 44], sizes = [8, 4], strides = [1, 1]} : vector<24x64xf32> to vector<8x4xf32>
    %c0_425 = arith.constant 0 : index
    %c0_426 = arith.constant 0 : index
    %530 = vector.load %arg3[%c0_425, %c0_426] : memref<4x24xf32, #tpu.memory_space<vmem>>, vector<4x24xf32>
    %cst_427 = arith.constant dense<0.000000e+00> : vector<8x24xf32>
    %531 = tpu.matmul %529, %530, %cst_427 {dimension_numbers = #tpu.dot_dimension_numbers<[1], [0], [0], [1], [0, 0, 1, 1], [], []>} : vector<8x4xf32>, vector<4x24xf32>, vector<8x24xf32> -> vector<8x24xf32>
    %532 = vector.extract_strided_slice %531 {offsets = [0, 0], sizes = [8, 8], strides = [1, 1]} : vector<8x24xf32> to vector<8x8xf32>
    %c0_428 = arith.constant 0 : index
    %c105 = arith.constant 105 : index
    %c0_429 = arith.constant 0 : index
    %c0_430 = arith.constant 0 : index
    %533 = vector.load %arg4[%c0_428, %c105, %c0_429, %c0_430] : memref<1x144x8x8xf32, #tpu.memory_space<vmem>>, vector<1x1x8x8xf32>
    %534 = vector.shape_cast %533 : vector<1x1x8x8xf32> to vector<8x8xf32>
    %535 = vector.shape_cast %532 : vector<8x8xf32> to vector<1x1x8x8xf32>
    tpu.vector_store %arg4[%c0_428, %c105, %c0_429, %c0_430], %535 {strides = array<i32>} : memref<1x144x8x8xf32, #tpu.memory_space<vmem>>, vector<1x1x8x8xf32>,
    %536 = vector.extract_strided_slice %531 {offsets = [0, 8], sizes = [8, 8], strides = [1, 1]} : vector<8x24xf32> to vector<8x8xf32>
    %c0_431 = arith.constant 0 : index
    %c106 = arith.constant 106 : index
    %c0_432 = arith.constant 0 : index
    %c0_433 = arith.constant 0 : index
    %537 = vector.load %arg4[%c0_431, %c106, %c0_432, %c0_433] : memref<1x144x8x8xf32, #tpu.memory_space<vmem>>, vector<1x1x8x8xf32>
    %538 = vector.shape_cast %537 : vector<1x1x8x8xf32> to vector<8x8xf32>
    %539 = vector.shape_cast %536 : vector<8x8xf32> to vector<1x1x8x8xf32>
    tpu.vector_store %arg4[%c0_431, %c106, %c0_432, %c0_433], %539 {strides = array<i32>} : memref<1x144x8x8xf32, #tpu.memory_space<vmem>>, vector<1x1x8x8xf32>,
    %540 = vector.extract_strided_slice %531 {offsets = [0, 16], sizes = [8, 8], strides = [1, 1]} : vector<8x24xf32> to vector<8x8xf32>
    %c0_434 = arith.constant 0 : index
    %c107 = arith.constant 107 : index
    %c0_435 = arith.constant 0 : index
    %c0_436 = arith.constant 0 : index
    %541 = vector.load %arg4[%c0_434, %c107, %c0_435, %c0_436] : memref<1x144x8x8xf32, #tpu.memory_space<vmem>>, vector<1x1x8x8xf32>
    %542 = vector.shape_cast %541 : vector<1x1x8x8xf32> to vector<8x8xf32>
    %543 = vector.shape_cast %540 : vector<8x8xf32> to vector<1x1x8x8xf32>
    tpu.vector_store %arg4[%c0_434, %c107, %c0_435, %c0_436], %543 {strides = array<i32>} : memref<1x144x8x8xf32, #tpu.memory_space<vmem>>, vector<1x1x8x8xf32>,
    %544 = vector.extract_strided_slice %3 {offsets = [0, 48], sizes = [8, 4], strides = [1, 1]} : vector<24x64xf32> to vector<8x4xf32>
    %c0_437 = arith.constant 0 : index
    %c0_438 = arith.constant 0 : index
    %545 = vector.load %arg3[%c0_437, %c0_438] : memref<4x24xf32, #tpu.memory_space<vmem>>, vector<4x24xf32>
    %cst_439 = arith.constant dense<0.000000e+00> : vector<8x24xf32>
    %546 = tpu.matmul %544, %545, %cst_439 {dimension_numbers = #tpu.dot_dimension_numbers<[1], [0], [0], [1], [0, 0, 1, 1], [], []>} : vector<8x4xf32>, vector<4x24xf32>, vector<8x24xf32> -> vector<8x24xf32>
    %547 = vector.extract_strided_slice %546 {offsets = [0, 0], sizes = [8, 8], strides = [1, 1]} : vector<8x24xf32> to vector<8x8xf32>
    %c0_440 = arith.constant 0 : index
    %c108 = arith.constant 108 : index
    %c0_441 = arith.constant 0 : index
    %c0_442 = arith.constant 0 : index
    %548 = vector.load %arg4[%c0_440, %c108, %c0_441, %c0_442] : memref<1x144x8x8xf32, #tpu.memory_space<vmem>>, vector<1x1x8x8xf32>
    %549 = vector.shape_cast %548 : vector<1x1x8x8xf32> to vector<8x8xf32>
    %550 = vector.shape_cast %547 : vector<8x8xf32> to vector<1x1x8x8xf32>
    tpu.vector_store %arg4[%c0_440, %c108, %c0_441, %c0_442], %550 {strides = array<i32>} : memref<1x144x8x8xf32, #tpu.memory_space<vmem>>, vector<1x1x8x8xf32>,
    %551 = vector.extract_strided_slice %546 {offsets = [0, 8], sizes = [8, 8], strides = [1, 1]} : vector<8x24xf32> to vector<8x8xf32>
    %c0_443 = arith.constant 0 : index
    %c109 = arith.constant 109 : index
    %c0_444 = arith.constant 0 : index
    %c0_445 = arith.constant 0 : index
    %552 = vector.load %arg4[%c0_443, %c109, %c0_444, %c0_445] : memref<1x144x8x8xf32, #tpu.memory_space<vmem>>, vector<1x1x8x8xf32>
    %553 = vector.shape_cast %552 : vector<1x1x8x8xf32> to vector<8x8xf32>
    %554 = vector.shape_cast %551 : vector<8x8xf32> to vector<1x1x8x8xf32>
    tpu.vector_store %arg4[%c0_443, %c109, %c0_444, %c0_445], %554 {strides = array<i32>} : memref<1x144x8x8xf32, #tpu.memory_space<vmem>>, vector<1x1x8x8xf32>,
    %555 = vector.extract_strided_slice %546 {offsets = [0, 16], sizes = [8, 8], strides = [1, 1]} : vector<8x24xf32> to vector<8x8xf32>
    %c0_446 = arith.constant 0 : index
    %c110 = arith.constant 110 : index
    %c0_447 = arith.constant 0 : index
    %c0_448 = arith.constant 0 : index
    %556 = vector.load %arg4[%c0_446, %c110, %c0_447, %c0_448] : memref<1x144x8x8xf32, #tpu.memory_space<vmem>>, vector<1x1x8x8xf32>
    %557 = vector.shape_cast %556 : vector<1x1x8x8xf32> to vector<8x8xf32>
    %558 = vector.shape_cast %555 : vector<8x8xf32> to vector<1x1x8x8xf32>
    tpu.vector_store %arg4[%c0_446, %c110, %c0_447, %c0_448], %558 {strides = array<i32>} : memref<1x144x8x8xf32, #tpu.memory_space<vmem>>, vector<1x1x8x8xf32>,
    %559 = vector.extract_strided_slice %3 {offsets = [8, 48], sizes = [8, 4], strides = [1, 1]} : vector<24x64xf32> to vector<8x4xf32>
    %c0_449 = arith.constant 0 : index
    %c0_450 = arith.constant 0 : index
    %560 = vector.load %arg3[%c0_449, %c0_450] : memref<4x24xf32, #tpu.memory_space<vmem>>, vector<4x24xf32>
    %cst_451 = arith.constant dense<0.000000e+00> : vector<8x24xf32>
    %561 = tpu.matmul %559, %560, %cst_451 {dimension_numbers = #tpu.dot_dimension_numbers<[1], [0], [0], [1], [0, 0, 1, 1], [], []>} : vector<8x4xf32>, vector<4x24xf32>, vector<8x24xf32> -> vector<8x24xf32>
    %562 = vector.extract_strided_slice %561 {offsets = [0, 0], sizes = [8, 8], strides = [1, 1]} : vector<8x24xf32> to vector<8x8xf32>
    %c0_452 = arith.constant 0 : index
    %c111 = arith.constant 111 : index
    %c0_453 = arith.constant 0 : index
    %c0_454 = arith.constant 0 : index
    %563 = vector.load %arg4[%c0_452, %c111, %c0_453, %c0_454] : memref<1x144x8x8xf32, #tpu.memory_space<vmem>>, vector<1x1x8x8xf32>
    %564 = vector.shape_cast %563 : vector<1x1x8x8xf32> to vector<8x8xf32>
    %565 = vector.shape_cast %562 : vector<8x8xf32> to vector<1x1x8x8xf32>
    tpu.vector_store %arg4[%c0_452, %c111, %c0_453, %c0_454], %565 {strides = array<i32>} : memref<1x144x8x8xf32, #tpu.memory_space<vmem>>, vector<1x1x8x8xf32>,
    %566 = vector.extract_strided_slice %561 {offsets = [0, 8], sizes = [8, 8], strides = [1, 1]} : vector<8x24xf32> to vector<8x8xf32>
    %c0_455 = arith.constant 0 : index
    %c112 = arith.constant 112 : index
    %c0_456 = arith.constant 0 : index
    %c0_457 = arith.constant 0 : index
    %567 = vector.load %arg4[%c0_455, %c112, %c0_456, %c0_457] : memref<1x144x8x8xf32, #tpu.memory_space<vmem>>, vector<1x1x8x8xf32>
    %568 = vector.shape_cast %567 : vector<1x1x8x8xf32> to vector<8x8xf32>
    %569 = vector.shape_cast %566 : vector<8x8xf32> to vector<1x1x8x8xf32>
    tpu.vector_store %arg4[%c0_455, %c112, %c0_456, %c0_457], %569 {strides = array<i32>} : memref<1x144x8x8xf32, #tpu.memory_space<vmem>>, vector<1x1x8x8xf32>,
    %570 = vector.extract_strided_slice %561 {offsets = [0, 16], sizes = [8, 8], strides = [1, 1]} : vector<8x24xf32> to vector<8x8xf32>
    %c0_458 = arith.constant 0 : index
    %c113 = arith.constant 113 : index
    %c0_459 = arith.constant 0 : index
    %c0_460 = arith.constant 0 : index
    %571 = vector.load %arg4[%c0_458, %c113, %c0_459, %c0_460] : memref<1x144x8x8xf32, #tpu.memory_space<vmem>>, vector<1x1x8x8xf32>
    %572 = vector.shape_cast %571 : vector<1x1x8x8xf32> to vector<8x8xf32>
    %573 = vector.shape_cast %570 : vector<8x8xf32> to vector<1x1x8x8xf32>
    tpu.vector_store %arg4[%c0_458, %c113, %c0_459, %c0_460], %573 {strides = array<i32>} : memref<1x144x8x8xf32, #tpu.memory_space<vmem>>, vector<1x1x8x8xf32>,
    %574 = vector.extract_strided_slice %3 {offsets = [16, 48], sizes = [8, 4], strides = [1, 1]} : vector<24x64xf32> to vector<8x4xf32>
    %c0_461 = arith.constant 0 : index
    %c0_462 = arith.constant 0 : index
    %575 = vector.load %arg3[%c0_461, %c0_462] : memref<4x24xf32, #tpu.memory_space<vmem>>, vector<4x24xf32>
    %cst_463 = arith.constant dense<0.000000e+00> : vector<8x24xf32>
    %576 = tpu.matmul %574, %575, %cst_463 {dimension_numbers = #tpu.dot_dimension_numbers<[1], [0], [0], [1], [0, 0, 1, 1], [], []>} : vector<8x4xf32>, vector<4x24xf32>, vector<8x24xf32> -> vector<8x24xf32>
    %577 = vector.extract_strided_slice %576 {offsets = [0, 0], sizes = [8, 8], strides = [1, 1]} : vector<8x24xf32> to vector<8x8xf32>
    %c0_464 = arith.constant 0 : index
    %c114 = arith.constant 114 : index
    %c0_465 = arith.constant 0 : index
    %c0_466 = arith.constant 0 : index
    %578 = vector.load %arg4[%c0_464, %c114, %c0_465, %c0_466] : memref<1x144x8x8xf32, #tpu.memory_space<vmem>>, vector<1x1x8x8xf32>
    %579 = vector.shape_cast %578 : vector<1x1x8x8xf32> to vector<8x8xf32>
    %580 = vector.shape_cast %577 : vector<8x8xf32> to vector<1x1x8x8xf32>
    tpu.vector_store %arg4[%c0_464, %c114, %c0_465, %c0_466], %580 {strides = array<i32>} : memref<1x144x8x8xf32, #tpu.memory_space<vmem>>, vector<1x1x8x8xf32>,
    %581 = vector.extract_strided_slice %576 {offsets = [0, 8], sizes = [8, 8], strides = [1, 1]} : vector<8x24xf32> to vector<8x8xf32>
    %c0_467 = arith.constant 0 : index
    %c115 = arith.constant 115 : index
    %c0_468 = arith.constant 0 : index
    %c0_469 = arith.constant 0 : index
    %582 = vector.load %arg4[%c0_467, %c115, %c0_468, %c0_469] : memref<1x144x8x8xf32, #tpu.memory_space<vmem>>, vector<1x1x8x8xf32>
    %583 = vector.shape_cast %582 : vector<1x1x8x8xf32> to vector<8x8xf32>
    %584 = vector.shape_cast %581 : vector<8x8xf32> to vector<1x1x8x8xf32>
    tpu.vector_store %arg4[%c0_467, %c115, %c0_468, %c0_469], %584 {strides = array<i32>} : memref<1x144x8x8xf32, #tpu.memory_space<vmem>>, vector<1x1x8x8xf32>,
    %585 = vector.extract_strided_slice %576 {offsets = [0, 16], sizes = [8, 8], strides = [1, 1]} : vector<8x24xf32> to vector<8x8xf32>
    %c0_470 = arith.constant 0 : index
    %c116 = arith.constant 116 : index
    %c0_471 = arith.constant 0 : index
    %c0_472 = arith.constant 0 : index
    %586 = vector.load %arg4[%c0_470, %c116, %c0_471, %c0_472] : memref<1x144x8x8xf32, #tpu.memory_space<vmem>>, vector<1x1x8x8xf32>
    %587 = vector.shape_cast %586 : vector<1x1x8x8xf32> to vector<8x8xf32>
    %588 = vector.shape_cast %585 : vector<8x8xf32> to vector<1x1x8x8xf32>
    tpu.vector_store %arg4[%c0_470, %c116, %c0_471, %c0_472], %588 {strides = array<i32>} : memref<1x144x8x8xf32, #tpu.memory_space<vmem>>, vector<1x1x8x8xf32>,
    %589 = vector.extract_strided_slice %3 {offsets = [0, 52], sizes = [8, 4], strides = [1, 1]} : vector<24x64xf32> to vector<8x4xf32>
    %c0_473 = arith.constant 0 : index
    %c0_474 = arith.constant 0 : index
    %590 = vector.load %arg3[%c0_473, %c0_474] : memref<4x24xf32, #tpu.memory_space<vmem>>, vector<4x24xf32>
    %cst_475 = arith.constant dense<0.000000e+00> : vector<8x24xf32>
    %591 = tpu.matmul %589, %590, %cst_475 {dimension_numbers = #tpu.dot_dimension_numbers<[1], [0], [0], [1], [0, 0, 1, 1], [], []>} : vector<8x4xf32>, vector<4x24xf32>, vector<8x24xf32> -> vector<8x24xf32>
    %592 = vector.extract_strided_slice %591 {offsets = [0, 0], sizes = [8, 8], strides = [1, 1]} : vector<8x24xf32> to vector<8x8xf32>
    %c0_476 = arith.constant 0 : index
    %c117 = arith.constant 117 : index
    %c0_477 = arith.constant 0 : index
    %c0_478 = arith.constant 0 : index
    %593 = vector.load %arg4[%c0_476, %c117, %c0_477, %c0_478] : memref<1x144x8x8xf32, #tpu.memory_space<vmem>>, vector<1x1x8x8xf32>
    %594 = vector.shape_cast %593 : vector<1x1x8x8xf32> to vector<8x8xf32>
    %595 = vector.shape_cast %592 : vector<8x8xf32> to vector<1x1x8x8xf32>
    tpu.vector_store %arg4[%c0_476, %c117, %c0_477, %c0_478], %595 {strides = array<i32>} : memref<1x144x8x8xf32, #tpu.memory_space<vmem>>, vector<1x1x8x8xf32>,
    %596 = vector.extract_strided_slice %591 {offsets = [0, 8], sizes = [8, 8], strides = [1, 1]} : vector<8x24xf32> to vector<8x8xf32>
    %c0_479 = arith.constant 0 : index
    %c118 = arith.constant 118 : index
    %c0_480 = arith.constant 0 : index
    %c0_481 = arith.constant 0 : index
    %597 = vector.load %arg4[%c0_479, %c118, %c0_480, %c0_481] : memref<1x144x8x8xf32, #tpu.memory_space<vmem>>, vector<1x1x8x8xf32>
    %598 = vector.shape_cast %597 : vector<1x1x8x8xf32> to vector<8x8xf32>
    %599 = vector.shape_cast %596 : vector<8x8xf32> to vector<1x1x8x8xf32>
    tpu.vector_store %arg4[%c0_479, %c118, %c0_480, %c0_481], %599 {strides = array<i32>} : memref<1x144x8x8xf32, #tpu.memory_space<vmem>>, vector<1x1x8x8xf32>,
    %600 = vector.extract_strided_slice %591 {offsets = [0, 16], sizes = [8, 8], strides = [1, 1]} : vector<8x24xf32> to vector<8x8xf32>
    %c0_482 = arith.constant 0 : index
    %c119 = arith.constant 119 : index
    %c0_483 = arith.constant 0 : index
    %c0_484 = arith.constant 0 : index
    %601 = vector.load %arg4[%c0_482, %c119, %c0_483, %c0_484] : memref<1x144x8x8xf32, #tpu.memory_space<vmem>>, vector<1x1x8x8xf32>
    %602 = vector.shape_cast %601 : vector<1x1x8x8xf32> to vector<8x8xf32>
    %603 = vector.shape_cast %600 : vector<8x8xf32> to vector<1x1x8x8xf32>
    tpu.vector_store %arg4[%c0_482, %c119, %c0_483, %c0_484], %603 {strides = array<i32>} : memref<1x144x8x8xf32, #tpu.memory_space<vmem>>, vector<1x1x8x8xf32>,
    %604 = vector.extract_strided_slice %3 {offsets = [8, 52], sizes = [8, 4], strides = [1, 1]} : vector<24x64xf32> to vector<8x4xf32>
    %c0_485 = arith.constant 0 : index
    %c0_486 = arith.constant 0 : index
    %605 = vector.load %arg3[%c0_485, %c0_486] : memref<4x24xf32, #tpu.memory_space<vmem>>, vector<4x24xf32>
    %cst_487 = arith.constant dense<0.000000e+00> : vector<8x24xf32>
    %606 = tpu.matmul %604, %605, %cst_487 {dimension_numbers = #tpu.dot_dimension_numbers<[1], [0], [0], [1], [0, 0, 1, 1], [], []>} : vector<8x4xf32>, vector<4x24xf32>, vector<8x24xf32> -> vector<8x24xf32>
    %607 = vector.extract_strided_slice %606 {offsets = [0, 0], sizes = [8, 8], strides = [1, 1]} : vector<8x24xf32> to vector<8x8xf32>
    %c0_488 = arith.constant 0 : index
    %c120 = arith.constant 120 : index
    %c0_489 = arith.constant 0 : index
    %c0_490 = arith.constant 0 : index
    %608 = vector.load %arg4[%c0_488, %c120, %c0_489, %c0_490] : memref<1x144x8x8xf32, #tpu.memory_space<vmem>>, vector<1x1x8x8xf32>
    %609 = vector.shape_cast %608 : vector<1x1x8x8xf32> to vector<8x8xf32>
    %610 = vector.shape_cast %607 : vector<8x8xf32> to vector<1x1x8x8xf32>
    tpu.vector_store %arg4[%c0_488, %c120, %c0_489, %c0_490], %610 {strides = array<i32>} : memref<1x144x8x8xf32, #tpu.memory_space<vmem>>, vector<1x1x8x8xf32>,
    %611 = vector.extract_strided_slice %606 {offsets = [0, 8], sizes = [8, 8], strides = [1, 1]} : vector<8x24xf32> to vector<8x8xf32>
    %c0_491 = arith.constant 0 : index
    %c121 = arith.constant 121 : index
    %c0_492 = arith.constant 0 : index
    %c0_493 = arith.constant 0 : index
    %612 = vector.load %arg4[%c0_491, %c121, %c0_492, %c0_493] : memref<1x144x8x8xf32, #tpu.memory_space<vmem>>, vector<1x1x8x8xf32>
    %613 = vector.shape_cast %612 : vector<1x1x8x8xf32> to vector<8x8xf32>
    %614 = vector.shape_cast %611 : vector<8x8xf32> to vector<1x1x8x8xf32>
    tpu.vector_store %arg4[%c0_491, %c121, %c0_492, %c0_493], %614 {strides = array<i32>} : memref<1x144x8x8xf32, #tpu.memory_space<vmem>>, vector<1x1x8x8xf32>,
    %615 = vector.extract_strided_slice %606 {offsets = [0, 16], sizes = [8, 8], strides = [1, 1]} : vector<8x24xf32> to vector<8x8xf32>
    %c0_494 = arith.constant 0 : index
    %c122 = arith.constant 122 : index
    %c0_495 = arith.constant 0 : index
    %c0_496 = arith.constant 0 : index
    %616 = vector.load %arg4[%c0_494, %c122, %c0_495, %c0_496] : memref<1x144x8x8xf32, #tpu.memory_space<vmem>>, vector<1x1x8x8xf32>
    %617 = vector.shape_cast %616 : vector<1x1x8x8xf32> to vector<8x8xf32>
    %618 = vector.shape_cast %615 : vector<8x8xf32> to vector<1x1x8x8xf32>
    tpu.vector_store %arg4[%c0_494, %c122, %c0_495, %c0_496], %618 {strides = array<i32>} : memref<1x144x8x8xf32, #tpu.memory_space<vmem>>, vector<1x1x8x8xf32>,
    %619 = vector.extract_strided_slice %3 {offsets = [16, 52], sizes = [8, 4], strides = [1, 1]} : vector<24x64xf32> to vector<8x4xf32>
    %c0_497 = arith.constant 0 : index
    %c0_498 = arith.constant 0 : index
    %620 = vector.load %arg3[%c0_497, %c0_498] : memref<4x24xf32, #tpu.memory_space<vmem>>, vector<4x24xf32>
    %cst_499 = arith.constant dense<0.000000e+00> : vector<8x24xf32>
    %621 = tpu.matmul %619, %620, %cst_499 {dimension_numbers = #tpu.dot_dimension_numbers<[1], [0], [0], [1], [0, 0, 1, 1], [], []>} : vector<8x4xf32>, vector<4x24xf32>, vector<8x24xf32> -> vector<8x24xf32>
    %622 = vector.extract_strided_slice %621 {offsets = [0, 0], sizes = [8, 8], strides = [1, 1]} : vector<8x24xf32> to vector<8x8xf32>
    %c0_500 = arith.constant 0 : index
    %c123 = arith.constant 123 : index
    %c0_501 = arith.constant 0 : index
    %c0_502 = arith.constant 0 : index
    %623 = vector.load %arg4[%c0_500, %c123, %c0_501, %c0_502] : memref<1x144x8x8xf32, #tpu.memory_space<vmem>>, vector<1x1x8x8xf32>
    %624 = vector.shape_cast %623 : vector<1x1x8x8xf32> to vector<8x8xf32>
    %625 = vector.shape_cast %622 : vector<8x8xf32> to vector<1x1x8x8xf32>
    tpu.vector_store %arg4[%c0_500, %c123, %c0_501, %c0_502], %625 {strides = array<i32>} : memref<1x144x8x8xf32, #tpu.memory_space<vmem>>, vector<1x1x8x8xf32>,
    %626 = vector.extract_strided_slice %621 {offsets = [0, 8], sizes = [8, 8], strides = [1, 1]} : vector<8x24xf32> to vector<8x8xf32>
    %c0_503 = arith.constant 0 : index
    %c124 = arith.constant 124 : index
    %c0_504 = arith.constant 0 : index
    %c0_505 = arith.constant 0 : index
    %627 = vector.load %arg4[%c0_503, %c124, %c0_504, %c0_505] : memref<1x144x8x8xf32, #tpu.memory_space<vmem>>, vector<1x1x8x8xf32>
    %628 = vector.shape_cast %627 : vector<1x1x8x8xf32> to vector<8x8xf32>
    %629 = vector.shape_cast %626 : vector<8x8xf32> to vector<1x1x8x8xf32>
    tpu.vector_store %arg4[%c0_503, %c124, %c0_504, %c0_505], %629 {strides = array<i32>} : memref<1x144x8x8xf32, #tpu.memory_space<vmem>>, vector<1x1x8x8xf32>,
    %630 = vector.extract_strided_slice %621 {offsets = [0, 16], sizes = [8, 8], strides = [1, 1]} : vector<8x24xf32> to vector<8x8xf32>
    %c0_506 = arith.constant 0 : index
    %c125 = arith.constant 125 : index
    %c0_507 = arith.constant 0 : index
    %c0_508 = arith.constant 0 : index
    %631 = vector.load %arg4[%c0_506, %c125, %c0_507, %c0_508] : memref<1x144x8x8xf32, #tpu.memory_space<vmem>>, vector<1x1x8x8xf32>
    %632 = vector.shape_cast %631 : vector<1x1x8x8xf32> to vector<8x8xf32>
    %633 = vector.shape_cast %630 : vector<8x8xf32> to vector<1x1x8x8xf32>
    tpu.vector_store %arg4[%c0_506, %c125, %c0_507, %c0_508], %633 {strides = array<i32>} : memref<1x144x8x8xf32, #tpu.memory_space<vmem>>, vector<1x1x8x8xf32>,
    %634 = vector.extract_strided_slice %3 {offsets = [0, 56], sizes = [8, 4], strides = [1, 1]} : vector<24x64xf32> to vector<8x4xf32>
    %c0_509 = arith.constant 0 : index
    %c0_510 = arith.constant 0 : index
    %635 = vector.load %arg3[%c0_509, %c0_510] : memref<4x24xf32, #tpu.memory_space<vmem>>, vector<4x24xf32>
    %cst_511 = arith.constant dense<0.000000e+00> : vector<8x24xf32>
    %636 = tpu.matmul %634, %635, %cst_511 {dimension_numbers = #tpu.dot_dimension_numbers<[1], [0], [0], [1], [0, 0, 1, 1], [], []>} : vector<8x4xf32>, vector<4x24xf32>, vector<8x24xf32> -> vector<8x24xf32>
    %637 = vector.extract_strided_slice %636 {offsets = [0, 0], sizes = [8, 8], strides = [1, 1]} : vector<8x24xf32> to vector<8x8xf32>
    %c0_512 = arith.constant 0 : index
    %c126 = arith.constant 126 : index
    %c0_513 = arith.constant 0 : index
    %c0_514 = arith.constant 0 : index
    %638 = vector.load %arg4[%c0_512, %c126, %c0_513, %c0_514] : memref<1x144x8x8xf32, #tpu.memory_space<vmem>>, vector<1x1x8x8xf32>
    %639 = vector.shape_cast %638 : vector<1x1x8x8xf32> to vector<8x8xf32>
    %640 = vector.shape_cast %637 : vector<8x8xf32> to vector<1x1x8x8xf32>
    tpu.vector_store %arg4[%c0_512, %c126, %c0_513, %c0_514], %640 {strides = array<i32>} : memref<1x144x8x8xf32, #tpu.memory_space<vmem>>, vector<1x1x8x8xf32>,
    %641 = vector.extract_strided_slice %636 {offsets = [0, 8], sizes = [8, 8], strides = [1, 1]} : vector<8x24xf32> to vector<8x8xf32>
    %c0_515 = arith.constant 0 : index
    %c127 = arith.constant 127 : index
    %c0_516 = arith.constant 0 : index
    %c0_517 = arith.constant 0 : index
    %642 = vector.load %arg4[%c0_515, %c127, %c0_516, %c0_517] : memref<1x144x8x8xf32, #tpu.memory_space<vmem>>, vector<1x1x8x8xf32>
    %643 = vector.shape_cast %642 : vector<1x1x8x8xf32> to vector<8x8xf32>
    %644 = vector.shape_cast %641 : vector<8x8xf32> to vector<1x1x8x8xf32>
    tpu.vector_store %arg4[%c0_515, %c127, %c0_516, %c0_517], %644 {strides = array<i32>} : memref<1x144x8x8xf32, #tpu.memory_space<vmem>>, vector<1x1x8x8xf32>,
    %645 = vector.extract_strided_slice %636 {offsets = [0, 16], sizes = [8, 8], strides = [1, 1]} : vector<8x24xf32> to vector<8x8xf32>
    %c0_518 = arith.constant 0 : index
    %c128 = arith.constant 128 : index
    %c0_519 = arith.constant 0 : index
    %c0_520 = arith.constant 0 : index
    %646 = vector.load %arg4[%c0_518, %c128, %c0_519, %c0_520] : memref<1x144x8x8xf32, #tpu.memory_space<vmem>>, vector<1x1x8x8xf32>
    %647 = vector.shape_cast %646 : vector<1x1x8x8xf32> to vector<8x8xf32>
    %648 = vector.shape_cast %645 : vector<8x8xf32> to vector<1x1x8x8xf32>
    tpu.vector_store %arg4[%c0_518, %c128, %c0_519, %c0_520], %648 {strides = array<i32>} : memref<1x144x8x8xf32, #tpu.memory_space<vmem>>, vector<1x1x8x8xf32>,
    %649 = vector.extract_strided_slice %3 {offsets = [8, 56], sizes = [8, 4], strides = [1, 1]} : vector<24x64xf32> to vector<8x4xf32>
    %c0_521 = arith.constant 0 : index
    %c0_522 = arith.constant 0 : index
    %650 = vector.load %arg3[%c0_521, %c0_522] : memref<4x24xf32, #tpu.memory_space<vmem>>, vector<4x24xf32>
    %cst_523 = arith.constant dense<0.000000e+00> : vector<8x24xf32>
    %651 = tpu.matmul %649, %650, %cst_523 {dimension_numbers = #tpu.dot_dimension_numbers<[1], [0], [0], [1], [0, 0, 1, 1], [], []>} : vector<8x4xf32>, vector<4x24xf32>, vector<8x24xf32> -> vector<8x24xf32>
    %652 = vector.extract_strided_slice %651 {offsets = [0, 0], sizes = [8, 8], strides = [1, 1]} : vector<8x24xf32> to vector<8x8xf32>
    %c0_524 = arith.constant 0 : index
    %c129 = arith.constant 129 : index
    %c0_525 = arith.constant 0 : index
    %c0_526 = arith.constant 0 : index
    %653 = vector.load %arg4[%c0_524, %c129, %c0_525, %c0_526] : memref<1x144x8x8xf32, #tpu.memory_space<vmem>>, vector<1x1x8x8xf32>
    %654 = vector.shape_cast %653 : vector<1x1x8x8xf32> to vector<8x8xf32>
    %655 = vector.shape_cast %652 : vector<8x8xf32> to vector<1x1x8x8xf32>
    tpu.vector_store %arg4[%c0_524, %c129, %c0_525, %c0_526], %655 {strides = array<i32>} : memref<1x144x8x8xf32, #tpu.memory_space<vmem>>, vector<1x1x8x8xf32>,
    %656 = vector.extract_strided_slice %651 {offsets = [0, 8], sizes = [8, 8], strides = [1, 1]} : vector<8x24xf32> to vector<8x8xf32>
    %c0_527 = arith.constant 0 : index
    %c130 = arith.constant 130 : index
    %c0_528 = arith.constant 0 : index
    %c0_529 = arith.constant 0 : index
    %657 = vector.load %arg4[%c0_527, %c130, %c0_528, %c0_529] : memref<1x144x8x8xf32, #tpu.memory_space<vmem>>, vector<1x1x8x8xf32>
    %658 = vector.shape_cast %657 : vector<1x1x8x8xf32> to vector<8x8xf32>
    %659 = vector.shape_cast %656 : vector<8x8xf32> to vector<1x1x8x8xf32>
    tpu.vector_store %arg4[%c0_527, %c130, %c0_528, %c0_529], %659 {strides = array<i32>} : memref<1x144x8x8xf32, #tpu.memory_space<vmem>>, vector<1x1x8x8xf32>,
    %660 = vector.extract_strided_slice %651 {offsets = [0, 16], sizes = [8, 8], strides = [1, 1]} : vector<8x24xf32> to vector<8x8xf32>
    %c0_530 = arith.constant 0 : index
    %c131 = arith.constant 131 : index
    %c0_531 = arith.constant 0 : index
    %c0_532 = arith.constant 0 : index
    %661 = vector.load %arg4[%c0_530, %c131, %c0_531, %c0_532] : memref<1x144x8x8xf32, #tpu.memory_space<vmem>>, vector<1x1x8x8xf32>
    %662 = vector.shape_cast %661 : vector<1x1x8x8xf32> to vector<8x8xf32>
    %663 = vector.shape_cast %660 : vector<8x8xf32> to vector<1x1x8x8xf32>
    tpu.vector_store %arg4[%c0_530, %c131, %c0_531, %c0_532], %663 {strides = array<i32>} : memref<1x144x8x8xf32, #tpu.memory_space<vmem>>, vector<1x1x8x8xf32>,
    %664 = vector.extract_strided_slice %3 {offsets = [16, 56], sizes = [8, 4], strides = [1, 1]} : vector<24x64xf32> to vector<8x4xf32>
    %c0_533 = arith.constant 0 : index
    %c0_534 = arith.constant 0 : index
    %665 = vector.load %arg3[%c0_533, %c0_534] : memref<4x24xf32, #tpu.memory_space<vmem>>, vector<4x24xf32>
    %cst_535 = arith.constant dense<0.000000e+00> : vector<8x24xf32>
    %666 = tpu.matmul %664, %665, %cst_535 {dimension_numbers = #tpu.dot_dimension_numbers<[1], [0], [0], [1], [0, 0, 1, 1], [], []>} : vector<8x4xf32>, vector<4x24xf32>, vector<8x24xf32> -> vector<8x24xf32>
    %667 = vector.extract_strided_slice %666 {offsets = [0, 0], sizes = [8, 8], strides = [1, 1]} : vector<8x24xf32> to vector<8x8xf32>
    %c0_536 = arith.constant 0 : index
    %c132 = arith.constant 132 : index
    %c0_537 = arith.constant 0 : index
    %c0_538 = arith.constant 0 : index
    %668 = vector.load %arg4[%c0_536, %c132, %c0_537, %c0_538] : memref<1x144x8x8xf32, #tpu.memory_space<vmem>>, vector<1x1x8x8xf32>
    %669 = vector.shape_cast %668 : vector<1x1x8x8xf32> to vector<8x8xf32>
    %670 = vector.shape_cast %667 : vector<8x8xf32> to vector<1x1x8x8xf32>
    tpu.vector_store %arg4[%c0_536, %c132, %c0_537, %c0_538], %670 {strides = array<i32>} : memref<1x144x8x8xf32, #tpu.memory_space<vmem>>, vector<1x1x8x8xf32>,
    %671 = vector.extract_strided_slice %666 {offsets = [0, 8], sizes = [8, 8], strides = [1, 1]} : vector<8x24xf32> to vector<8x8xf32>
    %c0_539 = arith.constant 0 : index
    %c133 = arith.constant 133 : index
    %c0_540 = arith.constant 0 : index
    %c0_541 = arith.constant 0 : index
    %672 = vector.load %arg4[%c0_539, %c133, %c0_540, %c0_541] : memref<1x144x8x8xf32, #tpu.memory_space<vmem>>, vector<1x1x8x8xf32>
    %673 = vector.shape_cast %672 : vector<1x1x8x8xf32> to vector<8x8xf32>
    %674 = vector.shape_cast %671 : vector<8x8xf32> to vector<1x1x8x8xf32>
    tpu.vector_store %arg4[%c0_539, %c133, %c0_540, %c0_541], %674 {strides = array<i32>} : memref<1x144x8x8xf32, #tpu.memory_space<vmem>>, vector<1x1x8x8xf32>,
    %675 = vector.extract_strided_slice %666 {offsets = [0, 16], sizes = [8, 8], strides = [1, 1]} : vector<8x24xf32> to vector<8x8xf32>
    %c0_542 = arith.constant 0 : index
    %c134 = arith.constant 134 : index
    %c0_543 = arith.constant 0 : index
    %c0_544 = arith.constant 0 : index
    %676 = vector.load %arg4[%c0_542, %c134, %c0_543, %c0_544] : memref<1x144x8x8xf32, #tpu.memory_space<vmem>>, vector<1x1x8x8xf32>
    %677 = vector.shape_cast %676 : vector<1x1x8x8xf32> to vector<8x8xf32>
    %678 = vector.shape_cast %675 : vector<8x8xf32> to vector<1x1x8x8xf32>
    tpu.vector_store %arg4[%c0_542, %c134, %c0_543, %c0_544], %678 {strides = array<i32>} : memref<1x144x8x8xf32, #tpu.memory_space<vmem>>, vector<1x1x8x8xf32>,
    %679 = vector.extract_strided_slice %3 {offsets = [0, 60], sizes = [8, 4], strides = [1, 1]} : vector<24x64xf32> to vector<8x4xf32>
    %c0_545 = arith.constant 0 : index
    %c0_546 = arith.constant 0 : index
    %680 = vector.load %arg3[%c0_545, %c0_546] : memref<4x24xf32, #tpu.memory_space<vmem>>, vector<4x24xf32>
    %cst_547 = arith.constant dense<0.000000e+00> : vector<8x24xf32>
    %681 = tpu.matmul %679, %680, %cst_547 {dimension_numbers = #tpu.dot_dimension_numbers<[1], [0], [0], [1], [0, 0, 1, 1], [], []>} : vector<8x4xf32>, vector<4x24xf32>, vector<8x24xf32> -> vector<8x24xf32>
    %682 = vector.extract_strided_slice %681 {offsets = [0, 0], sizes = [8, 8], strides = [1, 1]} : vector<8x24xf32> to vector<8x8xf32>
    %c0_548 = arith.constant 0 : index
    %c135 = arith.constant 135 : index
    %c0_549 = arith.constant 0 : index
    %c0_550 = arith.constant 0 : index
    %683 = vector.load %arg4[%c0_548, %c135, %c0_549, %c0_550] : memref<1x144x8x8xf32, #tpu.memory_space<vmem>>, vector<1x1x8x8xf32>
    %684 = vector.shape_cast %683 : vector<1x1x8x8xf32> to vector<8x8xf32>
    %685 = vector.shape_cast %682 : vector<8x8xf32> to vector<1x1x8x8xf32>
    tpu.vector_store %arg4[%c0_548, %c135, %c0_549, %c0_550], %685 {strides = array<i32>} : memref<1x144x8x8xf32, #tpu.memory_space<vmem>>, vector<1x1x8x8xf32>,
    %686 = vector.extract_strided_slice %681 {offsets = [0, 8], sizes = [8, 8], strides = [1, 1]} : vector<8x24xf32> to vector<8x8xf32>
    %c0_551 = arith.constant 0 : index
    %c136 = arith.constant 136 : index
    %c0_552 = arith.constant 0 : index
    %c0_553 = arith.constant 0 : index
    %687 = vector.load %arg4[%c0_551, %c136, %c0_552, %c0_553] : memref<1x144x8x8xf32, #tpu.memory_space<vmem>>, vector<1x1x8x8xf32>
    %688 = vector.shape_cast %687 : vector<1x1x8x8xf32> to vector<8x8xf32>
    %689 = vector.shape_cast %686 : vector<8x8xf32> to vector<1x1x8x8xf32>
    tpu.vector_store %arg4[%c0_551, %c136, %c0_552, %c0_553], %689 {strides = array<i32>} : memref<1x144x8x8xf32, #tpu.memory_space<vmem>>, vector<1x1x8x8xf32>,
    %690 = vector.extract_strided_slice %681 {offsets = [0, 16], sizes = [8, 8], strides = [1, 1]} : vector<8x24xf32> to vector<8x8xf32>
    %c0_554 = arith.constant 0 : index
    %c137 = arith.constant 137 : index
    %c0_555 = arith.constant 0 : index
    %c0_556 = arith.constant 0 : index
    %691 = vector.load %arg4[%c0_554, %c137, %c0_555, %c0_556] : memref<1x144x8x8xf32, #tpu.memory_space<vmem>>, vector<1x1x8x8xf32>
    %692 = vector.shape_cast %691 : vector<1x1x8x8xf32> to vector<8x8xf32>
    %693 = vector.shape_cast %690 : vector<8x8xf32> to vector<1x1x8x8xf32>
    tpu.vector_store %arg4[%c0_554, %c137, %c0_555, %c0_556], %693 {strides = array<i32>} : memref<1x144x8x8xf32, #tpu.memory_space<vmem>>, vector<1x1x8x8xf32>,
    %694 = vector.extract_strided_slice %3 {offsets = [8, 60], sizes = [8, 4], strides = [1, 1]} : vector<24x64xf32> to vector<8x4xf32>
    %c0_557 = arith.constant 0 : index
    %c0_558 = arith.constant 0 : index
    %695 = vector.load %arg3[%c0_557, %c0_558] : memref<4x24xf32, #tpu.memory_space<vmem>>, vector<4x24xf32>
    %cst_559 = arith.constant dense<0.000000e+00> : vector<8x24xf32>
    %696 = tpu.matmul %694, %695, %cst_559 {dimension_numbers = #tpu.dot_dimension_numbers<[1], [0], [0], [1], [0, 0, 1, 1], [], []>} : vector<8x4xf32>, vector<4x24xf32>, vector<8x24xf32> -> vector<8x24xf32>
    %697 = vector.extract_strided_slice %696 {offsets = [0, 0], sizes = [8, 8], strides = [1, 1]} : vector<8x24xf32> to vector<8x8xf32>
    %c0_560 = arith.constant 0 : index
    %c138 = arith.constant 138 : index
    %c0_561 = arith.constant 0 : index
    %c0_562 = arith.constant 0 : index
    %698 = vector.load %arg4[%c0_560, %c138, %c0_561, %c0_562] : memref<1x144x8x8xf32, #tpu.memory_space<vmem>>, vector<1x1x8x8xf32>
    %699 = vector.shape_cast %698 : vector<1x1x8x8xf32> to vector<8x8xf32>
    %700 = vector.shape_cast %697 : vector<8x8xf32> to vector<1x1x8x8xf32>
    tpu.vector_store %arg4[%c0_560, %c138, %c0_561, %c0_562], %700 {strides = array<i32>} : memref<1x144x8x8xf32, #tpu.memory_space<vmem>>, vector<1x1x8x8xf32>,
    %701 = vector.extract_strided_slice %696 {offsets = [0, 8], sizes = [8, 8], strides = [1, 1]} : vector<8x24xf32> to vector<8x8xf32>
    %c0_563 = arith.constant 0 : index
    %c139 = arith.constant 139 : index
    %c0_564 = arith.constant 0 : index
    %c0_565 = arith.constant 0 : index
    %702 = vector.load %arg4[%c0_563, %c139, %c0_564, %c0_565] : memref<1x144x8x8xf32, #tpu.memory_space<vmem>>, vector<1x1x8x8xf32>
    %703 = vector.shape_cast %702 : vector<1x1x8x8xf32> to vector<8x8xf32>
    %704 = vector.shape_cast %701 : vector<8x8xf32> to vector<1x1x8x8xf32>
    tpu.vector_store %arg4[%c0_563, %c139, %c0_564, %c0_565], %704 {strides = array<i32>} : memref<1x144x8x8xf32, #tpu.memory_space<vmem>>, vector<1x1x8x8xf32>,
    %705 = vector.extract_strided_slice %696 {offsets = [0, 16], sizes = [8, 8], strides = [1, 1]} : vector<8x24xf32> to vector<8x8xf32>
    %c0_566 = arith.constant 0 : index
    %c140 = arith.constant 140 : index
    %c0_567 = arith.constant 0 : index
    %c0_568 = arith.constant 0 : index
    %706 = vector.load %arg4[%c0_566, %c140, %c0_567, %c0_568] : memref<1x144x8x8xf32, #tpu.memory_space<vmem>>, vector<1x1x8x8xf32>
    %707 = vector.shape_cast %706 : vector<1x1x8x8xf32> to vector<8x8xf32>
    %708 = vector.shape_cast %705 : vector<8x8xf32> to vector<1x1x8x8xf32>
    tpu.vector_store %arg4[%c0_566, %c140, %c0_567, %c0_568], %708 {strides = array<i32>} : memref<1x144x8x8xf32, #tpu.memory_space<vmem>>, vector<1x1x8x8xf32>,
    %709 = vector.extract_strided_slice %3 {offsets = [16, 60], sizes = [8, 4], strides = [1, 1]} : vector<24x64xf32> to vector<8x4xf32>
    %c0_569 = arith.constant 0 : index
    %c0_570 = arith.constant 0 : index
    %710 = vector.load %arg3[%c0_569, %c0_570] : memref<4x24xf32, #tpu.memory_space<vmem>>, vector<4x24xf32>
    %cst_571 = arith.constant dense<0.000000e+00> : vector<8x24xf32>
    %711 = tpu.matmul %709, %710, %cst_571 {dimension_numbers = #tpu.dot_dimension_numbers<[1], [0], [0], [1], [0, 0, 1, 1], [], []>} : vector<8x4xf32>, vector<4x24xf32>, vector<8x24xf32> -> vector<8x24xf32>
    %712 = vector.extract_strided_slice %711 {offsets = [0, 0], sizes = [8, 8], strides = [1, 1]} : vector<8x24xf32> to vector<8x8xf32>
    %c0_572 = arith.constant 0 : index
    %c141 = arith.constant 141 : index
    %c0_573 = arith.constant 0 : index
    %c0_574 = arith.constant 0 : index
    %713 = vector.load %arg4[%c0_572, %c141, %c0_573, %c0_574] : memref<1x144x8x8xf32, #tpu.memory_space<vmem>>, vector<1x1x8x8xf32>
    %714 = vector.shape_cast %713 : vector<1x1x8x8xf32> to vector<8x8xf32>
    %715 = vector.shape_cast %712 : vector<8x8xf32> to vector<1x1x8x8xf32>
    tpu.vector_store %arg4[%c0_572, %c141, %c0_573, %c0_574], %715 {strides = array<i32>} : memref<1x144x8x8xf32, #tpu.memory_space<vmem>>, vector<1x1x8x8xf32>,
    %716 = vector.extract_strided_slice %711 {offsets = [0, 8], sizes = [8, 8], strides = [1, 1]} : vector<8x24xf32> to vector<8x8xf32>
    %c0_575 = arith.constant 0 : index
    %c142 = arith.constant 142 : index
    %c0_576 = arith.constant 0 : index
    %c0_577 = arith.constant 0 : index
    %717 = vector.load %arg4[%c0_575, %c142, %c0_576, %c0_577] : memref<1x144x8x8xf32, #tpu.memory_space<vmem>>, vector<1x1x8x8xf32>
    %718 = vector.shape_cast %717 : vector<1x1x8x8xf32> to vector<8x8xf32>
    %719 = vector.shape_cast %716 : vector<8x8xf32> to vector<1x1x8x8xf32>
    tpu.vector_store %arg4[%c0_575, %c142, %c0_576, %c0_577], %719 {strides = array<i32>} : memref<1x144x8x8xf32, #tpu.memory_space<vmem>>, vector<1x1x8x8xf32>,
    %720 = vector.extract_strided_slice %711 {offsets = [0, 16], sizes = [8, 8], strides = [1, 1]} : vector<8x24xf32> to vector<8x8xf32>
    %c0_578 = arith.constant 0 : index
    %c143 = arith.constant 143 : index
    %c0_579 = arith.constant 0 : index
    %c0_580 = arith.constant 0 : index
    %721 = vector.load %arg4[%c0_578, %c143, %c0_579, %c0_580] : memref<1x144x8x8xf32, #tpu.memory_space<vmem>>, vector<1x1x8x8xf32>
    %722 = vector.shape_cast %721 : vector<1x1x8x8xf32> to vector<8x8xf32>
    %723 = vector.shape_cast %720 : vector<8x8xf32> to vector<1x1x8x8xf32>
    tpu.vector_store %arg4[%c0_578, %c143, %c0_579, %c0_580], %723 {strides = array<i32>} : memref<1x144x8x8xf32, #tpu.memory_space<vmem>>, vector<1x1x8x8xf32>,
    return
  }
  func.func @transform_0(%arg0: i32) -> (i32, i32, i32) {
    %c0_i32 = arith.constant 0 : i32
    %c0_i32_0 = arith.constant 0 : i32
    %c0_i32_1 = arith.constant 0 : i32
    return %arg0, %c0_i32, %c0_i32_0 : i32, i32, i32
  }
  func.func @transform_1(%arg0: i32) -> (i32, i32) {
    %c0_i32 = arith.constant 0 : i32
    %c0_i32_0 = arith.constant 0 : i32
    %c0_i32_1 = arith.constant 0 : i32
    return %c0_i32, %c0_i32_0 : i32, i32
  }
  func.func @transform_2(%arg0: i32) -> (i32, i32) {
    %c0_i32 = arith.constant 0 : i32
    %c0_i32_0 = arith.constant 0 : i32
    %c0_i32_1 = arith.constant 0 : i32
    return %c0_i32, %c0_i32_0 : i32, i32
  }
  func.func @transform_3(%arg0: i32) -> (i32, i32, i32, i32) {
    %c0_i32 = arith.constant 0 : i32
    %c0_i32_0 = arith.constant 0 : i32
    %c0_i32_1 = arith.constant 0 : i32
    %c0_i32_2 = arith.constant 0 : i32
    return %arg0, %c0_i32, %c0_i32_0, %c0_i32_1 : i32, i32, i32, i32
  }
}

module attributes {stable_mosaic.version = 11 : i64} {
  func.func @kernel(%arg0: i32, %arg1: memref<1x8x128xf32, #tpu.memory_space<vmem>>, %arg2: memref<48x8xf32, #tpu.memory_space<vmem>>, %arg3: memref<8x48xf32, #tpu.memory_space<vmem>>, %arg4: memref<1x144x16x16xf32, #tpu.memory_space<vmem>>) attributes {dimension_semantics = [#tpu.dimension_semantics<parallel>], iteration_bounds = array<i64: 2>, scalar_prefetch = 0 : i64, scratch_operands = 0 : i64, tpu.core_type = #tpu.core_type<tc>, window_params = [{transform_indices = @transform_0, window_bounds = array<i64: 1, 8, 128>}, {pipeline_mode = #tpu.pipeline_mode<synchronous>, transform_indices = @transform_1, window_bounds = array<i64: 48, 8>}, {pipeline_mode = #tpu.pipeline_mode<synchronous>, transform_indices = @transform_2, window_bounds = array<i64: 8, 48>}, {transform_indices = @transform_3, window_bounds = array<i64: 1, 144, 16, 16>}]} {
    %c0 = arith.constant 0 : index
    %c0_0 = arith.constant 0 : index
    %0 = vector.load %arg2[%c0, %c0_0] : memref<48x8xf32, #tpu.memory_space<vmem>>, vector<48x8xf32>
    %c0_1 = arith.constant 0 : index
    %c0_2 = arith.constant 0 : index
    %c0_3 = arith.constant 0 : index
    %1 = vector.load %arg1[%c0_1, %c0_2, %c0_3] : memref<1x8x128xf32, #tpu.memory_space<vmem>>, vector<1x8x128xf32>
    %2 = vector.shape_cast %1 : vector<1x8x128xf32> to vector<8x128xf32>
    %cst = arith.constant dense<0.000000e+00> : vector<48x128xf32>
    %3 = tpu.matmul %0, %2, %cst {dimension_numbers = #tpu.dot_dimension_numbers<[1], [0], [0], [1], [0, 0, 1, 1], [], []>} : vector<48x8xf32>, vector<8x128xf32>, vector<48x128xf32> -> vector<48x128xf32>
    %4 = vector.extract_strided_slice %3 {offsets = [0, 0], sizes = [16, 8], strides = [1, 1]} : vector<48x128xf32> to vector<16x8xf32>
    %c0_4 = arith.constant 0 : index
    %c0_5 = arith.constant 0 : index
    %5 = vector.load %arg3[%c0_4, %c0_5] : memref<8x48xf32, #tpu.memory_space<vmem>>, vector<8x48xf32>
    %cst_6 = arith.constant dense<0.000000e+00> : vector<16x48xf32>
    %6 = tpu.matmul %4, %5, %cst_6 {dimension_numbers = #tpu.dot_dimension_numbers<[1], [0], [0], [1], [0, 0, 1, 1], [], []>} : vector<16x8xf32>, vector<8x48xf32>, vector<16x48xf32> -> vector<16x48xf32>
    %7 = vector.extract_strided_slice %6 {offsets = [0, 0], sizes = [16, 16], strides = [1, 1]} : vector<16x48xf32> to vector<16x16xf32>
    %c0_7 = arith.constant 0 : index
    %c0_8 = arith.constant 0 : index
    %c0_9 = arith.constant 0 : index
    %c0_10 = arith.constant 0 : index
    %8 = vector.load %arg4[%c0_7, %c0_8, %c0_9, %c0_10] : memref<1x144x16x16xf32, #tpu.memory_space<vmem>>, vector<1x1x16x16xf32>
    %9 = vector.shape_cast %8 : vector<1x1x16x16xf32> to vector<16x16xf32>
    %10 = vector.shape_cast %7 : vector<16x16xf32> to vector<1x1x16x16xf32>
    tpu.vector_store %arg4[%c0_7, %c0_8, %c0_9, %c0_10], %10 {strides = array<i32>} : memref<1x144x16x16xf32, #tpu.memory_space<vmem>>, vector<1x1x16x16xf32>,
    %11 = vector.extract_strided_slice %6 {offsets = [0, 16], sizes = [16, 16], strides = [1, 1]} : vector<16x48xf32> to vector<16x16xf32>
    %c0_11 = arith.constant 0 : index
    %c1 = arith.constant 1 : index
    %c0_12 = arith.constant 0 : index
    %c0_13 = arith.constant 0 : index
    %12 = vector.load %arg4[%c0_11, %c1, %c0_12, %c0_13] : memref<1x144x16x16xf32, #tpu.memory_space<vmem>>, vector<1x1x16x16xf32>
    %13 = vector.shape_cast %12 : vector<1x1x16x16xf32> to vector<16x16xf32>
    %14 = vector.shape_cast %11 : vector<16x16xf32> to vector<1x1x16x16xf32>
    tpu.vector_store %arg4[%c0_11, %c1, %c0_12, %c0_13], %14 {strides = array<i32>} : memref<1x144x16x16xf32, #tpu.memory_space<vmem>>, vector<1x1x16x16xf32>,
    %15 = vector.extract_strided_slice %6 {offsets = [0, 32], sizes = [16, 16], strides = [1, 1]} : vector<16x48xf32> to vector<16x16xf32>
    %c0_14 = arith.constant 0 : index
    %c2 = arith.constant 2 : index
    %c0_15 = arith.constant 0 : index
    %c0_16 = arith.constant 0 : index
    %16 = vector.load %arg4[%c0_14, %c2, %c0_15, %c0_16] : memref<1x144x16x16xf32, #tpu.memory_space<vmem>>, vector<1x1x16x16xf32>
    %17 = vector.shape_cast %16 : vector<1x1x16x16xf32> to vector<16x16xf32>
    %18 = vector.shape_cast %15 : vector<16x16xf32> to vector<1x1x16x16xf32>
    tpu.vector_store %arg4[%c0_14, %c2, %c0_15, %c0_16], %18 {strides = array<i32>} : memref<1x144x16x16xf32, #tpu.memory_space<vmem>>, vector<1x1x16x16xf32>,
    %19 = vector.extract_strided_slice %3 {offsets = [16, 0], sizes = [16, 8], strides = [1, 1]} : vector<48x128xf32> to vector<16x8xf32>
    %c0_17 = arith.constant 0 : index
    %c0_18 = arith.constant 0 : index
    %20 = vector.load %arg3[%c0_17, %c0_18] : memref<8x48xf32, #tpu.memory_space<vmem>>, vector<8x48xf32>
    %cst_19 = arith.constant dense<0.000000e+00> : vector<16x48xf32>
    %21 = tpu.matmul %19, %20, %cst_19 {dimension_numbers = #tpu.dot_dimension_numbers<[1], [0], [0], [1], [0, 0, 1, 1], [], []>} : vector<16x8xf32>, vector<8x48xf32>, vector<16x48xf32> -> vector<16x48xf32>
    %22 = vector.extract_strided_slice %21 {offsets = [0, 0], sizes = [16, 16], strides = [1, 1]} : vector<16x48xf32> to vector<16x16xf32>
    %c0_20 = arith.constant 0 : index
    %c3 = arith.constant 3 : index
    %c0_21 = arith.constant 0 : index
    %c0_22 = arith.constant 0 : index
    %23 = vector.load %arg4[%c0_20, %c3, %c0_21, %c0_22] : memref<1x144x16x16xf32, #tpu.memory_space<vmem>>, vector<1x1x16x16xf32>
    %24 = vector.shape_cast %23 : vector<1x1x16x16xf32> to vector<16x16xf32>
    %25 = vector.shape_cast %22 : vector<16x16xf32> to vector<1x1x16x16xf32>
    tpu.vector_store %arg4[%c0_20, %c3, %c0_21, %c0_22], %25 {strides = array<i32>} : memref<1x144x16x16xf32, #tpu.memory_space<vmem>>, vector<1x1x16x16xf32>,
    %26 = vector.extract_strided_slice %21 {offsets = [0, 16], sizes = [16, 16], strides = [1, 1]} : vector<16x48xf32> to vector<16x16xf32>
    %c0_23 = arith.constant 0 : index
    %c4 = arith.constant 4 : index
    %c0_24 = arith.constant 0 : index
    %c0_25 = arith.constant 0 : index
    %27 = vector.load %arg4[%c0_23, %c4, %c0_24, %c0_25] : memref<1x144x16x16xf32, #tpu.memory_space<vmem>>, vector<1x1x16x16xf32>
    %28 = vector.shape_cast %27 : vector<1x1x16x16xf32> to vector<16x16xf32>
    %29 = vector.shape_cast %26 : vector<16x16xf32> to vector<1x1x16x16xf32>
    tpu.vector_store %arg4[%c0_23, %c4, %c0_24, %c0_25], %29 {strides = array<i32>} : memref<1x144x16x16xf32, #tpu.memory_space<vmem>>, vector<1x1x16x16xf32>,
    %30 = vector.extract_strided_slice %21 {offsets = [0, 32], sizes = [16, 16], strides = [1, 1]} : vector<16x48xf32> to vector<16x16xf32>
    %c0_26 = arith.constant 0 : index
    %c5 = arith.constant 5 : index
    %c0_27 = arith.constant 0 : index
    %c0_28 = arith.constant 0 : index
    %31 = vector.load %arg4[%c0_26, %c5, %c0_27, %c0_28] : memref<1x144x16x16xf32, #tpu.memory_space<vmem>>, vector<1x1x16x16xf32>
    %32 = vector.shape_cast %31 : vector<1x1x16x16xf32> to vector<16x16xf32>
    %33 = vector.shape_cast %30 : vector<16x16xf32> to vector<1x1x16x16xf32>
    tpu.vector_store %arg4[%c0_26, %c5, %c0_27, %c0_28], %33 {strides = array<i32>} : memref<1x144x16x16xf32, #tpu.memory_space<vmem>>, vector<1x1x16x16xf32>,
    %34 = vector.extract_strided_slice %3 {offsets = [32, 0], sizes = [16, 8], strides = [1, 1]} : vector<48x128xf32> to vector<16x8xf32>
    %c0_29 = arith.constant 0 : index
    %c0_30 = arith.constant 0 : index
    %35 = vector.load %arg3[%c0_29, %c0_30] : memref<8x48xf32, #tpu.memory_space<vmem>>, vector<8x48xf32>
    %cst_31 = arith.constant dense<0.000000e+00> : vector<16x48xf32>
    %36 = tpu.matmul %34, %35, %cst_31 {dimension_numbers = #tpu.dot_dimension_numbers<[1], [0], [0], [1], [0, 0, 1, 1], [], []>} : vector<16x8xf32>, vector<8x48xf32>, vector<16x48xf32> -> vector<16x48xf32>
    %37 = vector.extract_strided_slice %36 {offsets = [0, 0], sizes = [16, 16], strides = [1, 1]} : vector<16x48xf32> to vector<16x16xf32>
    %c0_32 = arith.constant 0 : index
    %c6 = arith.constant 6 : index
    %c0_33 = arith.constant 0 : index
    %c0_34 = arith.constant 0 : index
    %38 = vector.load %arg4[%c0_32, %c6, %c0_33, %c0_34] : memref<1x144x16x16xf32, #tpu.memory_space<vmem>>, vector<1x1x16x16xf32>
    %39 = vector.shape_cast %38 : vector<1x1x16x16xf32> to vector<16x16xf32>
    %40 = vector.shape_cast %37 : vector<16x16xf32> to vector<1x1x16x16xf32>
    tpu.vector_store %arg4[%c0_32, %c6, %c0_33, %c0_34], %40 {strides = array<i32>} : memref<1x144x16x16xf32, #tpu.memory_space<vmem>>, vector<1x1x16x16xf32>,
    %41 = vector.extract_strided_slice %36 {offsets = [0, 16], sizes = [16, 16], strides = [1, 1]} : vector<16x48xf32> to vector<16x16xf32>
    %c0_35 = arith.constant 0 : index
    %c7 = arith.constant 7 : index
    %c0_36 = arith.constant 0 : index
    %c0_37 = arith.constant 0 : index
    %42 = vector.load %arg4[%c0_35, %c7, %c0_36, %c0_37] : memref<1x144x16x16xf32, #tpu.memory_space<vmem>>, vector<1x1x16x16xf32>
    %43 = vector.shape_cast %42 : vector<1x1x16x16xf32> to vector<16x16xf32>
    %44 = vector.shape_cast %41 : vector<16x16xf32> to vector<1x1x16x16xf32>
    tpu.vector_store %arg4[%c0_35, %c7, %c0_36, %c0_37], %44 {strides = array<i32>} : memref<1x144x16x16xf32, #tpu.memory_space<vmem>>, vector<1x1x16x16xf32>,
    %45 = vector.extract_strided_slice %36 {offsets = [0, 32], sizes = [16, 16], strides = [1, 1]} : vector<16x48xf32> to vector<16x16xf32>
    %c0_38 = arith.constant 0 : index
    %c8 = arith.constant 8 : index
    %c0_39 = arith.constant 0 : index
    %c0_40 = arith.constant 0 : index
    %46 = vector.load %arg4[%c0_38, %c8, %c0_39, %c0_40] : memref<1x144x16x16xf32, #tpu.memory_space<vmem>>, vector<1x1x16x16xf32>
    %47 = vector.shape_cast %46 : vector<1x1x16x16xf32> to vector<16x16xf32>
    %48 = vector.shape_cast %45 : vector<16x16xf32> to vector<1x1x16x16xf32>
    tpu.vector_store %arg4[%c0_38, %c8, %c0_39, %c0_40], %48 {strides = array<i32>} : memref<1x144x16x16xf32, #tpu.memory_space<vmem>>, vector<1x1x16x16xf32>,
    %49 = vector.extract_strided_slice %3 {offsets = [0, 8], sizes = [16, 8], strides = [1, 1]} : vector<48x128xf32> to vector<16x8xf32>
    %c0_41 = arith.constant 0 : index
    %c0_42 = arith.constant 0 : index
    %50 = vector.load %arg3[%c0_41, %c0_42] : memref<8x48xf32, #tpu.memory_space<vmem>>, vector<8x48xf32>
    %cst_43 = arith.constant dense<0.000000e+00> : vector<16x48xf32>
    %51 = tpu.matmul %49, %50, %cst_43 {dimension_numbers = #tpu.dot_dimension_numbers<[1], [0], [0], [1], [0, 0, 1, 1], [], []>} : vector<16x8xf32>, vector<8x48xf32>, vector<16x48xf32> -> vector<16x48xf32>
    %52 = vector.extract_strided_slice %51 {offsets = [0, 0], sizes = [16, 16], strides = [1, 1]} : vector<16x48xf32> to vector<16x16xf32>
    %c0_44 = arith.constant 0 : index
    %c9 = arith.constant 9 : index
    %c0_45 = arith.constant 0 : index
    %c0_46 = arith.constant 0 : index
    %53 = vector.load %arg4[%c0_44, %c9, %c0_45, %c0_46] : memref<1x144x16x16xf32, #tpu.memory_space<vmem>>, vector<1x1x16x16xf32>
    %54 = vector.shape_cast %53 : vector<1x1x16x16xf32> to vector<16x16xf32>
    %55 = vector.shape_cast %52 : vector<16x16xf32> to vector<1x1x16x16xf32>
    tpu.vector_store %arg4[%c0_44, %c9, %c0_45, %c0_46], %55 {strides = array<i32>} : memref<1x144x16x16xf32, #tpu.memory_space<vmem>>, vector<1x1x16x16xf32>,
    %56 = vector.extract_strided_slice %51 {offsets = [0, 16], sizes = [16, 16], strides = [1, 1]} : vector<16x48xf32> to vector<16x16xf32>
    %c0_47 = arith.constant 0 : index
    %c10 = arith.constant 10 : index
    %c0_48 = arith.constant 0 : index
    %c0_49 = arith.constant 0 : index
    %57 = vector.load %arg4[%c0_47, %c10, %c0_48, %c0_49] : memref<1x144x16x16xf32, #tpu.memory_space<vmem>>, vector<1x1x16x16xf32>
    %58 = vector.shape_cast %57 : vector<1x1x16x16xf32> to vector<16x16xf32>
    %59 = vector.shape_cast %56 : vector<16x16xf32> to vector<1x1x16x16xf32>
    tpu.vector_store %arg4[%c0_47, %c10, %c0_48, %c0_49], %59 {strides = array<i32>} : memref<1x144x16x16xf32, #tpu.memory_space<vmem>>, vector<1x1x16x16xf32>,
    %60 = vector.extract_strided_slice %51 {offsets = [0, 32], sizes = [16, 16], strides = [1, 1]} : vector<16x48xf32> to vector<16x16xf32>
    %c0_50 = arith.constant 0 : index
    %c11 = arith.constant 11 : index
    %c0_51 = arith.constant 0 : index
    %c0_52 = arith.constant 0 : index
    %61 = vector.load %arg4[%c0_50, %c11, %c0_51, %c0_52] : memref<1x144x16x16xf32, #tpu.memory_space<vmem>>, vector<1x1x16x16xf32>
    %62 = vector.shape_cast %61 : vector<1x1x16x16xf32> to vector<16x16xf32>
    %63 = vector.shape_cast %60 : vector<16x16xf32> to vector<1x1x16x16xf32>
    tpu.vector_store %arg4[%c0_50, %c11, %c0_51, %c0_52], %63 {strides = array<i32>} : memref<1x144x16x16xf32, #tpu.memory_space<vmem>>, vector<1x1x16x16xf32>,
    %64 = vector.extract_strided_slice %3 {offsets = [16, 8], sizes = [16, 8], strides = [1, 1]} : vector<48x128xf32> to vector<16x8xf32>
    %c0_53 = arith.constant 0 : index
    %c0_54 = arith.constant 0 : index
    %65 = vector.load %arg3[%c0_53, %c0_54] : memref<8x48xf32, #tpu.memory_space<vmem>>, vector<8x48xf32>
    %cst_55 = arith.constant dense<0.000000e+00> : vector<16x48xf32>
    %66 = tpu.matmul %64, %65, %cst_55 {dimension_numbers = #tpu.dot_dimension_numbers<[1], [0], [0], [1], [0, 0, 1, 1], [], []>} : vector<16x8xf32>, vector<8x48xf32>, vector<16x48xf32> -> vector<16x48xf32>
    %67 = vector.extract_strided_slice %66 {offsets = [0, 0], sizes = [16, 16], strides = [1, 1]} : vector<16x48xf32> to vector<16x16xf32>
    %c0_56 = arith.constant 0 : index
    %c12 = arith.constant 12 : index
    %c0_57 = arith.constant 0 : index
    %c0_58 = arith.constant 0 : index
    %68 = vector.load %arg4[%c0_56, %c12, %c0_57, %c0_58] : memref<1x144x16x16xf32, #tpu.memory_space<vmem>>, vector<1x1x16x16xf32>
    %69 = vector.shape_cast %68 : vector<1x1x16x16xf32> to vector<16x16xf32>
    %70 = vector.shape_cast %67 : vector<16x16xf32> to vector<1x1x16x16xf32>
    tpu.vector_store %arg4[%c0_56, %c12, %c0_57, %c0_58], %70 {strides = array<i32>} : memref<1x144x16x16xf32, #tpu.memory_space<vmem>>, vector<1x1x16x16xf32>,
    %71 = vector.extract_strided_slice %66 {offsets = [0, 16], sizes = [16, 16], strides = [1, 1]} : vector<16x48xf32> to vector<16x16xf32>
    %c0_59 = arith.constant 0 : index
    %c13 = arith.constant 13 : index
    %c0_60 = arith.constant 0 : index
    %c0_61 = arith.constant 0 : index
    %72 = vector.load %arg4[%c0_59, %c13, %c0_60, %c0_61] : memref<1x144x16x16xf32, #tpu.memory_space<vmem>>, vector<1x1x16x16xf32>
    %73 = vector.shape_cast %72 : vector<1x1x16x16xf32> to vector<16x16xf32>
    %74 = vector.shape_cast %71 : vector<16x16xf32> to vector<1x1x16x16xf32>
    tpu.vector_store %arg4[%c0_59, %c13, %c0_60, %c0_61], %74 {strides = array<i32>} : memref<1x144x16x16xf32, #tpu.memory_space<vmem>>, vector<1x1x16x16xf32>,
    %75 = vector.extract_strided_slice %66 {offsets = [0, 32], sizes = [16, 16], strides = [1, 1]} : vector<16x48xf32> to vector<16x16xf32>
    %c0_62 = arith.constant 0 : index
    %c14 = arith.constant 14 : index
    %c0_63 = arith.constant 0 : index
    %c0_64 = arith.constant 0 : index
    %76 = vector.load %arg4[%c0_62, %c14, %c0_63, %c0_64] : memref<1x144x16x16xf32, #tpu.memory_space<vmem>>, vector<1x1x16x16xf32>
    %77 = vector.shape_cast %76 : vector<1x1x16x16xf32> to vector<16x16xf32>
    %78 = vector.shape_cast %75 : vector<16x16xf32> to vector<1x1x16x16xf32>
    tpu.vector_store %arg4[%c0_62, %c14, %c0_63, %c0_64], %78 {strides = array<i32>} : memref<1x144x16x16xf32, #tpu.memory_space<vmem>>, vector<1x1x16x16xf32>,
    %79 = vector.extract_strided_slice %3 {offsets = [32, 8], sizes = [16, 8], strides = [1, 1]} : vector<48x128xf32> to vector<16x8xf32>
    %c0_65 = arith.constant 0 : index
    %c0_66 = arith.constant 0 : index
    %80 = vector.load %arg3[%c0_65, %c0_66] : memref<8x48xf32, #tpu.memory_space<vmem>>, vector<8x48xf32>
    %cst_67 = arith.constant dense<0.000000e+00> : vector<16x48xf32>
    %81 = tpu.matmul %79, %80, %cst_67 {dimension_numbers = #tpu.dot_dimension_numbers<[1], [0], [0], [1], [0, 0, 1, 1], [], []>} : vector<16x8xf32>, vector<8x48xf32>, vector<16x48xf32> -> vector<16x48xf32>
    %82 = vector.extract_strided_slice %81 {offsets = [0, 0], sizes = [16, 16], strides = [1, 1]} : vector<16x48xf32> to vector<16x16xf32>
    %c0_68 = arith.constant 0 : index
    %c15 = arith.constant 15 : index
    %c0_69 = arith.constant 0 : index
    %c0_70 = arith.constant 0 : index
    %83 = vector.load %arg4[%c0_68, %c15, %c0_69, %c0_70] : memref<1x144x16x16xf32, #tpu.memory_space<vmem>>, vector<1x1x16x16xf32>
    %84 = vector.shape_cast %83 : vector<1x1x16x16xf32> to vector<16x16xf32>
    %85 = vector.shape_cast %82 : vector<16x16xf32> to vector<1x1x16x16xf32>
    tpu.vector_store %arg4[%c0_68, %c15, %c0_69, %c0_70], %85 {strides = array<i32>} : memref<1x144x16x16xf32, #tpu.memory_space<vmem>>, vector<1x1x16x16xf32>,
    %86 = vector.extract_strided_slice %81 {offsets = [0, 16], sizes = [16, 16], strides = [1, 1]} : vector<16x48xf32> to vector<16x16xf32>
    %c0_71 = arith.constant 0 : index
    %c16 = arith.constant 16 : index
    %c0_72 = arith.constant 0 : index
    %c0_73 = arith.constant 0 : index
    %87 = vector.load %arg4[%c0_71, %c16, %c0_72, %c0_73] : memref<1x144x16x16xf32, #tpu.memory_space<vmem>>, vector<1x1x16x16xf32>
    %88 = vector.shape_cast %87 : vector<1x1x16x16xf32> to vector<16x16xf32>
    %89 = vector.shape_cast %86 : vector<16x16xf32> to vector<1x1x16x16xf32>
    tpu.vector_store %arg4[%c0_71, %c16, %c0_72, %c0_73], %89 {strides = array<i32>} : memref<1x144x16x16xf32, #tpu.memory_space<vmem>>, vector<1x1x16x16xf32>,
    %90 = vector.extract_strided_slice %81 {offsets = [0, 32], sizes = [16, 16], strides = [1, 1]} : vector<16x48xf32> to vector<16x16xf32>
    %c0_74 = arith.constant 0 : index
    %c17 = arith.constant 17 : index
    %c0_75 = arith.constant 0 : index
    %c0_76 = arith.constant 0 : index
    %91 = vector.load %arg4[%c0_74, %c17, %c0_75, %c0_76] : memref<1x144x16x16xf32, #tpu.memory_space<vmem>>, vector<1x1x16x16xf32>
    %92 = vector.shape_cast %91 : vector<1x1x16x16xf32> to vector<16x16xf32>
    %93 = vector.shape_cast %90 : vector<16x16xf32> to vector<1x1x16x16xf32>
    tpu.vector_store %arg4[%c0_74, %c17, %c0_75, %c0_76], %93 {strides = array<i32>} : memref<1x144x16x16xf32, #tpu.memory_space<vmem>>, vector<1x1x16x16xf32>,
    %94 = vector.extract_strided_slice %3 {offsets = [0, 16], sizes = [16, 8], strides = [1, 1]} : vector<48x128xf32> to vector<16x8xf32>
    %c0_77 = arith.constant 0 : index
    %c0_78 = arith.constant 0 : index
    %95 = vector.load %arg3[%c0_77, %c0_78] : memref<8x48xf32, #tpu.memory_space<vmem>>, vector<8x48xf32>
    %cst_79 = arith.constant dense<0.000000e+00> : vector<16x48xf32>
    %96 = tpu.matmul %94, %95, %cst_79 {dimension_numbers = #tpu.dot_dimension_numbers<[1], [0], [0], [1], [0, 0, 1, 1], [], []>} : vector<16x8xf32>, vector<8x48xf32>, vector<16x48xf32> -> vector<16x48xf32>
    %97 = vector.extract_strided_slice %96 {offsets = [0, 0], sizes = [16, 16], strides = [1, 1]} : vector<16x48xf32> to vector<16x16xf32>
    %c0_80 = arith.constant 0 : index
    %c18 = arith.constant 18 : index
    %c0_81 = arith.constant 0 : index
    %c0_82 = arith.constant 0 : index
    %98 = vector.load %arg4[%c0_80, %c18, %c0_81, %c0_82] : memref<1x144x16x16xf32, #tpu.memory_space<vmem>>, vector<1x1x16x16xf32>
    %99 = vector.shape_cast %98 : vector<1x1x16x16xf32> to vector<16x16xf32>
    %100 = vector.shape_cast %97 : vector<16x16xf32> to vector<1x1x16x16xf32>
    tpu.vector_store %arg4[%c0_80, %c18, %c0_81, %c0_82], %100 {strides = array<i32>} : memref<1x144x16x16xf32, #tpu.memory_space<vmem>>, vector<1x1x16x16xf32>,
    %101 = vector.extract_strided_slice %96 {offsets = [0, 16], sizes = [16, 16], strides = [1, 1]} : vector<16x48xf32> to vector<16x16xf32>
    %c0_83 = arith.constant 0 : index
    %c19 = arith.constant 19 : index
    %c0_84 = arith.constant 0 : index
    %c0_85 = arith.constant 0 : index
    %102 = vector.load %arg4[%c0_83, %c19, %c0_84, %c0_85] : memref<1x144x16x16xf32, #tpu.memory_space<vmem>>, vector<1x1x16x16xf32>
    %103 = vector.shape_cast %102 : vector<1x1x16x16xf32> to vector<16x16xf32>
    %104 = vector.shape_cast %101 : vector<16x16xf32> to vector<1x1x16x16xf32>
    tpu.vector_store %arg4[%c0_83, %c19, %c0_84, %c0_85], %104 {strides = array<i32>} : memref<1x144x16x16xf32, #tpu.memory_space<vmem>>, vector<1x1x16x16xf32>,
    %105 = vector.extract_strided_slice %96 {offsets = [0, 32], sizes = [16, 16], strides = [1, 1]} : vector<16x48xf32> to vector<16x16xf32>
    %c0_86 = arith.constant 0 : index
    %c20 = arith.constant 20 : index
    %c0_87 = arith.constant 0 : index
    %c0_88 = arith.constant 0 : index
    %106 = vector.load %arg4[%c0_86, %c20, %c0_87, %c0_88] : memref<1x144x16x16xf32, #tpu.memory_space<vmem>>, vector<1x1x16x16xf32>
    %107 = vector.shape_cast %106 : vector<1x1x16x16xf32> to vector<16x16xf32>
    %108 = vector.shape_cast %105 : vector<16x16xf32> to vector<1x1x16x16xf32>
    tpu.vector_store %arg4[%c0_86, %c20, %c0_87, %c0_88], %108 {strides = array<i32>} : memref<1x144x16x16xf32, #tpu.memory_space<vmem>>, vector<1x1x16x16xf32>,
    %109 = vector.extract_strided_slice %3 {offsets = [16, 16], sizes = [16, 8], strides = [1, 1]} : vector<48x128xf32> to vector<16x8xf32>
    %c0_89 = arith.constant 0 : index
    %c0_90 = arith.constant 0 : index
    %110 = vector.load %arg3[%c0_89, %c0_90] : memref<8x48xf32, #tpu.memory_space<vmem>>, vector<8x48xf32>
    %cst_91 = arith.constant dense<0.000000e+00> : vector<16x48xf32>
    %111 = tpu.matmul %109, %110, %cst_91 {dimension_numbers = #tpu.dot_dimension_numbers<[1], [0], [0], [1], [0, 0, 1, 1], [], []>} : vector<16x8xf32>, vector<8x48xf32>, vector<16x48xf32> -> vector<16x48xf32>
    %112 = vector.extract_strided_slice %111 {offsets = [0, 0], sizes = [16, 16], strides = [1, 1]} : vector<16x48xf32> to vector<16x16xf32>
    %c0_92 = arith.constant 0 : index
    %c21 = arith.constant 21 : index
    %c0_93 = arith.constant 0 : index
    %c0_94 = arith.constant 0 : index
    %113 = vector.load %arg4[%c0_92, %c21, %c0_93, %c0_94] : memref<1x144x16x16xf32, #tpu.memory_space<vmem>>, vector<1x1x16x16xf32>
    %114 = vector.shape_cast %113 : vector<1x1x16x16xf32> to vector<16x16xf32>
    %115 = vector.shape_cast %112 : vector<16x16xf32> to vector<1x1x16x16xf32>
    tpu.vector_store %arg4[%c0_92, %c21, %c0_93, %c0_94], %115 {strides = array<i32>} : memref<1x144x16x16xf32, #tpu.memory_space<vmem>>, vector<1x1x16x16xf32>,
    %116 = vector.extract_strided_slice %111 {offsets = [0, 16], sizes = [16, 16], strides = [1, 1]} : vector<16x48xf32> to vector<16x16xf32>
    %c0_95 = arith.constant 0 : index
    %c22 = arith.constant 22 : index
    %c0_96 = arith.constant 0 : index
    %c0_97 = arith.constant 0 : index
    %117 = vector.load %arg4[%c0_95, %c22, %c0_96, %c0_97] : memref<1x144x16x16xf32, #tpu.memory_space<vmem>>, vector<1x1x16x16xf32>
    %118 = vector.shape_cast %117 : vector<1x1x16x16xf32> to vector<16x16xf32>
    %119 = vector.shape_cast %116 : vector<16x16xf32> to vector<1x1x16x16xf32>
    tpu.vector_store %arg4[%c0_95, %c22, %c0_96, %c0_97], %119 {strides = array<i32>} : memref<1x144x16x16xf32, #tpu.memory_space<vmem>>, vector<1x1x16x16xf32>,
    %120 = vector.extract_strided_slice %111 {offsets = [0, 32], sizes = [16, 16], strides = [1, 1]} : vector<16x48xf32> to vector<16x16xf32>
    %c0_98 = arith.constant 0 : index
    %c23 = arith.constant 23 : index
    %c0_99 = arith.constant 0 : index
    %c0_100 = arith.constant 0 : index
    %121 = vector.load %arg4[%c0_98, %c23, %c0_99, %c0_100] : memref<1x144x16x16xf32, #tpu.memory_space<vmem>>, vector<1x1x16x16xf32>
    %122 = vector.shape_cast %121 : vector<1x1x16x16xf32> to vector<16x16xf32>
    %123 = vector.shape_cast %120 : vector<16x16xf32> to vector<1x1x16x16xf32>
    tpu.vector_store %arg4[%c0_98, %c23, %c0_99, %c0_100], %123 {strides = array<i32>} : memref<1x144x16x16xf32, #tpu.memory_space<vmem>>, vector<1x1x16x16xf32>,
    %124 = vector.extract_strided_slice %3 {offsets = [32, 16], sizes = [16, 8], strides = [1, 1]} : vector<48x128xf32> to vector<16x8xf32>
    %c0_101 = arith.constant 0 : index
    %c0_102 = arith.constant 0 : index
    %125 = vector.load %arg3[%c0_101, %c0_102] : memref<8x48xf32, #tpu.memory_space<vmem>>, vector<8x48xf32>
    %cst_103 = arith.constant dense<0.000000e+00> : vector<16x48xf32>
    %126 = tpu.matmul %124, %125, %cst_103 {dimension_numbers = #tpu.dot_dimension_numbers<[1], [0], [0], [1], [0, 0, 1, 1], [], []>} : vector<16x8xf32>, vector<8x48xf32>, vector<16x48xf32> -> vector<16x48xf32>
    %127 = vector.extract_strided_slice %126 {offsets = [0, 0], sizes = [16, 16], strides = [1, 1]} : vector<16x48xf32> to vector<16x16xf32>
    %c0_104 = arith.constant 0 : index
    %c24 = arith.constant 24 : index
    %c0_105 = arith.constant 0 : index
    %c0_106 = arith.constant 0 : index
    %128 = vector.load %arg4[%c0_104, %c24, %c0_105, %c0_106] : memref<1x144x16x16xf32, #tpu.memory_space<vmem>>, vector<1x1x16x16xf32>
    %129 = vector.shape_cast %128 : vector<1x1x16x16xf32> to vector<16x16xf32>
    %130 = vector.shape_cast %127 : vector<16x16xf32> to vector<1x1x16x16xf32>
    tpu.vector_store %arg4[%c0_104, %c24, %c0_105, %c0_106], %130 {strides = array<i32>} : memref<1x144x16x16xf32, #tpu.memory_space<vmem>>, vector<1x1x16x16xf32>,
    %131 = vector.extract_strided_slice %126 {offsets = [0, 16], sizes = [16, 16], strides = [1, 1]} : vector<16x48xf32> to vector<16x16xf32>
    %c0_107 = arith.constant 0 : index
    %c25 = arith.constant 25 : index
    %c0_108 = arith.constant 0 : index
    %c0_109 = arith.constant 0 : index
    %132 = vector.load %arg4[%c0_107, %c25, %c0_108, %c0_109] : memref<1x144x16x16xf32, #tpu.memory_space<vmem>>, vector<1x1x16x16xf32>
    %133 = vector.shape_cast %132 : vector<1x1x16x16xf32> to vector<16x16xf32>
    %134 = vector.shape_cast %131 : vector<16x16xf32> to vector<1x1x16x16xf32>
    tpu.vector_store %arg4[%c0_107, %c25, %c0_108, %c0_109], %134 {strides = array<i32>} : memref<1x144x16x16xf32, #tpu.memory_space<vmem>>, vector<1x1x16x16xf32>,
    %135 = vector.extract_strided_slice %126 {offsets = [0, 32], sizes = [16, 16], strides = [1, 1]} : vector<16x48xf32> to vector<16x16xf32>
    %c0_110 = arith.constant 0 : index
    %c26 = arith.constant 26 : index
    %c0_111 = arith.constant 0 : index
    %c0_112 = arith.constant 0 : index
    %136 = vector.load %arg4[%c0_110, %c26, %c0_111, %c0_112] : memref<1x144x16x16xf32, #tpu.memory_space<vmem>>, vector<1x1x16x16xf32>
    %137 = vector.shape_cast %136 : vector<1x1x16x16xf32> to vector<16x16xf32>
    %138 = vector.shape_cast %135 : vector<16x16xf32> to vector<1x1x16x16xf32>
    tpu.vector_store %arg4[%c0_110, %c26, %c0_111, %c0_112], %138 {strides = array<i32>} : memref<1x144x16x16xf32, #tpu.memory_space<vmem>>, vector<1x1x16x16xf32>,
    %139 = vector.extract_strided_slice %3 {offsets = [0, 24], sizes = [16, 8], strides = [1, 1]} : vector<48x128xf32> to vector<16x8xf32>
    %c0_113 = arith.constant 0 : index
    %c0_114 = arith.constant 0 : index
    %140 = vector.load %arg3[%c0_113, %c0_114] : memref<8x48xf32, #tpu.memory_space<vmem>>, vector<8x48xf32>
    %cst_115 = arith.constant dense<0.000000e+00> : vector<16x48xf32>
    %141 = tpu.matmul %139, %140, %cst_115 {dimension_numbers = #tpu.dot_dimension_numbers<[1], [0], [0], [1], [0, 0, 1, 1], [], []>} : vector<16x8xf32>, vector<8x48xf32>, vector<16x48xf32> -> vector<16x48xf32>
    %142 = vector.extract_strided_slice %141 {offsets = [0, 0], sizes = [16, 16], strides = [1, 1]} : vector<16x48xf32> to vector<16x16xf32>
    %c0_116 = arith.constant 0 : index
    %c27 = arith.constant 27 : index
    %c0_117 = arith.constant 0 : index
    %c0_118 = arith.constant 0 : index
    %143 = vector.load %arg4[%c0_116, %c27, %c0_117, %c0_118] : memref<1x144x16x16xf32, #tpu.memory_space<vmem>>, vector<1x1x16x16xf32>
    %144 = vector.shape_cast %143 : vector<1x1x16x16xf32> to vector<16x16xf32>
    %145 = vector.shape_cast %142 : vector<16x16xf32> to vector<1x1x16x16xf32>
    tpu.vector_store %arg4[%c0_116, %c27, %c0_117, %c0_118], %145 {strides = array<i32>} : memref<1x144x16x16xf32, #tpu.memory_space<vmem>>, vector<1x1x16x16xf32>,
    %146 = vector.extract_strided_slice %141 {offsets = [0, 16], sizes = [16, 16], strides = [1, 1]} : vector<16x48xf32> to vector<16x16xf32>
    %c0_119 = arith.constant 0 : index
    %c28 = arith.constant 28 : index
    %c0_120 = arith.constant 0 : index
    %c0_121 = arith.constant 0 : index
    %147 = vector.load %arg4[%c0_119, %c28, %c0_120, %c0_121] : memref<1x144x16x16xf32, #tpu.memory_space<vmem>>, vector<1x1x16x16xf32>
    %148 = vector.shape_cast %147 : vector<1x1x16x16xf32> to vector<16x16xf32>
    %149 = vector.shape_cast %146 : vector<16x16xf32> to vector<1x1x16x16xf32>
    tpu.vector_store %arg4[%c0_119, %c28, %c0_120, %c0_121], %149 {strides = array<i32>} : memref<1x144x16x16xf32, #tpu.memory_space<vmem>>, vector<1x1x16x16xf32>,
    %150 = vector.extract_strided_slice %141 {offsets = [0, 32], sizes = [16, 16], strides = [1, 1]} : vector<16x48xf32> to vector<16x16xf32>
    %c0_122 = arith.constant 0 : index
    %c29 = arith.constant 29 : index
    %c0_123 = arith.constant 0 : index
    %c0_124 = arith.constant 0 : index
    %151 = vector.load %arg4[%c0_122, %c29, %c0_123, %c0_124] : memref<1x144x16x16xf32, #tpu.memory_space<vmem>>, vector<1x1x16x16xf32>
    %152 = vector.shape_cast %151 : vector<1x1x16x16xf32> to vector<16x16xf32>
    %153 = vector.shape_cast %150 : vector<16x16xf32> to vector<1x1x16x16xf32>
    tpu.vector_store %arg4[%c0_122, %c29, %c0_123, %c0_124], %153 {strides = array<i32>} : memref<1x144x16x16xf32, #tpu.memory_space<vmem>>, vector<1x1x16x16xf32>,
    %154 = vector.extract_strided_slice %3 {offsets = [16, 24], sizes = [16, 8], strides = [1, 1]} : vector<48x128xf32> to vector<16x8xf32>
    %c0_125 = arith.constant 0 : index
    %c0_126 = arith.constant 0 : index
    %155 = vector.load %arg3[%c0_125, %c0_126] : memref<8x48xf32, #tpu.memory_space<vmem>>, vector<8x48xf32>
    %cst_127 = arith.constant dense<0.000000e+00> : vector<16x48xf32>
    %156 = tpu.matmul %154, %155, %cst_127 {dimension_numbers = #tpu.dot_dimension_numbers<[1], [0], [0], [1], [0, 0, 1, 1], [], []>} : vector<16x8xf32>, vector<8x48xf32>, vector<16x48xf32> -> vector<16x48xf32>
    %157 = vector.extract_strided_slice %156 {offsets = [0, 0], sizes = [16, 16], strides = [1, 1]} : vector<16x48xf32> to vector<16x16xf32>
    %c0_128 = arith.constant 0 : index
    %c30 = arith.constant 30 : index
    %c0_129 = arith.constant 0 : index
    %c0_130 = arith.constant 0 : index
    %158 = vector.load %arg4[%c0_128, %c30, %c0_129, %c0_130] : memref<1x144x16x16xf32, #tpu.memory_space<vmem>>, vector<1x1x16x16xf32>
    %159 = vector.shape_cast %158 : vector<1x1x16x16xf32> to vector<16x16xf32>
    %160 = vector.shape_cast %157 : vector<16x16xf32> to vector<1x1x16x16xf32>
    tpu.vector_store %arg4[%c0_128, %c30, %c0_129, %c0_130], %160 {strides = array<i32>} : memref<1x144x16x16xf32, #tpu.memory_space<vmem>>, vector<1x1x16x16xf32>,
    %161 = vector.extract_strided_slice %156 {offsets = [0, 16], sizes = [16, 16], strides = [1, 1]} : vector<16x48xf32> to vector<16x16xf32>
    %c0_131 = arith.constant 0 : index
    %c31 = arith.constant 31 : index
    %c0_132 = arith.constant 0 : index
    %c0_133 = arith.constant 0 : index
    %162 = vector.load %arg4[%c0_131, %c31, %c0_132, %c0_133] : memref<1x144x16x16xf32, #tpu.memory_space<vmem>>, vector<1x1x16x16xf32>
    %163 = vector.shape_cast %162 : vector<1x1x16x16xf32> to vector<16x16xf32>
    %164 = vector.shape_cast %161 : vector<16x16xf32> to vector<1x1x16x16xf32>
    tpu.vector_store %arg4[%c0_131, %c31, %c0_132, %c0_133], %164 {strides = array<i32>} : memref<1x144x16x16xf32, #tpu.memory_space<vmem>>, vector<1x1x16x16xf32>,
    %165 = vector.extract_strided_slice %156 {offsets = [0, 32], sizes = [16, 16], strides = [1, 1]} : vector<16x48xf32> to vector<16x16xf32>
    %c0_134 = arith.constant 0 : index
    %c32 = arith.constant 32 : index
    %c0_135 = arith.constant 0 : index
    %c0_136 = arith.constant 0 : index
    %166 = vector.load %arg4[%c0_134, %c32, %c0_135, %c0_136] : memref<1x144x16x16xf32, #tpu.memory_space<vmem>>, vector<1x1x16x16xf32>
    %167 = vector.shape_cast %166 : vector<1x1x16x16xf32> to vector<16x16xf32>
    %168 = vector.shape_cast %165 : vector<16x16xf32> to vector<1x1x16x16xf32>
    tpu.vector_store %arg4[%c0_134, %c32, %c0_135, %c0_136], %168 {strides = array<i32>} : memref<1x144x16x16xf32, #tpu.memory_space<vmem>>, vector<1x1x16x16xf32>,
    %169 = vector.extract_strided_slice %3 {offsets = [32, 24], sizes = [16, 8], strides = [1, 1]} : vector<48x128xf32> to vector<16x8xf32>
    %c0_137 = arith.constant 0 : index
    %c0_138 = arith.constant 0 : index
    %170 = vector.load %arg3[%c0_137, %c0_138] : memref<8x48xf32, #tpu.memory_space<vmem>>, vector<8x48xf32>
    %cst_139 = arith.constant dense<0.000000e+00> : vector<16x48xf32>
    %171 = tpu.matmul %169, %170, %cst_139 {dimension_numbers = #tpu.dot_dimension_numbers<[1], [0], [0], [1], [0, 0, 1, 1], [], []>} : vector<16x8xf32>, vector<8x48xf32>, vector<16x48xf32> -> vector<16x48xf32>
    %172 = vector.extract_strided_slice %171 {offsets = [0, 0], sizes = [16, 16], strides = [1, 1]} : vector<16x48xf32> to vector<16x16xf32>
    %c0_140 = arith.constant 0 : index
    %c33 = arith.constant 33 : index
    %c0_141 = arith.constant 0 : index
    %c0_142 = arith.constant 0 : index
    %173 = vector.load %arg4[%c0_140, %c33, %c0_141, %c0_142] : memref<1x144x16x16xf32, #tpu.memory_space<vmem>>, vector<1x1x16x16xf32>
    %174 = vector.shape_cast %173 : vector<1x1x16x16xf32> to vector<16x16xf32>
    %175 = vector.shape_cast %172 : vector<16x16xf32> to vector<1x1x16x16xf32>
    tpu.vector_store %arg4[%c0_140, %c33, %c0_141, %c0_142], %175 {strides = array<i32>} : memref<1x144x16x16xf32, #tpu.memory_space<vmem>>, vector<1x1x16x16xf32>,
    %176 = vector.extract_strided_slice %171 {offsets = [0, 16], sizes = [16, 16], strides = [1, 1]} : vector<16x48xf32> to vector<16x16xf32>
    %c0_143 = arith.constant 0 : index
    %c34 = arith.constant 34 : index
    %c0_144 = arith.constant 0 : index
    %c0_145 = arith.constant 0 : index
    %177 = vector.load %arg4[%c0_143, %c34, %c0_144, %c0_145] : memref<1x144x16x16xf32, #tpu.memory_space<vmem>>, vector<1x1x16x16xf32>
    %178 = vector.shape_cast %177 : vector<1x1x16x16xf32> to vector<16x16xf32>
    %179 = vector.shape_cast %176 : vector<16x16xf32> to vector<1x1x16x16xf32>
    tpu.vector_store %arg4[%c0_143, %c34, %c0_144, %c0_145], %179 {strides = array<i32>} : memref<1x144x16x16xf32, #tpu.memory_space<vmem>>, vector<1x1x16x16xf32>,
    %180 = vector.extract_strided_slice %171 {offsets = [0, 32], sizes = [16, 16], strides = [1, 1]} : vector<16x48xf32> to vector<16x16xf32>
    %c0_146 = arith.constant 0 : index
    %c35 = arith.constant 35 : index
    %c0_147 = arith.constant 0 : index
    %c0_148 = arith.constant 0 : index
    %181 = vector.load %arg4[%c0_146, %c35, %c0_147, %c0_148] : memref<1x144x16x16xf32, #tpu.memory_space<vmem>>, vector<1x1x16x16xf32>
    %182 = vector.shape_cast %181 : vector<1x1x16x16xf32> to vector<16x16xf32>
    %183 = vector.shape_cast %180 : vector<16x16xf32> to vector<1x1x16x16xf32>
    tpu.vector_store %arg4[%c0_146, %c35, %c0_147, %c0_148], %183 {strides = array<i32>} : memref<1x144x16x16xf32, #tpu.memory_space<vmem>>, vector<1x1x16x16xf32>,
    %184 = vector.extract_strided_slice %3 {offsets = [0, 32], sizes = [16, 8], strides = [1, 1]} : vector<48x128xf32> to vector<16x8xf32>
    %c0_149 = arith.constant 0 : index
    %c0_150 = arith.constant 0 : index
    %185 = vector.load %arg3[%c0_149, %c0_150] : memref<8x48xf32, #tpu.memory_space<vmem>>, vector<8x48xf32>
    %cst_151 = arith.constant dense<0.000000e+00> : vector<16x48xf32>
    %186 = tpu.matmul %184, %185, %cst_151 {dimension_numbers = #tpu.dot_dimension_numbers<[1], [0], [0], [1], [0, 0, 1, 1], [], []>} : vector<16x8xf32>, vector<8x48xf32>, vector<16x48xf32> -> vector<16x48xf32>
    %187 = vector.extract_strided_slice %186 {offsets = [0, 0], sizes = [16, 16], strides = [1, 1]} : vector<16x48xf32> to vector<16x16xf32>
    %c0_152 = arith.constant 0 : index
    %c36 = arith.constant 36 : index
    %c0_153 = arith.constant 0 : index
    %c0_154 = arith.constant 0 : index
    %188 = vector.load %arg4[%c0_152, %c36, %c0_153, %c0_154] : memref<1x144x16x16xf32, #tpu.memory_space<vmem>>, vector<1x1x16x16xf32>
    %189 = vector.shape_cast %188 : vector<1x1x16x16xf32> to vector<16x16xf32>
    %190 = vector.shape_cast %187 : vector<16x16xf32> to vector<1x1x16x16xf32>
    tpu.vector_store %arg4[%c0_152, %c36, %c0_153, %c0_154], %190 {strides = array<i32>} : memref<1x144x16x16xf32, #tpu.memory_space<vmem>>, vector<1x1x16x16xf32>,
    %191 = vector.extract_strided_slice %186 {offsets = [0, 16], sizes = [16, 16], strides = [1, 1]} : vector<16x48xf32> to vector<16x16xf32>
    %c0_155 = arith.constant 0 : index
    %c37 = arith.constant 37 : index
    %c0_156 = arith.constant 0 : index
    %c0_157 = arith.constant 0 : index
    %192 = vector.load %arg4[%c0_155, %c37, %c0_156, %c0_157] : memref<1x144x16x16xf32, #tpu.memory_space<vmem>>, vector<1x1x16x16xf32>
    %193 = vector.shape_cast %192 : vector<1x1x16x16xf32> to vector<16x16xf32>
    %194 = vector.shape_cast %191 : vector<16x16xf32> to vector<1x1x16x16xf32>
    tpu.vector_store %arg4[%c0_155, %c37, %c0_156, %c0_157], %194 {strides = array<i32>} : memref<1x144x16x16xf32, #tpu.memory_space<vmem>>, vector<1x1x16x16xf32>,
    %195 = vector.extract_strided_slice %186 {offsets = [0, 32], sizes = [16, 16], strides = [1, 1]} : vector<16x48xf32> to vector<16x16xf32>
    %c0_158 = arith.constant 0 : index
    %c38 = arith.constant 38 : index
    %c0_159 = arith.constant 0 : index
    %c0_160 = arith.constant 0 : index
    %196 = vector.load %arg4[%c0_158, %c38, %c0_159, %c0_160] : memref<1x144x16x16xf32, #tpu.memory_space<vmem>>, vector<1x1x16x16xf32>
    %197 = vector.shape_cast %196 : vector<1x1x16x16xf32> to vector<16x16xf32>
    %198 = vector.shape_cast %195 : vector<16x16xf32> to vector<1x1x16x16xf32>
    tpu.vector_store %arg4[%c0_158, %c38, %c0_159, %c0_160], %198 {strides = array<i32>} : memref<1x144x16x16xf32, #tpu.memory_space<vmem>>, vector<1x1x16x16xf32>,
    %199 = vector.extract_strided_slice %3 {offsets = [16, 32], sizes = [16, 8], strides = [1, 1]} : vector<48x128xf32> to vector<16x8xf32>
    %c0_161 = arith.constant 0 : index
    %c0_162 = arith.constant 0 : index
    %200 = vector.load %arg3[%c0_161, %c0_162] : memref<8x48xf32, #tpu.memory_space<vmem>>, vector<8x48xf32>
    %cst_163 = arith.constant dense<0.000000e+00> : vector<16x48xf32>
    %201 = tpu.matmul %199, %200, %cst_163 {dimension_numbers = #tpu.dot_dimension_numbers<[1], [0], [0], [1], [0, 0, 1, 1], [], []>} : vector<16x8xf32>, vector<8x48xf32>, vector<16x48xf32> -> vector<16x48xf32>
    %202 = vector.extract_strided_slice %201 {offsets = [0, 0], sizes = [16, 16], strides = [1, 1]} : vector<16x48xf32> to vector<16x16xf32>
    %c0_164 = arith.constant 0 : index
    %c39 = arith.constant 39 : index
    %c0_165 = arith.constant 0 : index
    %c0_166 = arith.constant 0 : index
    %203 = vector.load %arg4[%c0_164, %c39, %c0_165, %c0_166] : memref<1x144x16x16xf32, #tpu.memory_space<vmem>>, vector<1x1x16x16xf32>
    %204 = vector.shape_cast %203 : vector<1x1x16x16xf32> to vector<16x16xf32>
    %205 = vector.shape_cast %202 : vector<16x16xf32> to vector<1x1x16x16xf32>
    tpu.vector_store %arg4[%c0_164, %c39, %c0_165, %c0_166], %205 {strides = array<i32>} : memref<1x144x16x16xf32, #tpu.memory_space<vmem>>, vector<1x1x16x16xf32>,
    %206 = vector.extract_strided_slice %201 {offsets = [0, 16], sizes = [16, 16], strides = [1, 1]} : vector<16x48xf32> to vector<16x16xf32>
    %c0_167 = arith.constant 0 : index
    %c40 = arith.constant 40 : index
    %c0_168 = arith.constant 0 : index
    %c0_169 = arith.constant 0 : index
    %207 = vector.load %arg4[%c0_167, %c40, %c0_168, %c0_169] : memref<1x144x16x16xf32, #tpu.memory_space<vmem>>, vector<1x1x16x16xf32>
    %208 = vector.shape_cast %207 : vector<1x1x16x16xf32> to vector<16x16xf32>
    %209 = vector.shape_cast %206 : vector<16x16xf32> to vector<1x1x16x16xf32>
    tpu.vector_store %arg4[%c0_167, %c40, %c0_168, %c0_169], %209 {strides = array<i32>} : memref<1x144x16x16xf32, #tpu.memory_space<vmem>>, vector<1x1x16x16xf32>,
    %210 = vector.extract_strided_slice %201 {offsets = [0, 32], sizes = [16, 16], strides = [1, 1]} : vector<16x48xf32> to vector<16x16xf32>
    %c0_170 = arith.constant 0 : index
    %c41 = arith.constant 41 : index
    %c0_171 = arith.constant 0 : index
    %c0_172 = arith.constant 0 : index
    %211 = vector.load %arg4[%c0_170, %c41, %c0_171, %c0_172] : memref<1x144x16x16xf32, #tpu.memory_space<vmem>>, vector<1x1x16x16xf32>
    %212 = vector.shape_cast %211 : vector<1x1x16x16xf32> to vector<16x16xf32>
    %213 = vector.shape_cast %210 : vector<16x16xf32> to vector<1x1x16x16xf32>
    tpu.vector_store %arg4[%c0_170, %c41, %c0_171, %c0_172], %213 {strides = array<i32>} : memref<1x144x16x16xf32, #tpu.memory_space<vmem>>, vector<1x1x16x16xf32>,
    %214 = vector.extract_strided_slice %3 {offsets = [32, 32], sizes = [16, 8], strides = [1, 1]} : vector<48x128xf32> to vector<16x8xf32>
    %c0_173 = arith.constant 0 : index
    %c0_174 = arith.constant 0 : index
    %215 = vector.load %arg3[%c0_173, %c0_174] : memref<8x48xf32, #tpu.memory_space<vmem>>, vector<8x48xf32>
    %cst_175 = arith.constant dense<0.000000e+00> : vector<16x48xf32>
    %216 = tpu.matmul %214, %215, %cst_175 {dimension_numbers = #tpu.dot_dimension_numbers<[1], [0], [0], [1], [0, 0, 1, 1], [], []>} : vector<16x8xf32>, vector<8x48xf32>, vector<16x48xf32> -> vector<16x48xf32>
    %217 = vector.extract_strided_slice %216 {offsets = [0, 0], sizes = [16, 16], strides = [1, 1]} : vector<16x48xf32> to vector<16x16xf32>
    %c0_176 = arith.constant 0 : index
    %c42 = arith.constant 42 : index
    %c0_177 = arith.constant 0 : index
    %c0_178 = arith.constant 0 : index
    %218 = vector.load %arg4[%c0_176, %c42, %c0_177, %c0_178] : memref<1x144x16x16xf32, #tpu.memory_space<vmem>>, vector<1x1x16x16xf32>
    %219 = vector.shape_cast %218 : vector<1x1x16x16xf32> to vector<16x16xf32>
    %220 = vector.shape_cast %217 : vector<16x16xf32> to vector<1x1x16x16xf32>
    tpu.vector_store %arg4[%c0_176, %c42, %c0_177, %c0_178], %220 {strides = array<i32>} : memref<1x144x16x16xf32, #tpu.memory_space<vmem>>, vector<1x1x16x16xf32>,
    %221 = vector.extract_strided_slice %216 {offsets = [0, 16], sizes = [16, 16], strides = [1, 1]} : vector<16x48xf32> to vector<16x16xf32>
    %c0_179 = arith.constant 0 : index
    %c43 = arith.constant 43 : index
    %c0_180 = arith.constant 0 : index
    %c0_181 = arith.constant 0 : index
    %222 = vector.load %arg4[%c0_179, %c43, %c0_180, %c0_181] : memref<1x144x16x16xf32, #tpu.memory_space<vmem>>, vector<1x1x16x16xf32>
    %223 = vector.shape_cast %222 : vector<1x1x16x16xf32> to vector<16x16xf32>
    %224 = vector.shape_cast %221 : vector<16x16xf32> to vector<1x1x16x16xf32>
    tpu.vector_store %arg4[%c0_179, %c43, %c0_180, %c0_181], %224 {strides = array<i32>} : memref<1x144x16x16xf32, #tpu.memory_space<vmem>>, vector<1x1x16x16xf32>,
    %225 = vector.extract_strided_slice %216 {offsets = [0, 32], sizes = [16, 16], strides = [1, 1]} : vector<16x48xf32> to vector<16x16xf32>
    %c0_182 = arith.constant 0 : index
    %c44 = arith.constant 44 : index
    %c0_183 = arith.constant 0 : index
    %c0_184 = arith.constant 0 : index
    %226 = vector.load %arg4[%c0_182, %c44, %c0_183, %c0_184] : memref<1x144x16x16xf32, #tpu.memory_space<vmem>>, vector<1x1x16x16xf32>
    %227 = vector.shape_cast %226 : vector<1x1x16x16xf32> to vector<16x16xf32>
    %228 = vector.shape_cast %225 : vector<16x16xf32> to vector<1x1x16x16xf32>
    tpu.vector_store %arg4[%c0_182, %c44, %c0_183, %c0_184], %228 {strides = array<i32>} : memref<1x144x16x16xf32, #tpu.memory_space<vmem>>, vector<1x1x16x16xf32>,
    %229 = vector.extract_strided_slice %3 {offsets = [0, 40], sizes = [16, 8], strides = [1, 1]} : vector<48x128xf32> to vector<16x8xf32>
    %c0_185 = arith.constant 0 : index
    %c0_186 = arith.constant 0 : index
    %230 = vector.load %arg3[%c0_185, %c0_186] : memref<8x48xf32, #tpu.memory_space<vmem>>, vector<8x48xf32>
    %cst_187 = arith.constant dense<0.000000e+00> : vector<16x48xf32>
    %231 = tpu.matmul %229, %230, %cst_187 {dimension_numbers = #tpu.dot_dimension_numbers<[1], [0], [0], [1], [0, 0, 1, 1], [], []>} : vector<16x8xf32>, vector<8x48xf32>, vector<16x48xf32> -> vector<16x48xf32>
    %232 = vector.extract_strided_slice %231 {offsets = [0, 0], sizes = [16, 16], strides = [1, 1]} : vector<16x48xf32> to vector<16x16xf32>
    %c0_188 = arith.constant 0 : index
    %c45 = arith.constant 45 : index
    %c0_189 = arith.constant 0 : index
    %c0_190 = arith.constant 0 : index
    %233 = vector.load %arg4[%c0_188, %c45, %c0_189, %c0_190] : memref<1x144x16x16xf32, #tpu.memory_space<vmem>>, vector<1x1x16x16xf32>
    %234 = vector.shape_cast %233 : vector<1x1x16x16xf32> to vector<16x16xf32>
    %235 = vector.shape_cast %232 : vector<16x16xf32> to vector<1x1x16x16xf32>
    tpu.vector_store %arg4[%c0_188, %c45, %c0_189, %c0_190], %235 {strides = array<i32>} : memref<1x144x16x16xf32, #tpu.memory_space<vmem>>, vector<1x1x16x16xf32>,
    %236 = vector.extract_strided_slice %231 {offsets = [0, 16], sizes = [16, 16], strides = [1, 1]} : vector<16x48xf32> to vector<16x16xf32>
    %c0_191 = arith.constant 0 : index
    %c46 = arith.constant 46 : index
    %c0_192 = arith.constant 0 : index
    %c0_193 = arith.constant 0 : index
    %237 = vector.load %arg4[%c0_191, %c46, %c0_192, %c0_193] : memref<1x144x16x16xf32, #tpu.memory_space<vmem>>, vector<1x1x16x16xf32>
    %238 = vector.shape_cast %237 : vector<1x1x16x16xf32> to vector<16x16xf32>
    %239 = vector.shape_cast %236 : vector<16x16xf32> to vector<1x1x16x16xf32>
    tpu.vector_store %arg4[%c0_191, %c46, %c0_192, %c0_193], %239 {strides = array<i32>} : memref<1x144x16x16xf32, #tpu.memory_space<vmem>>, vector<1x1x16x16xf32>,
    %240 = vector.extract_strided_slice %231 {offsets = [0, 32], sizes = [16, 16], strides = [1, 1]} : vector<16x48xf32> to vector<16x16xf32>
    %c0_194 = arith.constant 0 : index
    %c47 = arith.constant 47 : index
    %c0_195 = arith.constant 0 : index
    %c0_196 = arith.constant 0 : index
    %241 = vector.load %arg4[%c0_194, %c47, %c0_195, %c0_196] : memref<1x144x16x16xf32, #tpu.memory_space<vmem>>, vector<1x1x16x16xf32>
    %242 = vector.shape_cast %241 : vector<1x1x16x16xf32> to vector<16x16xf32>
    %243 = vector.shape_cast %240 : vector<16x16xf32> to vector<1x1x16x16xf32>
    tpu.vector_store %arg4[%c0_194, %c47, %c0_195, %c0_196], %243 {strides = array<i32>} : memref<1x144x16x16xf32, #tpu.memory_space<vmem>>, vector<1x1x16x16xf32>,
    %244 = vector.extract_strided_slice %3 {offsets = [16, 40], sizes = [16, 8], strides = [1, 1]} : vector<48x128xf32> to vector<16x8xf32>
    %c0_197 = arith.constant 0 : index
    %c0_198 = arith.constant 0 : index
    %245 = vector.load %arg3[%c0_197, %c0_198] : memref<8x48xf32, #tpu.memory_space<vmem>>, vector<8x48xf32>
    %cst_199 = arith.constant dense<0.000000e+00> : vector<16x48xf32>
    %246 = tpu.matmul %244, %245, %cst_199 {dimension_numbers = #tpu.dot_dimension_numbers<[1], [0], [0], [1], [0, 0, 1, 1], [], []>} : vector<16x8xf32>, vector<8x48xf32>, vector<16x48xf32> -> vector<16x48xf32>
    %247 = vector.extract_strided_slice %246 {offsets = [0, 0], sizes = [16, 16], strides = [1, 1]} : vector<16x48xf32> to vector<16x16xf32>
    %c0_200 = arith.constant 0 : index
    %c48 = arith.constant 48 : index
    %c0_201 = arith.constant 0 : index
    %c0_202 = arith.constant 0 : index
    %248 = vector.load %arg4[%c0_200, %c48, %c0_201, %c0_202] : memref<1x144x16x16xf32, #tpu.memory_space<vmem>>, vector<1x1x16x16xf32>
    %249 = vector.shape_cast %248 : vector<1x1x16x16xf32> to vector<16x16xf32>
    %250 = vector.shape_cast %247 : vector<16x16xf32> to vector<1x1x16x16xf32>
    tpu.vector_store %arg4[%c0_200, %c48, %c0_201, %c0_202], %250 {strides = array<i32>} : memref<1x144x16x16xf32, #tpu.memory_space<vmem>>, vector<1x1x16x16xf32>,
    %251 = vector.extract_strided_slice %246 {offsets = [0, 16], sizes = [16, 16], strides = [1, 1]} : vector<16x48xf32> to vector<16x16xf32>
    %c0_203 = arith.constant 0 : index
    %c49 = arith.constant 49 : index
    %c0_204 = arith.constant 0 : index
    %c0_205 = arith.constant 0 : index
    %252 = vector.load %arg4[%c0_203, %c49, %c0_204, %c0_205] : memref<1x144x16x16xf32, #tpu.memory_space<vmem>>, vector<1x1x16x16xf32>
    %253 = vector.shape_cast %252 : vector<1x1x16x16xf32> to vector<16x16xf32>
    %254 = vector.shape_cast %251 : vector<16x16xf32> to vector<1x1x16x16xf32>
    tpu.vector_store %arg4[%c0_203, %c49, %c0_204, %c0_205], %254 {strides = array<i32>} : memref<1x144x16x16xf32, #tpu.memory_space<vmem>>, vector<1x1x16x16xf32>,
    %255 = vector.extract_strided_slice %246 {offsets = [0, 32], sizes = [16, 16], strides = [1, 1]} : vector<16x48xf32> to vector<16x16xf32>
    %c0_206 = arith.constant 0 : index
    %c50 = arith.constant 50 : index
    %c0_207 = arith.constant 0 : index
    %c0_208 = arith.constant 0 : index
    %256 = vector.load %arg4[%c0_206, %c50, %c0_207, %c0_208] : memref<1x144x16x16xf32, #tpu.memory_space<vmem>>, vector<1x1x16x16xf32>
    %257 = vector.shape_cast %256 : vector<1x1x16x16xf32> to vector<16x16xf32>
    %258 = vector.shape_cast %255 : vector<16x16xf32> to vector<1x1x16x16xf32>
    tpu.vector_store %arg4[%c0_206, %c50, %c0_207, %c0_208], %258 {strides = array<i32>} : memref<1x144x16x16xf32, #tpu.memory_space<vmem>>, vector<1x1x16x16xf32>,
    %259 = vector.extract_strided_slice %3 {offsets = [32, 40], sizes = [16, 8], strides = [1, 1]} : vector<48x128xf32> to vector<16x8xf32>
    %c0_209 = arith.constant 0 : index
    %c0_210 = arith.constant 0 : index
    %260 = vector.load %arg3[%c0_209, %c0_210] : memref<8x48xf32, #tpu.memory_space<vmem>>, vector<8x48xf32>
    %cst_211 = arith.constant dense<0.000000e+00> : vector<16x48xf32>
    %261 = tpu.matmul %259, %260, %cst_211 {dimension_numbers = #tpu.dot_dimension_numbers<[1], [0], [0], [1], [0, 0, 1, 1], [], []>} : vector<16x8xf32>, vector<8x48xf32>, vector<16x48xf32> -> vector<16x48xf32>
    %262 = vector.extract_strided_slice %261 {offsets = [0, 0], sizes = [16, 16], strides = [1, 1]} : vector<16x48xf32> to vector<16x16xf32>
    %c0_212 = arith.constant 0 : index
    %c51 = arith.constant 51 : index
    %c0_213 = arith.constant 0 : index
    %c0_214 = arith.constant 0 : index
    %263 = vector.load %arg4[%c0_212, %c51, %c0_213, %c0_214] : memref<1x144x16x16xf32, #tpu.memory_space<vmem>>, vector<1x1x16x16xf32>
    %264 = vector.shape_cast %263 : vector<1x1x16x16xf32> to vector<16x16xf32>
    %265 = vector.shape_cast %262 : vector<16x16xf32> to vector<1x1x16x16xf32>
    tpu.vector_store %arg4[%c0_212, %c51, %c0_213, %c0_214], %265 {strides = array<i32>} : memref<1x144x16x16xf32, #tpu.memory_space<vmem>>, vector<1x1x16x16xf32>,
    %266 = vector.extract_strided_slice %261 {offsets = [0, 16], sizes = [16, 16], strides = [1, 1]} : vector<16x48xf32> to vector<16x16xf32>
    %c0_215 = arith.constant 0 : index
    %c52 = arith.constant 52 : index
    %c0_216 = arith.constant 0 : index
    %c0_217 = arith.constant 0 : index
    %267 = vector.load %arg4[%c0_215, %c52, %c0_216, %c0_217] : memref<1x144x16x16xf32, #tpu.memory_space<vmem>>, vector<1x1x16x16xf32>
    %268 = vector.shape_cast %267 : vector<1x1x16x16xf32> to vector<16x16xf32>
    %269 = vector.shape_cast %266 : vector<16x16xf32> to vector<1x1x16x16xf32>
    tpu.vector_store %arg4[%c0_215, %c52, %c0_216, %c0_217], %269 {strides = array<i32>} : memref<1x144x16x16xf32, #tpu.memory_space<vmem>>, vector<1x1x16x16xf32>,
    %270 = vector.extract_strided_slice %261 {offsets = [0, 32], sizes = [16, 16], strides = [1, 1]} : vector<16x48xf32> to vector<16x16xf32>
    %c0_218 = arith.constant 0 : index
    %c53 = arith.constant 53 : index
    %c0_219 = arith.constant 0 : index
    %c0_220 = arith.constant 0 : index
    %271 = vector.load %arg4[%c0_218, %c53, %c0_219, %c0_220] : memref<1x144x16x16xf32, #tpu.memory_space<vmem>>, vector<1x1x16x16xf32>
    %272 = vector.shape_cast %271 : vector<1x1x16x16xf32> to vector<16x16xf32>
    %273 = vector.shape_cast %270 : vector<16x16xf32> to vector<1x1x16x16xf32>
    tpu.vector_store %arg4[%c0_218, %c53, %c0_219, %c0_220], %273 {strides = array<i32>} : memref<1x144x16x16xf32, #tpu.memory_space<vmem>>, vector<1x1x16x16xf32>,
    %274 = vector.extract_strided_slice %3 {offsets = [0, 48], sizes = [16, 8], strides = [1, 1]} : vector<48x128xf32> to vector<16x8xf32>
    %c0_221 = arith.constant 0 : index
    %c0_222 = arith.constant 0 : index
    %275 = vector.load %arg3[%c0_221, %c0_222] : memref<8x48xf32, #tpu.memory_space<vmem>>, vector<8x48xf32>
    %cst_223 = arith.constant dense<0.000000e+00> : vector<16x48xf32>
    %276 = tpu.matmul %274, %275, %cst_223 {dimension_numbers = #tpu.dot_dimension_numbers<[1], [0], [0], [1], [0, 0, 1, 1], [], []>} : vector<16x8xf32>, vector<8x48xf32>, vector<16x48xf32> -> vector<16x48xf32>
    %277 = vector.extract_strided_slice %276 {offsets = [0, 0], sizes = [16, 16], strides = [1, 1]} : vector<16x48xf32> to vector<16x16xf32>
    %c0_224 = arith.constant 0 : index
    %c54 = arith.constant 54 : index
    %c0_225 = arith.constant 0 : index
    %c0_226 = arith.constant 0 : index
    %278 = vector.load %arg4[%c0_224, %c54, %c0_225, %c0_226] : memref<1x144x16x16xf32, #tpu.memory_space<vmem>>, vector<1x1x16x16xf32>
    %279 = vector.shape_cast %278 : vector<1x1x16x16xf32> to vector<16x16xf32>
    %280 = vector.shape_cast %277 : vector<16x16xf32> to vector<1x1x16x16xf32>
    tpu.vector_store %arg4[%c0_224, %c54, %c0_225, %c0_226], %280 {strides = array<i32>} : memref<1x144x16x16xf32, #tpu.memory_space<vmem>>, vector<1x1x16x16xf32>,
    %281 = vector.extract_strided_slice %276 {offsets = [0, 16], sizes = [16, 16], strides = [1, 1]} : vector<16x48xf32> to vector<16x16xf32>
    %c0_227 = arith.constant 0 : index
    %c55 = arith.constant 55 : index
    %c0_228 = arith.constant 0 : index
    %c0_229 = arith.constant 0 : index
    %282 = vector.load %arg4[%c0_227, %c55, %c0_228, %c0_229] : memref<1x144x16x16xf32, #tpu.memory_space<vmem>>, vector<1x1x16x16xf32>
    %283 = vector.shape_cast %282 : vector<1x1x16x16xf32> to vector<16x16xf32>
    %284 = vector.shape_cast %281 : vector<16x16xf32> to vector<1x1x16x16xf32>
    tpu.vector_store %arg4[%c0_227, %c55, %c0_228, %c0_229], %284 {strides = array<i32>} : memref<1x144x16x16xf32, #tpu.memory_space<vmem>>, vector<1x1x16x16xf32>,
    %285 = vector.extract_strided_slice %276 {offsets = [0, 32], sizes = [16, 16], strides = [1, 1]} : vector<16x48xf32> to vector<16x16xf32>
    %c0_230 = arith.constant 0 : index
    %c56 = arith.constant 56 : index
    %c0_231 = arith.constant 0 : index
    %c0_232 = arith.constant 0 : index
    %286 = vector.load %arg4[%c0_230, %c56, %c0_231, %c0_232] : memref<1x144x16x16xf32, #tpu.memory_space<vmem>>, vector<1x1x16x16xf32>
    %287 = vector.shape_cast %286 : vector<1x1x16x16xf32> to vector<16x16xf32>
    %288 = vector.shape_cast %285 : vector<16x16xf32> to vector<1x1x16x16xf32>
    tpu.vector_store %arg4[%c0_230, %c56, %c0_231, %c0_232], %288 {strides = array<i32>} : memref<1x144x16x16xf32, #tpu.memory_space<vmem>>, vector<1x1x16x16xf32>,
    %289 = vector.extract_strided_slice %3 {offsets = [16, 48], sizes = [16, 8], strides = [1, 1]} : vector<48x128xf32> to vector<16x8xf32>
    %c0_233 = arith.constant 0 : index
    %c0_234 = arith.constant 0 : index
    %290 = vector.load %arg3[%c0_233, %c0_234] : memref<8x48xf32, #tpu.memory_space<vmem>>, vector<8x48xf32>
    %cst_235 = arith.constant dense<0.000000e+00> : vector<16x48xf32>
    %291 = tpu.matmul %289, %290, %cst_235 {dimension_numbers = #tpu.dot_dimension_numbers<[1], [0], [0], [1], [0, 0, 1, 1], [], []>} : vector<16x8xf32>, vector<8x48xf32>, vector<16x48xf32> -> vector<16x48xf32>
    %292 = vector.extract_strided_slice %291 {offsets = [0, 0], sizes = [16, 16], strides = [1, 1]} : vector<16x48xf32> to vector<16x16xf32>
    %c0_236 = arith.constant 0 : index
    %c57 = arith.constant 57 : index
    %c0_237 = arith.constant 0 : index
    %c0_238 = arith.constant 0 : index
    %293 = vector.load %arg4[%c0_236, %c57, %c0_237, %c0_238] : memref<1x144x16x16xf32, #tpu.memory_space<vmem>>, vector<1x1x16x16xf32>
    %294 = vector.shape_cast %293 : vector<1x1x16x16xf32> to vector<16x16xf32>
    %295 = vector.shape_cast %292 : vector<16x16xf32> to vector<1x1x16x16xf32>
    tpu.vector_store %arg4[%c0_236, %c57, %c0_237, %c0_238], %295 {strides = array<i32>} : memref<1x144x16x16xf32, #tpu.memory_space<vmem>>, vector<1x1x16x16xf32>,
    %296 = vector.extract_strided_slice %291 {offsets = [0, 16], sizes = [16, 16], strides = [1, 1]} : vector<16x48xf32> to vector<16x16xf32>
    %c0_239 = arith.constant 0 : index
    %c58 = arith.constant 58 : index
    %c0_240 = arith.constant 0 : index
    %c0_241 = arith.constant 0 : index
    %297 = vector.load %arg4[%c0_239, %c58, %c0_240, %c0_241] : memref<1x144x16x16xf32, #tpu.memory_space<vmem>>, vector<1x1x16x16xf32>
    %298 = vector.shape_cast %297 : vector<1x1x16x16xf32> to vector<16x16xf32>
    %299 = vector.shape_cast %296 : vector<16x16xf32> to vector<1x1x16x16xf32>
    tpu.vector_store %arg4[%c0_239, %c58, %c0_240, %c0_241], %299 {strides = array<i32>} : memref<1x144x16x16xf32, #tpu.memory_space<vmem>>, vector<1x1x16x16xf32>,
    %300 = vector.extract_strided_slice %291 {offsets = [0, 32], sizes = [16, 16], strides = [1, 1]} : vector<16x48xf32> to vector<16x16xf32>
    %c0_242 = arith.constant 0 : index
    %c59 = arith.constant 59 : index
    %c0_243 = arith.constant 0 : index
    %c0_244 = arith.constant 0 : index
    %301 = vector.load %arg4[%c0_242, %c59, %c0_243, %c0_244] : memref<1x144x16x16xf32, #tpu.memory_space<vmem>>, vector<1x1x16x16xf32>
    %302 = vector.shape_cast %301 : vector<1x1x16x16xf32> to vector<16x16xf32>
    %303 = vector.shape_cast %300 : vector<16x16xf32> to vector<1x1x16x16xf32>
    tpu.vector_store %arg4[%c0_242, %c59, %c0_243, %c0_244], %303 {strides = array<i32>} : memref<1x144x16x16xf32, #tpu.memory_space<vmem>>, vector<1x1x16x16xf32>,
    %304 = vector.extract_strided_slice %3 {offsets = [32, 48], sizes = [16, 8], strides = [1, 1]} : vector<48x128xf32> to vector<16x8xf32>
    %c0_245 = arith.constant 0 : index
    %c0_246 = arith.constant 0 : index
    %305 = vector.load %arg3[%c0_245, %c0_246] : memref<8x48xf32, #tpu.memory_space<vmem>>, vector<8x48xf32>
    %cst_247 = arith.constant dense<0.000000e+00> : vector<16x48xf32>
    %306 = tpu.matmul %304, %305, %cst_247 {dimension_numbers = #tpu.dot_dimension_numbers<[1], [0], [0], [1], [0, 0, 1, 1], [], []>} : vector<16x8xf32>, vector<8x48xf32>, vector<16x48xf32> -> vector<16x48xf32>
    %307 = vector.extract_strided_slice %306 {offsets = [0, 0], sizes = [16, 16], strides = [1, 1]} : vector<16x48xf32> to vector<16x16xf32>
    %c0_248 = arith.constant 0 : index
    %c60 = arith.constant 60 : index
    %c0_249 = arith.constant 0 : index
    %c0_250 = arith.constant 0 : index
    %308 = vector.load %arg4[%c0_248, %c60, %c0_249, %c0_250] : memref<1x144x16x16xf32, #tpu.memory_space<vmem>>, vector<1x1x16x16xf32>
    %309 = vector.shape_cast %308 : vector<1x1x16x16xf32> to vector<16x16xf32>
    %310 = vector.shape_cast %307 : vector<16x16xf32> to vector<1x1x16x16xf32>
    tpu.vector_store %arg4[%c0_248, %c60, %c0_249, %c0_250], %310 {strides = array<i32>} : memref<1x144x16x16xf32, #tpu.memory_space<vmem>>, vector<1x1x16x16xf32>,
    %311 = vector.extract_strided_slice %306 {offsets = [0, 16], sizes = [16, 16], strides = [1, 1]} : vector<16x48xf32> to vector<16x16xf32>
    %c0_251 = arith.constant 0 : index
    %c61 = arith.constant 61 : index
    %c0_252 = arith.constant 0 : index
    %c0_253 = arith.constant 0 : index
    %312 = vector.load %arg4[%c0_251, %c61, %c0_252, %c0_253] : memref<1x144x16x16xf32, #tpu.memory_space<vmem>>, vector<1x1x16x16xf32>
    %313 = vector.shape_cast %312 : vector<1x1x16x16xf32> to vector<16x16xf32>
    %314 = vector.shape_cast %311 : vector<16x16xf32> to vector<1x1x16x16xf32>
    tpu.vector_store %arg4[%c0_251, %c61, %c0_252, %c0_253], %314 {strides = array<i32>} : memref<1x144x16x16xf32, #tpu.memory_space<vmem>>, vector<1x1x16x16xf32>,
    %315 = vector.extract_strided_slice %306 {offsets = [0, 32], sizes = [16, 16], strides = [1, 1]} : vector<16x48xf32> to vector<16x16xf32>
    %c0_254 = arith.constant 0 : index
    %c62 = arith.constant 62 : index
    %c0_255 = arith.constant 0 : index
    %c0_256 = arith.constant 0 : index
    %316 = vector.load %arg4[%c0_254, %c62, %c0_255, %c0_256] : memref<1x144x16x16xf32, #tpu.memory_space<vmem>>, vector<1x1x16x16xf32>
    %317 = vector.shape_cast %316 : vector<1x1x16x16xf32> to vector<16x16xf32>
    %318 = vector.shape_cast %315 : vector<16x16xf32> to vector<1x1x16x16xf32>
    tpu.vector_store %arg4[%c0_254, %c62, %c0_255, %c0_256], %318 {strides = array<i32>} : memref<1x144x16x16xf32, #tpu.memory_space<vmem>>, vector<1x1x16x16xf32>,
    %319 = vector.extract_strided_slice %3 {offsets = [0, 56], sizes = [16, 8], strides = [1, 1]} : vector<48x128xf32> to vector<16x8xf32>
    %c0_257 = arith.constant 0 : index
    %c0_258 = arith.constant 0 : index
    %320 = vector.load %arg3[%c0_257, %c0_258] : memref<8x48xf32, #tpu.memory_space<vmem>>, vector<8x48xf32>
    %cst_259 = arith.constant dense<0.000000e+00> : vector<16x48xf32>
    %321 = tpu.matmul %319, %320, %cst_259 {dimension_numbers = #tpu.dot_dimension_numbers<[1], [0], [0], [1], [0, 0, 1, 1], [], []>} : vector<16x8xf32>, vector<8x48xf32>, vector<16x48xf32> -> vector<16x48xf32>
    %322 = vector.extract_strided_slice %321 {offsets = [0, 0], sizes = [16, 16], strides = [1, 1]} : vector<16x48xf32> to vector<16x16xf32>
    %c0_260 = arith.constant 0 : index
    %c63 = arith.constant 63 : index
    %c0_261 = arith.constant 0 : index
    %c0_262 = arith.constant 0 : index
    %323 = vector.load %arg4[%c0_260, %c63, %c0_261, %c0_262] : memref<1x144x16x16xf32, #tpu.memory_space<vmem>>, vector<1x1x16x16xf32>
    %324 = vector.shape_cast %323 : vector<1x1x16x16xf32> to vector<16x16xf32>
    %325 = vector.shape_cast %322 : vector<16x16xf32> to vector<1x1x16x16xf32>
    tpu.vector_store %arg4[%c0_260, %c63, %c0_261, %c0_262], %325 {strides = array<i32>} : memref<1x144x16x16xf32, #tpu.memory_space<vmem>>, vector<1x1x16x16xf32>,
    %326 = vector.extract_strided_slice %321 {offsets = [0, 16], sizes = [16, 16], strides = [1, 1]} : vector<16x48xf32> to vector<16x16xf32>
    %c0_263 = arith.constant 0 : index
    %c64 = arith.constant 64 : index
    %c0_264 = arith.constant 0 : index
    %c0_265 = arith.constant 0 : index
    %327 = vector.load %arg4[%c0_263, %c64, %c0_264, %c0_265] : memref<1x144x16x16xf32, #tpu.memory_space<vmem>>, vector<1x1x16x16xf32>
    %328 = vector.shape_cast %327 : vector<1x1x16x16xf32> to vector<16x16xf32>
    %329 = vector.shape_cast %326 : vector<16x16xf32> to vector<1x1x16x16xf32>
    tpu.vector_store %arg4[%c0_263, %c64, %c0_264, %c0_265], %329 {strides = array<i32>} : memref<1x144x16x16xf32, #tpu.memory_space<vmem>>, vector<1x1x16x16xf32>,
    %330 = vector.extract_strided_slice %321 {offsets = [0, 32], sizes = [16, 16], strides = [1, 1]} : vector<16x48xf32> to vector<16x16xf32>
    %c0_266 = arith.constant 0 : index
    %c65 = arith.constant 65 : index
    %c0_267 = arith.constant 0 : index
    %c0_268 = arith.constant 0 : index
    %331 = vector.load %arg4[%c0_266, %c65, %c0_267, %c0_268] : memref<1x144x16x16xf32, #tpu.memory_space<vmem>>, vector<1x1x16x16xf32>
    %332 = vector.shape_cast %331 : vector<1x1x16x16xf32> to vector<16x16xf32>
    %333 = vector.shape_cast %330 : vector<16x16xf32> to vector<1x1x16x16xf32>
    tpu.vector_store %arg4[%c0_266, %c65, %c0_267, %c0_268], %333 {strides = array<i32>} : memref<1x144x16x16xf32, #tpu.memory_space<vmem>>, vector<1x1x16x16xf32>,
    %334 = vector.extract_strided_slice %3 {offsets = [16, 56], sizes = [16, 8], strides = [1, 1]} : vector<48x128xf32> to vector<16x8xf32>
    %c0_269 = arith.constant 0 : index
    %c0_270 = arith.constant 0 : index
    %335 = vector.load %arg3[%c0_269, %c0_270] : memref<8x48xf32, #tpu.memory_space<vmem>>, vector<8x48xf32>
    %cst_271 = arith.constant dense<0.000000e+00> : vector<16x48xf32>
    %336 = tpu.matmul %334, %335, %cst_271 {dimension_numbers = #tpu.dot_dimension_numbers<[1], [0], [0], [1], [0, 0, 1, 1], [], []>} : vector<16x8xf32>, vector<8x48xf32>, vector<16x48xf32> -> vector<16x48xf32>
    %337 = vector.extract_strided_slice %336 {offsets = [0, 0], sizes = [16, 16], strides = [1, 1]} : vector<16x48xf32> to vector<16x16xf32>
    %c0_272 = arith.constant 0 : index
    %c66 = arith.constant 66 : index
    %c0_273 = arith.constant 0 : index
    %c0_274 = arith.constant 0 : index
    %338 = vector.load %arg4[%c0_272, %c66, %c0_273, %c0_274] : memref<1x144x16x16xf32, #tpu.memory_space<vmem>>, vector<1x1x16x16xf32>
    %339 = vector.shape_cast %338 : vector<1x1x16x16xf32> to vector<16x16xf32>
    %340 = vector.shape_cast %337 : vector<16x16xf32> to vector<1x1x16x16xf32>
    tpu.vector_store %arg4[%c0_272, %c66, %c0_273, %c0_274], %340 {strides = array<i32>} : memref<1x144x16x16xf32, #tpu.memory_space<vmem>>, vector<1x1x16x16xf32>,
    %341 = vector.extract_strided_slice %336 {offsets = [0, 16], sizes = [16, 16], strides = [1, 1]} : vector<16x48xf32> to vector<16x16xf32>
    %c0_275 = arith.constant 0 : index
    %c67 = arith.constant 67 : index
    %c0_276 = arith.constant 0 : index
    %c0_277 = arith.constant 0 : index
    %342 = vector.load %arg4[%c0_275, %c67, %c0_276, %c0_277] : memref<1x144x16x16xf32, #tpu.memory_space<vmem>>, vector<1x1x16x16xf32>
    %343 = vector.shape_cast %342 : vector<1x1x16x16xf32> to vector<16x16xf32>
    %344 = vector.shape_cast %341 : vector<16x16xf32> to vector<1x1x16x16xf32>
    tpu.vector_store %arg4[%c0_275, %c67, %c0_276, %c0_277], %344 {strides = array<i32>} : memref<1x144x16x16xf32, #tpu.memory_space<vmem>>, vector<1x1x16x16xf32>,
    %345 = vector.extract_strided_slice %336 {offsets = [0, 32], sizes = [16, 16], strides = [1, 1]} : vector<16x48xf32> to vector<16x16xf32>
    %c0_278 = arith.constant 0 : index
    %c68 = arith.constant 68 : index
    %c0_279 = arith.constant 0 : index
    %c0_280 = arith.constant 0 : index
    %346 = vector.load %arg4[%c0_278, %c68, %c0_279, %c0_280] : memref<1x144x16x16xf32, #tpu.memory_space<vmem>>, vector<1x1x16x16xf32>
    %347 = vector.shape_cast %346 : vector<1x1x16x16xf32> to vector<16x16xf32>
    %348 = vector.shape_cast %345 : vector<16x16xf32> to vector<1x1x16x16xf32>
    tpu.vector_store %arg4[%c0_278, %c68, %c0_279, %c0_280], %348 {strides = array<i32>} : memref<1x144x16x16xf32, #tpu.memory_space<vmem>>, vector<1x1x16x16xf32>,
    %349 = vector.extract_strided_slice %3 {offsets = [32, 56], sizes = [16, 8], strides = [1, 1]} : vector<48x128xf32> to vector<16x8xf32>
    %c0_281 = arith.constant 0 : index
    %c0_282 = arith.constant 0 : index
    %350 = vector.load %arg3[%c0_281, %c0_282] : memref<8x48xf32, #tpu.memory_space<vmem>>, vector<8x48xf32>
    %cst_283 = arith.constant dense<0.000000e+00> : vector<16x48xf32>
    %351 = tpu.matmul %349, %350, %cst_283 {dimension_numbers = #tpu.dot_dimension_numbers<[1], [0], [0], [1], [0, 0, 1, 1], [], []>} : vector<16x8xf32>, vector<8x48xf32>, vector<16x48xf32> -> vector<16x48xf32>
    %352 = vector.extract_strided_slice %351 {offsets = [0, 0], sizes = [16, 16], strides = [1, 1]} : vector<16x48xf32> to vector<16x16xf32>
    %c0_284 = arith.constant 0 : index
    %c69 = arith.constant 69 : index
    %c0_285 = arith.constant 0 : index
    %c0_286 = arith.constant 0 : index
    %353 = vector.load %arg4[%c0_284, %c69, %c0_285, %c0_286] : memref<1x144x16x16xf32, #tpu.memory_space<vmem>>, vector<1x1x16x16xf32>
    %354 = vector.shape_cast %353 : vector<1x1x16x16xf32> to vector<16x16xf32>
    %355 = vector.shape_cast %352 : vector<16x16xf32> to vector<1x1x16x16xf32>
    tpu.vector_store %arg4[%c0_284, %c69, %c0_285, %c0_286], %355 {strides = array<i32>} : memref<1x144x16x16xf32, #tpu.memory_space<vmem>>, vector<1x1x16x16xf32>,
    %356 = vector.extract_strided_slice %351 {offsets = [0, 16], sizes = [16, 16], strides = [1, 1]} : vector<16x48xf32> to vector<16x16xf32>
    %c0_287 = arith.constant 0 : index
    %c70 = arith.constant 70 : index
    %c0_288 = arith.constant 0 : index
    %c0_289 = arith.constant 0 : index
    %357 = vector.load %arg4[%c0_287, %c70, %c0_288, %c0_289] : memref<1x144x16x16xf32, #tpu.memory_space<vmem>>, vector<1x1x16x16xf32>
    %358 = vector.shape_cast %357 : vector<1x1x16x16xf32> to vector<16x16xf32>
    %359 = vector.shape_cast %356 : vector<16x16xf32> to vector<1x1x16x16xf32>
    tpu.vector_store %arg4[%c0_287, %c70, %c0_288, %c0_289], %359 {strides = array<i32>} : memref<1x144x16x16xf32, #tpu.memory_space<vmem>>, vector<1x1x16x16xf32>,
    %360 = vector.extract_strided_slice %351 {offsets = [0, 32], sizes = [16, 16], strides = [1, 1]} : vector<16x48xf32> to vector<16x16xf32>
    %c0_290 = arith.constant 0 : index
    %c71 = arith.constant 71 : index
    %c0_291 = arith.constant 0 : index
    %c0_292 = arith.constant 0 : index
    %361 = vector.load %arg4[%c0_290, %c71, %c0_291, %c0_292] : memref<1x144x16x16xf32, #tpu.memory_space<vmem>>, vector<1x1x16x16xf32>
    %362 = vector.shape_cast %361 : vector<1x1x16x16xf32> to vector<16x16xf32>
    %363 = vector.shape_cast %360 : vector<16x16xf32> to vector<1x1x16x16xf32>
    tpu.vector_store %arg4[%c0_290, %c71, %c0_291, %c0_292], %363 {strides = array<i32>} : memref<1x144x16x16xf32, #tpu.memory_space<vmem>>, vector<1x1x16x16xf32>,
    %364 = vector.extract_strided_slice %3 {offsets = [0, 64], sizes = [16, 8], strides = [1, 1]} : vector<48x128xf32> to vector<16x8xf32>
    %c0_293 = arith.constant 0 : index
    %c0_294 = arith.constant 0 : index
    %365 = vector.load %arg3[%c0_293, %c0_294] : memref<8x48xf32, #tpu.memory_space<vmem>>, vector<8x48xf32>
    %cst_295 = arith.constant dense<0.000000e+00> : vector<16x48xf32>
    %366 = tpu.matmul %364, %365, %cst_295 {dimension_numbers = #tpu.dot_dimension_numbers<[1], [0], [0], [1], [0, 0, 1, 1], [], []>} : vector<16x8xf32>, vector<8x48xf32>, vector<16x48xf32> -> vector<16x48xf32>
    %367 = vector.extract_strided_slice %366 {offsets = [0, 0], sizes = [16, 16], strides = [1, 1]} : vector<16x48xf32> to vector<16x16xf32>
    %c0_296 = arith.constant 0 : index
    %c72 = arith.constant 72 : index
    %c0_297 = arith.constant 0 : index
    %c0_298 = arith.constant 0 : index
    %368 = vector.load %arg4[%c0_296, %c72, %c0_297, %c0_298] : memref<1x144x16x16xf32, #tpu.memory_space<vmem>>, vector<1x1x16x16xf32>
    %369 = vector.shape_cast %368 : vector<1x1x16x16xf32> to vector<16x16xf32>
    %370 = vector.shape_cast %367 : vector<16x16xf32> to vector<1x1x16x16xf32>
    tpu.vector_store %arg4[%c0_296, %c72, %c0_297, %c0_298], %370 {strides = array<i32>} : memref<1x144x16x16xf32, #tpu.memory_space<vmem>>, vector<1x1x16x16xf32>,
    %371 = vector.extract_strided_slice %366 {offsets = [0, 16], sizes = [16, 16], strides = [1, 1]} : vector<16x48xf32> to vector<16x16xf32>
    %c0_299 = arith.constant 0 : index
    %c73 = arith.constant 73 : index
    %c0_300 = arith.constant 0 : index
    %c0_301 = arith.constant 0 : index
    %372 = vector.load %arg4[%c0_299, %c73, %c0_300, %c0_301] : memref<1x144x16x16xf32, #tpu.memory_space<vmem>>, vector<1x1x16x16xf32>
    %373 = vector.shape_cast %372 : vector<1x1x16x16xf32> to vector<16x16xf32>
    %374 = vector.shape_cast %371 : vector<16x16xf32> to vector<1x1x16x16xf32>
    tpu.vector_store %arg4[%c0_299, %c73, %c0_300, %c0_301], %374 {strides = array<i32>} : memref<1x144x16x16xf32, #tpu.memory_space<vmem>>, vector<1x1x16x16xf32>,
    %375 = vector.extract_strided_slice %366 {offsets = [0, 32], sizes = [16, 16], strides = [1, 1]} : vector<16x48xf32> to vector<16x16xf32>
    %c0_302 = arith.constant 0 : index
    %c74 = arith.constant 74 : index
    %c0_303 = arith.constant 0 : index
    %c0_304 = arith.constant 0 : index
    %376 = vector.load %arg4[%c0_302, %c74, %c0_303, %c0_304] : memref<1x144x16x16xf32, #tpu.memory_space<vmem>>, vector<1x1x16x16xf32>
    %377 = vector.shape_cast %376 : vector<1x1x16x16xf32> to vector<16x16xf32>
    %378 = vector.shape_cast %375 : vector<16x16xf32> to vector<1x1x16x16xf32>
    tpu.vector_store %arg4[%c0_302, %c74, %c0_303, %c0_304], %378 {strides = array<i32>} : memref<1x144x16x16xf32, #tpu.memory_space<vmem>>, vector<1x1x16x16xf32>,
    %379 = vector.extract_strided_slice %3 {offsets = [16, 64], sizes = [16, 8], strides = [1, 1]} : vector<48x128xf32> to vector<16x8xf32>
    %c0_305 = arith.constant 0 : index
    %c0_306 = arith.constant 0 : index
    %380 = vector.load %arg3[%c0_305, %c0_306] : memref<8x48xf32, #tpu.memory_space<vmem>>, vector<8x48xf32>
    %cst_307 = arith.constant dense<0.000000e+00> : vector<16x48xf32>
    %381 = tpu.matmul %379, %380, %cst_307 {dimension_numbers = #tpu.dot_dimension_numbers<[1], [0], [0], [1], [0, 0, 1, 1], [], []>} : vector<16x8xf32>, vector<8x48xf32>, vector<16x48xf32> -> vector<16x48xf32>
    %382 = vector.extract_strided_slice %381 {offsets = [0, 0], sizes = [16, 16], strides = [1, 1]} : vector<16x48xf32> to vector<16x16xf32>
    %c0_308 = arith.constant 0 : index
    %c75 = arith.constant 75 : index
    %c0_309 = arith.constant 0 : index
    %c0_310 = arith.constant 0 : index
    %383 = vector.load %arg4[%c0_308, %c75, %c0_309, %c0_310] : memref<1x144x16x16xf32, #tpu.memory_space<vmem>>, vector<1x1x16x16xf32>
    %384 = vector.shape_cast %383 : vector<1x1x16x16xf32> to vector<16x16xf32>
    %385 = vector.shape_cast %382 : vector<16x16xf32> to vector<1x1x16x16xf32>
    tpu.vector_store %arg4[%c0_308, %c75, %c0_309, %c0_310], %385 {strides = array<i32>} : memref<1x144x16x16xf32, #tpu.memory_space<vmem>>, vector<1x1x16x16xf32>,
    %386 = vector.extract_strided_slice %381 {offsets = [0, 16], sizes = [16, 16], strides = [1, 1]} : vector<16x48xf32> to vector<16x16xf32>
    %c0_311 = arith.constant 0 : index
    %c76 = arith.constant 76 : index
    %c0_312 = arith.constant 0 : index
    %c0_313 = arith.constant 0 : index
    %387 = vector.load %arg4[%c0_311, %c76, %c0_312, %c0_313] : memref<1x144x16x16xf32, #tpu.memory_space<vmem>>, vector<1x1x16x16xf32>
    %388 = vector.shape_cast %387 : vector<1x1x16x16xf32> to vector<16x16xf32>
    %389 = vector.shape_cast %386 : vector<16x16xf32> to vector<1x1x16x16xf32>
    tpu.vector_store %arg4[%c0_311, %c76, %c0_312, %c0_313], %389 {strides = array<i32>} : memref<1x144x16x16xf32, #tpu.memory_space<vmem>>, vector<1x1x16x16xf32>,
    %390 = vector.extract_strided_slice %381 {offsets = [0, 32], sizes = [16, 16], strides = [1, 1]} : vector<16x48xf32> to vector<16x16xf32>
    %c0_314 = arith.constant 0 : index
    %c77 = arith.constant 77 : index
    %c0_315 = arith.constant 0 : index
    %c0_316 = arith.constant 0 : index
    %391 = vector.load %arg4[%c0_314, %c77, %c0_315, %c0_316] : memref<1x144x16x16xf32, #tpu.memory_space<vmem>>, vector<1x1x16x16xf32>
    %392 = vector.shape_cast %391 : vector<1x1x16x16xf32> to vector<16x16xf32>
    %393 = vector.shape_cast %390 : vector<16x16xf32> to vector<1x1x16x16xf32>
    tpu.vector_store %arg4[%c0_314, %c77, %c0_315, %c0_316], %393 {strides = array<i32>} : memref<1x144x16x16xf32, #tpu.memory_space<vmem>>, vector<1x1x16x16xf32>,
    %394 = vector.extract_strided_slice %3 {offsets = [32, 64], sizes = [16, 8], strides = [1, 1]} : vector<48x128xf32> to vector<16x8xf32>
    %c0_317 = arith.constant 0 : index
    %c0_318 = arith.constant 0 : index
    %395 = vector.load %arg3[%c0_317, %c0_318] : memref<8x48xf32, #tpu.memory_space<vmem>>, vector<8x48xf32>
    %cst_319 = arith.constant dense<0.000000e+00> : vector<16x48xf32>
    %396 = tpu.matmul %394, %395, %cst_319 {dimension_numbers = #tpu.dot_dimension_numbers<[1], [0], [0], [1], [0, 0, 1, 1], [], []>} : vector<16x8xf32>, vector<8x48xf32>, vector<16x48xf32> -> vector<16x48xf32>
    %397 = vector.extract_strided_slice %396 {offsets = [0, 0], sizes = [16, 16], strides = [1, 1]} : vector<16x48xf32> to vector<16x16xf32>
    %c0_320 = arith.constant 0 : index
    %c78 = arith.constant 78 : index
    %c0_321 = arith.constant 0 : index
    %c0_322 = arith.constant 0 : index
    %398 = vector.load %arg4[%c0_320, %c78, %c0_321, %c0_322] : memref<1x144x16x16xf32, #tpu.memory_space<vmem>>, vector<1x1x16x16xf32>
    %399 = vector.shape_cast %398 : vector<1x1x16x16xf32> to vector<16x16xf32>
    %400 = vector.shape_cast %397 : vector<16x16xf32> to vector<1x1x16x16xf32>
    tpu.vector_store %arg4[%c0_320, %c78, %c0_321, %c0_322], %400 {strides = array<i32>} : memref<1x144x16x16xf32, #tpu.memory_space<vmem>>, vector<1x1x16x16xf32>,
    %401 = vector.extract_strided_slice %396 {offsets = [0, 16], sizes = [16, 16], strides = [1, 1]} : vector<16x48xf32> to vector<16x16xf32>
    %c0_323 = arith.constant 0 : index
    %c79 = arith.constant 79 : index
    %c0_324 = arith.constant 0 : index
    %c0_325 = arith.constant 0 : index
    %402 = vector.load %arg4[%c0_323, %c79, %c0_324, %c0_325] : memref<1x144x16x16xf32, #tpu.memory_space<vmem>>, vector<1x1x16x16xf32>
    %403 = vector.shape_cast %402 : vector<1x1x16x16xf32> to vector<16x16xf32>
    %404 = vector.shape_cast %401 : vector<16x16xf32> to vector<1x1x16x16xf32>
    tpu.vector_store %arg4[%c0_323, %c79, %c0_324, %c0_325], %404 {strides = array<i32>} : memref<1x144x16x16xf32, #tpu.memory_space<vmem>>, vector<1x1x16x16xf32>,
    %405 = vector.extract_strided_slice %396 {offsets = [0, 32], sizes = [16, 16], strides = [1, 1]} : vector<16x48xf32> to vector<16x16xf32>
    %c0_326 = arith.constant 0 : index
    %c80 = arith.constant 80 : index
    %c0_327 = arith.constant 0 : index
    %c0_328 = arith.constant 0 : index
    %406 = vector.load %arg4[%c0_326, %c80, %c0_327, %c0_328] : memref<1x144x16x16xf32, #tpu.memory_space<vmem>>, vector<1x1x16x16xf32>
    %407 = vector.shape_cast %406 : vector<1x1x16x16xf32> to vector<16x16xf32>
    %408 = vector.shape_cast %405 : vector<16x16xf32> to vector<1x1x16x16xf32>
    tpu.vector_store %arg4[%c0_326, %c80, %c0_327, %c0_328], %408 {strides = array<i32>} : memref<1x144x16x16xf32, #tpu.memory_space<vmem>>, vector<1x1x16x16xf32>,
    %409 = vector.extract_strided_slice %3 {offsets = [0, 72], sizes = [16, 8], strides = [1, 1]} : vector<48x128xf32> to vector<16x8xf32>
    %c0_329 = arith.constant 0 : index
    %c0_330 = arith.constant 0 : index
    %410 = vector.load %arg3[%c0_329, %c0_330] : memref<8x48xf32, #tpu.memory_space<vmem>>, vector<8x48xf32>
    %cst_331 = arith.constant dense<0.000000e+00> : vector<16x48xf32>
    %411 = tpu.matmul %409, %410, %cst_331 {dimension_numbers = #tpu.dot_dimension_numbers<[1], [0], [0], [1], [0, 0, 1, 1], [], []>} : vector<16x8xf32>, vector<8x48xf32>, vector<16x48xf32> -> vector<16x48xf32>
    %412 = vector.extract_strided_slice %411 {offsets = [0, 0], sizes = [16, 16], strides = [1, 1]} : vector<16x48xf32> to vector<16x16xf32>
    %c0_332 = arith.constant 0 : index
    %c81 = arith.constant 81 : index
    %c0_333 = arith.constant 0 : index
    %c0_334 = arith.constant 0 : index
    %413 = vector.load %arg4[%c0_332, %c81, %c0_333, %c0_334] : memref<1x144x16x16xf32, #tpu.memory_space<vmem>>, vector<1x1x16x16xf32>
    %414 = vector.shape_cast %413 : vector<1x1x16x16xf32> to vector<16x16xf32>
    %415 = vector.shape_cast %412 : vector<16x16xf32> to vector<1x1x16x16xf32>
    tpu.vector_store %arg4[%c0_332, %c81, %c0_333, %c0_334], %415 {strides = array<i32>} : memref<1x144x16x16xf32, #tpu.memory_space<vmem>>, vector<1x1x16x16xf32>,
    %416 = vector.extract_strided_slice %411 {offsets = [0, 16], sizes = [16, 16], strides = [1, 1]} : vector<16x48xf32> to vector<16x16xf32>
    %c0_335 = arith.constant 0 : index
    %c82 = arith.constant 82 : index
    %c0_336 = arith.constant 0 : index
    %c0_337 = arith.constant 0 : index
    %417 = vector.load %arg4[%c0_335, %c82, %c0_336, %c0_337] : memref<1x144x16x16xf32, #tpu.memory_space<vmem>>, vector<1x1x16x16xf32>
    %418 = vector.shape_cast %417 : vector<1x1x16x16xf32> to vector<16x16xf32>
    %419 = vector.shape_cast %416 : vector<16x16xf32> to vector<1x1x16x16xf32>
    tpu.vector_store %arg4[%c0_335, %c82, %c0_336, %c0_337], %419 {strides = array<i32>} : memref<1x144x16x16xf32, #tpu.memory_space<vmem>>, vector<1x1x16x16xf32>,
    %420 = vector.extract_strided_slice %411 {offsets = [0, 32], sizes = [16, 16], strides = [1, 1]} : vector<16x48xf32> to vector<16x16xf32>
    %c0_338 = arith.constant 0 : index
    %c83 = arith.constant 83 : index
    %c0_339 = arith.constant 0 : index
    %c0_340 = arith.constant 0 : index
    %421 = vector.load %arg4[%c0_338, %c83, %c0_339, %c0_340] : memref<1x144x16x16xf32, #tpu.memory_space<vmem>>, vector<1x1x16x16xf32>
    %422 = vector.shape_cast %421 : vector<1x1x16x16xf32> to vector<16x16xf32>
    %423 = vector.shape_cast %420 : vector<16x16xf32> to vector<1x1x16x16xf32>
    tpu.vector_store %arg4[%c0_338, %c83, %c0_339, %c0_340], %423 {strides = array<i32>} : memref<1x144x16x16xf32, #tpu.memory_space<vmem>>, vector<1x1x16x16xf32>,
    %424 = vector.extract_strided_slice %3 {offsets = [16, 72], sizes = [16, 8], strides = [1, 1]} : vector<48x128xf32> to vector<16x8xf32>
    %c0_341 = arith.constant 0 : index
    %c0_342 = arith.constant 0 : index
    %425 = vector.load %arg3[%c0_341, %c0_342] : memref<8x48xf32, #tpu.memory_space<vmem>>, vector<8x48xf32>
    %cst_343 = arith.constant dense<0.000000e+00> : vector<16x48xf32>
    %426 = tpu.matmul %424, %425, %cst_343 {dimension_numbers = #tpu.dot_dimension_numbers<[1], [0], [0], [1], [0, 0, 1, 1], [], []>} : vector<16x8xf32>, vector<8x48xf32>, vector<16x48xf32> -> vector<16x48xf32>
    %427 = vector.extract_strided_slice %426 {offsets = [0, 0], sizes = [16, 16], strides = [1, 1]} : vector<16x48xf32> to vector<16x16xf32>
    %c0_344 = arith.constant 0 : index
    %c84 = arith.constant 84 : index
    %c0_345 = arith.constant 0 : index
    %c0_346 = arith.constant 0 : index
    %428 = vector.load %arg4[%c0_344, %c84, %c0_345, %c0_346] : memref<1x144x16x16xf32, #tpu.memory_space<vmem>>, vector<1x1x16x16xf32>
    %429 = vector.shape_cast %428 : vector<1x1x16x16xf32> to vector<16x16xf32>
    %430 = vector.shape_cast %427 : vector<16x16xf32> to vector<1x1x16x16xf32>
    tpu.vector_store %arg4[%c0_344, %c84, %c0_345, %c0_346], %430 {strides = array<i32>} : memref<1x144x16x16xf32, #tpu.memory_space<vmem>>, vector<1x1x16x16xf32>,
    %431 = vector.extract_strided_slice %426 {offsets = [0, 16], sizes = [16, 16], strides = [1, 1]} : vector<16x48xf32> to vector<16x16xf32>
    %c0_347 = arith.constant 0 : index
    %c85 = arith.constant 85 : index
    %c0_348 = arith.constant 0 : index
    %c0_349 = arith.constant 0 : index
    %432 = vector.load %arg4[%c0_347, %c85, %c0_348, %c0_349] : memref<1x144x16x16xf32, #tpu.memory_space<vmem>>, vector<1x1x16x16xf32>
    %433 = vector.shape_cast %432 : vector<1x1x16x16xf32> to vector<16x16xf32>
    %434 = vector.shape_cast %431 : vector<16x16xf32> to vector<1x1x16x16xf32>
    tpu.vector_store %arg4[%c0_347, %c85, %c0_348, %c0_349], %434 {strides = array<i32>} : memref<1x144x16x16xf32, #tpu.memory_space<vmem>>, vector<1x1x16x16xf32>,
    %435 = vector.extract_strided_slice %426 {offsets = [0, 32], sizes = [16, 16], strides = [1, 1]} : vector<16x48xf32> to vector<16x16xf32>
    %c0_350 = arith.constant 0 : index
    %c86 = arith.constant 86 : index
    %c0_351 = arith.constant 0 : index
    %c0_352 = arith.constant 0 : index
    %436 = vector.load %arg4[%c0_350, %c86, %c0_351, %c0_352] : memref<1x144x16x16xf32, #tpu.memory_space<vmem>>, vector<1x1x16x16xf32>
    %437 = vector.shape_cast %436 : vector<1x1x16x16xf32> to vector<16x16xf32>
    %438 = vector.shape_cast %435 : vector<16x16xf32> to vector<1x1x16x16xf32>
    tpu.vector_store %arg4[%c0_350, %c86, %c0_351, %c0_352], %438 {strides = array<i32>} : memref<1x144x16x16xf32, #tpu.memory_space<vmem>>, vector<1x1x16x16xf32>,
    %439 = vector.extract_strided_slice %3 {offsets = [32, 72], sizes = [16, 8], strides = [1, 1]} : vector<48x128xf32> to vector<16x8xf32>
    %c0_353 = arith.constant 0 : index
    %c0_354 = arith.constant 0 : index
    %440 = vector.load %arg3[%c0_353, %c0_354] : memref<8x48xf32, #tpu.memory_space<vmem>>, vector<8x48xf32>
    %cst_355 = arith.constant dense<0.000000e+00> : vector<16x48xf32>
    %441 = tpu.matmul %439, %440, %cst_355 {dimension_numbers = #tpu.dot_dimension_numbers<[1], [0], [0], [1], [0, 0, 1, 1], [], []>} : vector<16x8xf32>, vector<8x48xf32>, vector<16x48xf32> -> vector<16x48xf32>
    %442 = vector.extract_strided_slice %441 {offsets = [0, 0], sizes = [16, 16], strides = [1, 1]} : vector<16x48xf32> to vector<16x16xf32>
    %c0_356 = arith.constant 0 : index
    %c87 = arith.constant 87 : index
    %c0_357 = arith.constant 0 : index
    %c0_358 = arith.constant 0 : index
    %443 = vector.load %arg4[%c0_356, %c87, %c0_357, %c0_358] : memref<1x144x16x16xf32, #tpu.memory_space<vmem>>, vector<1x1x16x16xf32>
    %444 = vector.shape_cast %443 : vector<1x1x16x16xf32> to vector<16x16xf32>
    %445 = vector.shape_cast %442 : vector<16x16xf32> to vector<1x1x16x16xf32>
    tpu.vector_store %arg4[%c0_356, %c87, %c0_357, %c0_358], %445 {strides = array<i32>} : memref<1x144x16x16xf32, #tpu.memory_space<vmem>>, vector<1x1x16x16xf32>,
    %446 = vector.extract_strided_slice %441 {offsets = [0, 16], sizes = [16, 16], strides = [1, 1]} : vector<16x48xf32> to vector<16x16xf32>
    %c0_359 = arith.constant 0 : index
    %c88 = arith.constant 88 : index
    %c0_360 = arith.constant 0 : index
    %c0_361 = arith.constant 0 : index
    %447 = vector.load %arg4[%c0_359, %c88, %c0_360, %c0_361] : memref<1x144x16x16xf32, #tpu.memory_space<vmem>>, vector<1x1x16x16xf32>
    %448 = vector.shape_cast %447 : vector<1x1x16x16xf32> to vector<16x16xf32>
    %449 = vector.shape_cast %446 : vector<16x16xf32> to vector<1x1x16x16xf32>
    tpu.vector_store %arg4[%c0_359, %c88, %c0_360, %c0_361], %449 {strides = array<i32>} : memref<1x144x16x16xf32, #tpu.memory_space<vmem>>, vector<1x1x16x16xf32>,
    %450 = vector.extract_strided_slice %441 {offsets = [0, 32], sizes = [16, 16], strides = [1, 1]} : vector<16x48xf32> to vector<16x16xf32>
    %c0_362 = arith.constant 0 : index
    %c89 = arith.constant 89 : index
    %c0_363 = arith.constant 0 : index
    %c0_364 = arith.constant 0 : index
    %451 = vector.load %arg4[%c0_362, %c89, %c0_363, %c0_364] : memref<1x144x16x16xf32, #tpu.memory_space<vmem>>, vector<1x1x16x16xf32>
    %452 = vector.shape_cast %451 : vector<1x1x16x16xf32> to vector<16x16xf32>
    %453 = vector.shape_cast %450 : vector<16x16xf32> to vector<1x1x16x16xf32>
    tpu.vector_store %arg4[%c0_362, %c89, %c0_363, %c0_364], %453 {strides = array<i32>} : memref<1x144x16x16xf32, #tpu.memory_space<vmem>>, vector<1x1x16x16xf32>,
    %454 = vector.extract_strided_slice %3 {offsets = [0, 80], sizes = [16, 8], strides = [1, 1]} : vector<48x128xf32> to vector<16x8xf32>
    %c0_365 = arith.constant 0 : index
    %c0_366 = arith.constant 0 : index
    %455 = vector.load %arg3[%c0_365, %c0_366] : memref<8x48xf32, #tpu.memory_space<vmem>>, vector<8x48xf32>
    %cst_367 = arith.constant dense<0.000000e+00> : vector<16x48xf32>
    %456 = tpu.matmul %454, %455, %cst_367 {dimension_numbers = #tpu.dot_dimension_numbers<[1], [0], [0], [1], [0, 0, 1, 1], [], []>} : vector<16x8xf32>, vector<8x48xf32>, vector<16x48xf32> -> vector<16x48xf32>
    %457 = vector.extract_strided_slice %456 {offsets = [0, 0], sizes = [16, 16], strides = [1, 1]} : vector<16x48xf32> to vector<16x16xf32>
    %c0_368 = arith.constant 0 : index
    %c90 = arith.constant 90 : index
    %c0_369 = arith.constant 0 : index
    %c0_370 = arith.constant 0 : index
    %458 = vector.load %arg4[%c0_368, %c90, %c0_369, %c0_370] : memref<1x144x16x16xf32, #tpu.memory_space<vmem>>, vector<1x1x16x16xf32>
    %459 = vector.shape_cast %458 : vector<1x1x16x16xf32> to vector<16x16xf32>
    %460 = vector.shape_cast %457 : vector<16x16xf32> to vector<1x1x16x16xf32>
    tpu.vector_store %arg4[%c0_368, %c90, %c0_369, %c0_370], %460 {strides = array<i32>} : memref<1x144x16x16xf32, #tpu.memory_space<vmem>>, vector<1x1x16x16xf32>,
    %461 = vector.extract_strided_slice %456 {offsets = [0, 16], sizes = [16, 16], strides = [1, 1]} : vector<16x48xf32> to vector<16x16xf32>
    %c0_371 = arith.constant 0 : index
    %c91 = arith.constant 91 : index
    %c0_372 = arith.constant 0 : index
    %c0_373 = arith.constant 0 : index
    %462 = vector.load %arg4[%c0_371, %c91, %c0_372, %c0_373] : memref<1x144x16x16xf32, #tpu.memory_space<vmem>>, vector<1x1x16x16xf32>
    %463 = vector.shape_cast %462 : vector<1x1x16x16xf32> to vector<16x16xf32>
    %464 = vector.shape_cast %461 : vector<16x16xf32> to vector<1x1x16x16xf32>
    tpu.vector_store %arg4[%c0_371, %c91, %c0_372, %c0_373], %464 {strides = array<i32>} : memref<1x144x16x16xf32, #tpu.memory_space<vmem>>, vector<1x1x16x16xf32>,
    %465 = vector.extract_strided_slice %456 {offsets = [0, 32], sizes = [16, 16], strides = [1, 1]} : vector<16x48xf32> to vector<16x16xf32>
    %c0_374 = arith.constant 0 : index
    %c92 = arith.constant 92 : index
    %c0_375 = arith.constant 0 : index
    %c0_376 = arith.constant 0 : index
    %466 = vector.load %arg4[%c0_374, %c92, %c0_375, %c0_376] : memref<1x144x16x16xf32, #tpu.memory_space<vmem>>, vector<1x1x16x16xf32>
    %467 = vector.shape_cast %466 : vector<1x1x16x16xf32> to vector<16x16xf32>
    %468 = vector.shape_cast %465 : vector<16x16xf32> to vector<1x1x16x16xf32>
    tpu.vector_store %arg4[%c0_374, %c92, %c0_375, %c0_376], %468 {strides = array<i32>} : memref<1x144x16x16xf32, #tpu.memory_space<vmem>>, vector<1x1x16x16xf32>,
    %469 = vector.extract_strided_slice %3 {offsets = [16, 80], sizes = [16, 8], strides = [1, 1]} : vector<48x128xf32> to vector<16x8xf32>
    %c0_377 = arith.constant 0 : index
    %c0_378 = arith.constant 0 : index
    %470 = vector.load %arg3[%c0_377, %c0_378] : memref<8x48xf32, #tpu.memory_space<vmem>>, vector<8x48xf32>
    %cst_379 = arith.constant dense<0.000000e+00> : vector<16x48xf32>
    %471 = tpu.matmul %469, %470, %cst_379 {dimension_numbers = #tpu.dot_dimension_numbers<[1], [0], [0], [1], [0, 0, 1, 1], [], []>} : vector<16x8xf32>, vector<8x48xf32>, vector<16x48xf32> -> vector<16x48xf32>
    %472 = vector.extract_strided_slice %471 {offsets = [0, 0], sizes = [16, 16], strides = [1, 1]} : vector<16x48xf32> to vector<16x16xf32>
    %c0_380 = arith.constant 0 : index
    %c93 = arith.constant 93 : index
    %c0_381 = arith.constant 0 : index
    %c0_382 = arith.constant 0 : index
    %473 = vector.load %arg4[%c0_380, %c93, %c0_381, %c0_382] : memref<1x144x16x16xf32, #tpu.memory_space<vmem>>, vector<1x1x16x16xf32>
    %474 = vector.shape_cast %473 : vector<1x1x16x16xf32> to vector<16x16xf32>
    %475 = vector.shape_cast %472 : vector<16x16xf32> to vector<1x1x16x16xf32>
    tpu.vector_store %arg4[%c0_380, %c93, %c0_381, %c0_382], %475 {strides = array<i32>} : memref<1x144x16x16xf32, #tpu.memory_space<vmem>>, vector<1x1x16x16xf32>,
    %476 = vector.extract_strided_slice %471 {offsets = [0, 16], sizes = [16, 16], strides = [1, 1]} : vector<16x48xf32> to vector<16x16xf32>
    %c0_383 = arith.constant 0 : index
    %c94 = arith.constant 94 : index
    %c0_384 = arith.constant 0 : index
    %c0_385 = arith.constant 0 : index
    %477 = vector.load %arg4[%c0_383, %c94, %c0_384, %c0_385] : memref<1x144x16x16xf32, #tpu.memory_space<vmem>>, vector<1x1x16x16xf32>
    %478 = vector.shape_cast %477 : vector<1x1x16x16xf32> to vector<16x16xf32>
    %479 = vector.shape_cast %476 : vector<16x16xf32> to vector<1x1x16x16xf32>
    tpu.vector_store %arg4[%c0_383, %c94, %c0_384, %c0_385], %479 {strides = array<i32>} : memref<1x144x16x16xf32, #tpu.memory_space<vmem>>, vector<1x1x16x16xf32>,
    %480 = vector.extract_strided_slice %471 {offsets = [0, 32], sizes = [16, 16], strides = [1, 1]} : vector<16x48xf32> to vector<16x16xf32>
    %c0_386 = arith.constant 0 : index
    %c95 = arith.constant 95 : index
    %c0_387 = arith.constant 0 : index
    %c0_388 = arith.constant 0 : index
    %481 = vector.load %arg4[%c0_386, %c95, %c0_387, %c0_388] : memref<1x144x16x16xf32, #tpu.memory_space<vmem>>, vector<1x1x16x16xf32>
    %482 = vector.shape_cast %481 : vector<1x1x16x16xf32> to vector<16x16xf32>
    %483 = vector.shape_cast %480 : vector<16x16xf32> to vector<1x1x16x16xf32>
    tpu.vector_store %arg4[%c0_386, %c95, %c0_387, %c0_388], %483 {strides = array<i32>} : memref<1x144x16x16xf32, #tpu.memory_space<vmem>>, vector<1x1x16x16xf32>,
    %484 = vector.extract_strided_slice %3 {offsets = [32, 80], sizes = [16, 8], strides = [1, 1]} : vector<48x128xf32> to vector<16x8xf32>
    %c0_389 = arith.constant 0 : index
    %c0_390 = arith.constant 0 : index
    %485 = vector.load %arg3[%c0_389, %c0_390] : memref<8x48xf32, #tpu.memory_space<vmem>>, vector<8x48xf32>
    %cst_391 = arith.constant dense<0.000000e+00> : vector<16x48xf32>
    %486 = tpu.matmul %484, %485, %cst_391 {dimension_numbers = #tpu.dot_dimension_numbers<[1], [0], [0], [1], [0, 0, 1, 1], [], []>} : vector<16x8xf32>, vector<8x48xf32>, vector<16x48xf32> -> vector<16x48xf32>
    %487 = vector.extract_strided_slice %486 {offsets = [0, 0], sizes = [16, 16], strides = [1, 1]} : vector<16x48xf32> to vector<16x16xf32>
    %c0_392 = arith.constant 0 : index
    %c96 = arith.constant 96 : index
    %c0_393 = arith.constant 0 : index
    %c0_394 = arith.constant 0 : index
    %488 = vector.load %arg4[%c0_392, %c96, %c0_393, %c0_394] : memref<1x144x16x16xf32, #tpu.memory_space<vmem>>, vector<1x1x16x16xf32>
    %489 = vector.shape_cast %488 : vector<1x1x16x16xf32> to vector<16x16xf32>
    %490 = vector.shape_cast %487 : vector<16x16xf32> to vector<1x1x16x16xf32>
    tpu.vector_store %arg4[%c0_392, %c96, %c0_393, %c0_394], %490 {strides = array<i32>} : memref<1x144x16x16xf32, #tpu.memory_space<vmem>>, vector<1x1x16x16xf32>,
    %491 = vector.extract_strided_slice %486 {offsets = [0, 16], sizes = [16, 16], strides = [1, 1]} : vector<16x48xf32> to vector<16x16xf32>
    %c0_395 = arith.constant 0 : index
    %c97 = arith.constant 97 : index
    %c0_396 = arith.constant 0 : index
    %c0_397 = arith.constant 0 : index
    %492 = vector.load %arg4[%c0_395, %c97, %c0_396, %c0_397] : memref<1x144x16x16xf32, #tpu.memory_space<vmem>>, vector<1x1x16x16xf32>
    %493 = vector.shape_cast %492 : vector<1x1x16x16xf32> to vector<16x16xf32>
    %494 = vector.shape_cast %491 : vector<16x16xf32> to vector<1x1x16x16xf32>
    tpu.vector_store %arg4[%c0_395, %c97, %c0_396, %c0_397], %494 {strides = array<i32>} : memref<1x144x16x16xf32, #tpu.memory_space<vmem>>, vector<1x1x16x16xf32>,
    %495 = vector.extract_strided_slice %486 {offsets = [0, 32], sizes = [16, 16], strides = [1, 1]} : vector<16x48xf32> to vector<16x16xf32>
    %c0_398 = arith.constant 0 : index
    %c98 = arith.constant 98 : index
    %c0_399 = arith.constant 0 : index
    %c0_400 = arith.constant 0 : index
    %496 = vector.load %arg4[%c0_398, %c98, %c0_399, %c0_400] : memref<1x144x16x16xf32, #tpu.memory_space<vmem>>, vector<1x1x16x16xf32>
    %497 = vector.shape_cast %496 : vector<1x1x16x16xf32> to vector<16x16xf32>
    %498 = vector.shape_cast %495 : vector<16x16xf32> to vector<1x1x16x16xf32>
    tpu.vector_store %arg4[%c0_398, %c98, %c0_399, %c0_400], %498 {strides = array<i32>} : memref<1x144x16x16xf32, #tpu.memory_space<vmem>>, vector<1x1x16x16xf32>,
    %499 = vector.extract_strided_slice %3 {offsets = [0, 88], sizes = [16, 8], strides = [1, 1]} : vector<48x128xf32> to vector<16x8xf32>
    %c0_401 = arith.constant 0 : index
    %c0_402 = arith.constant 0 : index
    %500 = vector.load %arg3[%c0_401, %c0_402] : memref<8x48xf32, #tpu.memory_space<vmem>>, vector<8x48xf32>
    %cst_403 = arith.constant dense<0.000000e+00> : vector<16x48xf32>
    %501 = tpu.matmul %499, %500, %cst_403 {dimension_numbers = #tpu.dot_dimension_numbers<[1], [0], [0], [1], [0, 0, 1, 1], [], []>} : vector<16x8xf32>, vector<8x48xf32>, vector<16x48xf32> -> vector<16x48xf32>
    %502 = vector.extract_strided_slice %501 {offsets = [0, 0], sizes = [16, 16], strides = [1, 1]} : vector<16x48xf32> to vector<16x16xf32>
    %c0_404 = arith.constant 0 : index
    %c99 = arith.constant 99 : index
    %c0_405 = arith.constant 0 : index
    %c0_406 = arith.constant 0 : index
    %503 = vector.load %arg4[%c0_404, %c99, %c0_405, %c0_406] : memref<1x144x16x16xf32, #tpu.memory_space<vmem>>, vector<1x1x16x16xf32>
    %504 = vector.shape_cast %503 : vector<1x1x16x16xf32> to vector<16x16xf32>
    %505 = vector.shape_cast %502 : vector<16x16xf32> to vector<1x1x16x16xf32>
    tpu.vector_store %arg4[%c0_404, %c99, %c0_405, %c0_406], %505 {strides = array<i32>} : memref<1x144x16x16xf32, #tpu.memory_space<vmem>>, vector<1x1x16x16xf32>,
    %506 = vector.extract_strided_slice %501 {offsets = [0, 16], sizes = [16, 16], strides = [1, 1]} : vector<16x48xf32> to vector<16x16xf32>
    %c0_407 = arith.constant 0 : index
    %c100 = arith.constant 100 : index
    %c0_408 = arith.constant 0 : index
    %c0_409 = arith.constant 0 : index
    %507 = vector.load %arg4[%c0_407, %c100, %c0_408, %c0_409] : memref<1x144x16x16xf32, #tpu.memory_space<vmem>>, vector<1x1x16x16xf32>
    %508 = vector.shape_cast %507 : vector<1x1x16x16xf32> to vector<16x16xf32>
    %509 = vector.shape_cast %506 : vector<16x16xf32> to vector<1x1x16x16xf32>
    tpu.vector_store %arg4[%c0_407, %c100, %c0_408, %c0_409], %509 {strides = array<i32>} : memref<1x144x16x16xf32, #tpu.memory_space<vmem>>, vector<1x1x16x16xf32>,
    %510 = vector.extract_strided_slice %501 {offsets = [0, 32], sizes = [16, 16], strides = [1, 1]} : vector<16x48xf32> to vector<16x16xf32>
    %c0_410 = arith.constant 0 : index
    %c101 = arith.constant 101 : index
    %c0_411 = arith.constant 0 : index
    %c0_412 = arith.constant 0 : index
    %511 = vector.load %arg4[%c0_410, %c101, %c0_411, %c0_412] : memref<1x144x16x16xf32, #tpu.memory_space<vmem>>, vector<1x1x16x16xf32>
    %512 = vector.shape_cast %511 : vector<1x1x16x16xf32> to vector<16x16xf32>
    %513 = vector.shape_cast %510 : vector<16x16xf32> to vector<1x1x16x16xf32>
    tpu.vector_store %arg4[%c0_410, %c101, %c0_411, %c0_412], %513 {strides = array<i32>} : memref<1x144x16x16xf32, #tpu.memory_space<vmem>>, vector<1x1x16x16xf32>,
    %514 = vector.extract_strided_slice %3 {offsets = [16, 88], sizes = [16, 8], strides = [1, 1]} : vector<48x128xf32> to vector<16x8xf32>
    %c0_413 = arith.constant 0 : index
    %c0_414 = arith.constant 0 : index
    %515 = vector.load %arg3[%c0_413, %c0_414] : memref<8x48xf32, #tpu.memory_space<vmem>>, vector<8x48xf32>
    %cst_415 = arith.constant dense<0.000000e+00> : vector<16x48xf32>
    %516 = tpu.matmul %514, %515, %cst_415 {dimension_numbers = #tpu.dot_dimension_numbers<[1], [0], [0], [1], [0, 0, 1, 1], [], []>} : vector<16x8xf32>, vector<8x48xf32>, vector<16x48xf32> -> vector<16x48xf32>
    %517 = vector.extract_strided_slice %516 {offsets = [0, 0], sizes = [16, 16], strides = [1, 1]} : vector<16x48xf32> to vector<16x16xf32>
    %c0_416 = arith.constant 0 : index
    %c102 = arith.constant 102 : index
    %c0_417 = arith.constant 0 : index
    %c0_418 = arith.constant 0 : index
    %518 = vector.load %arg4[%c0_416, %c102, %c0_417, %c0_418] : memref<1x144x16x16xf32, #tpu.memory_space<vmem>>, vector<1x1x16x16xf32>
    %519 = vector.shape_cast %518 : vector<1x1x16x16xf32> to vector<16x16xf32>
    %520 = vector.shape_cast %517 : vector<16x16xf32> to vector<1x1x16x16xf32>
    tpu.vector_store %arg4[%c0_416, %c102, %c0_417, %c0_418], %520 {strides = array<i32>} : memref<1x144x16x16xf32, #tpu.memory_space<vmem>>, vector<1x1x16x16xf32>,
    %521 = vector.extract_strided_slice %516 {offsets = [0, 16], sizes = [16, 16], strides = [1, 1]} : vector<16x48xf32> to vector<16x16xf32>
    %c0_419 = arith.constant 0 : index
    %c103 = arith.constant 103 : index
    %c0_420 = arith.constant 0 : index
    %c0_421 = arith.constant 0 : index
    %522 = vector.load %arg4[%c0_419, %c103, %c0_420, %c0_421] : memref<1x144x16x16xf32, #tpu.memory_space<vmem>>, vector<1x1x16x16xf32>
    %523 = vector.shape_cast %522 : vector<1x1x16x16xf32> to vector<16x16xf32>
    %524 = vector.shape_cast %521 : vector<16x16xf32> to vector<1x1x16x16xf32>
    tpu.vector_store %arg4[%c0_419, %c103, %c0_420, %c0_421], %524 {strides = array<i32>} : memref<1x144x16x16xf32, #tpu.memory_space<vmem>>, vector<1x1x16x16xf32>,
    %525 = vector.extract_strided_slice %516 {offsets = [0, 32], sizes = [16, 16], strides = [1, 1]} : vector<16x48xf32> to vector<16x16xf32>
    %c0_422 = arith.constant 0 : index
    %c104 = arith.constant 104 : index
    %c0_423 = arith.constant 0 : index
    %c0_424 = arith.constant 0 : index
    %526 = vector.load %arg4[%c0_422, %c104, %c0_423, %c0_424] : memref<1x144x16x16xf32, #tpu.memory_space<vmem>>, vector<1x1x16x16xf32>
    %527 = vector.shape_cast %526 : vector<1x1x16x16xf32> to vector<16x16xf32>
    %528 = vector.shape_cast %525 : vector<16x16xf32> to vector<1x1x16x16xf32>
    tpu.vector_store %arg4[%c0_422, %c104, %c0_423, %c0_424], %528 {strides = array<i32>} : memref<1x144x16x16xf32, #tpu.memory_space<vmem>>, vector<1x1x16x16xf32>,
    %529 = vector.extract_strided_slice %3 {offsets = [32, 88], sizes = [16, 8], strides = [1, 1]} : vector<48x128xf32> to vector<16x8xf32>
    %c0_425 = arith.constant 0 : index
    %c0_426 = arith.constant 0 : index
    %530 = vector.load %arg3[%c0_425, %c0_426] : memref<8x48xf32, #tpu.memory_space<vmem>>, vector<8x48xf32>
    %cst_427 = arith.constant dense<0.000000e+00> : vector<16x48xf32>
    %531 = tpu.matmul %529, %530, %cst_427 {dimension_numbers = #tpu.dot_dimension_numbers<[1], [0], [0], [1], [0, 0, 1, 1], [], []>} : vector<16x8xf32>, vector<8x48xf32>, vector<16x48xf32> -> vector<16x48xf32>
    %532 = vector.extract_strided_slice %531 {offsets = [0, 0], sizes = [16, 16], strides = [1, 1]} : vector<16x48xf32> to vector<16x16xf32>
    %c0_428 = arith.constant 0 : index
    %c105 = arith.constant 105 : index
    %c0_429 = arith.constant 0 : index
    %c0_430 = arith.constant 0 : index
    %533 = vector.load %arg4[%c0_428, %c105, %c0_429, %c0_430] : memref<1x144x16x16xf32, #tpu.memory_space<vmem>>, vector<1x1x16x16xf32>
    %534 = vector.shape_cast %533 : vector<1x1x16x16xf32> to vector<16x16xf32>
    %535 = vector.shape_cast %532 : vector<16x16xf32> to vector<1x1x16x16xf32>
    tpu.vector_store %arg4[%c0_428, %c105, %c0_429, %c0_430], %535 {strides = array<i32>} : memref<1x144x16x16xf32, #tpu.memory_space<vmem>>, vector<1x1x16x16xf32>,
    %536 = vector.extract_strided_slice %531 {offsets = [0, 16], sizes = [16, 16], strides = [1, 1]} : vector<16x48xf32> to vector<16x16xf32>
    %c0_431 = arith.constant 0 : index
    %c106 = arith.constant 106 : index
    %c0_432 = arith.constant 0 : index
    %c0_433 = arith.constant 0 : index
    %537 = vector.load %arg4[%c0_431, %c106, %c0_432, %c0_433] : memref<1x144x16x16xf32, #tpu.memory_space<vmem>>, vector<1x1x16x16xf32>
    %538 = vector.shape_cast %537 : vector<1x1x16x16xf32> to vector<16x16xf32>
    %539 = vector.shape_cast %536 : vector<16x16xf32> to vector<1x1x16x16xf32>
    tpu.vector_store %arg4[%c0_431, %c106, %c0_432, %c0_433], %539 {strides = array<i32>} : memref<1x144x16x16xf32, #tpu.memory_space<vmem>>, vector<1x1x16x16xf32>,
    %540 = vector.extract_strided_slice %531 {offsets = [0, 32], sizes = [16, 16], strides = [1, 1]} : vector<16x48xf32> to vector<16x16xf32>
    %c0_434 = arith.constant 0 : index
    %c107 = arith.constant 107 : index
    %c0_435 = arith.constant 0 : index
    %c0_436 = arith.constant 0 : index
    %541 = vector.load %arg4[%c0_434, %c107, %c0_435, %c0_436] : memref<1x144x16x16xf32, #tpu.memory_space<vmem>>, vector<1x1x16x16xf32>
    %542 = vector.shape_cast %541 : vector<1x1x16x16xf32> to vector<16x16xf32>
    %543 = vector.shape_cast %540 : vector<16x16xf32> to vector<1x1x16x16xf32>
    tpu.vector_store %arg4[%c0_434, %c107, %c0_435, %c0_436], %543 {strides = array<i32>} : memref<1x144x16x16xf32, #tpu.memory_space<vmem>>, vector<1x1x16x16xf32>,
    %544 = vector.extract_strided_slice %3 {offsets = [0, 96], sizes = [16, 8], strides = [1, 1]} : vector<48x128xf32> to vector<16x8xf32>
    %c0_437 = arith.constant 0 : index
    %c0_438 = arith.constant 0 : index
    %545 = vector.load %arg3[%c0_437, %c0_438] : memref<8x48xf32, #tpu.memory_space<vmem>>, vector<8x48xf32>
    %cst_439 = arith.constant dense<0.000000e+00> : vector<16x48xf32>
    %546 = tpu.matmul %544, %545, %cst_439 {dimension_numbers = #tpu.dot_dimension_numbers<[1], [0], [0], [1], [0, 0, 1, 1], [], []>} : vector<16x8xf32>, vector<8x48xf32>, vector<16x48xf32> -> vector<16x48xf32>
    %547 = vector.extract_strided_slice %546 {offsets = [0, 0], sizes = [16, 16], strides = [1, 1]} : vector<16x48xf32> to vector<16x16xf32>
    %c0_440 = arith.constant 0 : index
    %c108 = arith.constant 108 : index
    %c0_441 = arith.constant 0 : index
    %c0_442 = arith.constant 0 : index
    %548 = vector.load %arg4[%c0_440, %c108, %c0_441, %c0_442] : memref<1x144x16x16xf32, #tpu.memory_space<vmem>>, vector<1x1x16x16xf32>
    %549 = vector.shape_cast %548 : vector<1x1x16x16xf32> to vector<16x16xf32>
    %550 = vector.shape_cast %547 : vector<16x16xf32> to vector<1x1x16x16xf32>
    tpu.vector_store %arg4[%c0_440, %c108, %c0_441, %c0_442], %550 {strides = array<i32>} : memref<1x144x16x16xf32, #tpu.memory_space<vmem>>, vector<1x1x16x16xf32>,
    %551 = vector.extract_strided_slice %546 {offsets = [0, 16], sizes = [16, 16], strides = [1, 1]} : vector<16x48xf32> to vector<16x16xf32>
    %c0_443 = arith.constant 0 : index
    %c109 = arith.constant 109 : index
    %c0_444 = arith.constant 0 : index
    %c0_445 = arith.constant 0 : index
    %552 = vector.load %arg4[%c0_443, %c109, %c0_444, %c0_445] : memref<1x144x16x16xf32, #tpu.memory_space<vmem>>, vector<1x1x16x16xf32>
    %553 = vector.shape_cast %552 : vector<1x1x16x16xf32> to vector<16x16xf32>
    %554 = vector.shape_cast %551 : vector<16x16xf32> to vector<1x1x16x16xf32>
    tpu.vector_store %arg4[%c0_443, %c109, %c0_444, %c0_445], %554 {strides = array<i32>} : memref<1x144x16x16xf32, #tpu.memory_space<vmem>>, vector<1x1x16x16xf32>,
    %555 = vector.extract_strided_slice %546 {offsets = [0, 32], sizes = [16, 16], strides = [1, 1]} : vector<16x48xf32> to vector<16x16xf32>
    %c0_446 = arith.constant 0 : index
    %c110 = arith.constant 110 : index
    %c0_447 = arith.constant 0 : index
    %c0_448 = arith.constant 0 : index
    %556 = vector.load %arg4[%c0_446, %c110, %c0_447, %c0_448] : memref<1x144x16x16xf32, #tpu.memory_space<vmem>>, vector<1x1x16x16xf32>
    %557 = vector.shape_cast %556 : vector<1x1x16x16xf32> to vector<16x16xf32>
    %558 = vector.shape_cast %555 : vector<16x16xf32> to vector<1x1x16x16xf32>
    tpu.vector_store %arg4[%c0_446, %c110, %c0_447, %c0_448], %558 {strides = array<i32>} : memref<1x144x16x16xf32, #tpu.memory_space<vmem>>, vector<1x1x16x16xf32>,
    %559 = vector.extract_strided_slice %3 {offsets = [16, 96], sizes = [16, 8], strides = [1, 1]} : vector<48x128xf32> to vector<16x8xf32>
    %c0_449 = arith.constant 0 : index
    %c0_450 = arith.constant 0 : index
    %560 = vector.load %arg3[%c0_449, %c0_450] : memref<8x48xf32, #tpu.memory_space<vmem>>, vector<8x48xf32>
    %cst_451 = arith.constant dense<0.000000e+00> : vector<16x48xf32>
    %561 = tpu.matmul %559, %560, %cst_451 {dimension_numbers = #tpu.dot_dimension_numbers<[1], [0], [0], [1], [0, 0, 1, 1], [], []>} : vector<16x8xf32>, vector<8x48xf32>, vector<16x48xf32> -> vector<16x48xf32>
    %562 = vector.extract_strided_slice %561 {offsets = [0, 0], sizes = [16, 16], strides = [1, 1]} : vector<16x48xf32> to vector<16x16xf32>
    %c0_452 = arith.constant 0 : index
    %c111 = arith.constant 111 : index
    %c0_453 = arith.constant 0 : index
    %c0_454 = arith.constant 0 : index
    %563 = vector.load %arg4[%c0_452, %c111, %c0_453, %c0_454] : memref<1x144x16x16xf32, #tpu.memory_space<vmem>>, vector<1x1x16x16xf32>
    %564 = vector.shape_cast %563 : vector<1x1x16x16xf32> to vector<16x16xf32>
    %565 = vector.shape_cast %562 : vector<16x16xf32> to vector<1x1x16x16xf32>
    tpu.vector_store %arg4[%c0_452, %c111, %c0_453, %c0_454], %565 {strides = array<i32>} : memref<1x144x16x16xf32, #tpu.memory_space<vmem>>, vector<1x1x16x16xf32>,
    %566 = vector.extract_strided_slice %561 {offsets = [0, 16], sizes = [16, 16], strides = [1, 1]} : vector<16x48xf32> to vector<16x16xf32>
    %c0_455 = arith.constant 0 : index
    %c112 = arith.constant 112 : index
    %c0_456 = arith.constant 0 : index
    %c0_457 = arith.constant 0 : index
    %567 = vector.load %arg4[%c0_455, %c112, %c0_456, %c0_457] : memref<1x144x16x16xf32, #tpu.memory_space<vmem>>, vector<1x1x16x16xf32>
    %568 = vector.shape_cast %567 : vector<1x1x16x16xf32> to vector<16x16xf32>
    %569 = vector.shape_cast %566 : vector<16x16xf32> to vector<1x1x16x16xf32>
    tpu.vector_store %arg4[%c0_455, %c112, %c0_456, %c0_457], %569 {strides = array<i32>} : memref<1x144x16x16xf32, #tpu.memory_space<vmem>>, vector<1x1x16x16xf32>,
    %570 = vector.extract_strided_slice %561 {offsets = [0, 32], sizes = [16, 16], strides = [1, 1]} : vector<16x48xf32> to vector<16x16xf32>
    %c0_458 = arith.constant 0 : index
    %c113 = arith.constant 113 : index
    %c0_459 = arith.constant 0 : index
    %c0_460 = arith.constant 0 : index
    %571 = vector.load %arg4[%c0_458, %c113, %c0_459, %c0_460] : memref<1x144x16x16xf32, #tpu.memory_space<vmem>>, vector<1x1x16x16xf32>
    %572 = vector.shape_cast %571 : vector<1x1x16x16xf32> to vector<16x16xf32>
    %573 = vector.shape_cast %570 : vector<16x16xf32> to vector<1x1x16x16xf32>
    tpu.vector_store %arg4[%c0_458, %c113, %c0_459, %c0_460], %573 {strides = array<i32>} : memref<1x144x16x16xf32, #tpu.memory_space<vmem>>, vector<1x1x16x16xf32>,
    %574 = vector.extract_strided_slice %3 {offsets = [32, 96], sizes = [16, 8], strides = [1, 1]} : vector<48x128xf32> to vector<16x8xf32>
    %c0_461 = arith.constant 0 : index
    %c0_462 = arith.constant 0 : index
    %575 = vector.load %arg3[%c0_461, %c0_462] : memref<8x48xf32, #tpu.memory_space<vmem>>, vector<8x48xf32>
    %cst_463 = arith.constant dense<0.000000e+00> : vector<16x48xf32>
    %576 = tpu.matmul %574, %575, %cst_463 {dimension_numbers = #tpu.dot_dimension_numbers<[1], [0], [0], [1], [0, 0, 1, 1], [], []>} : vector<16x8xf32>, vector<8x48xf32>, vector<16x48xf32> -> vector<16x48xf32>
    %577 = vector.extract_strided_slice %576 {offsets = [0, 0], sizes = [16, 16], strides = [1, 1]} : vector<16x48xf32> to vector<16x16xf32>
    %c0_464 = arith.constant 0 : index
    %c114 = arith.constant 114 : index
    %c0_465 = arith.constant 0 : index
    %c0_466 = arith.constant 0 : index
    %578 = vector.load %arg4[%c0_464, %c114, %c0_465, %c0_466] : memref<1x144x16x16xf32, #tpu.memory_space<vmem>>, vector<1x1x16x16xf32>
    %579 = vector.shape_cast %578 : vector<1x1x16x16xf32> to vector<16x16xf32>
    %580 = vector.shape_cast %577 : vector<16x16xf32> to vector<1x1x16x16xf32>
    tpu.vector_store %arg4[%c0_464, %c114, %c0_465, %c0_466], %580 {strides = array<i32>} : memref<1x144x16x16xf32, #tpu.memory_space<vmem>>, vector<1x1x16x16xf32>,
    %581 = vector.extract_strided_slice %576 {offsets = [0, 16], sizes = [16, 16], strides = [1, 1]} : vector<16x48xf32> to vector<16x16xf32>
    %c0_467 = arith.constant 0 : index
    %c115 = arith.constant 115 : index
    %c0_468 = arith.constant 0 : index
    %c0_469 = arith.constant 0 : index
    %582 = vector.load %arg4[%c0_467, %c115, %c0_468, %c0_469] : memref<1x144x16x16xf32, #tpu.memory_space<vmem>>, vector<1x1x16x16xf32>
    %583 = vector.shape_cast %582 : vector<1x1x16x16xf32> to vector<16x16xf32>
    %584 = vector.shape_cast %581 : vector<16x16xf32> to vector<1x1x16x16xf32>
    tpu.vector_store %arg4[%c0_467, %c115, %c0_468, %c0_469], %584 {strides = array<i32>} : memref<1x144x16x16xf32, #tpu.memory_space<vmem>>, vector<1x1x16x16xf32>,
    %585 = vector.extract_strided_slice %576 {offsets = [0, 32], sizes = [16, 16], strides = [1, 1]} : vector<16x48xf32> to vector<16x16xf32>
    %c0_470 = arith.constant 0 : index
    %c116 = arith.constant 116 : index
    %c0_471 = arith.constant 0 : index
    %c0_472 = arith.constant 0 : index
    %586 = vector.load %arg4[%c0_470, %c116, %c0_471, %c0_472] : memref<1x144x16x16xf32, #tpu.memory_space<vmem>>, vector<1x1x16x16xf32>
    %587 = vector.shape_cast %586 : vector<1x1x16x16xf32> to vector<16x16xf32>
    %588 = vector.shape_cast %585 : vector<16x16xf32> to vector<1x1x16x16xf32>
    tpu.vector_store %arg4[%c0_470, %c116, %c0_471, %c0_472], %588 {strides = array<i32>} : memref<1x144x16x16xf32, #tpu.memory_space<vmem>>, vector<1x1x16x16xf32>,
    %589 = vector.extract_strided_slice %3 {offsets = [0, 104], sizes = [16, 8], strides = [1, 1]} : vector<48x128xf32> to vector<16x8xf32>
    %c0_473 = arith.constant 0 : index
    %c0_474 = arith.constant 0 : index
    %590 = vector.load %arg3[%c0_473, %c0_474] : memref<8x48xf32, #tpu.memory_space<vmem>>, vector<8x48xf32>
    %cst_475 = arith.constant dense<0.000000e+00> : vector<16x48xf32>
    %591 = tpu.matmul %589, %590, %cst_475 {dimension_numbers = #tpu.dot_dimension_numbers<[1], [0], [0], [1], [0, 0, 1, 1], [], []>} : vector<16x8xf32>, vector<8x48xf32>, vector<16x48xf32> -> vector<16x48xf32>
    %592 = vector.extract_strided_slice %591 {offsets = [0, 0], sizes = [16, 16], strides = [1, 1]} : vector<16x48xf32> to vector<16x16xf32>
    %c0_476 = arith.constant 0 : index
    %c117 = arith.constant 117 : index
    %c0_477 = arith.constant 0 : index
    %c0_478 = arith.constant 0 : index
    %593 = vector.load %arg4[%c0_476, %c117, %c0_477, %c0_478] : memref<1x144x16x16xf32, #tpu.memory_space<vmem>>, vector<1x1x16x16xf32>
    %594 = vector.shape_cast %593 : vector<1x1x16x16xf32> to vector<16x16xf32>
    %595 = vector.shape_cast %592 : vector<16x16xf32> to vector<1x1x16x16xf32>
    tpu.vector_store %arg4[%c0_476, %c117, %c0_477, %c0_478], %595 {strides = array<i32>} : memref<1x144x16x16xf32, #tpu.memory_space<vmem>>, vector<1x1x16x16xf32>,
    %596 = vector.extract_strided_slice %591 {offsets = [0, 16], sizes = [16, 16], strides = [1, 1]} : vector<16x48xf32> to vector<16x16xf32>
    %c0_479 = arith.constant 0 : index
    %c118 = arith.constant 118 : index
    %c0_480 = arith.constant 0 : index
    %c0_481 = arith.constant 0 : index
    %597 = vector.load %arg4[%c0_479, %c118, %c0_480, %c0_481] : memref<1x144x16x16xf32, #tpu.memory_space<vmem>>, vector<1x1x16x16xf32>
    %598 = vector.shape_cast %597 : vector<1x1x16x16xf32> to vector<16x16xf32>
    %599 = vector.shape_cast %596 : vector<16x16xf32> to vector<1x1x16x16xf32>
    tpu.vector_store %arg4[%c0_479, %c118, %c0_480, %c0_481], %599 {strides = array<i32>} : memref<1x144x16x16xf32, #tpu.memory_space<vmem>>, vector<1x1x16x16xf32>,
    %600 = vector.extract_strided_slice %591 {offsets = [0, 32], sizes = [16, 16], strides = [1, 1]} : vector<16x48xf32> to vector<16x16xf32>
    %c0_482 = arith.constant 0 : index
    %c119 = arith.constant 119 : index
    %c0_483 = arith.constant 0 : index
    %c0_484 = arith.constant 0 : index
    %601 = vector.load %arg4[%c0_482, %c119, %c0_483, %c0_484] : memref<1x144x16x16xf32, #tpu.memory_space<vmem>>, vector<1x1x16x16xf32>
    %602 = vector.shape_cast %601 : vector<1x1x16x16xf32> to vector<16x16xf32>
    %603 = vector.shape_cast %600 : vector<16x16xf32> to vector<1x1x16x16xf32>
    tpu.vector_store %arg4[%c0_482, %c119, %c0_483, %c0_484], %603 {strides = array<i32>} : memref<1x144x16x16xf32, #tpu.memory_space<vmem>>, vector<1x1x16x16xf32>,
    %604 = vector.extract_strided_slice %3 {offsets = [16, 104], sizes = [16, 8], strides = [1, 1]} : vector<48x128xf32> to vector<16x8xf32>
    %c0_485 = arith.constant 0 : index
    %c0_486 = arith.constant 0 : index
    %605 = vector.load %arg3[%c0_485, %c0_486] : memref<8x48xf32, #tpu.memory_space<vmem>>, vector<8x48xf32>
    %cst_487 = arith.constant dense<0.000000e+00> : vector<16x48xf32>
    %606 = tpu.matmul %604, %605, %cst_487 {dimension_numbers = #tpu.dot_dimension_numbers<[1], [0], [0], [1], [0, 0, 1, 1], [], []>} : vector<16x8xf32>, vector<8x48xf32>, vector<16x48xf32> -> vector<16x48xf32>
    %607 = vector.extract_strided_slice %606 {offsets = [0, 0], sizes = [16, 16], strides = [1, 1]} : vector<16x48xf32> to vector<16x16xf32>
    %c0_488 = arith.constant 0 : index
    %c120 = arith.constant 120 : index
    %c0_489 = arith.constant 0 : index
    %c0_490 = arith.constant 0 : index
    %608 = vector.load %arg4[%c0_488, %c120, %c0_489, %c0_490] : memref<1x144x16x16xf32, #tpu.memory_space<vmem>>, vector<1x1x16x16xf32>
    %609 = vector.shape_cast %608 : vector<1x1x16x16xf32> to vector<16x16xf32>
    %610 = vector.shape_cast %607 : vector<16x16xf32> to vector<1x1x16x16xf32>
    tpu.vector_store %arg4[%c0_488, %c120, %c0_489, %c0_490], %610 {strides = array<i32>} : memref<1x144x16x16xf32, #tpu.memory_space<vmem>>, vector<1x1x16x16xf32>,
    %611 = vector.extract_strided_slice %606 {offsets = [0, 16], sizes = [16, 16], strides = [1, 1]} : vector<16x48xf32> to vector<16x16xf32>
    %c0_491 = arith.constant 0 : index
    %c121 = arith.constant 121 : index
    %c0_492 = arith.constant 0 : index
    %c0_493 = arith.constant 0 : index
    %612 = vector.load %arg4[%c0_491, %c121, %c0_492, %c0_493] : memref<1x144x16x16xf32, #tpu.memory_space<vmem>>, vector<1x1x16x16xf32>
    %613 = vector.shape_cast %612 : vector<1x1x16x16xf32> to vector<16x16xf32>
    %614 = vector.shape_cast %611 : vector<16x16xf32> to vector<1x1x16x16xf32>
    tpu.vector_store %arg4[%c0_491, %c121, %c0_492, %c0_493], %614 {strides = array<i32>} : memref<1x144x16x16xf32, #tpu.memory_space<vmem>>, vector<1x1x16x16xf32>,
    %615 = vector.extract_strided_slice %606 {offsets = [0, 32], sizes = [16, 16], strides = [1, 1]} : vector<16x48xf32> to vector<16x16xf32>
    %c0_494 = arith.constant 0 : index
    %c122 = arith.constant 122 : index
    %c0_495 = arith.constant 0 : index
    %c0_496 = arith.constant 0 : index
    %616 = vector.load %arg4[%c0_494, %c122, %c0_495, %c0_496] : memref<1x144x16x16xf32, #tpu.memory_space<vmem>>, vector<1x1x16x16xf32>
    %617 = vector.shape_cast %616 : vector<1x1x16x16xf32> to vector<16x16xf32>
    %618 = vector.shape_cast %615 : vector<16x16xf32> to vector<1x1x16x16xf32>
    tpu.vector_store %arg4[%c0_494, %c122, %c0_495, %c0_496], %618 {strides = array<i32>} : memref<1x144x16x16xf32, #tpu.memory_space<vmem>>, vector<1x1x16x16xf32>,
    %619 = vector.extract_strided_slice %3 {offsets = [32, 104], sizes = [16, 8], strides = [1, 1]} : vector<48x128xf32> to vector<16x8xf32>
    %c0_497 = arith.constant 0 : index
    %c0_498 = arith.constant 0 : index
    %620 = vector.load %arg3[%c0_497, %c0_498] : memref<8x48xf32, #tpu.memory_space<vmem>>, vector<8x48xf32>
    %cst_499 = arith.constant dense<0.000000e+00> : vector<16x48xf32>
    %621 = tpu.matmul %619, %620, %cst_499 {dimension_numbers = #tpu.dot_dimension_numbers<[1], [0], [0], [1], [0, 0, 1, 1], [], []>} : vector<16x8xf32>, vector<8x48xf32>, vector<16x48xf32> -> vector<16x48xf32>
    %622 = vector.extract_strided_slice %621 {offsets = [0, 0], sizes = [16, 16], strides = [1, 1]} : vector<16x48xf32> to vector<16x16xf32>
    %c0_500 = arith.constant 0 : index
    %c123 = arith.constant 123 : index
    %c0_501 = arith.constant 0 : index
    %c0_502 = arith.constant 0 : index
    %623 = vector.load %arg4[%c0_500, %c123, %c0_501, %c0_502] : memref<1x144x16x16xf32, #tpu.memory_space<vmem>>, vector<1x1x16x16xf32>
    %624 = vector.shape_cast %623 : vector<1x1x16x16xf32> to vector<16x16xf32>
    %625 = vector.shape_cast %622 : vector<16x16xf32> to vector<1x1x16x16xf32>
    tpu.vector_store %arg4[%c0_500, %c123, %c0_501, %c0_502], %625 {strides = array<i32>} : memref<1x144x16x16xf32, #tpu.memory_space<vmem>>, vector<1x1x16x16xf32>,
    %626 = vector.extract_strided_slice %621 {offsets = [0, 16], sizes = [16, 16], strides = [1, 1]} : vector<16x48xf32> to vector<16x16xf32>
    %c0_503 = arith.constant 0 : index
    %c124 = arith.constant 124 : index
    %c0_504 = arith.constant 0 : index
    %c0_505 = arith.constant 0 : index
    %627 = vector.load %arg4[%c0_503, %c124, %c0_504, %c0_505] : memref<1x144x16x16xf32, #tpu.memory_space<vmem>>, vector<1x1x16x16xf32>
    %628 = vector.shape_cast %627 : vector<1x1x16x16xf32> to vector<16x16xf32>
    %629 = vector.shape_cast %626 : vector<16x16xf32> to vector<1x1x16x16xf32>
    tpu.vector_store %arg4[%c0_503, %c124, %c0_504, %c0_505], %629 {strides = array<i32>} : memref<1x144x16x16xf32, #tpu.memory_space<vmem>>, vector<1x1x16x16xf32>,
    %630 = vector.extract_strided_slice %621 {offsets = [0, 32], sizes = [16, 16], strides = [1, 1]} : vector<16x48xf32> to vector<16x16xf32>
    %c0_506 = arith.constant 0 : index
    %c125 = arith.constant 125 : index
    %c0_507 = arith.constant 0 : index
    %c0_508 = arith.constant 0 : index
    %631 = vector.load %arg4[%c0_506, %c125, %c0_507, %c0_508] : memref<1x144x16x16xf32, #tpu.memory_space<vmem>>, vector<1x1x16x16xf32>
    %632 = vector.shape_cast %631 : vector<1x1x16x16xf32> to vector<16x16xf32>
    %633 = vector.shape_cast %630 : vector<16x16xf32> to vector<1x1x16x16xf32>
    tpu.vector_store %arg4[%c0_506, %c125, %c0_507, %c0_508], %633 {strides = array<i32>} : memref<1x144x16x16xf32, #tpu.memory_space<vmem>>, vector<1x1x16x16xf32>,
    %634 = vector.extract_strided_slice %3 {offsets = [0, 112], sizes = [16, 8], strides = [1, 1]} : vector<48x128xf32> to vector<16x8xf32>
    %c0_509 = arith.constant 0 : index
    %c0_510 = arith.constant 0 : index
    %635 = vector.load %arg3[%c0_509, %c0_510] : memref<8x48xf32, #tpu.memory_space<vmem>>, vector<8x48xf32>
    %cst_511 = arith.constant dense<0.000000e+00> : vector<16x48xf32>
    %636 = tpu.matmul %634, %635, %cst_511 {dimension_numbers = #tpu.dot_dimension_numbers<[1], [0], [0], [1], [0, 0, 1, 1], [], []>} : vector<16x8xf32>, vector<8x48xf32>, vector<16x48xf32> -> vector<16x48xf32>
    %637 = vector.extract_strided_slice %636 {offsets = [0, 0], sizes = [16, 16], strides = [1, 1]} : vector<16x48xf32> to vector<16x16xf32>
    %c0_512 = arith.constant 0 : index
    %c126 = arith.constant 126 : index
    %c0_513 = arith.constant 0 : index
    %c0_514 = arith.constant 0 : index
    %638 = vector.load %arg4[%c0_512, %c126, %c0_513, %c0_514] : memref<1x144x16x16xf32, #tpu.memory_space<vmem>>, vector<1x1x16x16xf32>
    %639 = vector.shape_cast %638 : vector<1x1x16x16xf32> to vector<16x16xf32>
    %640 = vector.shape_cast %637 : vector<16x16xf32> to vector<1x1x16x16xf32>
    tpu.vector_store %arg4[%c0_512, %c126, %c0_513, %c0_514], %640 {strides = array<i32>} : memref<1x144x16x16xf32, #tpu.memory_space<vmem>>, vector<1x1x16x16xf32>,
    %641 = vector.extract_strided_slice %636 {offsets = [0, 16], sizes = [16, 16], strides = [1, 1]} : vector<16x48xf32> to vector<16x16xf32>
    %c0_515 = arith.constant 0 : index
    %c127 = arith.constant 127 : index
    %c0_516 = arith.constant 0 : index
    %c0_517 = arith.constant 0 : index
    %642 = vector.load %arg4[%c0_515, %c127, %c0_516, %c0_517] : memref<1x144x16x16xf32, #tpu.memory_space<vmem>>, vector<1x1x16x16xf32>
    %643 = vector.shape_cast %642 : vector<1x1x16x16xf32> to vector<16x16xf32>
    %644 = vector.shape_cast %641 : vector<16x16xf32> to vector<1x1x16x16xf32>
    tpu.vector_store %arg4[%c0_515, %c127, %c0_516, %c0_517], %644 {strides = array<i32>} : memref<1x144x16x16xf32, #tpu.memory_space<vmem>>, vector<1x1x16x16xf32>,
    %645 = vector.extract_strided_slice %636 {offsets = [0, 32], sizes = [16, 16], strides = [1, 1]} : vector<16x48xf32> to vector<16x16xf32>
    %c0_518 = arith.constant 0 : index
    %c128 = arith.constant 128 : index
    %c0_519 = arith.constant 0 : index
    %c0_520 = arith.constant 0 : index
    %646 = vector.load %arg4[%c0_518, %c128, %c0_519, %c0_520] : memref<1x144x16x16xf32, #tpu.memory_space<vmem>>, vector<1x1x16x16xf32>
    %647 = vector.shape_cast %646 : vector<1x1x16x16xf32> to vector<16x16xf32>
    %648 = vector.shape_cast %645 : vector<16x16xf32> to vector<1x1x16x16xf32>
    tpu.vector_store %arg4[%c0_518, %c128, %c0_519, %c0_520], %648 {strides = array<i32>} : memref<1x144x16x16xf32, #tpu.memory_space<vmem>>, vector<1x1x16x16xf32>,
    %649 = vector.extract_strided_slice %3 {offsets = [16, 112], sizes = [16, 8], strides = [1, 1]} : vector<48x128xf32> to vector<16x8xf32>
    %c0_521 = arith.constant 0 : index
    %c0_522 = arith.constant 0 : index
    %650 = vector.load %arg3[%c0_521, %c0_522] : memref<8x48xf32, #tpu.memory_space<vmem>>, vector<8x48xf32>
    %cst_523 = arith.constant dense<0.000000e+00> : vector<16x48xf32>
    %651 = tpu.matmul %649, %650, %cst_523 {dimension_numbers = #tpu.dot_dimension_numbers<[1], [0], [0], [1], [0, 0, 1, 1], [], []>} : vector<16x8xf32>, vector<8x48xf32>, vector<16x48xf32> -> vector<16x48xf32>
    %652 = vector.extract_strided_slice %651 {offsets = [0, 0], sizes = [16, 16], strides = [1, 1]} : vector<16x48xf32> to vector<16x16xf32>
    %c0_524 = arith.constant 0 : index
    %c129 = arith.constant 129 : index
    %c0_525 = arith.constant 0 : index
    %c0_526 = arith.constant 0 : index
    %653 = vector.load %arg4[%c0_524, %c129, %c0_525, %c0_526] : memref<1x144x16x16xf32, #tpu.memory_space<vmem>>, vector<1x1x16x16xf32>
    %654 = vector.shape_cast %653 : vector<1x1x16x16xf32> to vector<16x16xf32>
    %655 = vector.shape_cast %652 : vector<16x16xf32> to vector<1x1x16x16xf32>
    tpu.vector_store %arg4[%c0_524, %c129, %c0_525, %c0_526], %655 {strides = array<i32>} : memref<1x144x16x16xf32, #tpu.memory_space<vmem>>, vector<1x1x16x16xf32>,
    %656 = vector.extract_strided_slice %651 {offsets = [0, 16], sizes = [16, 16], strides = [1, 1]} : vector<16x48xf32> to vector<16x16xf32>
    %c0_527 = arith.constant 0 : index
    %c130 = arith.constant 130 : index
    %c0_528 = arith.constant 0 : index
    %c0_529 = arith.constant 0 : index
    %657 = vector.load %arg4[%c0_527, %c130, %c0_528, %c0_529] : memref<1x144x16x16xf32, #tpu.memory_space<vmem>>, vector<1x1x16x16xf32>
    %658 = vector.shape_cast %657 : vector<1x1x16x16xf32> to vector<16x16xf32>
    %659 = vector.shape_cast %656 : vector<16x16xf32> to vector<1x1x16x16xf32>
    tpu.vector_store %arg4[%c0_527, %c130, %c0_528, %c0_529], %659 {strides = array<i32>} : memref<1x144x16x16xf32, #tpu.memory_space<vmem>>, vector<1x1x16x16xf32>,
    %660 = vector.extract_strided_slice %651 {offsets = [0, 32], sizes = [16, 16], strides = [1, 1]} : vector<16x48xf32> to vector<16x16xf32>
    %c0_530 = arith.constant 0 : index
    %c131 = arith.constant 131 : index
    %c0_531 = arith.constant 0 : index
    %c0_532 = arith.constant 0 : index
    %661 = vector.load %arg4[%c0_530, %c131, %c0_531, %c0_532] : memref<1x144x16x16xf32, #tpu.memory_space<vmem>>, vector<1x1x16x16xf32>
    %662 = vector.shape_cast %661 : vector<1x1x16x16xf32> to vector<16x16xf32>
    %663 = vector.shape_cast %660 : vector<16x16xf32> to vector<1x1x16x16xf32>
    tpu.vector_store %arg4[%c0_530, %c131, %c0_531, %c0_532], %663 {strides = array<i32>} : memref<1x144x16x16xf32, #tpu.memory_space<vmem>>, vector<1x1x16x16xf32>,
    %664 = vector.extract_strided_slice %3 {offsets = [32, 112], sizes = [16, 8], strides = [1, 1]} : vector<48x128xf32> to vector<16x8xf32>
    %c0_533 = arith.constant 0 : index
    %c0_534 = arith.constant 0 : index
    %665 = vector.load %arg3[%c0_533, %c0_534] : memref<8x48xf32, #tpu.memory_space<vmem>>, vector<8x48xf32>
    %cst_535 = arith.constant dense<0.000000e+00> : vector<16x48xf32>
    %666 = tpu.matmul %664, %665, %cst_535 {dimension_numbers = #tpu.dot_dimension_numbers<[1], [0], [0], [1], [0, 0, 1, 1], [], []>} : vector<16x8xf32>, vector<8x48xf32>, vector<16x48xf32> -> vector<16x48xf32>
    %667 = vector.extract_strided_slice %666 {offsets = [0, 0], sizes = [16, 16], strides = [1, 1]} : vector<16x48xf32> to vector<16x16xf32>
    %c0_536 = arith.constant 0 : index
    %c132 = arith.constant 132 : index
    %c0_537 = arith.constant 0 : index
    %c0_538 = arith.constant 0 : index
    %668 = vector.load %arg4[%c0_536, %c132, %c0_537, %c0_538] : memref<1x144x16x16xf32, #tpu.memory_space<vmem>>, vector<1x1x16x16xf32>
    %669 = vector.shape_cast %668 : vector<1x1x16x16xf32> to vector<16x16xf32>
    %670 = vector.shape_cast %667 : vector<16x16xf32> to vector<1x1x16x16xf32>
    tpu.vector_store %arg4[%c0_536, %c132, %c0_537, %c0_538], %670 {strides = array<i32>} : memref<1x144x16x16xf32, #tpu.memory_space<vmem>>, vector<1x1x16x16xf32>,
    %671 = vector.extract_strided_slice %666 {offsets = [0, 16], sizes = [16, 16], strides = [1, 1]} : vector<16x48xf32> to vector<16x16xf32>
    %c0_539 = arith.constant 0 : index
    %c133 = arith.constant 133 : index
    %c0_540 = arith.constant 0 : index
    %c0_541 = arith.constant 0 : index
    %672 = vector.load %arg4[%c0_539, %c133, %c0_540, %c0_541] : memref<1x144x16x16xf32, #tpu.memory_space<vmem>>, vector<1x1x16x16xf32>
    %673 = vector.shape_cast %672 : vector<1x1x16x16xf32> to vector<16x16xf32>
    %674 = vector.shape_cast %671 : vector<16x16xf32> to vector<1x1x16x16xf32>
    tpu.vector_store %arg4[%c0_539, %c133, %c0_540, %c0_541], %674 {strides = array<i32>} : memref<1x144x16x16xf32, #tpu.memory_space<vmem>>, vector<1x1x16x16xf32>,
    %675 = vector.extract_strided_slice %666 {offsets = [0, 32], sizes = [16, 16], strides = [1, 1]} : vector<16x48xf32> to vector<16x16xf32>
    %c0_542 = arith.constant 0 : index
    %c134 = arith.constant 134 : index
    %c0_543 = arith.constant 0 : index
    %c0_544 = arith.constant 0 : index
    %676 = vector.load %arg4[%c0_542, %c134, %c0_543, %c0_544] : memref<1x144x16x16xf32, #tpu.memory_space<vmem>>, vector<1x1x16x16xf32>
    %677 = vector.shape_cast %676 : vector<1x1x16x16xf32> to vector<16x16xf32>
    %678 = vector.shape_cast %675 : vector<16x16xf32> to vector<1x1x16x16xf32>
    tpu.vector_store %arg4[%c0_542, %c134, %c0_543, %c0_544], %678 {strides = array<i32>} : memref<1x144x16x16xf32, #tpu.memory_space<vmem>>, vector<1x1x16x16xf32>,
    %679 = vector.extract_strided_slice %3 {offsets = [0, 120], sizes = [16, 8], strides = [1, 1]} : vector<48x128xf32> to vector<16x8xf32>
    %c0_545 = arith.constant 0 : index
    %c0_546 = arith.constant 0 : index
    %680 = vector.load %arg3[%c0_545, %c0_546] : memref<8x48xf32, #tpu.memory_space<vmem>>, vector<8x48xf32>
    %cst_547 = arith.constant dense<0.000000e+00> : vector<16x48xf32>
    %681 = tpu.matmul %679, %680, %cst_547 {dimension_numbers = #tpu.dot_dimension_numbers<[1], [0], [0], [1], [0, 0, 1, 1], [], []>} : vector<16x8xf32>, vector<8x48xf32>, vector<16x48xf32> -> vector<16x48xf32>
    %682 = vector.extract_strided_slice %681 {offsets = [0, 0], sizes = [16, 16], strides = [1, 1]} : vector<16x48xf32> to vector<16x16xf32>
    %c0_548 = arith.constant 0 : index
    %c135 = arith.constant 135 : index
    %c0_549 = arith.constant 0 : index
    %c0_550 = arith.constant 0 : index
    %683 = vector.load %arg4[%c0_548, %c135, %c0_549, %c0_550] : memref<1x144x16x16xf32, #tpu.memory_space<vmem>>, vector<1x1x16x16xf32>
    %684 = vector.shape_cast %683 : vector<1x1x16x16xf32> to vector<16x16xf32>
    %685 = vector.shape_cast %682 : vector<16x16xf32> to vector<1x1x16x16xf32>
    tpu.vector_store %arg4[%c0_548, %c135, %c0_549, %c0_550], %685 {strides = array<i32>} : memref<1x144x16x16xf32, #tpu.memory_space<vmem>>, vector<1x1x16x16xf32>,
    %686 = vector.extract_strided_slice %681 {offsets = [0, 16], sizes = [16, 16], strides = [1, 1]} : vector<16x48xf32> to vector<16x16xf32>
    %c0_551 = arith.constant 0 : index
    %c136 = arith.constant 136 : index
    %c0_552 = arith.constant 0 : index
    %c0_553 = arith.constant 0 : index
    %687 = vector.load %arg4[%c0_551, %c136, %c0_552, %c0_553] : memref<1x144x16x16xf32, #tpu.memory_space<vmem>>, vector<1x1x16x16xf32>
    %688 = vector.shape_cast %687 : vector<1x1x16x16xf32> to vector<16x16xf32>
    %689 = vector.shape_cast %686 : vector<16x16xf32> to vector<1x1x16x16xf32>
    tpu.vector_store %arg4[%c0_551, %c136, %c0_552, %c0_553], %689 {strides = array<i32>} : memref<1x144x16x16xf32, #tpu.memory_space<vmem>>, vector<1x1x16x16xf32>,
    %690 = vector.extract_strided_slice %681 {offsets = [0, 32], sizes = [16, 16], strides = [1, 1]} : vector<16x48xf32> to vector<16x16xf32>
    %c0_554 = arith.constant 0 : index
    %c137 = arith.constant 137 : index
    %c0_555 = arith.constant 0 : index
    %c0_556 = arith.constant 0 : index
    %691 = vector.load %arg4[%c0_554, %c137, %c0_555, %c0_556] : memref<1x144x16x16xf32, #tpu.memory_space<vmem>>, vector<1x1x16x16xf32>
    %692 = vector.shape_cast %691 : vector<1x1x16x16xf32> to vector<16x16xf32>
    %693 = vector.shape_cast %690 : vector<16x16xf32> to vector<1x1x16x16xf32>
    tpu.vector_store %arg4[%c0_554, %c137, %c0_555, %c0_556], %693 {strides = array<i32>} : memref<1x144x16x16xf32, #tpu.memory_space<vmem>>, vector<1x1x16x16xf32>,
    %694 = vector.extract_strided_slice %3 {offsets = [16, 120], sizes = [16, 8], strides = [1, 1]} : vector<48x128xf32> to vector<16x8xf32>
    %c0_557 = arith.constant 0 : index
    %c0_558 = arith.constant 0 : index
    %695 = vector.load %arg3[%c0_557, %c0_558] : memref<8x48xf32, #tpu.memory_space<vmem>>, vector<8x48xf32>
    %cst_559 = arith.constant dense<0.000000e+00> : vector<16x48xf32>
    %696 = tpu.matmul %694, %695, %cst_559 {dimension_numbers = #tpu.dot_dimension_numbers<[1], [0], [0], [1], [0, 0, 1, 1], [], []>} : vector<16x8xf32>, vector<8x48xf32>, vector<16x48xf32> -> vector<16x48xf32>
    %697 = vector.extract_strided_slice %696 {offsets = [0, 0], sizes = [16, 16], strides = [1, 1]} : vector<16x48xf32> to vector<16x16xf32>
    %c0_560 = arith.constant 0 : index
    %c138 = arith.constant 138 : index
    %c0_561 = arith.constant 0 : index
    %c0_562 = arith.constant 0 : index
    %698 = vector.load %arg4[%c0_560, %c138, %c0_561, %c0_562] : memref<1x144x16x16xf32, #tpu.memory_space<vmem>>, vector<1x1x16x16xf32>
    %699 = vector.shape_cast %698 : vector<1x1x16x16xf32> to vector<16x16xf32>
    %700 = vector.shape_cast %697 : vector<16x16xf32> to vector<1x1x16x16xf32>
    tpu.vector_store %arg4[%c0_560, %c138, %c0_561, %c0_562], %700 {strides = array<i32>} : memref<1x144x16x16xf32, #tpu.memory_space<vmem>>, vector<1x1x16x16xf32>,
    %701 = vector.extract_strided_slice %696 {offsets = [0, 16], sizes = [16, 16], strides = [1, 1]} : vector<16x48xf32> to vector<16x16xf32>
    %c0_563 = arith.constant 0 : index
    %c139 = arith.constant 139 : index
    %c0_564 = arith.constant 0 : index
    %c0_565 = arith.constant 0 : index
    %702 = vector.load %arg4[%c0_563, %c139, %c0_564, %c0_565] : memref<1x144x16x16xf32, #tpu.memory_space<vmem>>, vector<1x1x16x16xf32>
    %703 = vector.shape_cast %702 : vector<1x1x16x16xf32> to vector<16x16xf32>
    %704 = vector.shape_cast %701 : vector<16x16xf32> to vector<1x1x16x16xf32>
    tpu.vector_store %arg4[%c0_563, %c139, %c0_564, %c0_565], %704 {strides = array<i32>} : memref<1x144x16x16xf32, #tpu.memory_space<vmem>>, vector<1x1x16x16xf32>,
    %705 = vector.extract_strided_slice %696 {offsets = [0, 32], sizes = [16, 16], strides = [1, 1]} : vector<16x48xf32> to vector<16x16xf32>
    %c0_566 = arith.constant 0 : index
    %c140 = arith.constant 140 : index
    %c0_567 = arith.constant 0 : index
    %c0_568 = arith.constant 0 : index
    %706 = vector.load %arg4[%c0_566, %c140, %c0_567, %c0_568] : memref<1x144x16x16xf32, #tpu.memory_space<vmem>>, vector<1x1x16x16xf32>
    %707 = vector.shape_cast %706 : vector<1x1x16x16xf32> to vector<16x16xf32>
    %708 = vector.shape_cast %705 : vector<16x16xf32> to vector<1x1x16x16xf32>
    tpu.vector_store %arg4[%c0_566, %c140, %c0_567, %c0_568], %708 {strides = array<i32>} : memref<1x144x16x16xf32, #tpu.memory_space<vmem>>, vector<1x1x16x16xf32>,
    %709 = vector.extract_strided_slice %3 {offsets = [32, 120], sizes = [16, 8], strides = [1, 1]} : vector<48x128xf32> to vector<16x8xf32>
    %c0_569 = arith.constant 0 : index
    %c0_570 = arith.constant 0 : index
    %710 = vector.load %arg3[%c0_569, %c0_570] : memref<8x48xf32, #tpu.memory_space<vmem>>, vector<8x48xf32>
    %cst_571 = arith.constant dense<0.000000e+00> : vector<16x48xf32>
    %711 = tpu.matmul %709, %710, %cst_571 {dimension_numbers = #tpu.dot_dimension_numbers<[1], [0], [0], [1], [0, 0, 1, 1], [], []>} : vector<16x8xf32>, vector<8x48xf32>, vector<16x48xf32> -> vector<16x48xf32>
    %712 = vector.extract_strided_slice %711 {offsets = [0, 0], sizes = [16, 16], strides = [1, 1]} : vector<16x48xf32> to vector<16x16xf32>
    %c0_572 = arith.constant 0 : index
    %c141 = arith.constant 141 : index
    %c0_573 = arith.constant 0 : index
    %c0_574 = arith.constant 0 : index
    %713 = vector.load %arg4[%c0_572, %c141, %c0_573, %c0_574] : memref<1x144x16x16xf32, #tpu.memory_space<vmem>>, vector<1x1x16x16xf32>
    %714 = vector.shape_cast %713 : vector<1x1x16x16xf32> to vector<16x16xf32>
    %715 = vector.shape_cast %712 : vector<16x16xf32> to vector<1x1x16x16xf32>
    tpu.vector_store %arg4[%c0_572, %c141, %c0_573, %c0_574], %715 {strides = array<i32>} : memref<1x144x16x16xf32, #tpu.memory_space<vmem>>, vector<1x1x16x16xf32>,
    %716 = vector.extract_strided_slice %711 {offsets = [0, 16], sizes = [16, 16], strides = [1, 1]} : vector<16x48xf32> to vector<16x16xf32>
    %c0_575 = arith.constant 0 : index
    %c142 = arith.constant 142 : index
    %c0_576 = arith.constant 0 : index
    %c0_577 = arith.constant 0 : index
    %717 = vector.load %arg4[%c0_575, %c142, %c0_576, %c0_577] : memref<1x144x16x16xf32, #tpu.memory_space<vmem>>, vector<1x1x16x16xf32>
    %718 = vector.shape_cast %717 : vector<1x1x16x16xf32> to vector<16x16xf32>
    %719 = vector.shape_cast %716 : vector<16x16xf32> to vector<1x1x16x16xf32>
    tpu.vector_store %arg4[%c0_575, %c142, %c0_576, %c0_577], %719 {strides = array<i32>} : memref<1x144x16x16xf32, #tpu.memory_space<vmem>>, vector<1x1x16x16xf32>,
    %720 = vector.extract_strided_slice %711 {offsets = [0, 32], sizes = [16, 16], strides = [1, 1]} : vector<16x48xf32> to vector<16x16xf32>
    %c0_578 = arith.constant 0 : index
    %c143 = arith.constant 143 : index
    %c0_579 = arith.constant 0 : index
    %c0_580 = arith.constant 0 : index
    %721 = vector.load %arg4[%c0_578, %c143, %c0_579, %c0_580] : memref<1x144x16x16xf32, #tpu.memory_space<vmem>>, vector<1x1x16x16xf32>
    %722 = vector.shape_cast %721 : vector<1x1x16x16xf32> to vector<16x16xf32>
    %723 = vector.shape_cast %720 : vector<16x16xf32> to vector<1x1x16x16xf32>
    tpu.vector_store %arg4[%c0_578, %c143, %c0_579, %c0_580], %723 {strides = array<i32>} : memref<1x144x16x16xf32, #tpu.memory_space<vmem>>, vector<1x1x16x16xf32>,
    return
  }
  func.func @transform_0(%arg0: i32) -> (i32, i32, i32) {
    %c0_i32 = arith.constant 0 : i32
    %c0_i32_0 = arith.constant 0 : i32
    %c0_i32_1 = arith.constant 0 : i32
    return %arg0, %c0_i32, %c0_i32_0 : i32, i32, i32
  }
  func.func @transform_1(%arg0: i32) -> (i32, i32) {
    %c0_i32 = arith.constant 0 : i32
    %c0_i32_0 = arith.constant 0 : i32
    %c0_i32_1 = arith.constant 0 : i32
    return %c0_i32, %c0_i32_0 : i32, i32
  }
  func.func @transform_2(%arg0: i32) -> (i32, i32) {
    %c0_i32 = arith.constant 0 : i32
    %c0_i32_0 = arith.constant 0 : i32
    %c0_i32_1 = arith.constant 0 : i32
    return %c0_i32, %c0_i32_0 : i32, i32
  }
  func.func @transform_3(%arg0: i32) -> (i32, i32, i32, i32) {
    %c0_i32 = arith.constant 0 : i32
    %c0_i32_0 = arith.constant 0 : i32
    %c0_i32_1 = arith.constant 0 : i32
    %c0_i32_2 = arith.constant 0 : i32
    return %arg0, %c0_i32, %c0_i32_0, %c0_i32_1 : i32, i32, i32, i32
  }
}

module attributes {stable_mosaic.version = 11 : i64} {
  func.func @kernel(%arg0: i32, %arg1: memref<1x144x256xf32, #tpu.memory_space<vmem>>, %arg2: memref<4x144xf32, #tpu.memory_space<vmem>>, %arg3: memref<4x1xf32, #tpu.memory_space<vmem>>, %arg4: memref<1x4x256xf32, #tpu.memory_space<vmem>>, %arg5: memref<1x8x256xf32, #tpu.memory_space<vmem>>) attributes {dimension_semantics = [#tpu.dimension_semantics<parallel>], iteration_bounds = array<i64: 2>, scalar_prefetch = 0 : i64, scratch_operands = 0 : i64, tpu.core_type = #tpu.core_type<tc>, window_params = [{transform_indices = @transform_0, window_bounds = array<i64: 1, 144, 256>}, {pipeline_mode = #tpu.pipeline_mode<synchronous>, transform_indices = @transform_1, window_bounds = array<i64: 4, 144>}, {pipeline_mode = #tpu.pipeline_mode<synchronous>, transform_indices = @transform_2, window_bounds = array<i64: 4, 1>}, {transform_indices = @transform_3, window_bounds = array<i64: 1, 4, 256>}, {transform_indices = @transform_4, window_bounds = array<i64: 1, 8, 256>}]} {
    %c0 = arith.constant 0 : index
    %c0_0 = arith.constant 0 : index
    %0 = vector.load %arg2[%c0, %c0_0] : memref<4x144xf32, #tpu.memory_space<vmem>>, vector<4x144xf32>
    %c0_1 = arith.constant 0 : index
    %c0_2 = arith.constant 0 : index
    %c0_3 = arith.constant 0 : index
    %1 = vector.load %arg1[%c0_1, %c0_2, %c0_3] : memref<1x144x256xf32, #tpu.memory_space<vmem>>, vector<1x144x256xf32>
    %2 = vector.shape_cast %1 : vector<1x144x256xf32> to vector<144x256xf32>
    %cst = arith.constant dense<0.000000e+00> : vector<4x256xf32>
    %3 = tpu.matmul %0, %2, %cst {dimension_numbers = #tpu.dot_dimension_numbers<[1], [0], [0], [1], [0, 0, 1, 1], [], []>} : vector<4x144xf32>, vector<144x256xf32>, vector<4x256xf32> -> vector<4x256xf32>
    %c0_4 = arith.constant 0 : index
    %c0_5 = arith.constant 0 : index
    %4 = vector.load %arg3[%c0_4, %c0_5] : memref<4x1xf32, #tpu.memory_space<vmem>>, vector<4x1xf32>
    %5 = vector.broadcast %4 : vector<4x1xf32> to vector<4x256xf32>
    %6 = arith.addf %3, %5 : vector<4x256xf32>
    %cst_6 = arith.constant 0.000000e+00 : f32
    %7 = vector.broadcast %cst_6 : f32 to vector<4x256xf32>
    %8 = arith.maximumf %6, %7 : vector<4x256xf32>
    %c0_7 = arith.constant 0 : index
    %c0_8 = arith.constant 0 : index
    %c0_9 = arith.constant 0 : index
    %9 = vector.load %arg5[%c0_7, %c0_8, %c0_9] : memref<1x8x256xf32, #tpu.memory_space<vmem>>, vector<1x4x256xf32>
    %10 = vector.shape_cast %9 : vector<1x4x256xf32> to vector<4x256xf32>
    %11 = vector.shape_cast %8 : vector<4x256xf32> to vector<1x4x256xf32>
    tpu.vector_store %arg5[%c0_7, %c0_8, %c0_9], %11 {strides = array<i32>} : memref<1x8x256xf32, #tpu.memory_space<vmem>>, vector<1x4x256xf32>,
    %c0_10 = arith.constant 0 : index
    %c0_11 = arith.constant 0 : index
    %c0_12 = arith.constant 0 : index
    %12 = vector.load %arg4[%c0_10, %c0_11, %c0_12] : memref<1x4x256xf32, #tpu.memory_space<vmem>>, vector<1x4x256xf32>
    %13 = vector.shape_cast %12 : vector<1x4x256xf32> to vector<4x256xf32>
    %c0_13 = arith.constant 0 : index
    %c4 = arith.constant 4 : index
    %c0_14 = arith.constant 0 : index
    %14 = vector.load %arg5[%c0_13, %c4, %c0_14] : memref<1x8x256xf32, #tpu.memory_space<vmem>>, vector<1x4x256xf32>
    %15 = vector.shape_cast %14 : vector<1x4x256xf32> to vector<4x256xf32>
    %16 = vector.shape_cast %13 : vector<4x256xf32> to vector<1x4x256xf32>
    tpu.vector_store %arg5[%c0_13, %c4, %c0_14], %16 {strides = array<i32>} : memref<1x8x256xf32, #tpu.memory_space<vmem>>, vector<1x4x256xf32>,
    return
  }
  func.func @transform_0(%arg0: i32) -> (i32, i32, i32) {
    %c0_i32 = arith.constant 0 : i32
    %c0_i32_0 = arith.constant 0 : i32
    %c0_i32_1 = arith.constant 0 : i32
    return %arg0, %c0_i32, %c0_i32_0 : i32, i32, i32
  }
  func.func @transform_1(%arg0: i32) -> (i32, i32) {
    %c0_i32 = arith.constant 0 : i32
    %c0_i32_0 = arith.constant 0 : i32
    %c0_i32_1 = arith.constant 0 : i32
    return %c0_i32, %c0_i32_0 : i32, i32
  }
  func.func @transform_2(%arg0: i32) -> (i32, i32) {
    %c0_i32 = arith.constant 0 : i32
    %c0_i32_0 = arith.constant 0 : i32
    %c0_i32_1 = arith.constant 0 : i32
    return %c0_i32, %c0_i32_0 : i32, i32
  }
  func.func @transform_3(%arg0: i32) -> (i32, i32, i32) {
    %c0_i32 = arith.constant 0 : i32
    %c0_i32_0 = arith.constant 0 : i32
    %c0_i32_1 = arith.constant 0 : i32
    return %arg0, %c0_i32, %c0_i32_0 : i32, i32, i32
  }
  func.func @transform_4(%arg0: i32) -> (i32, i32, i32) {
    %c0_i32 = arith.constant 0 : i32
    %c0_i32_0 = arith.constant 0 : i32
    %c0_i32_1 = arith.constant 0 : i32
    return %arg0, %c0_i32, %c0_i32_0 : i32, i32, i32
  }
}

module attributes {stable_mosaic.version = 11 : i64} {
  func.func @kernel(%arg0: i32, %arg1: memref<1x8x256xf32, #tpu.memory_space<vmem>>, %arg2: memref<3x8xf32, #tpu.memory_space<vmem>>, %arg3: memref<3x1xf32, #tpu.memory_space<vmem>>, %arg4: memref<1x3x256xf32, #tpu.memory_space<vmem>>) attributes {dimension_semantics = [#tpu.dimension_semantics<parallel>], iteration_bounds = array<i64: 2>, scalar_prefetch = 0 : i64, scratch_operands = 0 : i64, tpu.core_type = #tpu.core_type<tc>, window_params = [{transform_indices = @transform_0, window_bounds = array<i64: 1, 8, 256>}, {pipeline_mode = #tpu.pipeline_mode<synchronous>, transform_indices = @transform_1, window_bounds = array<i64: 3, 8>}, {pipeline_mode = #tpu.pipeline_mode<synchronous>, transform_indices = @transform_2, window_bounds = array<i64: 3, 1>}, {transform_indices = @transform_3, window_bounds = array<i64: 1, 3, 256>}]} {
    %c0 = arith.constant 0 : index
    %c0_0 = arith.constant 0 : index
    %0 = vector.load %arg2[%c0, %c0_0] : memref<3x8xf32, #tpu.memory_space<vmem>>, vector<3x8xf32>
    %c0_1 = arith.constant 0 : index
    %c0_2 = arith.constant 0 : index
    %c0_3 = arith.constant 0 : index
    %1 = vector.load %arg1[%c0_1, %c0_2, %c0_3] : memref<1x8x256xf32, #tpu.memory_space<vmem>>, vector<1x8x256xf32>
    %2 = vector.shape_cast %1 : vector<1x8x256xf32> to vector<8x256xf32>
    %cst = arith.constant dense<0.000000e+00> : vector<3x256xf32>
    %3 = tpu.matmul %0, %2, %cst {dimension_numbers = #tpu.dot_dimension_numbers<[1], [0], [0], [1], [0, 0, 1, 1], [], []>} : vector<3x8xf32>, vector<8x256xf32>, vector<3x256xf32> -> vector<3x256xf32>
    %c0_4 = arith.constant 0 : index
    %c0_5 = arith.constant 0 : index
    %4 = vector.load %arg3[%c0_4, %c0_5] : memref<3x1xf32, #tpu.memory_space<vmem>>, vector<3x1xf32>
    %5 = vector.broadcast %4 : vector<3x1xf32> to vector<3x256xf32>
    %6 = arith.addf %3, %5 : vector<3x256xf32>
    %c0_6 = arith.constant 0 : index
    %c0_7 = arith.constant 0 : index
    %c0_8 = arith.constant 0 : index
    %7 = vector.load %arg4[%c0_6, %c0_7, %c0_8] : memref<1x3x256xf32, #tpu.memory_space<vmem>>, vector<1x3x256xf32>
    %8 = vector.shape_cast %7 : vector<1x3x256xf32> to vector<3x256xf32>
    %9 = vector.shape_cast %6 : vector<3x256xf32> to vector<1x3x256xf32>
    tpu.vector_store %arg4[%c0_6, %c0_7, %c0_8], %9 {strides = array<i32>} : memref<1x3x256xf32, #tpu.memory_space<vmem>>, vector<1x3x256xf32>,
    return
  }
  func.func @transform_0(%arg0: i32) -> (i32, i32, i32) {
    %c0_i32 = arith.constant 0 : i32
    %c0_i32_0 = arith.constant 0 : i32
    %c0_i32_1 = arith.constant 0 : i32
    return %arg0, %c0_i32, %c0_i32_0 : i32, i32, i32
  }
  func.func @transform_1(%arg0: i32) -> (i32, i32) {
    %c0_i32 = arith.constant 0 : i32
    %c0_i32_0 = arith.constant 0 : i32
    %c0_i32_1 = arith.constant 0 : i32
    return %c0_i32, %c0_i32_0 : i32, i32
  }
  func.func @transform_2(%arg0: i32) -> (i32, i32) {
    %c0_i32 = arith.constant 0 : i32
    %c0_i32_0 = arith.constant 0 : i32
    %c0_i32_1 = arith.constant 0 : i32
    return %c0_i32, %c0_i32_0 : i32, i32
  }
  func.func @transform_3(%arg0: i32) -> (i32, i32, i32) {
    %c0_i32 = arith.constant 0 : i32
    %c0_i32_0 = arith.constant 0 : i32
    %c0_i32_1 = arith.constant 0 : i32
    return %arg0, %c0_i32, %c0_i32_0 : i32, i32, i32
  }
}

</mosaic_0001>

<bundles_post_ra>
// kernel: decoder_forward.6
= control target key start
LH: loop header
LB: loop body
LE: loop exit
PB: predicated region body
PF: predicated region fallthrough
CT: control target
= control target key end

     0   :  { %s447_s15 = smov 0   ;;  %s501_s0 = inlined_call_operand.vmem [shape: f32[2,144,64], index: 0, kind: input, shape index: {}]   ;;  %s502_s1 = inlined_call_operand.vmem [shape: f32[8,144], index: 1, kind: input, shape index: {}]   ;;  %s503_s2 = inlined_call_operand.vmem [shape: f32[8,1], index: 2, kind: input, shape index: {}]   ;;  %s504_s3 = inlined_call_operand.vmem [shape: f32[2,8,64], index: 3, kind: input, shape index: {}]   ;;  %s505_s4 = inlined_call_operand.vmem [shape: f32[2,16,64], index: 4, kind: output, shape index: {}]  }
   0x1 LB: > { %s387_s16 = sadd.s32 4294967295, %s418_s15   ;;  %p391_p0 = scmp.ge.s32.totalorder %s418_s15, 1  ;;  %s418_s15 = sphi %s447_s15, %s14_s15  }
   0x2   : > { %p171_p1 = scmp.lt.s32.totalorder %s418_s15, 3 }
   0x4   : > { %p172_p2 = pnand %p391_p0, %p171_p1 }
   0x5   : > { %p201_p3 = scmp.lt.s32.totalorder (!%p172_p2), %s387_s16, 1 }
   0x6   : > { %175 = sbr.rel (%p172_p2) target bundleno = 249 (0xf9), region = 36 }
   0xb   : > { %v216_v0 = vld [vmem:[%s502_s1 + $0x8] sm:$0xff]  ;;  %vm241_vm0 = vcmask 130048   ;;  %v420_v1 = vmov 0.0   ;;  %v235_v2 = vld [vmem:[%s503_s2] sm:$0xff]  ;;  %s507_s16 = smov (!%p201_p3, %s387_s16), 1  ;;  %v421_v3 = vmov 0  }
   0xc   : > { %245 = vmatprep.subr.mxu0 %v420_v1  ;;  %396 = vmatprep.mubr.msk.f32.mxu0 %vm241_vm0, %v216_v0  ;;  %s400_s21 = smul.u32 144, %s507_s16  ;;  %v215_v22 = vld [vmem:[%s502_s1] sm:$0xff]  ;;  %s393_s27 = sshll.u32 %s507_s16, 3  ;;  %vm316_vm1 = vcmask 523264  }
   0xd   : > { %411 = vset.pattern.permute.xlu0 %v421_v3  ;;  %s399_s28 = sshll.u32 %s507_s16, 4  ;;  %s209_s5 = scalar_lea.vmem %s504_s3, %s393_s27 }
   0xe   : > { %238 = vperm.xlu0 %411, %v235_v2   ;;  %s467_s24 = scalar_lea.vmem %s501_s0, %s400_s21  ;;  %s214_s8 = scalar_lea.vmem %s505_s4, %s399_s28  ;;  %v318_v23 = vld [vmem:[%s209_s5] sm:$0xff] }
   0xf   : > { %v232_v4 = vld [vmem:[%s467_s24 + $0x78] sm:$0xff]  ;;  %v231_v5 = vld [vmem:[%s467_s24 + $0x70] sm:$0xff]  ;;  %v230_v6 = vld [vmem:[%s467_s24 + $0x68] sm:$0xff]  ;;  %319 = vst.msk [vmem:[%s214_s8 + $0x8] sm:$0xff] %vm316_vm1, %v318_v23 }
  0x10   : > { %246 = vmatpush1.msra.mxu0 %v232_v4  ;;  %v229_v7 = vld [vmem:[%s467_s24 + $0x60] sm:$0xff]  ;;  %v228_v8 = vld [vmem:[%s467_s24 + $0x58] sm:$0xff]  ;;  %v227_v9 = vld [vmem:[%s467_s24 + $0x50] sm:$0xff] }
  0x11   : > { %247 = vmatprep.subr.mxu0 %v420_v1  ;;  %v226_v10 = vld [vmem:[%s467_s24 + $0x48] sm:$0xff]  ;;  %v225_v11 = vld [vmem:[%s467_s24 + $0x40] sm:$0xff]  ;;  %v224_v12 = vld [vmem:[%s467_s24 + $0x38] sm:$0xff] }
  0x12   : > { %248 = vmatpush1.msra.mxu0 %v231_v5  ;;  %v223_v13 = vld [vmem:[%s467_s24 + $0x30] sm:$0xff]  ;;  %v222_v14 = vld [vmem:[%s467_s24 + $0x28] sm:$0xff]  ;;  %v221_v15 = vld [vmem:[%s467_s24 + $0x20] sm:$0xff] }
  0x13   : > { %249 = vmatprep.subr.mxu0 %v420_v1  ;;  %v220_v16 = vld [vmem:[%s467_s24 + $0x18] sm:$0xff]  ;;  %v219_v17 = vld [vmem:[%s467_s24 + $0x10] sm:$0xff]  ;;  %v218_v18 = vld [vmem:[%s467_s24 + $0x8] sm:$0xff] }
  0x14   : > { %250 = vmatpush1.msra.mxu0 %v230_v6  ;;  %v217_v19 = vld [vmem:[%s467_s24] sm:$0xff]  ;;  %v234_v20 = vld [vmem:[%s467_s24 + $0x88] sm:$0xff] }
  0x15   : > { %251 = vmatprep.subr.mxu0 %v420_v1  ;;  %v233_v21 = vld [vmem:[%s467_s24 + $0x80] sm:$0xff] }
  0x16   : > { %252 = vmatpush1.msra.mxu0 %v229_v7 }
  0x17   : > { %253 = vmatprep.subr.mxu0 %v420_v1 }
  0x18   : > { %254 = vmatpush1.msra.mxu0 %v228_v8 }
  0x19   : > { %255 = vmatprep.subr.mxu0 %v420_v1 }
  0x1a   : > { %256 = vmatpush1.msra.mxu0 %v227_v9 }
  0x1b   : > { %257 = vmatprep.subr.mxu0 %v420_v1 }
  0x1c   : > { %258 = vmatpush1.msra.mxu0 %v226_v10 }
  0x1d   : > { %259 = vmatprep.subr.mxu0 %v420_v1 }
  0x1e   : > { %260 = vmatpush1.msra.mxu0 %v225_v11 }
  0x1f   : > { %261 = vmatprep.subr.mxu0 %v420_v1 }
  0x20   : > { %262 = vmatpush1.msra.mxu0 %v224_v12 }
  0x21   : > { %263 = vmatprep.subr.mxu0 %v420_v1 }
  0x22   : > { %264 = vmatpush1.msra.mxu0 %v223_v13 }
  0x23   : > { %265 = vmatprep.subr.mxu0 %v420_v1 }
  0x24   : > { %266 = vmatpush1.msra.mxu0 %v222_v14 }
  0x25   : > { %267 = vmatprep.subr.mxu0 %v420_v1 }
  0x26   : > { %268 = vmatpush1.msra.mxu0 %v221_v15 }
  0x27   : > { %269 = vmatprep.subr.mxu0 %v420_v1 }
  0x28   : > { %270 = vmatpush1.msra.mxu0 %v220_v16 }
  0x29   : > { %271 = vmatprep.subr.mxu0 %v420_v1 }
  0x2a   : > { %272 = vmatpush1.msra.mxu0 %v219_v17 }
  0x2b   : > { %273 = vmatprep.subr.mxu0 %v420_v1 }
  0x2c   : > { %274 = vmatpush1.msra.mxu0 %v218_v18 }
  0x2d   : > { %275 = vmatprep.subr.mxu0 %v420_v1 }
  0x2e   : > { %276 = vmatpush1.msra.mxu0 %v217_v19 }
  0x2f   : > { %305 = vmatprep.subr.mxu0 %v420_v1 }
  0x30   : > { %306 = vmatpush2.msra.mxu0 %v234_v20 }
  0x31   : > { %307 = vmatprep.subr.mxu0 %v420_v1 }
  0x32   : > { %308 = vmatpush2.msra.mxu0 %v233_v21 }
  0x33   : > { %310 = vmatmul.mubr.f32.vlgmr.msra.gmra.mxu0 %v215_v22 }
  0x89   : > { %v239_v24 = vpop.permute.xlu0 %238 }
  0xf3   : > { %v311_v25 = vpop.f32.mrf.mxu0 }
  0xf4   : > { %v312_v26 = vadd.f32 %v311_v25, %v239_v24 }
  0xf5   : > { %v313_v27 = vpop.f32.mrf.mxu0 }
  0xf6   : > { %v315_v28 = vmax.f32 %v312_v26, 0.0 }
  0xf8   : > { %317 = vst.msk [vmem:[%s214_s8] sm:$0xff] %vm316_vm1, %v315_v28 }
  0xf9 PF: > { %s14_s15 = sadd.s32 1, %s418_s15  }
  0xfa   : > { %p11_p4 = scmp.ge.s32.totalorder %s14_s15, 4  }
  0xfc   :  { %13 = sbr.rel (!%p11_p4) target bundleno = 1 (0x1), region = 69 }

// kernel: decoder_forward.5
= control target key start
LH: loop header
LB: loop body
LE: loop exit
PB: predicated region body
PF: predicated region fallthrough
CT: control target
= control target key end

     0   :  { %8 = vsyncpa [#allocation3], 0  ;;  %s6381_s0 = inlined_call_operand.vmem [shape: f32[2,4,64], index: 0, kind: input, shape index: {}]   ;;  %s6382_s1 = inlined_call_operand.hbm [shape: f32[24,4], index: 1, kind: input, shape index: {}]   ;;  %s6383_s2 = inlined_call_operand.hbm [shape: f32[4,24], index: 2, kind: input, shape index: {}]   ;;  %s6384_s3 = inlined_call_operand.vmem [shape: f32[2,144,8,8], index: 3, kind: output, shape index: {}]  }
   0x1   :  { %9 = vsyncpa [#allocation5], 0  ;;  %s5501_s12 = smov 0  }
   0x2 LB: > { %s5507_s13 = sadd.s32 4294967295, %s5458_s12   ;;  %p4738_p0 = scmp.ge.s32.totalorder %s5458_s12, 1  ;;  %s5458_s12 = sphi %s5501_s12, %s15_s12  }
   0x3   : > { %p114_p1 = scmp.lt.s32.totalorder %s5458_s12, 3  ;;  %s5460_s14 = smov [#allocation2]  }
   0x4   : > { %s126_s15 = sshll.u32 %s5460_s14, 4  ;;  %p5359_p3 = scmp.eq.s32.totalorder %s5507_s13, 0  ;;  %s127_s15 = int_to_ptr.vmem [resolvable:$true] %s126_s15 }
   0x5   : > { %p5511_p2 = pnand %p4738_p0, %p114_p1  ;;  %s5461_s17 = smov [#allocation4]  }
   0x6   : > { %s140_s18 = sshll.u32 %s5461_s17, 4  ;;  %s5403_s20 = scalar_lea.vmem %s127_s15, 384  ;;  %s141_s18 = int_to_ptr.vmem [resolvable:$true] %s140_s18 }
   0x7   : > { %p5352_p4 = pneg %p5511_p2  ;;  %p5404_p7 = scmp.ne.s32.totalorder %s127_s15, %s5403_s20 }
   0x8   : > { %p5411_p10 = scmp.lt.s32.totalorder %s127_s15, %s127_s15  ;;  %p5412_p11 = scmp.lt.s32.totalorder %s5403_s20, %s5403_s20 }
   0x9   : > { %p5520_p5 = pnand %p5359_p3, %p5352_p4 }
   0xa   : > { %p5413_p12 = por %p5412_p11, %p5411_p10 }
   0xb   : > { %p5394_p6 = pneg %p5520_p5 }
   0xd   : > { %p5406_p8 = pnand %p5404_p7, %p5394_p6 }
   0xf   : > { %p5407_p9 = pneg %p5406_p8 }
  0x11   : > { %p5414_p13 = pnand %p5413_p12, %p5407_p9 }
  0x13   : > { %5417 = shalt.err (!%p5414_p13)
}
  0x14   : > { %s5462_s21 = smov 128   ;;  %s5463_s22 = smov 8  }
  0x15   : > { %5355 = dma.hbm_to_vmem [thread:$0]  (!%p5520_p5), %s6382_s1, 384, %s127_s15, [#allocation3], %s5462_s21, %s5462_s21, %s5463_s22  }
  0x16   : > { %s5429_s25 = scalar_lea.vmem %s141_s18, 64  ;;  %p5437_p7 = scmp.lt.s32.totalorder %s141_s18, %s141_s18 }
  0x17   : > { %p5430_p0 = scmp.ne.s32.totalorder %s141_s18, %s5429_s25  ;;  %p5438_p8 = scmp.lt.s32.totalorder %s5429_s25, %s5429_s25 }
  0x19   : > { %p5432_p1 = pnand %p5430_p0, %p5394_p6  ;;  %p5439_p10 = por %p5438_p8, %p5437_p7 }
  0x1b   : > { %p5433_p4 = pneg %p5432_p1 }
  0x1d   : > { %p5440_p9 = pnand %p5439_p10, %p5433_p4 }
  0x1f   : > { %5443 = shalt.err (!%p5440_p9)
}
  0x20   : > { %5358 = dma.hbm_to_vmem [thread:$0]  (!%p5520_p5), %s6383_s2, 64, %s141_s18, [#allocation5]  }
  0x21   : > { %160 = sbr.rel (%p5511_p2) target bundleno = 842 (0x34a), region = 32 }
  0x26   : > { %5449 = dma.done.wait (%p5359_p3), [#allocation3], 384  }
  0x27   : > { %5451 = vsyncadd (%p5359_p3), [#allocation3], 4294966912 }
  0x28   : > { %5453 = dma.done.wait (%p5359_p3), [#allocation5], 64  }
  0x29   : > { %5455 = vsyncadd (%p5359_p3), [#allocation5], 4294967232  ;;  %p187_p6 = scmp.lt.s32.totalorder %s5507_s13, 1  ;;  %v5464_v0 = vmov 0.0   ;;  %vm5465_vm0 = vmmov 0   ;;  %vm210_vm1 = vcmask 1043456  }
  0x2a   : > { %5092 = vmatprep.subr.mxu0 %v5464_v0  ;;  %5094 = vmatprep.mubr.msk.f32.mxu0 %vm5465_vm0, %v5464_v0  ;;  %vm200_vm2 = vcmask 31744   ;;  %v196_v2 = vld [vmem:[#allocation2] sm:$0xff]  ;;  %v197_v3 = vld [vmem:[#allocation2 + $0x8] sm:$0xff]  ;;  %v198_v4 = vld [vmem:[#allocation2 + $0x10] sm:$0xff]  ;;  %s5466_s5 = smov 124   ;;  %s5467_s6 = smov 120  }
  0x2b   : > { %s6388_s13 = smov (!%p187_p6, %s5507_s13), 1  ;;  %5103 = vmatprep.subr.mxu1 %v5464_v0  ;;  %5105 = vmatprep.mubr.msk.f32.mxu1 %vm5465_vm0, %v5464_v0  ;;  %v294_v5 = vld [vmem:[#allocation4] sm:$0xf]  ;;  %s5468_s7 = smov 116   ;;  %vm371_vm3 = vcmask 64512  }
  0x2c   : > { %s4745_s28 = sshll.u32 %s6388_s13, 2  ;;  %5104 = vmatpush3.msk.msra.mxu1 %vm210_vm1, %v294_v5  ;;  %v564_v6 = vld [vmem:[#allocation4] sm:$0xf]  ;;  %s5469_s8 = smov 112  }
  0x2d   : > { %s190_s4 = scalar_lea.vmem %s6381_s0, %s4745_s28  ;;  %5108 = vmatprep.subr.mxu1 %v5464_v0  ;;  %v384_v7 = vld [vmem:[#allocation4] sm:$0xf]  ;;  %s5470_s9 = smov 108  }
  0x2e   : > { %v199_v1 = vld [vmem:[%s190_s4] sm:$0xf]  ;;  %v474_v10 = vld [vmem:[#allocation4] sm:$0xf]  ;;  %s5471_s10 = smov 104   ;;  %s5472_s11 = smov 100  }
  0x2f   : > { %5093 = vmatpush3.msk.msra.mxu0 %vm210_vm1, %v199_v1  ;;  %v655_v14 = vld [vmem:[#allocation4] sm:$0xf]  ;;  %s5473_s14 = smov 96   ;;  %s5474_s15 = smov 92  }
  0x30   : > { %5095 = vmatmul.mubr.msk.f32.vlgmr.msra.gmra.mxu0 %vm200_vm2, %v196_v2  ;;  %5118 = vmatprep.subr.mxu0 %v5464_v0  ;;  %s5475_s16 = smov 88   ;;  %s5476_s17 = smov 84   ;;  %v746_v16 = vld [vmem:[#allocation4] sm:$0xf] }
  0x31   : > { %5097 = vmatprep.mubr.msk.f32.mxu0 %vm5465_vm0, %v5464_v0  ;;  %5119 = vmatpush3.msk.msra.mxu0 %vm210_vm1, %v564_v6  ;;  %s5477_s18 = smov 80   ;;  %s5478_s19 = smov 76   ;;  %v837_v18 = vld [vmem:[#allocation4] sm:$0xf] }
  0x32   : > { %5128 = vmatprep.subr.mxu0 %v5464_v0  ;;  %s5479_s20 = smov 72   ;;  %s5480_s21 = smov 68   ;;  %v928_v20 = vld [vmem:[#allocation4] sm:$0xf] }
  0x33   : > { %v1110_v23 = vld [vmem:[#allocation4] sm:$0xf]  ;;  %s5343_s22 = smul.u32 1152, %s6388_s13 }
  0x34   : > { %5098 = vmatmul.mubr.msk.f32.gmra.mxu0 %vm200_vm2, %v197_v3  ;;  %v1019_v26 = vld [vmem:[#allocation4] sm:$0xf] }
  0x35   : > { %5100 = vmatprep.mubr.msk.f32.mxu0 %vm5465_vm0, %v5464_v0  ;;  %v1292_v27 = vld [vmem:[#allocation4] sm:$0xf]  ;;  %s5815_s24 = scalar_lea.vmem %s6384_s3, %s5343_s22 }
  0x36   : > { %v1201_v30 = vld [vmem:[#allocation4] sm:$0xf] }
  0x37   : > { %v1474_v31 = vld [vmem:[#allocation4] sm:$0xf] }
  0x38   : > { %5101 = vmatmul.mubr.msk.f32.gmra.mxu0 %vm200_vm2, %v198_v4  ;;  %v1383_v34 = vld [vmem:[#allocation4] sm:$0xf] }
  0x39   : > { %5120 = vmatprep.mubr.msk.f32.mxu0 %vm5465_vm0, %v5464_v0  ;;  %v1656_v35 = vld [vmem:[#allocation4] sm:$0xf] }
  0x3a   : > { %v1565_v38 = vld [vmem:[#allocation4] sm:$0xf] }
  0x3b   : > { %v1838_v39 = vld [vmem:[#allocation4] sm:$0xf] }
  0x3c   : > { %v1747_v42 = vld [vmem:[#allocation4] sm:$0xf] }
  0x3d   : > { %v2020_v43 = vld [vmem:[#allocation4] sm:$0xf] }
  0x3e   : > { %v1929_v46 = vld [vmem:[#allocation4] sm:$0xf] }
  0x3f   : > { %v2202_v47 = vld [vmem:[#allocation4] sm:$0xf] }
  0x40   : > { %v2111_v50 = vld [vmem:[#allocation4] sm:$0xf] }
  0x41   : > { %v2384_v51 = vld [vmem:[#allocation4] sm:$0xf] }
  0x42   : > { %v2293_v54 = vld [vmem:[#allocation4] sm:$0xf] }
  0x43   : > { %v2566_v55 = vld [vmem:[#allocation4] sm:$0xf] }
  0x44   : > { %v2475_v58 = vld [vmem:[#allocation4] sm:$0xf] }
  0x45   : > { %v2748_v59 = vld [vmem:[#allocation4] sm:$0xf] }
  0x46   : > { %v2657_v62 = vld [vmem:[#allocation4] sm:$0xf] }
  0x47   : > { %v2930_v63 = vld [vmem:[#allocation4] sm:$0xf] }
  0x48   : > { %v2839_v3 = vld [vmem:[#allocation4] sm:$0xf] }
  0x49   : > { %v3112_v4 = vld [vmem:[#allocation4] sm:$0xf] }
  0xf0   : > { %v5581_v8 = vpop.f32.mrf.mxu0 }
  0xf1   : > { %565 = vrot.lane.b32.xlu0 %v5581_v8, %s5466_s5  ;;  %5106 = vmatmul.mubr.msk.f32.vlgmr.msra.gmra.mxu1 %vm200_vm2, %v5581_v8 }
  0xf2   : > { %v5096_v9 = vpop.f32.mrf.mxu0  ;;  %5109 = vmatpush3.msk.msra.mxu1 %vm210_vm1, %v384_v7  ;;  %5110 = vmatprep.mubr.msk.f32.mxu1 %vm5465_vm0, %v5464_v0  ;;  %v3021_v7 = vld [vmem:[#allocation4] sm:$0xf] }
  0xf3   : > { %5113 = vmatprep.subr.mxu1 %v5464_v0 }
  0xf4   : > { %v5590_v11 = vpop.f32.mrf.mxu0 }
  0xf5   : > { %656 = vrot.lane.b32.xlu0 %v5590_v11, %s5466_s5  ;;  %5111 = vmatmul.mubr.msk.f32.vlgmr.msra.gmra.mxu1 %vm200_vm2, %v5590_v11 }
  0xf6   : > { %v5099_v12 = vpop.f32.mrf.mxu0  ;;  %5114 = vmatpush3.msk.msra.mxu1 %vm210_vm1, %v474_v10  ;;  %5115 = vmatprep.mubr.msk.f32.mxu1 %vm5465_vm0, %v5464_v0 }
  0xf7   : > { %5123 = vmatprep.subr.mxu1 %v5464_v0  ;;  %v3476_v12 = vld [vmem:[#allocation4] sm:$0xf] }
  0xf8   : > { %v290_v13 = vpop.f32.mrf.mxu0 }
  0xf9   : > { %929 = vrot.lane.b32.xlu0 %v5590_v11, %s5467_s6  ;;  %747 = vrot.lane.b32.xlu1 %v290_v13, %s5466_s5 }
  0xfa   : > { %5116 = vmatmul.mubr.msk.f32.vlgmr.msra.gmra.mxu1 %vm200_vm2, %v290_v13  ;;  %v5102_v15 = vpop.f32.mrf.mxu0 }
  0xfb   : > { %5124 = vmatpush3.msk.msra.mxu1 %vm210_vm1, %v655_v14  ;;  %5125 = vmatprep.mubr.msk.f32.mxu1 %vm5465_vm0, %v5464_v0  ;;  %v3385_v15 = vld [vmem:[#allocation4] sm:$0xf] }
  0xfc   : > { %5133 = vmatprep.subr.mxu1 %v5464_v0 }
  0xfd   : > { %1111 = vrot.lane.b32.xlu0 %v5581_v8, %s5468_s7  ;;  %838 = vrot.lane.b32.xlu1 %v5581_v8, %s5467_s6 }
 0x101   : > { %1293 = vrot.lane.b32.xlu0 %v290_v13, %s5468_s7  ;;  %1020 = vrot.lane.b32.xlu1 %v290_v13, %s5467_s6 }
 0x105   : > { %1475 = vrot.lane.b32.xlu0 %v5590_v11, %s5469_s8  ;;  %1202 = vrot.lane.b32.xlu1 %v5590_v11, %s5468_s7 }
 0x109   : > { %1657 = vrot.lane.b32.xlu0 %v5581_v8, %s5470_s9  ;;  %1384 = vrot.lane.b32.xlu1 %v5581_v8, %s5469_s8 }
 0x10d   : > { %1839 = vrot.lane.b32.xlu0 %v290_v13, %s5470_s9  ;;  %1566 = vrot.lane.b32.xlu1 %v290_v13, %s5469_s8 }
 0x111   : > { %2021 = vrot.lane.b32.xlu0 %v5590_v11, %s5471_s10  ;;  %1748 = vrot.lane.b32.xlu1 %v5590_v11, %s5470_s9 }
 0x115   : > { %2203 = vrot.lane.b32.xlu0 %v5581_v8, %s5472_s11  ;;  %1930 = vrot.lane.b32.xlu1 %v5581_v8, %s5471_s10 }
 0x119   : > { %2385 = vrot.lane.b32.xlu0 %v290_v13, %s5472_s11  ;;  %2112 = vrot.lane.b32.xlu1 %v290_v13, %s5471_s10 }
 0x11d   : > { %2567 = vrot.lane.b32.xlu0 %v5590_v11, %s5473_s14  ;;  %2294 = vrot.lane.b32.xlu1 %v5590_v11, %s5472_s11 }
 0x121   : > { %2749 = vrot.lane.b32.xlu0 %v5581_v8, %s5474_s15  ;;  %2476 = vrot.lane.b32.xlu1 %v5581_v8, %s5473_s14 }
 0x125   : > { %2931 = vrot.lane.b32.xlu0 %v290_v13, %s5474_s15  ;;  %2658 = vrot.lane.b32.xlu1 %v290_v13, %s5473_s14 }
 0x129   : > { %3113 = vrot.lane.b32.xlu0 %v5590_v11, %s5475_s16  ;;  %2840 = vrot.lane.b32.xlu1 %v5590_v11, %s5474_s15 }
 0x12d   : > { %3295 = vrot.lane.b32.xlu0 %v5581_v8, %s5476_s17  ;;  %3022 = vrot.lane.b32.xlu1 %v5581_v8, %s5475_s16 }
 0x131   : > { %3477 = vrot.lane.b32.xlu0 %v290_v13, %s5476_s17  ;;  %3204 = vrot.lane.b32.xlu1 %v290_v13, %s5475_s16 }
 0x135   : > { %3659 = vrot.lane.b32.xlu0 %v5590_v11, %s5477_s18  ;;  %3386 = vrot.lane.b32.xlu1 %v5590_v11, %s5476_s17 }
 0x139   : > { %3841 = vrot.lane.b32.xlu0 %v5581_v8, %s5478_s19  ;;  %3568 = vrot.lane.b32.xlu1 %v5581_v8, %s5477_s18 }
 0x13d   : > { %4023 = vrot.lane.b32.xlu0 %v290_v13, %s5478_s19  ;;  %3750 = vrot.lane.b32.xlu1 %v290_v13, %s5477_s18 }
 0x141   : > { %4205 = vrot.lane.b32.xlu0 %v5590_v11, %s5479_s20  ;;  %3932 = vrot.lane.b32.xlu1 %v5590_v11, %s5478_s19 }
 0x145   : > { %4387 = vrot.lane.b32.xlu0 %v5581_v8, %s5480_s21  ;;  %4114 = vrot.lane.b32.xlu1 %v5581_v8, %s5479_s20  ;;  %v3294_v8 = vld [vmem:[#allocation4] sm:$0xf] }
 0x149   : > { %4569 = vrot.lane.b32.xlu0 %v290_v13, %s5480_s21  ;;  %4296 = vrot.lane.b32.xlu1 %v290_v13, %s5479_s20 }
 0x14d   : > { %4478 = vrot.lane.b32.xlu1 %v5590_v11, %s5480_s21  ;;  %v3203_v11 = vld [vmem:[#allocation4] sm:$0xf] }
 0x163   : > { %v566_v17 = vpop.permute.xlu0 %565 }
 0x164   : > { %5121 = vmatmul.mubr.msk.f32.vlgmr.msra.gmra.mxu0 %vm200_vm2, %v566_v17 }
 0x165   : > { %5129 = vmatpush3.msk.msra.mxu0 %vm210_vm1, %v746_v16  ;;  %5130 = vmatprep.mubr.msk.f32.mxu0 %vm5465_vm0, %v5464_v0  ;;  %v3658_v16 = vld [vmem:[#allocation4] sm:$0xf] }
 0x166   : > { %5138 = vmatprep.subr.mxu0 %v5464_v0 }
 0x167   : > { %v657_v19 = vpop.permute.xlu0 %656 }
 0x168   : > { %5126 = vmatmul.mubr.msk.f32.vlgmr.msra.gmra.mxu1 %vm200_vm2, %v657_v19  ;;  %v3567_v19 = vld [vmem:[#allocation4] sm:$0xf] }
 0x169   : > { %5134 = vmatpush3.msk.msra.mxu1 %vm210_vm1, %v837_v18  ;;  %5135 = vmatprep.mubr.msk.f32.mxu1 %vm5465_vm0, %v5464_v0 }
 0x16a   : > { %5143 = vmatprep.subr.mxu1 %v5464_v0 }
 0x16b   : > { %v930_v21 = vpop.permute.xlu0 %929  ;;  %v748_v22 = vpop.permute.xlu1 %747 }
 0x16c   : > { %5131 = vmatmul.mubr.msk.f32.vlgmr.msra.gmra.mxu0 %vm200_vm2, %v748_v22 }
 0x16d   : > { %5139 = vmatpush3.msk.msra.mxu0 %vm210_vm1, %v928_v20  ;;  %5140 = vmatprep.mubr.msk.f32.mxu0 %vm5465_vm0, %v5464_v0  ;;  %v3840_v20 = vld [vmem:[#allocation4] sm:$0xf] }
 0x16e   : > { %5148 = vmatprep.subr.mxu0 %v5464_v0 }
 0x16f   : > { %v1112_v24 = vpop.permute.xlu0 %1111  ;;  %v839_v25 = vpop.permute.xlu1 %838 }
 0x170   : > { %5136 = vmatmul.mubr.msk.f32.vlgmr.msra.gmra.mxu1 %vm200_vm2, %v839_v25  ;;  %5141 = vmatmul.mubr.msk.f32.vlgmr.msra.gmra.mxu0 %vm200_vm2, %v930_v21 }
 0x171   : > { %5149 = vmatpush3.msk.msra.mxu0 %vm210_vm1, %v1110_v23  ;;  %5150 = vmatprep.mubr.msk.f32.mxu0 %vm5465_vm0, %v5464_v0  ;;  %v3749_v23 = vld [vmem:[#allocation4] sm:$0xf] }
 0x172   : > { %5144 = vmatpush3.msk.msra.mxu1 %vm210_vm1, %v1019_v26  ;;  %5145 = vmatprep.mubr.msk.f32.mxu1 %vm5465_vm0, %v5464_v0 }
 0x173   : > { %v1294_v28 = vpop.permute.xlu0 %1293  ;;  %v1021_v29 = vpop.permute.xlu1 %1020  ;;  %5153 = vmatprep.subr.mxu1 %v5464_v0  ;;  %5158 = vmatprep.subr.mxu0 %v5464_v0 }
 0x174   : > { %5146 = vmatmul.mubr.msk.f32.vlgmr.msra.gmra.mxu1 %vm200_vm2, %v1021_v29  ;;  %5151 = vmatmul.mubr.msk.f32.vlgmr.msra.gmra.mxu0 %vm200_vm2, %v1112_v24  ;;  %v4022_v24 = vld [vmem:[#allocation4] sm:$0xf] }
 0x175   : > { %5159 = vmatpush3.msk.msra.mxu0 %vm210_vm1, %v1292_v27  ;;  %5160 = vmatprep.mubr.msk.f32.mxu0 %vm5465_vm0, %v5464_v0  ;;  %v3931_v27 = vld [vmem:[#allocation4] sm:$0xf] }
 0x176   : > { %5154 = vmatpush3.msk.msra.mxu1 %vm210_vm1, %v1201_v30  ;;  %5155 = vmatprep.mubr.msk.f32.mxu1 %vm5465_vm0, %v5464_v0 }
 0x177   : > { %v1476_v32 = vpop.permute.xlu0 %1475  ;;  %v1203_v33 = vpop.permute.xlu1 %1202  ;;  %5163 = vmatprep.subr.mxu1 %v5464_v0  ;;  %5168 = vmatprep.subr.mxu0 %v5464_v0 }
 0x178   : > { %5156 = vmatmul.mubr.msk.f32.vlgmr.msra.gmra.mxu1 %vm200_vm2, %v1203_v33  ;;  %5161 = vmatmul.mubr.msk.f32.vlgmr.msra.gmra.mxu0 %vm200_vm2, %v1294_v28 }
 0x179   : > { %5169 = vmatpush3.msk.msra.mxu0 %vm210_vm1, %v1474_v31  ;;  %5170 = vmatprep.mubr.msk.f32.mxu0 %vm5465_vm0, %v5464_v0  ;;  %v4204_v31 = vld [vmem:[#allocation4] sm:$0xf] }
 0x17a   : > { %5164 = vmatpush3.msk.msra.mxu1 %vm210_vm1, %v1383_v34  ;;  %5165 = vmatprep.mubr.msk.f32.mxu1 %vm5465_vm0, %v5464_v0  ;;  %v4113_v34 = vld [vmem:[#allocation4] sm:$0xf] }
 0x17b   : > { %v1658_v36 = vpop.permute.xlu0 %1657  ;;  %v1385_v37 = vpop.permute.xlu1 %1384  ;;  %5173 = vmatprep.subr.mxu1 %v5464_v0  ;;  %5178 = vmatprep.subr.mxu0 %v5464_v0 }
 0x17c   : > { %5166 = vmatmul.mubr.msk.f32.vlgmr.msra.gmra.mxu1 %vm200_vm2, %v1385_v37  ;;  %5171 = vmatmul.mubr.msk.f32.vlgmr.msra.gmra.mxu0 %vm200_vm2, %v1476_v32  ;;  %v4386_v37 = vld [vmem:[#allocation4] sm:$0xf] }
 0x17d   : > { %5179 = vmatpush3.msk.msra.mxu0 %vm210_vm1, %v1656_v35  ;;  %5180 = vmatprep.mubr.msk.f32.mxu0 %vm5465_vm0, %v5464_v0 }
 0x17e   : > { %5174 = vmatpush3.msk.msra.mxu1 %vm210_vm1, %v1565_v38  ;;  %5175 = vmatprep.mubr.msk.f32.mxu1 %vm5465_vm0, %v5464_v0 }
 0x17f   : > { %v1840_v40 = vpop.permute.xlu0 %1839  ;;  %v1567_v41 = vpop.permute.xlu1 %1566  ;;  %5183 = vmatprep.subr.mxu1 %v5464_v0  ;;  %5188 = vmatprep.subr.mxu0 %v5464_v0 }
 0x180   : > { %5176 = vmatmul.mubr.msk.f32.vlgmr.msra.gmra.mxu1 %vm200_vm2, %v1567_v41  ;;  %5181 = vmatmul.mubr.msk.f32.vlgmr.msra.gmra.mxu0 %vm200_vm2, %v1658_v36 }
 0x181   : > { %5189 = vmatpush3.msk.msra.mxu0 %vm210_vm1, %v1838_v39  ;;  %5190 = vmatprep.mubr.msk.f32.mxu0 %vm5465_vm0, %v5464_v0  ;;  %v4295_v39 = vld [vmem:[#allocation4] sm:$0xf] }
 0x182   : > { %5184 = vmatpush3.msk.msra.mxu1 %vm210_vm1, %v1747_v42  ;;  %5185 = vmatprep.mubr.msk.f32.mxu1 %vm5465_vm0, %v5464_v0 }
 0x183   : > { %v2022_v44 = vpop.permute.xlu0 %2021  ;;  %v1749_v45 = vpop.permute.xlu1 %1748  ;;  %5193 = vmatprep.subr.mxu1 %v5464_v0  ;;  %5198 = vmatprep.subr.mxu0 %v5464_v0 }
 0x184   : > { %5186 = vmatmul.mubr.msk.f32.vlgmr.msra.gmra.mxu1 %vm200_vm2, %v1749_v45  ;;  %5191 = vmatmul.mubr.msk.f32.vlgmr.msra.gmra.mxu0 %vm200_vm2, %v1840_v40 }
 0x185   : > { %5199 = vmatpush3.msk.msra.mxu0 %vm210_vm1, %v2020_v43  ;;  %5200 = vmatprep.mubr.msk.f32.mxu0 %vm5465_vm0, %v5464_v0  ;;  %v4568_v43 = vld [vmem:[#allocation4] sm:$0xf] }
 0x186   : > { %5194 = vmatpush3.msk.msra.mxu1 %vm210_vm1, %v1929_v46  ;;  %5195 = vmatprep.mubr.msk.f32.mxu1 %vm5465_vm0, %v5464_v0 }
 0x187   : > { %v2204_v48 = vpop.permute.xlu0 %2203  ;;  %v1931_v49 = vpop.permute.xlu1 %1930  ;;  %5203 = vmatprep.subr.mxu1 %v5464_v0  ;;  %5208 = vmatprep.subr.mxu0 %v5464_v0 }
 0x188   : > { %5196 = vmatmul.mubr.msk.f32.vlgmr.msra.gmra.mxu1 %vm200_vm2, %v1931_v49  ;;  %5201 = vmatmul.mubr.msk.f32.vlgmr.msra.gmra.mxu0 %vm200_vm2, %v2022_v44  ;;  %v4477_v44 = vld [vmem:[#allocation4] sm:$0xf] }
 0x189   : > { %5209 = vmatpush3.msk.msra.mxu0 %vm210_vm1, %v2202_v47  ;;  %5210 = vmatprep.mubr.msk.f32.mxu0 %vm5465_vm0, %v5464_v0 }
 0x18a   : > { %5204 = vmatpush3.msk.msra.mxu1 %vm210_vm1, %v2111_v50  ;;  %5205 = vmatprep.mubr.msk.f32.mxu1 %vm5465_vm0, %v5464_v0 }
 0x18b   : > { %v2386_v52 = vpop.permute.xlu0 %2385  ;;  %v2113_v53 = vpop.permute.xlu1 %2112  ;;  %5213 = vmatprep.subr.mxu1 %v5464_v0  ;;  %5218 = vmatprep.subr.mxu0 %v5464_v0 }
 0x18c   : > { %5206 = vmatmul.mubr.msk.f32.vlgmr.msra.gmra.mxu1 %vm200_vm2, %v2113_v53  ;;  %5211 = vmatmul.mubr.msk.f32.vlgmr.msra.gmra.mxu0 %vm200_vm2, %v2204_v48 }
 0x18d   : > { %5219 = vmatpush3.msk.msra.mxu0 %vm210_vm1, %v2384_v51  ;;  %5220 = vmatprep.mubr.msk.f32.mxu0 %vm5465_vm0, %v5464_v0 }
 0x18e   : > { %5214 = vmatpush3.msk.msra.mxu1 %vm210_vm1, %v2293_v54  ;;  %5215 = vmatprep.mubr.msk.f32.mxu1 %vm5465_vm0, %v5464_v0 }
 0x18f   : > { %v2568_v56 = vpop.permute.xlu0 %2567  ;;  %v2295_v57 = vpop.permute.xlu1 %2294  ;;  %5223 = vmatprep.subr.mxu1 %v5464_v0  ;;  %5228 = vmatprep.subr.mxu0 %v5464_v0 }
 0x190   : > { %5216 = vmatmul.mubr.msk.f32.vlgmr.msra.gmra.mxu1 %vm200_vm2, %v2295_v57  ;;  %5221 = vmatmul.mubr.msk.f32.vlgmr.msra.gmra.mxu0 %vm200_vm2, %v2386_v52 }
 0x191   : > { %5229 = vmatpush3.msk.msra.mxu0 %vm210_vm1, %v2566_v55  ;;  %5230 = vmatprep.mubr.msk.f32.mxu0 %vm5465_vm0, %v5464_v0 }
 0x192   : > { %5224 = vmatpush3.msk.msra.mxu1 %vm210_vm1, %v2475_v58  ;;  %5225 = vmatprep.mubr.msk.f32.mxu1 %vm5465_vm0, %v5464_v0 }
 0x193   : > { %v2750_v60 = vpop.permute.xlu0 %2749  ;;  %v2477_v61 = vpop.permute.xlu1 %2476  ;;  %5233 = vmatprep.subr.mxu1 %v5464_v0  ;;  %5238 = vmatprep.subr.mxu0 %v5464_v0 }
 0x194   : > { %5226 = vmatmul.mubr.msk.f32.vlgmr.msra.gmra.mxu1 %vm200_vm2, %v2477_v61  ;;  %5231 = vmatmul.mubr.msk.f32.vlgmr.msra.gmra.mxu0 %vm200_vm2, %v2568_v56 }
 0x195   : > { %5239 = vmatpush3.msk.msra.mxu0 %vm210_vm1, %v2748_v59  ;;  %5240 = vmatprep.mubr.msk.f32.mxu0 %vm5465_vm0, %v5464_v0 }
 0x196   : > { %5234 = vmatpush3.msk.msra.mxu1 %vm210_vm1, %v2657_v62  ;;  %5235 = vmatprep.mubr.msk.f32.mxu1 %vm5465_vm0, %v5464_v0 }
 0x197   : > { %v2932_v1 = vpop.permute.xlu0 %2931  ;;  %v2659_v2 = vpop.permute.xlu1 %2658  ;;  %5243 = vmatprep.subr.mxu1 %v5464_v0  ;;  %5248 = vmatprep.subr.mxu0 %v5464_v0 }
 0x198   : > { %5236 = vmatmul.mubr.msk.f32.vlgmr.msra.gmra.mxu1 %vm200_vm2, %v2659_v2  ;;  %5241 = vmatmul.mubr.msk.f32.vlgmr.msra.gmra.mxu0 %vm200_vm2, %v2750_v60 }
 0x199   : > { %5249 = vmatpush3.msk.msra.mxu0 %vm210_vm1, %v2930_v63  ;;  %5250 = vmatprep.mubr.msk.f32.mxu0 %vm5465_vm0, %v5464_v0 }
 0x19a   : > { %5244 = vmatpush3.msk.msra.mxu1 %vm210_vm1, %v2839_v3  ;;  %5245 = vmatprep.mubr.msk.f32.mxu1 %vm5465_vm0, %v5464_v0 }
 0x19b   : > { %v3114_v5 = vpop.permute.xlu0 %3113  ;;  %v2841_v6 = vpop.permute.xlu1 %2840  ;;  %5253 = vmatprep.subr.mxu1 %v5464_v0  ;;  %5258 = vmatprep.subr.mxu0 %v5464_v0 }
 0x19c   : > { %5246 = vmatmul.mubr.msk.f32.vlgmr.msra.gmra.mxu1 %vm200_vm2, %v2841_v6  ;;  %5251 = vmatmul.mubr.msk.f32.vlgmr.msra.gmra.mxu0 %vm200_vm2, %v2932_v1 }
 0x19d   : > { %5259 = vmatpush3.msk.msra.mxu0 %vm210_vm1, %v3112_v4  ;;  %5260 = vmatprep.mubr.msk.f32.mxu0 %vm5465_vm0, %v5464_v0 }
 0x19e   : > { %5254 = vmatpush3.msk.msra.mxu1 %vm210_vm1, %v3021_v7  ;;  %5255 = vmatprep.mubr.msk.f32.mxu1 %vm5465_vm0, %v5464_v0 }
 0x19f   : > { %v3296_v9 = vpop.permute.xlu0 %3295  ;;  %v3023_v10 = vpop.permute.xlu1 %3022  ;;  %5263 = vmatprep.subr.mxu1 %v5464_v0  ;;  %5268 = vmatprep.subr.mxu0 %v5464_v0 }
 0x1a0   : > { %5256 = vmatmul.mubr.msk.f32.vlgmr.msra.gmra.mxu1 %vm200_vm2, %v3023_v10  ;;  %5261 = vmatmul.mubr.msk.f32.vlgmr.msra.gmra.mxu0 %vm200_vm2, %v3114_v5 }
 0x1a1   : > { %5269 = vmatpush3.msk.msra.mxu0 %vm210_vm1, %v3294_v8  ;;  %5270 = vmatprep.mubr.msk.f32.mxu0 %vm5465_vm0, %v5464_v0 }
 0x1a2   : > { %5264 = vmatpush3.msk.msra.mxu1 %vm210_vm1, %v3203_v11  ;;  %5265 = vmatprep.mubr.msk.f32.mxu1 %vm5465_vm0, %v5464_v0 }
 0x1a3   : > { %v3478_v13 = vpop.permute.xlu0 %3477  ;;  %v3205_v14 = vpop.permute.xlu1 %3204  ;;  %5273 = vmatprep.subr.mxu1 %v5464_v0  ;;  %5278 = vmatprep.subr.mxu0 %v5464_v0 }
 0x1a4   : > { %5266 = vmatmul.mubr.msk.f32.vlgmr.msra.gmra.mxu1 %vm200_vm2, %v3205_v14  ;;  %5271 = vmatmul.mubr.msk.f32.vlgmr.msra.gmra.mxu0 %vm200_vm2, %v3296_v9 }
 0x1a5   : > { %5279 = vmatpush3.msk.msra.mxu0 %vm210_vm1, %v3476_v12  ;;  %5280 = vmatprep.mubr.msk.f32.mxu0 %vm5465_vm0, %v5464_v0 }
 0x1a6   : > { %5274 = vmatpush3.msk.msra.mxu1 %vm210_vm1, %v3385_v15  ;;  %5275 = vmatprep.mubr.msk.f32.mxu1 %vm5465_vm0, %v5464_v0 }
 0x1a7   : > { %v3660_v17 = vpop.permute.xlu0 %3659  ;;  %v3387_v18 = vpop.permute.xlu1 %3386  ;;  %5283 = vmatprep.subr.mxu1 %v5464_v0  ;;  %5288 = vmatprep.subr.mxu0 %v5464_v0 }
 0x1a8   : > { %5276 = vmatmul.mubr.msk.f32.vlgmr.msra.gmra.mxu1 %vm200_vm2, %v3387_v18  ;;  %5281 = vmatmul.mubr.msk.f32.vlgmr.msra.gmra.mxu0 %vm200_vm2, %v3478_v13 }
 0x1a9   : > { %5289 = vmatpush3.msk.msra.mxu0 %vm210_vm1, %v3658_v16  ;;  %5290 = vmatprep.mubr.msk.f32.mxu0 %vm5465_vm0, %v5464_v0 }
 0x1aa   : > { %5284 = vmatpush3.msk.msra.mxu1 %vm210_vm1, %v3567_v19  ;;  %5285 = vmatprep.mubr.msk.f32.mxu1 %vm5465_vm0, %v5464_v0 }
 0x1ab   : > { %v3842_v21 = vpop.permute.xlu0 %3841  ;;  %v3569_v22 = vpop.permute.xlu1 %3568  ;;  %5293 = vmatprep.subr.mxu1 %v5464_v0  ;;  %5298 = vmatprep.subr.mxu0 %v5464_v0 }
 0x1ac   : > { %5286 = vmatmul.mubr.msk.f32.vlgmr.msra.gmra.mxu1 %vm200_vm2, %v3569_v22  ;;  %5291 = vmatmul.mubr.msk.f32.vlgmr.msra.gmra.mxu0 %vm200_vm2, %v3660_v17 }
 0x1ad   : > { %5299 = vmatpush3.msk.msra.mxu0 %vm210_vm1, %v3840_v20  ;;  %5300 = vmatprep.mubr.msk.f32.mxu0 %vm5465_vm0, %v5464_v0 }
 0x1ae   : > { %5294 = vmatpush3.msk.msra.mxu1 %vm210_vm1, %v3749_v23  ;;  %5295 = vmatprep.mubr.msk.f32.mxu1 %vm5465_vm0, %v5464_v0 }
 0x1af   : > { %v4024_v25 = vpop.permute.xlu0 %4023  ;;  %v3751_v26 = vpop.permute.xlu1 %3750  ;;  %5303 = vmatprep.subr.mxu1 %v5464_v0  ;;  %5308 = vmatprep.subr.mxu0 %v5464_v0 }
 0x1b0   : > { %5296 = vmatmul.mubr.msk.f32.vlgmr.msra.gmra.mxu1 %vm200_vm2, %v3751_v26  ;;  %5301 = vmatmul.mubr.msk.f32.vlgmr.msra.gmra.mxu0 %vm200_vm2, %v3842_v21 }
 0x1b1   : > { %v367_v28 = vpop.f32.mrf.mxu1  ;;  %5309 = vmatpush3.msk.msra.mxu0 %vm210_vm1, %v4022_v24  ;;  %5310 = vmatprep.mubr.msk.f32.mxu0 %vm5465_vm0, %v5464_v0 }
 0x1b2   : > { %372 = vst.msk [vmem:[%s5815_s24] sm:$0xff] %vm371_vm3, %v367_v28  ;;  %379 = vrot.lane.b32.xlu0 %v367_v28, %s5469_s8  ;;  %374 = vrot.lane.b32.xlu1 %v367_v28, %s5467_s6 }
 0x1b3   : > { %v5107_v29 = vpop.f32.mrf.mxu1  ;;  %5304 = vmatpush3.msk.msra.mxu1 %vm210_vm1, %v3931_v27  ;;  %5305 = vmatprep.mubr.msk.f32.mxu1 %vm5465_vm0, %v5464_v0  ;;  %v3933_v30 = vpop.permute.xlu1 %3932 }
 0x1b4   : > { %5311 = vmatmul.mubr.msk.f32.vlgmr.msra.gmra.mxu0 %vm200_vm2, %v4024_v25  ;;  %5313 = vmatprep.subr.mxu1 %v5464_v0  ;;  %v4206_v32 = vpop.permute.xlu0 %4205 }
 0x1b5   : > { %5306 = vmatmul.mubr.msk.f32.vlgmr.msra.gmra.mxu1 %vm200_vm2, %v3933_v30  ;;  %v457_v33 = vpop.f32.mrf.mxu1  ;;  %5318 = vmatprep.subr.mxu0 %v5464_v0 }
 0x1b6   : > { %4757 = vst.msk [vmem:[%s5815_s24 + $0x18] sm:$0xff] %vm371_vm3, %v457_v33  ;;  %469 = vrot.lane.b32.xlu0 %v457_v33, %s5469_s8  ;;  %464 = vrot.lane.b32.xlu1 %v457_v33, %s5467_s6 }
 0x1b7   : > { %v5112_v35 = vpop.f32.mrf.mxu1  ;;  %5319 = vmatpush3.msk.msra.mxu0 %vm210_vm1, %v4204_v31  ;;  %5320 = vmatprep.mubr.msk.f32.mxu0 %vm5465_vm0, %v5464_v0  ;;  %v4115_v36 = vpop.permute.xlu1 %4114 }
 0x1b8   : > { %5314 = vmatpush3.msk.msra.mxu1 %vm210_vm1, %v4113_v34  ;;  %5315 = vmatprep.mubr.msk.f32.mxu1 %vm5465_vm0, %v5464_v0  ;;  %v4388_v40 = vpop.permute.xlu0 %4387 }
 0x1b9   : > { %5316 = vmatmul.mubr.msk.f32.vlgmr.msra.gmra.mxu1 %vm200_vm2, %v4115_v36  ;;  %5321 = vmatmul.mubr.msk.f32.vlgmr.msra.gmra.mxu0 %vm200_vm2, %v4206_v32 }
 0x1ba   : > { %v547_v38 = vpop.f32.mrf.mxu1  ;;  %5323 = vmatprep.subr.mxu1 %v5464_v0  ;;  %5328 = vmatprep.subr.mxu0 %v5464_v0 }
 0x1bb   : > { %4762 = vst.msk [vmem:[%s5815_s24 + $0x30] sm:$0xff] %vm371_vm3, %v547_v38  ;;  %559 = vrot.lane.b32.xlu0 %v547_v38, %s5469_s8  ;;  %554 = vrot.lane.b32.xlu1 %v547_v38, %s5467_s6  ;;  %v4297_v41 = vpop.permute.xlu1 %4296 }
 0x1bc   : > { %5329 = vmatpush3.msk.msra.mxu0 %vm210_vm1, %v4386_v37  ;;  %5330 = vmatprep.mubr.msk.f32.mxu0 %vm5465_vm0, %v5464_v0  ;;  %v5117_v42 = vpop.f32.mrf.mxu1  ;;  %v4570_v46 = vpop.permute.xlu0 %4569 }
 0x1bd   : > { %5324 = vmatpush3.msk.msra.mxu1 %vm210_vm1, %v4295_v39  ;;  %5325 = vmatprep.mubr.msk.f32.mxu1 %vm5465_vm0, %v5464_v0 }
 0x1be   : > { %5326 = vmatmul.mubr.msk.f32.vlgmr.msra.gmra.mxu1 %vm200_vm2, %v4297_v41  ;;  %5331 = vmatmul.mubr.msk.f32.vlgmr.msra.gmra.mxu0 %vm200_vm2, %v4388_v40 }
 0x1bf   : > { %5333 = vmatprep.subr.mxu1 %v5464_v0  ;;  %5338 = vmatprep.subr.mxu0 %v5464_v0  ;;  %v4479_v45 = vpop.permute.xlu1 %4478 }
 0x1c0   : > { %5339 = vmatpush3.msk.msra.mxu0 %vm210_vm1, %v4568_v43  ;;  %5340 = vmatprep.mubr.msk.f32.mxu0 %vm5465_vm0, %v5464_v0 }
 0x1c1   : > { %5334 = vmatpush3.msk.msra.mxu1 %vm210_vm1, %v4477_v44  ;;  %5335 = vmatprep.mubr.msk.f32.mxu1 %vm5465_vm0, %v5464_v0 }
 0x1c2   : > { %5336 = vmatmul.mubr.msk.f32.vlgmr.msra.gmra.mxu1 %vm200_vm2, %v4479_v45  ;;  %5341 = vmatmul.mubr.msk.f32.vlgmr.msra.gmra.mxu0 %vm200_vm2, %v4570_v46 }
 0x224   : > { %v380_v47 = vpop.permute.xlu0 %379  ;;  %v375_v48 = vpop.permute.xlu1 %374 }
 0x225   : > { %4754 = vst.msk [vmem:[%s5815_s24 + $0x10] sm:$0xff] %vm371_vm3, %v380_v47  ;;  %4753 = vst.msk [vmem:[%s5815_s24 + $0x8] sm:$0xff] %vm371_vm3, %v375_v48  ;;  %v638_v49 = vpop.f32.mrf.mxu0 }
 0x226   : > { %4767 = vst.msk [vmem:[%s5815_s24 + $0x48] sm:$0xff] %vm371_vm3, %v638_v49  ;;  %650 = vrot.lane.b32.xlu0 %v638_v49, %s5469_s8  ;;  %645 = vrot.lane.b32.xlu1 %v638_v49, %s5467_s6 }
 0x227   : > { %v5122_v0 = vpop.f32.mrf.mxu0 }
 0x228   : > { %v470_v50 = vpop.permute.xlu0 %469  ;;  %v465_v51 = vpop.permute.xlu1 %464 }
 0x229   : > { %4759 = vst.msk [vmem:[%s5815_s24 + $0x28] sm:$0xff] %vm371_vm3, %v470_v50  ;;  %4758 = vst.msk [vmem:[%s5815_s24 + $0x20] sm:$0xff] %vm371_vm3, %v465_v51  ;;  %v729_v52 = vpop.f32.mrf.mxu1 }
 0x22a   : > { %4772 = vst.msk [vmem:[%s5815_s24 + $0x60] sm:$0xff] %vm371_vm3, %v729_v52  ;;  %741 = vrot.lane.b32.xlu0 %v729_v52, %s5469_s8  ;;  %736 = vrot.lane.b32.xlu1 %v729_v52, %s5467_s6 }
 0x22b   : > { %v5127_v53 = vpop.f32.mrf.mxu1 }
 0x22c   : > { %v820_v54 = vpop.f32.mrf.mxu0 }
 0x22d   : > { %v560_v55 = vpop.permute.xlu0 %559  ;;  %v555_v56 = vpop.permute.xlu1 %554  ;;  %4777 = vst.msk [vmem:[%s5815_s24 + $0x78] sm:$0xff] %vm371_vm3, %v820_v54 }
 0x22e   : > { %4764 = vst.msk [vmem:[%s5815_s24 + $0x40] sm:$0xff] %vm371_vm3, %v560_v55  ;;  %4763 = vst.msk [vmem:[%s5815_s24 + $0x38] sm:$0xff] %vm371_vm3, %v555_v56  ;;  %832 = vrot.lane.b32.xlu0 %v820_v54, %s5469_s8  ;;  %827 = vrot.lane.b32.xlu1 %v820_v54, %s5467_s6  ;;  %v5132_v57 = vpop.f32.mrf.mxu0 }
 0x230   : > { %v911_v58 = vpop.f32.mrf.mxu1  ;;  %v1002_v59 = vpop.f32.mrf.mxu0 }
 0x231   : > { %4782 = vst.msk [vmem:[%s5815_s24 + $0x90] sm:$0xff] %vm371_vm3, %v911_v58  ;;  %4787 = vst.msk [vmem:[%s5815_s24 + $0xa8] sm:$0xff] %vm371_vm3, %v1002_v59 }
 0x232   : > { %923 = vrot.lane.b32.xlu0 %v911_v58, %s5469_s8  ;;  %918 = vrot.lane.b32.xlu1 %v911_v58, %s5467_s6  ;;  %v5137_v60 = vpop.f32.mrf.mxu1  ;;  %v5142_v61 = vpop.f32.mrf.mxu0 }
 0x234   : > { %v1093_v62 = vpop.f32.mrf.mxu1  ;;  %v1184_v63 = vpop.f32.mrf.mxu0 }
 0x235   : > { %4792 = vst.msk [vmem:[%s5815_s24 + $0xc0] sm:$0xff] %vm371_vm3, %v1093_v62  ;;  %4797 = vst.msk [vmem:[%s5815_s24 + $0xd8] sm:$0xff] %vm371_vm3, %v1184_v63 }
 0x236   : > { %1014 = vrot.lane.b32.xlu0 %v1002_v59, %s5469_s8  ;;  %1009 = vrot.lane.b32.xlu1 %v1002_v59, %s5467_s6  ;;  %v5147_v1 = vpop.f32.mrf.mxu1  ;;  %v5152_v2 = vpop.f32.mrf.mxu0 }
 0x238   : > { %v1275_v3 = vpop.f32.mrf.mxu1  ;;  %v1366_v4 = vpop.f32.mrf.mxu0 }
 0x239   : > { %4802 = vst.msk [vmem:[%s5815_s24 + $0xf0] sm:$0xff] %vm371_vm3, %v1275_v3  ;;  %4807 = vst.msk [vmem:[%s5815_s24 + $0x108] sm:$0xff] %vm371_vm3, %v1366_v4 }
 0x23a   : > { %1105 = vrot.lane.b32.xlu0 %v1093_v62, %s5469_s8  ;;  %1100 = vrot.lane.b32.xlu1 %v1093_v62, %s5467_s6  ;;  %v5157_v5 = vpop.f32.mrf.mxu1  ;;  %v5162_v6 = vpop.f32.mrf.mxu0 }
 0x23c   : > { %v1457_v7 = vpop.f32.mrf.mxu1  ;;  %v1548_v8 = vpop.f32.mrf.mxu0 }
 0x23d   : > { %4812 = vst.msk [vmem:[%s5815_s24 + $0x120] sm:$0xff] %vm371_vm3, %v1457_v7  ;;  %4817 = vst.msk [vmem:[%s5815_s24 + $0x138] sm:$0xff] %vm371_vm3, %v1548_v8 }
 0x23e   : > { %1196 = vrot.lane.b32.xlu0 %v1184_v63, %s5469_s8  ;;  %1191 = vrot.lane.b32.xlu1 %v1184_v63, %s5467_s6  ;;  %v5167_v9 = vpop.f32.mrf.mxu1  ;;  %v5172_v10 = vpop.f32.mrf.mxu0 }
 0x240   : > { %v1639_v11 = vpop.f32.mrf.mxu1  ;;  %v1730_v12 = vpop.f32.mrf.mxu0 }
 0x241   : > { %4822 = vst.msk [vmem:[%s5815_s24 + $0x150] sm:$0xff] %vm371_vm3, %v1639_v11  ;;  %4827 = vst.msk [vmem:[%s5815_s24 + $0x168] sm:$0xff] %vm371_vm3, %v1730_v12 }
 0x242   : > { %1287 = vrot.lane.b32.xlu0 %v1275_v3, %s5469_s8  ;;  %1282 = vrot.lane.b32.xlu1 %v1275_v3, %s5467_s6  ;;  %v5177_v13 = vpop.f32.mrf.mxu1  ;;  %v5182_v14 = vpop.f32.mrf.mxu0 }
 0x244   : > { %v1821_v15 = vpop.f32.mrf.mxu1  ;;  %v1912_v16 = vpop.f32.mrf.mxu0 }
 0x245   : > { %4832 = vst.msk [vmem:[%s5815_s24 + $0x180] sm:$0xff] %vm371_vm3, %v1821_v15  ;;  %4837 = vst.msk [vmem:[%s5815_s24 + $0x198] sm:$0xff] %vm371_vm3, %v1912_v16 }
 0x246   : > { %1378 = vrot.lane.b32.xlu0 %v1366_v4, %s5469_s8  ;;  %1373 = vrot.lane.b32.xlu1 %v1366_v4, %s5467_s6  ;;  %v5187_v17 = vpop.f32.mrf.mxu1  ;;  %v5192_v18 = vpop.f32.mrf.mxu0 }
 0x248   : > { %v2003_v19 = vpop.f32.mrf.mxu1  ;;  %v2094_v20 = vpop.f32.mrf.mxu0 }
 0x249   : > { %4842 = vst.msk [vmem:[%s5815_s24 + $0x1b0] sm:$0xff] %vm371_vm3, %v2003_v19  ;;  %4847 = vst.msk [vmem:[%s5815_s24 + $0x1c8] sm:$0xff] %vm371_vm3, %v2094_v20 }
 0x24a   : > { %1469 = vrot.lane.b32.xlu0 %v1457_v7, %s5469_s8  ;;  %1464 = vrot.lane.b32.xlu1 %v1457_v7, %s5467_s6  ;;  %v5197_v21 = vpop.f32.mrf.mxu1  ;;  %v5202_v22 = vpop.f32.mrf.mxu0 }
 0x24c   : > { %v2185_v23 = vpop.f32.mrf.mxu1  ;;  %v5937_v24 = vpop.f32.mrf.mxu0 }
 0x24d   : > { %4852 = vst.msk [vmem:[%s5815_s24 + $0x1e0] sm:$0xff] %vm371_vm3, %v2185_v23  ;;  %4857 = vst.msk [vmem:[%s5815_s24 + $0x1f8] sm:$0xff] %vm371_vm3, %v5937_v24 }
 0x24e   : > { %1560 = vrot.lane.b32.xlu0 %v1548_v8, %s5469_s8  ;;  %1555 = vrot.lane.b32.xlu1 %v1548_v8, %s5467_s6  ;;  %v5207_v25 = vpop.f32.mrf.mxu1  ;;  %v5212_v26 = vpop.f32.mrf.mxu0 }
 0x250   : > { %v5946_v27 = vpop.f32.mrf.mxu1  ;;  %v5948_v28 = vpop.f32.mrf.mxu0 }
 0x251   : > { %4862 = vst.msk [vmem:[%s5815_s24 + $0x210] sm:$0xff] %vm371_vm3, %v5946_v27  ;;  %4867 = vst.msk [vmem:[%s5815_s24 + $0x228] sm:$0xff] %vm371_vm3, %v5948_v28 }
 0x252   : > { %1651 = vrot.lane.b32.xlu0 %v1639_v11, %s5469_s8  ;;  %1646 = vrot.lane.b32.xlu1 %v1639_v11, %s5467_s6  ;;  %v5217_v29 = vpop.f32.mrf.mxu1  ;;  %v5222_v30 = vpop.f32.mrf.mxu0 }
 0x254   : > { %v5958_v31 = vpop.f32.mrf.mxu1  ;;  %v5960_v32 = vpop.f32.mrf.mxu0 }
 0x255   : > { %4872 = vst.msk [vmem:[%s5815_s24 + $0x240] sm:$0xff] %vm371_vm3, %v5958_v31  ;;  %4877 = vst.msk [vmem:[%s5815_s24 + $0x258] sm:$0xff] %vm371_vm3, %v5960_v32 }
 0x256   : > { %1742 = vrot.lane.b32.xlu0 %v1730_v12, %s5469_s8  ;;  %1737 = vrot.lane.b32.xlu1 %v1730_v12, %s5467_s6  ;;  %v5227_v33 = vpop.f32.mrf.mxu1  ;;  %v5232_v34 = vpop.f32.mrf.mxu0 }
 0x258   : > { %v5970_v35 = vpop.f32.mrf.mxu1  ;;  %v5972_v36 = vpop.f32.mrf.mxu0 }
 0x259   : > { %4882 = vst.msk [vmem:[%s5815_s24 + $0x270] sm:$0xff] %vm371_vm3, %v5970_v35  ;;  %4887 = vst.msk [vmem:[%s5815_s24 + $0x288] sm:$0xff] %vm371_vm3, %v5972_v36 }
 0x25a   : > { %1833 = vrot.lane.b32.xlu0 %v1821_v15, %s5469_s8  ;;  %1828 = vrot.lane.b32.xlu1 %v1821_v15, %s5467_s6  ;;  %v5237_v37 = vpop.f32.mrf.mxu1  ;;  %v5242_v38 = vpop.f32.mrf.mxu0 }
 0x25c   : > { %v5982_v39 = vpop.f32.mrf.mxu1  ;;  %v5984_v40 = vpop.f32.mrf.mxu0 }
 0x25d   : > { %4892 = vst.msk [vmem:[%s5815_s24 + $0x2a0] sm:$0xff] %vm371_vm3, %v5982_v39  ;;  %4897 = vst.msk [vmem:[%s5815_s24 + $0x2b8] sm:$0xff] %vm371_vm3, %v5984_v40 }
 0x25e   : > { %1924 = vrot.lane.b32.xlu0 %v1912_v16, %s5469_s8  ;;  %1919 = vrot.lane.b32.xlu1 %v1912_v16, %s5467_s6  ;;  %v5247_v41 = vpop.f32.mrf.mxu1  ;;  %v5252_v42 = vpop.f32.mrf.mxu0 }
 0x260   : > { %v5994_v43 = vpop.f32.mrf.mxu1  ;;  %v5996_v44 = vpop.f32.mrf.mxu0 }
 0x261   : > { %4902 = vst.msk [vmem:[%s5815_s24 + $0x2d0] sm:$0xff] %vm371_vm3, %v5994_v43  ;;  %4907 = vst.msk [vmem:[%s5815_s24 + $0x2e8] sm:$0xff] %vm371_vm3, %v5996_v44 }
 0x262   : > { %2015 = vrot.lane.b32.xlu0 %v2003_v19, %s5469_s8  ;;  %2010 = vrot.lane.b32.xlu1 %v2003_v19, %s5467_s6  ;;  %v5257_v45 = vpop.f32.mrf.mxu1  ;;  %v5262_v46 = vpop.f32.mrf.mxu0 }
 0x264   : > { %v6006_v47 = vpop.f32.mrf.mxu1  ;;  %v6008_v48 = vpop.f32.mrf.mxu0 }
 0x265   : > { %4912 = vst.msk [vmem:[%s5815_s24 + $0x300] sm:$0xff] %vm371_vm3, %v6006_v47  ;;  %4917 = vst.msk [vmem:[%s5815_s24 + $0x318] sm:$0xff] %vm371_vm3, %v6008_v48 }
 0x266   : > { %2106 = vrot.lane.b32.xlu0 %v2094_v20, %s5469_s8  ;;  %2101 = vrot.lane.b32.xlu1 %v2094_v20, %s5467_s6  ;;  %v5267_v49 = vpop.f32.mrf.mxu1  ;;  %v5272_v0 = vpop.f32.mrf.mxu0 }
 0x268   : > { %v6018_v50 = vpop.f32.mrf.mxu1  ;;  %v6020_v51 = vpop.f32.mrf.mxu0 }
 0x269   : > { %4922 = vst.msk [vmem:[%s5815_s24 + $0x330] sm:$0xff] %vm371_vm3, %v6018_v50  ;;  %4927 = vst.msk [vmem:[%s5815_s24 + $0x348] sm:$0xff] %vm371_vm3, %v6020_v51 }
 0x26a   : > { %2197 = vrot.lane.b32.xlu0 %v2185_v23, %s5469_s8  ;;  %2192 = vrot.lane.b32.xlu1 %v2185_v23, %s5467_s6  ;;  %v5277_v52 = vpop.f32.mrf.mxu1  ;;  %v5282_v53 = vpop.f32.mrf.mxu0 }
 0x26c   : > { %v6030_v54 = vpop.f32.mrf.mxu1  ;;  %v6032_v55 = vpop.f32.mrf.mxu0 }
 0x26d   : > { %4932 = vst.msk [vmem:[%s5815_s24 + $0x360] sm:$0xff] %vm371_vm3, %v6030_v54  ;;  %4937 = vst.msk [vmem:[%s5815_s24 + $0x378] sm:$0xff] %vm371_vm3, %v6032_v55 }
 0x26e   : > { %2288 = vrot.lane.b32.xlu0 %v5937_v24, %s5469_s8  ;;  %2283 = vrot.lane.b32.xlu1 %v5937_v24, %s5467_s6  ;;  %v5287_v56 = vpop.f32.mrf.mxu1  ;;  %v5292_v57 = vpop.f32.mrf.mxu0 }
 0x270   : > { %v6044_v58 = vpop.f32.mrf.mxu1  ;;  %v6046_v59 = vpop.f32.mrf.mxu0 }
 0x271   : > { %4942 = vst.msk [vmem:[%s5815_s24 + $0x390] sm:$0xff] %vm371_vm3, %v6044_v58  ;;  %4947 = vst.msk [vmem:[%s5815_s24 + $0x3a8] sm:$0xff] %vm371_vm3, %v6046_v59 }
 0x272   : > { %2379 = vrot.lane.b32.xlu0 %v5946_v27, %s5469_s8  ;;  %2374 = vrot.lane.b32.xlu1 %v5946_v27, %s5467_s6  ;;  %v5297_v60 = vpop.f32.mrf.mxu1  ;;  %v5302_v61 = vpop.f32.mrf.mxu0 }
 0x274   : > { %v6058_v62 = vpop.f32.mrf.mxu0 }
 0x275   : > { %v6060_v63 = vpop.f32.mrf.mxu1  ;;  %4957 = vst.msk [vmem:[%s5815_s24 + $0x3d8] sm:$0xff] %vm371_vm3, %v6058_v62 }
 0x276   : > { %4952 = vst.msk [vmem:[%s5815_s24 + $0x3c0] sm:$0xff] %vm371_vm3, %v6060_v63  ;;  %2470 = vrot.lane.b32.xlu0 %v5948_v28, %s5469_s8  ;;  %2465 = vrot.lane.b32.xlu1 %v5948_v28, %s5467_s6  ;;  %v5312_v1 = vpop.f32.mrf.mxu0 }
 0x277   : > { %v5307_v2 = vpop.f32.mrf.mxu1 }
 0x279   : > { %v6072_v3 = vpop.f32.mrf.mxu1  ;;  %v6074_v4 = vpop.f32.mrf.mxu0 }
 0x27a   : > { %4962 = vst.msk [vmem:[%s5815_s24 + $0x3f0] sm:$0xff] %vm371_vm3, %v6072_v3  ;;  %4967 = vst.msk [vmem:[%s5815_s24 + $0x408] sm:$0xff] %vm371_vm3, %v6074_v4  ;;  %2561 = vrot.lane.b32.xlu0 %v5958_v31, %s5469_s8  ;;  %2556 = vrot.lane.b32.xlu1 %v5958_v31, %s5467_s6 }
 0x27b   : > { %v5317_v5 = vpop.f32.mrf.mxu1  ;;  %v5322_v6 = vpop.f32.mrf.mxu0 }
 0x27e   : > { %v6086_v7 = vpop.f32.mrf.mxu1  ;;  %v6088_v8 = vpop.f32.mrf.mxu0  ;;  %2652 = vrot.lane.b32.xlu0 %v5960_v32, %s5469_s8  ;;  %2647 = vrot.lane.b32.xlu1 %v5960_v32, %s5467_s6 }
 0x27f   : > { %4972 = vst.msk [vmem:[%s5815_s24 + $0x420] sm:$0xff] %vm371_vm3, %v6086_v7  ;;  %4977 = vst.msk [vmem:[%s5815_s24 + $0x438] sm:$0xff] %vm371_vm3, %v6088_v8 }
 0x280   : > { %v5327_v9 = vpop.f32.mrf.mxu1  ;;  %v5332_v10 = vpop.f32.mrf.mxu0 }
 0x282   : > { %v6100_v11 = vpop.f32.mrf.mxu1  ;;  %v6102_v12 = vpop.f32.mrf.mxu0  ;;  %2743 = vrot.lane.b32.xlu0 %v5970_v35, %s5469_s8  ;;  %2738 = vrot.lane.b32.xlu1 %v5970_v35, %s5467_s6 }
 0x283   : > { %4982 = vst.msk [vmem:[%s5815_s24 + $0x450] sm:$0xff] %vm371_vm3, %v6100_v11  ;;  %4987 = vst.msk [vmem:[%s5815_s24 + $0x468] sm:$0xff] %vm371_vm3, %v6102_v12 }
 0x284   : > { %v5337_v13 = vpop.f32.mrf.mxu1  ;;  %v5342_v14 = vpop.f32.mrf.mxu0 }
 0x286   : > { %2834 = vrot.lane.b32.xlu0 %v5972_v36, %s5469_s8  ;;  %2829 = vrot.lane.b32.xlu1 %v5972_v36, %s5467_s6 }
 0x28a   : > { %2925 = vrot.lane.b32.xlu0 %v5982_v39, %s5469_s8  ;;  %2920 = vrot.lane.b32.xlu1 %v5982_v39, %s5467_s6 }
 0x28e   : > { %3016 = vrot.lane.b32.xlu0 %v5984_v40, %s5469_s8  ;;  %3011 = vrot.lane.b32.xlu1 %v5984_v40, %s5467_s6 }
 0x292   : > { %3107 = vrot.lane.b32.xlu0 %v5994_v43, %s5469_s8  ;;  %3102 = vrot.lane.b32.xlu1 %v5994_v43, %s5467_s6 }
 0x296   : > { %3198 = vrot.lane.b32.xlu0 %v5996_v44, %s5469_s8  ;;  %3193 = vrot.lane.b32.xlu1 %v5996_v44, %s5467_s6 }
 0x298   : > { %v651_v15 = vpop.permute.xlu0 %650  ;;  %v646_v16 = vpop.permute.xlu1 %645 }
 0x299   : > { %4769 = vst.msk [vmem:[%s5815_s24 + $0x58] sm:$0xff] %vm371_vm3, %v651_v15  ;;  %4768 = vst.msk [vmem:[%s5815_s24 + $0x50] sm:$0xff] %vm371_vm3, %v646_v16 }
 0x29a   : > { %3289 = vrot.lane.b32.xlu0 %v6006_v47, %s5469_s8  ;;  %3284 = vrot.lane.b32.xlu1 %v6006_v47, %s5467_s6 }
 0x29c   : > { %v742_v17 = vpop.permute.xlu0 %741  ;;  %v737_v18 = vpop.permute.xlu1 %736 }
 0x29d   : > { %4774 = vst.msk [vmem:[%s5815_s24 + $0x70] sm:$0xff] %vm371_vm3, %v742_v17  ;;  %4773 = vst.msk [vmem:[%s5815_s24 + $0x68] sm:$0xff] %vm371_vm3, %v737_v18 }
 0x29e   : > { %3380 = vrot.lane.b32.xlu0 %v6008_v48, %s5469_s8  ;;  %3375 = vrot.lane.b32.xlu1 %v6008_v48, %s5467_s6 }
 0x2a0   : > { %v833_v19 = vpop.permute.xlu0 %832  ;;  %v828_v20 = vpop.permute.xlu1 %827 }
 0x2a1   : > { %4779 = vst.msk [vmem:[%s5815_s24 + $0x88] sm:$0xff] %vm371_vm3, %v833_v19  ;;  %4778 = vst.msk [vmem:[%s5815_s24 + $0x80] sm:$0xff] %vm371_vm3, %v828_v20 }
 0x2a2   : > { %3471 = vrot.lane.b32.xlu0 %v6018_v50, %s5469_s8  ;;  %3466 = vrot.lane.b32.xlu1 %v6018_v50, %s5467_s6 }
 0x2a4   : > { %v924_v21 = vpop.permute.xlu0 %923  ;;  %v919_v22 = vpop.permute.xlu1 %918 }
 0x2a5   : > { %4784 = vst.msk [vmem:[%s5815_s24 + $0xa0] sm:$0xff] %vm371_vm3, %v924_v21  ;;  %4783 = vst.msk [vmem:[%s5815_s24 + $0x98] sm:$0xff] %vm371_vm3, %v919_v22 }
 0x2a6   : > { %3562 = vrot.lane.b32.xlu0 %v6020_v51, %s5469_s8  ;;  %3557 = vrot.lane.b32.xlu1 %v6020_v51, %s5467_s6 }
 0x2a8   : > { %v1015_v23 = vpop.permute.xlu0 %1014  ;;  %v1010_v24 = vpop.permute.xlu1 %1009 }
 0x2a9   : > { %4789 = vst.msk [vmem:[%s5815_s24 + $0xb8] sm:$0xff] %vm371_vm3, %v1015_v23  ;;  %4788 = vst.msk [vmem:[%s5815_s24 + $0xb0] sm:$0xff] %vm371_vm3, %v1010_v24 }
 0x2aa   : > { %3653 = vrot.lane.b32.xlu0 %v6030_v54, %s5469_s8  ;;  %3648 = vrot.lane.b32.xlu1 %v6030_v54, %s5467_s6 }
 0x2ac   : > { %v1106_v25 = vpop.permute.xlu0 %1105  ;;  %v1101_v26 = vpop.permute.xlu1 %1100 }
 0x2ad   : > { %4794 = vst.msk [vmem:[%s5815_s24 + $0xd0] sm:$0xff] %vm371_vm3, %v1106_v25  ;;  %4793 = vst.msk [vmem:[%s5815_s24 + $0xc8] sm:$0xff] %vm371_vm3, %v1101_v26 }
 0x2ae   : > { %3744 = vrot.lane.b32.xlu0 %v6032_v55, %s5469_s8  ;;  %3739 = vrot.lane.b32.xlu1 %v6032_v55, %s5467_s6 }
 0x2b0   : > { %v1197_v27 = vpop.permute.xlu0 %1196  ;;  %v1192_v28 = vpop.permute.xlu1 %1191 }
 0x2b1   : > { %4799 = vst.msk [vmem:[%s5815_s24 + $0xe8] sm:$0xff] %vm371_vm3, %v1197_v27  ;;  %4798 = vst.msk [vmem:[%s5815_s24 + $0xe0] sm:$0xff] %vm371_vm3, %v1192_v28 }
 0x2b2   : > { %3835 = vrot.lane.b32.xlu0 %v6044_v58, %s5469_s8  ;;  %3830 = vrot.lane.b32.xlu1 %v6044_v58, %s5467_s6 }
 0x2b4   : > { %v1288_v29 = vpop.permute.xlu0 %1287  ;;  %v1283_v30 = vpop.permute.xlu1 %1282 }
 0x2b5   : > { %4804 = vst.msk [vmem:[%s5815_s24 + $0x100] sm:$0xff] %vm371_vm3, %v1288_v29  ;;  %4803 = vst.msk [vmem:[%s5815_s24 + $0xf8] sm:$0xff] %vm371_vm3, %v1283_v30 }
 0x2b6   : > { %3926 = vrot.lane.b32.xlu0 %v6046_v59, %s5469_s8  ;;  %3921 = vrot.lane.b32.xlu1 %v6046_v59, %s5467_s6 }
 0x2b8   : > { %v1379_v31 = vpop.permute.xlu0 %1378  ;;  %v1374_v32 = vpop.permute.xlu1 %1373 }
 0x2b9   : > { %4809 = vst.msk [vmem:[%s5815_s24 + $0x118] sm:$0xff] %vm371_vm3, %v1379_v31  ;;  %4808 = vst.msk [vmem:[%s5815_s24 + $0x110] sm:$0xff] %vm371_vm3, %v1374_v32 }
 0x2ba   : > { %4017 = vrot.lane.b32.xlu0 %v6060_v63, %s5469_s8  ;;  %4012 = vrot.lane.b32.xlu1 %v6060_v63, %s5467_s6 }
 0x2bc   : > { %v1470_v33 = vpop.permute.xlu0 %1469  ;;  %v1465_v34 = vpop.permute.xlu1 %1464 }
 0x2bd   : > { %4814 = vst.msk [vmem:[%s5815_s24 + $0x130] sm:$0xff] %vm371_vm3, %v1470_v33  ;;  %4813 = vst.msk [vmem:[%s5815_s24 + $0x128] sm:$0xff] %vm371_vm3, %v1465_v34 }
 0x2be   : > { %4108 = vrot.lane.b32.xlu0 %v6058_v62, %s5469_s8  ;;  %4103 = vrot.lane.b32.xlu1 %v6058_v62, %s5467_s6 }
 0x2c0   : > { %v1561_v35 = vpop.permute.xlu0 %1560  ;;  %v1556_v36 = vpop.permute.xlu1 %1555 }
 0x2c1   : > { %4819 = vst.msk [vmem:[%s5815_s24 + $0x148] sm:$0xff] %vm371_vm3, %v1561_v35  ;;  %4818 = vst.msk [vmem:[%s5815_s24 + $0x140] sm:$0xff] %vm371_vm3, %v1556_v36 }
 0x2c2   : > { %4199 = vrot.lane.b32.xlu0 %v6072_v3, %s5469_s8  ;;  %4194 = vrot.lane.b32.xlu1 %v6072_v3, %s5467_s6 }
 0x2c4   : > { %v1652_v37 = vpop.permute.xlu0 %1651  ;;  %v1647_v38 = vpop.permute.xlu1 %1646 }
 0x2c5   : > { %4824 = vst.msk [vmem:[%s5815_s24 + $0x160] sm:$0xff] %vm371_vm3, %v1652_v37  ;;  %4823 = vst.msk [vmem:[%s5815_s24 + $0x158] sm:$0xff] %vm371_vm3, %v1647_v38 }
 0x2c6   : > { %4290 = vrot.lane.b32.xlu0 %v6074_v4, %s5469_s8  ;;  %4285 = vrot.lane.b32.xlu1 %v6074_v4, %s5467_s6 }
 0x2c8   : > { %v1743_v39 = vpop.permute.xlu0 %1742  ;;  %v1738_v40 = vpop.permute.xlu1 %1737 }
 0x2c9   : > { %4829 = vst.msk [vmem:[%s5815_s24 + $0x178] sm:$0xff] %vm371_vm3, %v1743_v39  ;;  %4828 = vst.msk [vmem:[%s5815_s24 + $0x170] sm:$0xff] %vm371_vm3, %v1738_v40 }
 0x2ca   : > { %4381 = vrot.lane.b32.xlu0 %v6086_v7, %s5469_s8  ;;  %4376 = vrot.lane.b32.xlu1 %v6086_v7, %s5467_s6 }
 0x2cc   : > { %v1834_v41 = vpop.permute.xlu0 %1833  ;;  %v1829_v42 = vpop.permute.xlu1 %1828 }
 0x2cd   : > { %4834 = vst.msk [vmem:[%s5815_s24 + $0x190] sm:$0xff] %vm371_vm3, %v1834_v41  ;;  %4833 = vst.msk [vmem:[%s5815_s24 + $0x188] sm:$0xff] %vm371_vm3, %v1829_v42 }
 0x2ce   : > { %4472 = vrot.lane.b32.xlu0 %v6088_v8, %s5469_s8  ;;  %4467 = vrot.lane.b32.xlu1 %v6088_v8, %s5467_s6 }
 0x2d0   : > { %v1925_v43 = vpop.permute.xlu0 %1924  ;;  %v1920_v44 = vpop.permute.xlu1 %1919 }
 0x2d1   : > { %4839 = vst.msk [vmem:[%s5815_s24 + $0x1a8] sm:$0xff] %vm371_vm3, %v1925_v43  ;;  %4838 = vst.msk [vmem:[%s5815_s24 + $0x1a0] sm:$0xff] %vm371_vm3, %v1920_v44 }
 0x2d2   : > { %4563 = vrot.lane.b32.xlu0 %v6100_v11, %s5469_s8  ;;  %4558 = vrot.lane.b32.xlu1 %v6100_v11, %s5467_s6 }
 0x2d4   : > { %v2016_v45 = vpop.permute.xlu0 %2015  ;;  %v2011_v46 = vpop.permute.xlu1 %2010 }
 0x2d5   : > { %4844 = vst.msk [vmem:[%s5815_s24 + $0x1c0] sm:$0xff] %vm371_vm3, %v2016_v45  ;;  %4843 = vst.msk [vmem:[%s5815_s24 + $0x1b8] sm:$0xff] %vm371_vm3, %v2011_v46 }
 0x2d6   : > { %4654 = vrot.lane.b32.xlu0 %v6102_v12, %s5469_s8  ;;  %4649 = vrot.lane.b32.xlu1 %v6102_v12, %s5467_s6 }
 0x2d8   : > { %v2107_v47 = vpop.permute.xlu0 %2106  ;;  %v2102_v48 = vpop.permute.xlu1 %2101 }
 0x2d9   : > { %4849 = vst.msk [vmem:[%s5815_s24 + $0x1d8] sm:$0xff] %vm371_vm3, %v2107_v47  ;;  %4848 = vst.msk [vmem:[%s5815_s24 + $0x1d0] sm:$0xff] %vm371_vm3, %v2102_v48 }
 0x2dc   : > { %v2198_v49 = vpop.permute.xlu0 %2197  ;;  %v2193_v0 = vpop.permute.xlu1 %2192 }
 0x2dd   : > { %4854 = vst.msk [vmem:[%s5815_s24 + $0x1f0] sm:$0xff] %vm371_vm3, %v2198_v49  ;;  %4853 = vst.msk [vmem:[%s5815_s24 + $0x1e8] sm:$0xff] %vm371_vm3, %v2193_v0 }
 0x2e0   : > { %v2289_v50 = vpop.permute.xlu0 %2288  ;;  %v2284_v51 = vpop.permute.xlu1 %2283 }
 0x2e1   : > { %4859 = vst.msk [vmem:[%s5815_s24 + $0x208] sm:$0xff] %vm371_vm3, %v2289_v50  ;;  %4858 = vst.msk [vmem:[%s5815_s24 + $0x200] sm:$0xff] %vm371_vm3, %v2284_v51 }
 0x2e4   : > { %v2380_v52 = vpop.permute.xlu0 %2379  ;;  %v2375_v53 = vpop.permute.xlu1 %2374 }
 0x2e5   : > { %4864 = vst.msk [vmem:[%s5815_s24 + $0x220] sm:$0xff] %vm371_vm3, %v2380_v52  ;;  %4863 = vst.msk [vmem:[%s5815_s24 + $0x218] sm:$0xff] %vm371_vm3, %v2375_v53 }
 0x2e8   : > { %v2471_v54 = vpop.permute.xlu0 %2470  ;;  %v2466_v55 = vpop.permute.xlu1 %2465 }
 0x2e9   : > { %4869 = vst.msk [vmem:[%s5815_s24 + $0x238] sm:$0xff] %vm371_vm3, %v2471_v54  ;;  %4868 = vst.msk [vmem:[%s5815_s24 + $0x230] sm:$0xff] %vm371_vm3, %v2466_v55 }
 0x2ec   : > { %v2562_v56 = vpop.permute.xlu0 %2561  ;;  %v2557_v57 = vpop.permute.xlu1 %2556 }
 0x2ed   : > { %4874 = vst.msk [vmem:[%s5815_s24 + $0x250] sm:$0xff] %vm371_vm3, %v2562_v56  ;;  %4873 = vst.msk [vmem:[%s5815_s24 + $0x248] sm:$0xff] %vm371_vm3, %v2557_v57 }
 0x2f0   : > { %v2653_v58 = vpop.permute.xlu0 %2652  ;;  %v2648_v59 = vpop.permute.xlu1 %2647 }
 0x2f1   : > { %4879 = vst.msk [vmem:[%s5815_s24 + $0x268] sm:$0xff] %vm371_vm3, %v2653_v58  ;;  %4878 = vst.msk [vmem:[%s5815_s24 + $0x260] sm:$0xff] %vm371_vm3, %v2648_v59 }
 0x2f4   : > { %v2744_v60 = vpop.permute.xlu0 %2743  ;;  %v2739_v61 = vpop.permute.xlu1 %2738 }
 0x2f5   : > { %4884 = vst.msk [vmem:[%s5815_s24 + $0x280] sm:$0xff] %vm371_vm3, %v2744_v60  ;;  %4883 = vst.msk [vmem:[%s5815_s24 + $0x278] sm:$0xff] %vm371_vm3, %v2739_v61 }
 0x2f8   : > { %v2835_v62 = vpop.permute.xlu0 %2834  ;;  %v2830_v63 = vpop.permute.xlu1 %2829 }
 0x2f9   : > { %4889 = vst.msk [vmem:[%s5815_s24 + $0x298] sm:$0xff] %vm371_vm3, %v2835_v62  ;;  %4888 = vst.msk [vmem:[%s5815_s24 + $0x290] sm:$0xff] %vm371_vm3, %v2830_v63 }
 0x2fc   : > { %v2926_v1 = vpop.permute.xlu0 %2925  ;;  %v2921_v2 = vpop.permute.xlu1 %2920 }
 0x2fd   : > { %4894 = vst.msk [vmem:[%s5815_s24 + $0x2b0] sm:$0xff] %vm371_vm3, %v2926_v1  ;;  %4893 = vst.msk [vmem:[%s5815_s24 + $0x2a8] sm:$0xff] %vm371_vm3, %v2921_v2 }
 0x300   : > { %v3017_v3 = vpop.permute.xlu0 %3016  ;;  %v3012_v4 = vpop.permute.xlu1 %3011 }
 0x301   : > { %4899 = vst.msk [vmem:[%s5815_s24 + $0x2c8] sm:$0xff] %vm371_vm3, %v3017_v3  ;;  %4898 = vst.msk [vmem:[%s5815_s24 + $0x2c0] sm:$0xff] %vm371_vm3, %v3012_v4 }
 0x304   : > { %v3108_v5 = vpop.permute.xlu0 %3107  ;;  %v3103_v6 = vpop.permute.xlu1 %3102 }
 0x305   : > { %4904 = vst.msk [vmem:[%s5815_s24 + $0x2e0] sm:$0xff] %vm371_vm3, %v3108_v5  ;;  %4903 = vst.msk [vmem:[%s5815_s24 + $0x2d8] sm:$0xff] %vm371_vm3, %v3103_v6 }
 0x308   : > { %v3199_v7 = vpop.permute.xlu0 %3198  ;;  %v3194_v8 = vpop.permute.xlu1 %3193 }
 0x309   : > { %4909 = vst.msk [vmem:[%s5815_s24 + $0x2f8] sm:$0xff] %vm371_vm3, %v3199_v7  ;;  %4908 = vst.msk [vmem:[%s5815_s24 + $0x2f0] sm:$0xff] %vm371_vm3, %v3194_v8 }
 0x30c   : > { %v3290_v9 = vpop.permute.xlu0 %3289  ;;  %v3285_v10 = vpop.permute.xlu1 %3284 }
 0x30d   : > { %4914 = vst.msk [vmem:[%s5815_s24 + $0x310] sm:$0xff] %vm371_vm3, %v3290_v9  ;;  %4913 = vst.msk [vmem:[%s5815_s24 + $0x308] sm:$0xff] %vm371_vm3, %v3285_v10 }
 0x310   : > { %v3381_v11 = vpop.permute.xlu0 %3380  ;;  %v3376_v12 = vpop.permute.xlu1 %3375 }
 0x311   : > { %4919 = vst.msk [vmem:[%s5815_s24 + $0x328] sm:$0xff] %vm371_vm3, %v3381_v11  ;;  %4918 = vst.msk [vmem:[%s5815_s24 + $0x320] sm:$0xff] %vm371_vm3, %v3376_v12 }
 0x314   : > { %v3472_v13 = vpop.permute.xlu0 %3471  ;;  %v3467_v14 = vpop.permute.xlu1 %3466 }
 0x315   : > { %4924 = vst.msk [vmem:[%s5815_s24 + $0x340] sm:$0xff] %vm371_vm3, %v3472_v13  ;;  %4923 = vst.msk [vmem:[%s5815_s24 + $0x338] sm:$0xff] %vm371_vm3, %v3467_v14 }
 0x318   : > { %v3563_v15 = vpop.permute.xlu0 %3562  ;;  %v3558_v16 = vpop.permute.xlu1 %3557 }
 0x319   : > { %4929 = vst.msk [vmem:[%s5815_s24 + $0x358] sm:$0xff] %vm371_vm3, %v3563_v15  ;;  %4928 = vst.msk [vmem:[%s5815_s24 + $0x350] sm:$0xff] %vm371_vm3, %v3558_v16 }
 0x31c   : > { %v3654_v17 = vpop.permute.xlu0 %3653  ;;  %v3649_v18 = vpop.permute.xlu1 %3648 }
 0x31d   : > { %4934 = vst.msk [vmem:[%s5815_s24 + $0x370] sm:$0xff] %vm371_vm3, %v3654_v17  ;;  %4933 = vst.msk [vmem:[%s5815_s24 + $0x368] sm:$0xff] %vm371_vm3, %v3649_v18 }
 0x320   : > { %v3745_v19 = vpop.permute.xlu0 %3744  ;;  %v3740_v20 = vpop.permute.xlu1 %3739 }
 0x321   : > { %4939 = vst.msk [vmem:[%s5815_s24 + $0x388] sm:$0xff] %vm371_vm3, %v3745_v19  ;;  %4938 = vst.msk [vmem:[%s5815_s24 + $0x380] sm:$0xff] %vm371_vm3, %v3740_v20 }
 0x324   : > { %v3836_v21 = vpop.permute.xlu0 %3835  ;;  %v3831_v22 = vpop.permute.xlu1 %3830 }
 0x325   : > { %4944 = vst.msk [vmem:[%s5815_s24 + $0x3a0] sm:$0xff] %vm371_vm3, %v3836_v21  ;;  %4943 = vst.msk [vmem:[%s5815_s24 + $0x398] sm:$0xff] %vm371_vm3, %v3831_v22 }
 0x328   : > { %v3927_v23 = vpop.permute.xlu0 %3926  ;;  %v3922_v24 = vpop.permute.xlu1 %3921 }
 0x329   : > { %4949 = vst.msk [vmem:[%s5815_s24 + $0x3b8] sm:$0xff] %vm371_vm3, %v3927_v23  ;;  %4948 = vst.msk [vmem:[%s5815_s24 + $0x3b0] sm:$0xff] %vm371_vm3, %v3922_v24 }
 0x32c   : > { %v4018_v25 = vpop.permute.xlu0 %4017  ;;  %v4013_v26 = vpop.permute.xlu1 %4012 }
 0x32d   : > { %4954 = vst.msk [vmem:[%s5815_s24 + $0x3d0] sm:$0xff] %vm371_vm3, %v4018_v25  ;;  %4953 = vst.msk [vmem:[%s5815_s24 + $0x3c8] sm:$0xff] %vm371_vm3, %v4013_v26 }
 0x330   : > { %v4109_v27 = vpop.permute.xlu0 %4108  ;;  %v4104_v28 = vpop.permute.xlu1 %4103 }
 0x331   : > { %4959 = vst.msk [vmem:[%s5815_s24 + $0x3e8] sm:$0xff] %vm371_vm3, %v4109_v27  ;;  %4958 = vst.msk [vmem:[%s5815_s24 + $0x3e0] sm:$0xff] %vm371_vm3, %v4104_v28 }
 0x334   : > { %v4200_v29 = vpop.permute.xlu0 %4199  ;;  %v4195_v30 = vpop.permute.xlu1 %4194 }
 0x335   : > { %4964 = vst.msk [vmem:[%s5815_s24 + $0x400] sm:$0xff] %vm371_vm3, %v4200_v29  ;;  %4963 = vst.msk [vmem:[%s5815_s24 + $0x3f8] sm:$0xff] %vm371_vm3, %v4195_v30 }
 0x338   : > { %v4291_v31 = vpop.permute.xlu0 %4290  ;;  %v4286_v32 = vpop.permute.xlu1 %4285 }
 0x339   : > { %4969 = vst.msk [vmem:[%s5815_s24 + $0x418] sm:$0xff] %vm371_vm3, %v4291_v31  ;;  %4968 = vst.msk [vmem:[%s5815_s24 + $0x410] sm:$0xff] %vm371_vm3, %v4286_v32 }
 0x33c   : > { %v4382_v33 = vpop.permute.xlu0 %4381  ;;  %v4377_v34 = vpop.permute.xlu1 %4376 }
 0x33d   : > { %4974 = vst.msk [vmem:[%s5815_s24 + $0x430] sm:$0xff] %vm371_vm3, %v4382_v33  ;;  %4973 = vst.msk [vmem:[%s5815_s24 + $0x428] sm:$0xff] %vm371_vm3, %v4377_v34 }
 0x340   : > { %v4473_v35 = vpop.permute.xlu0 %4472  ;;  %v4468_v36 = vpop.permute.xlu1 %4467 }
 0x341   : > { %4979 = vst.msk [vmem:[%s5815_s24 + $0x448] sm:$0xff] %vm371_vm3, %v4473_v35  ;;  %4978 = vst.msk [vmem:[%s5815_s24 + $0x440] sm:$0xff] %vm371_vm3, %v4468_v36 }
 0x344   : > { %v4564_v37 = vpop.permute.xlu0 %4563  ;;  %v4559_v38 = vpop.permute.xlu1 %4558 }
 0x345   : > { %4984 = vst.msk [vmem:[%s5815_s24 + $0x460] sm:$0xff] %vm371_vm3, %v4564_v37  ;;  %4983 = vst.msk [vmem:[%s5815_s24 + $0x458] sm:$0xff] %vm371_vm3, %v4559_v38 }
 0x348   : > { %v4655_v39 = vpop.permute.xlu0 %4654  ;;  %v4650_v40 = vpop.permute.xlu1 %4649 }
 0x349   : > { %4989 = vst.msk [vmem:[%s5815_s24 + $0x478] sm:$0xff] %vm371_vm3, %v4655_v39  ;;  %4988 = vst.msk [vmem:[%s5815_s24 + $0x470] sm:$0xff] %vm371_vm3, %v4650_v40 }
 0x34a PF: > { %s15_s12 = sadd.s32 1, %s5458_s12  }
 0x34b   : > { %p12_p2 = scmp.ge.s32.totalorder %s15_s12, 4  }
 0x34d   :  { %14 = sbr.rel (!%p12_p2) target bundleno = 2 (0x2), region = 214 }
 0x352   :  { %4680 = vsyncpa [#allocation3], 1 }
 0x353   :  { %4682 = vsyncpa [#allocation3 + $0x1], 1 }
 0x354   :  { %4683 = vsyncpa [#allocation5], 1 }

// kernel: decoder_forward.8
= control target key start
LH: loop header
LB: loop body
LE: loop exit
PB: predicated region body
PF: predicated region fallthrough
CT: control target
= control target key end

     0   :  { %s476_s15 = smov 0   ;;  %s550_s0 = inlined_call_operand.vmem [shape: f32[2,144,256], index: 0, kind: input, shape index: {}]   ;;  %s551_s1 = inlined_call_operand.vmem [shape: f32[4,144], index: 1, kind: input, shape index: {}]   ;;  %s552_s2 = inlined_call_operand.vmem [shape: f32[4,1], index: 2, kind: input, shape index: {}]   ;;  %s553_s3 = inlined_call_operand.vmem [shape: f32[2,4,256], index: 3, kind: input, shape index: {}]   ;;  %s554_s4 = inlined_call_operand.vmem [shape: f32[2,8,256], index: 4, kind: output, shape index: {}]  }
   0x1 LB: > { %s414_s16 = sadd.s32 4294967295, %s448_s15   ;;  %p418_p0 = scmp.ge.s32.totalorder %s448_s15, 1  ;;  %s448_s15 = sphi %s476_s15, %s14_s15  }
   0x2   : > { %p172_p1 = scmp.lt.s32.totalorder %s448_s15, 3 }
   0x4   : > { %p173_p2 = pnand %p418_p0, %p172_p1 }
   0x5   : > { %p203_p3 = scmp.lt.s32.totalorder (!%p173_p2), %s414_s16, 1 }
   0x6   : > { %176 = sbr.rel (%p173_p2) target bundleno = 252 (0xfc), region = 36 }
   0xb   : > { %v487_v0 = vld [vmem:[%s551_s1] sm:$0xff]  ;;  %vm263_vm0 = vcmask 130048   ;;  %v450_v3 = vmov 0   ;;  %s556_s16 = smov (!%p203_p3, %s414_s16), 1 }
   0xc   : > { %v255_v1 = vld [vmem:[%s552_s2] sm:$0xf]  ;;  %v262_v2 = vcombine.high %v487_v0, %v487_v0  ;;  %439 = vset.pattern.permute.xlu0 %v450_v3  ;;  %s429_s21 = smul.u32 288, %s556_s16  ;;  %s427_s25 = sshll.u32 %s556_s16, 3 }
   0xd   : > { %258 = vperm.xlu0 %439, %v255_v1   ;;  %s212_s28 = scalar_lea.vmem %s553_s3, %s427_s25  ;;  %s428_s29 = sshll.u32 %s556_s16, 4 }
   0xe   : > { %424 = vmatprep.mubr.msk.f32.mxu0 %vm263_vm0, %v262_v2  ;;  %s500_s24 = scalar_lea.vmem %s550_s0, %s429_s21  ;;  %s217_s6 = scalar_lea.vmem %s554_s4, %s428_s29  ;;  %v341_v40 = vld [vmem:[%s212_s28] sm:$0xff] }
   0xf   : > { %v250_v4 = vld [vmem:[%s500_s24 + $0xf8] sm:$0xff]  ;;  %v249_v5 = vld [vmem:[%s500_s24 + $0xf0] sm:$0xff]  ;;  %v248_v6 = vld [vmem:[%s500_s24 + $0xe8] sm:$0xff]  ;;  %v343_v41 = vcombine.low %v341_v40, %v341_v40  ;;  %346 = vst [vmem:[%s217_s6 + $0x8] sm:$0xf0] %v341_v40 }
  0x10   : > { %266 = vmatprep.subr.mxu0 %v250_v4  ;;  %v247_v7 = vld [vmem:[%s500_s24 + $0xe0] sm:$0xff]  ;;  %v246_v8 = vld [vmem:[%s500_s24 + $0xd8] sm:$0xff]  ;;  %v245_v9 = vld [vmem:[%s500_s24 + $0xd0] sm:$0xff] }
  0x11   : > { %267 = vmatpush1.msra.mxu0 %v249_v5  ;;  %v244_v10 = vld [vmem:[%s500_s24 + $0xc8] sm:$0xff]  ;;  %v243_v11 = vld [vmem:[%s500_s24 + $0xc0] sm:$0xff]  ;;  %v242_v12 = vld [vmem:[%s500_s24 + $0xb8] sm:$0xff]  ;;  %345 = vst [vmem:[%s217_s6] sm:$0xf0] %v343_v41 }
  0x12   : > { %268 = vmatprep.subr.mxu0 %v248_v6  ;;  %v241_v13 = vld [vmem:[%s500_s24 + $0xb0] sm:$0xff]  ;;  %v240_v14 = vld [vmem:[%s500_s24 + $0xa8] sm:$0xff]  ;;  %v239_v15 = vld [vmem:[%s500_s24 + $0xa0] sm:$0xff] }
  0x13   : > { %269 = vmatpush1.msra.mxu0 %v247_v7  ;;  %v238_v16 = vld [vmem:[%s500_s24 + $0x98] sm:$0xff]  ;;  %v237_v17 = vld [vmem:[%s500_s24 + $0x90] sm:$0xff]  ;;  %v236_v18 = vld [vmem:[%s500_s24 + $0x88] sm:$0xff] }
  0x14   : > { %270 = vmatprep.subr.mxu0 %v246_v8  ;;  %v235_v19 = vld [vmem:[%s500_s24 + $0x80] sm:$0xff]  ;;  %v234_v20 = vld [vmem:[%s500_s24 + $0x78] sm:$0xff]  ;;  %v233_v21 = vld [vmem:[%s500_s24 + $0x70] sm:$0xff] }
  0x15   : > { %271 = vmatpush1.msra.mxu0 %v245_v9  ;;  %v232_v22 = vld [vmem:[%s500_s24 + $0x68] sm:$0xff]  ;;  %v231_v23 = vld [vmem:[%s500_s24 + $0x60] sm:$0xff]  ;;  %v230_v24 = vld [vmem:[%s500_s24 + $0x58] sm:$0xff] }
  0x16   : > { %272 = vmatprep.subr.mxu0 %v244_v10  ;;  %v229_v25 = vld [vmem:[%s500_s24 + $0x50] sm:$0xff]  ;;  %v228_v26 = vld [vmem:[%s500_s24 + $0x48] sm:$0xff]  ;;  %v227_v27 = vld [vmem:[%s500_s24 + $0x40] sm:$0xff] }
  0x17   : > { %273 = vmatpush1.msra.mxu0 %v243_v11  ;;  %v226_v28 = vld [vmem:[%s500_s24 + $0x38] sm:$0xff]  ;;  %v225_v29 = vld [vmem:[%s500_s24 + $0x30] sm:$0xff]  ;;  %v224_v30 = vld [vmem:[%s500_s24 + $0x28] sm:$0xff] }
  0x18   : > { %274 = vmatprep.subr.mxu0 %v242_v12  ;;  %v223_v31 = vld [vmem:[%s500_s24 + $0x20] sm:$0xff]  ;;  %v222_v32 = vld [vmem:[%s500_s24 + $0x18] sm:$0xff]  ;;  %v221_v33 = vld [vmem:[%s500_s24 + $0x10] sm:$0xff] }
  0x19   : > { %275 = vmatpush1.msra.mxu0 %v241_v13  ;;  %v220_v34 = vld [vmem:[%s500_s24 + $0x8] sm:$0xff]  ;;  %v219_v35 = vld [vmem:[%s500_s24] sm:$0xff]  ;;  %v254_v36 = vld [vmem:[%s500_s24 + $0x118] sm:$0xff] }
  0x1a   : > { %276 = vmatprep.subr.mxu0 %v240_v14  ;;  %v253_v37 = vld [vmem:[%s500_s24 + $0x110] sm:$0xff]  ;;  %v252_v38 = vld [vmem:[%s500_s24 + $0x108] sm:$0xff]  ;;  %v251_v39 = vld [vmem:[%s500_s24 + $0x100] sm:$0xff] }
  0x1b   : > { %277 = vmatpush1.msra.mxu0 %v239_v15 }
  0x1c   : > { %278 = vmatprep.subr.mxu0 %v238_v16 }
  0x1d   : > { %279 = vmatpush1.msra.mxu0 %v237_v17 }
  0x1e   : > { %280 = vmatprep.subr.mxu0 %v236_v18 }
  0x1f   : > { %281 = vmatpush1.msra.mxu0 %v235_v19 }
  0x20   : > { %282 = vmatprep.subr.mxu0 %v234_v20 }
  0x21   : > { %283 = vmatpush1.msra.mxu0 %v233_v21 }
  0x22   : > { %284 = vmatprep.subr.mxu0 %v232_v22 }
  0x23   : > { %285 = vmatpush1.msra.mxu0 %v231_v23 }
  0x24   : > { %286 = vmatprep.subr.mxu0 %v230_v24 }
  0x25   : > { %287 = vmatpush1.msra.mxu0 %v229_v25 }
  0x26   : > { %288 = vmatprep.subr.mxu0 %v228_v26 }
  0x27   : > { %289 = vmatpush1.msra.mxu0 %v227_v27 }
  0x28   : > { %290 = vmatprep.subr.mxu0 %v226_v28 }
  0x29   : > { %291 = vmatpush1.msra.mxu0 %v225_v29 }
  0x2a   : > { %292 = vmatprep.subr.mxu0 %v224_v30 }
  0x2b   : > { %293 = vmatpush1.msra.mxu0 %v223_v31 }
  0x2c   : > { %294 = vmatprep.subr.mxu0 %v222_v32 }
  0x2d   : > { %295 = vmatpush1.msra.mxu0 %v221_v33 }
  0x2e   : > { %296 = vmatprep.subr.mxu0 %v220_v34 }
  0x2f   : > { %297 = vmatpush1.msra.mxu0 %v219_v35 }
  0x30   : > { %326 = vmatprep.subr.mxu0 %v254_v36 }
  0x31   : > { %327 = vmatpush2.msra.mxu0 %v253_v37 }
  0x32   : > { %328 = vmatprep.subr.mxu0 %v252_v38 }
  0x33   : > { %329 = vmatpush2.msra.mxu0 %v251_v39 }
  0x34   : > { %331 = vmatmul.mubr.f32.vlgmr.msra.gmra.mxu0 %v487_v0 }
  0x88   : > { %v259_v42 = vpop.permute.xlu0 %258 }
  0xf4   : > { %v332_v43 = vpop.f32.mrf.mxu0 }
  0xf5   : > { %v333_v44 = vadd.f32 %v332_v43, %v259_v42 }
  0xf6   : > { %v334_v45 = vpop.f32.mrf.mxu0 }
  0xf7   : > { %v337_v46 = vmax.f32 %v333_v44, 0.0  ;;  %v335_v47 = vadd.f32 %v334_v45, %v259_v42 }
  0xf9   : > { %339 = vst [vmem:[%s217_s6] sm:$0xf] %v337_v46  ;;  %v338_v48 = vmax.f32 %v335_v47, 0.0 }
  0xfb   : > { %340 = vst [vmem:[%s217_s6 + $0x8] sm:$0xf] %v338_v48 }
  0xfc PF: > { %s14_s15 = sadd.s32 1, %s448_s15  }
  0xfd   : > { %p11_p4 = scmp.ge.s32.totalorder %s14_s15, 4  }
  0xff   :  { %13 = sbr.rel (!%p11_p4) target bundleno = 1 (0x1), region = 69 }

// kernel: decoder_forward.7
= control target key start
LH: loop header
LB: loop body
LE: loop exit
PB: predicated region body
PF: predicated region fallthrough
CT: control target
= control target key end

     0   :  { %s6340_s12 = smov 0   ;;  %s8109_s0 = inlined_call_operand.vmem [shape: f32[2,8,128], index: 0, kind: input, shape index: {}]   ;;  %s8110_s1 = inlined_call_operand.vmem [shape: f32[48,8], index: 1, kind: input, shape index: {}]   ;;  %s8111_s2 = inlined_call_operand.vmem [shape: f32[8,48], index: 2, kind: input, shape index: {}]   ;;  %s8112_s3 = inlined_call_operand.vmem [shape: f32[2,144,16,16], index: 3, kind: output, shape index: {}]  }
   0x1 LB: > { %s5474_s13 = sadd.s32 4294967295, %s6303_s12   ;;  %p5478_p0 = scmp.ge.s32.totalorder %s6303_s12, 1  ;;  %s6303_s12 = sphi %s6340_s12, %s13_s12  }
   0x2   : > { %p136_p1 = scmp.lt.s32.totalorder %s6303_s12, 3 }
   0x4   : > { %p137_p2 = pnand %p5478_p0, %p136_p1 }
   0x6   : > { %140 = sbr.rel (%p137_p2) target bundleno = 1119 (0x45f), region = 32 }
   0xb   : > { %p159_p3 = scmp.lt.s32.totalorder %s5474_s13, 1  ;;  %v168_v0 = vld [vmem:[%s8110_s1] sm:$0xff]  ;;  %vm175_vm0 = vcmask 64512   ;;  %v169_v2 = vld [vmem:[%s8110_s1 + $0x8] sm:$0xff]  ;;  %v170_v3 = vld [vmem:[%s8110_s1 + $0x10] sm:$0xff]  ;;  %s6305_s5 = smov 80  }
   0xc   : > { %6024 = vmatprep.mubr.msk.f32.mxu0 %vm175_vm0, %v168_v0  ;;  %v171_v4 = vld [vmem:[%s8110_s1 + $0x18] sm:$0xff]  ;;  %v172_v5 = vld [vmem:[%s8110_s1 + $0x20] sm:$0xff]  ;;  %v173_v6 = vld [vmem:[%s8110_s1 + $0x28] sm:$0xff]  ;;  %s6306_s6 = smov 120   ;;  %s6307_s7 = smov 64   ;;  %vm371_vm1 = vcmask 130048  }
   0xd   : > { %s8132_s13 = smov (!%p159_p3, %s5474_s13), 1  ;;  %v6381_v7 = vld [vmem:[%s8111_s2] sm:$0xff]  ;;  %s6308_s8 = smov 112  }
   0xe   : > { %s5479_s16 = sshll.u32 %s8132_s13, 3  ;;  %6033 = vmatprep.subr.mxu1 %v6381_v7  ;;  %s6309_s9 = smov 48  }
   0xf   : > { %s162_s19 = scalar_lea.vmem %s8109_s0, %s5479_s16  ;;  %6034 = vmatpush3.msra.mxu1 %v6381_v7  ;;  %s6310_s10 = smov 104  }
  0x10   : > { %v174_v1 = vld [vmem:[%s162_s19] sm:$0xff]  ;;  %6038 = vmatprep.subr.mxu1 %v6381_v7  ;;  %s6311_s11 = smov 32   ;;  %s6312_s14 = smov 96  }
  0x11   : > { %6022 = vmatprep.subr.mxu0 %v174_v1  ;;  %s6313_s15 = smov 16   ;;  %s6314_s16 = smov 88  }
  0x12   : > { %6023 = vmatpush3.msra.mxu0 %v174_v1  ;;  %s6315_s17 = smov 72   ;;  %s6316_s18 = smov 56  }
  0x13   : > { %6025 = vmatmul.mubr.msk.f32.vlgmr.msra.gmra.mxu0 %vm175_vm0, %v169_v2  ;;  %6048 = vmatprep.subr.mxu0 %v6381_v7  ;;  %s6317_s19 = smov 40   ;;  %s6318_s20 = smov 24  }
  0x14   : > { %6027 = vmatprep.mubr.msk.f32.mxu0 %vm175_vm0, %v170_v3  ;;  %6049 = vmatpush3.msra.mxu0 %v6381_v7  ;;  %s6319_s21 = smov 8   ;;  %s6273_s22 = smul.u32 2304, %s8132_s13 }
  0x15   : > { %6058 = vmatprep.subr.mxu0 %v6381_v7 }
  0x16   : > { %s6643_s25 = scalar_lea.vmem %s8112_s3, %s6273_s22 }
  0x17   : > { %6028 = vmatmul.mubr.msk.f32.gmra.mxu0 %vm175_vm0, %v171_v4 }
  0x18   : > { %6030 = vmatprep.mubr.msk.f32.mxu0 %vm175_vm0, %v172_v5 }
  0x1b   : > { %6031 = vmatmul.mubr.msk.f32.gmra.mxu0 %vm175_vm0, %v173_v6 }
  0xd3   : > { %v6026_v8 = vpop.f32.mrf.mxu0 }
  0xd4   : > { %2212 = vrot.lane.b32.xlu0 %v6026_v8, %s6305_s5  ;;  %607 = vrot.lane.b32.xlu1 %v6026_v8, %s6306_s6 }
  0xd5   : > { %v260_v9 = vpop.f32.mrf.mxu0 }
  0xd6   : > { %6035 = vmatprep.mubr.msk.f32.mxu1 %vm175_vm0, %v260_v9 }
  0xd7   : > { %6036 = vmatmul.mubr.msk.f32.vlgmr.msra.gmra.mxu1 %vm175_vm0, %v6026_v8  ;;  %v6393_v10 = vpop.f32.mrf.mxu0 }
  0xd8   : > { %2854 = vrot.lane.b32.xlu0 %v6026_v8, %s6307_s7  ;;  %928 = vrot.lane.b32.xlu1 %v6026_v8, %s6308_s8 }
  0xd9   : > { %v6397_v11 = vpop.f32.mrf.mxu0  ;;  %6039 = vmatpush3.msra.mxu1 %v6381_v7 }
  0xda   : > { %6040 = vmatprep.mubr.msk.f32.mxu1 %vm175_vm0, %v6397_v11  ;;  %6043 = vmatprep.subr.mxu1 %v6381_v7 }
  0xdb   : > { %6041 = vmatmul.mubr.msk.f32.vlgmr.msra.gmra.mxu1 %vm175_vm0, %v6393_v10  ;;  %v6405_v12 = vpop.f32.mrf.mxu0 }
  0xdc   : > { %3496 = vrot.lane.b32.xlu0 %v6026_v8, %s6309_s9  ;;  %1249 = vrot.lane.b32.xlu1 %v6026_v8, %s6310_s10 }
  0xdd   : > { %v6409_v13 = vpop.f32.mrf.mxu0  ;;  %6044 = vmatpush3.msra.mxu1 %v6381_v7 }
  0xde   : > { %6045 = vmatprep.mubr.msk.f32.mxu1 %vm175_vm0, %v6409_v13  ;;  %6053 = vmatprep.subr.mxu1 %v6381_v7 }
  0xdf   : > { %6046 = vmatmul.mubr.msk.f32.vlgmr.msra.gmra.mxu1 %vm175_vm0, %v6405_v12 }
  0xe0   : > { %4138 = vrot.lane.b32.xlu0 %v6026_v8, %s6311_s11  ;;  %1570 = vrot.lane.b32.xlu1 %v6026_v8, %s6312_s14 }
  0xe1   : > { %6054 = vmatpush3.msra.mxu1 %v6381_v7 }
  0xe2   : > { %6063 = vmatprep.subr.mxu1 %v6381_v7 }
  0xe4   : > { %4780 = vrot.lane.b32.xlu0 %v6026_v8, %s6313_s15  ;;  %1891 = vrot.lane.b32.xlu1 %v6026_v8, %s6314_s16 }
  0xe8   : > { %2533 = vrot.lane.b32.xlu1 %v6026_v8, %s6315_s17  ;;  %605 = vrot.lane.b32.xlu0 %v260_v9, %s6306_s6 }
  0xec   : > { %3175 = vrot.lane.b32.xlu1 %v6026_v8, %s6316_s18  ;;  %926 = vrot.lane.b32.xlu0 %v260_v9, %s6308_s8 }
  0xf0   : > { %3817 = vrot.lane.b32.xlu1 %v6026_v8, %s6317_s19  ;;  %1247 = vrot.lane.b32.xlu0 %v260_v9, %s6310_s10 }
  0xf4   : > { %4459 = vrot.lane.b32.xlu1 %v6026_v8, %s6318_s20  ;;  %1568 = vrot.lane.b32.xlu0 %v260_v9, %s6312_s14 }
  0xf8   : > { %5101 = vrot.lane.b32.xlu1 %v6026_v8, %s6319_s21  ;;  %1889 = vrot.lane.b32.xlu0 %v260_v9, %s6314_s16 }
  0xfc   : > { %2531 = vrot.lane.b32.xlu1 %v260_v9, %s6315_s17  ;;  %2210 = vrot.lane.b32.xlu0 %v260_v9, %s6305_s5 }
 0x100   : > { %3173 = vrot.lane.b32.xlu1 %v260_v9, %s6316_s18  ;;  %2852 = vrot.lane.b32.xlu0 %v260_v9, %s6307_s7 }
 0x104   : > { %3815 = vrot.lane.b32.xlu1 %v260_v9, %s6317_s19  ;;  %3494 = vrot.lane.b32.xlu0 %v260_v9, %s6309_s9 }
 0x108   : > { %4457 = vrot.lane.b32.xlu1 %v260_v9, %s6318_s20  ;;  %4136 = vrot.lane.b32.xlu0 %v260_v9, %s6311_s11 }
 0x10c   : > { %5099 = vrot.lane.b32.xlu1 %v260_v9, %s6319_s21  ;;  %4778 = vrot.lane.b32.xlu0 %v260_v9, %s6313_s15 }
 0x110   : > { %2640 = vrot.lane.b32.xlu0 %v6393_v10, %s6315_s17  ;;  %714 = vrot.lane.b32.xlu1 %v6393_v10, %s6306_s6 }
 0x114   : > { %3282 = vrot.lane.b32.xlu0 %v6393_v10, %s6316_s18  ;;  %1035 = vrot.lane.b32.xlu1 %v6393_v10, %s6308_s8 }
 0x118   : > { %3924 = vrot.lane.b32.xlu0 %v6393_v10, %s6317_s19  ;;  %1356 = vrot.lane.b32.xlu1 %v6393_v10, %s6310_s10 }
 0x11c   : > { %4566 = vrot.lane.b32.xlu0 %v6393_v10, %s6318_s20  ;;  %1677 = vrot.lane.b32.xlu1 %v6393_v10, %s6312_s14 }
 0x120   : > { %5208 = vrot.lane.b32.xlu0 %v6393_v10, %s6319_s21  ;;  %1998 = vrot.lane.b32.xlu1 %v6393_v10, %s6314_s16 }
 0x124   : > { %2319 = vrot.lane.b32.xlu1 %v6393_v10, %s6305_s5  ;;  %712 = vrot.lane.b32.xlu0 %v6397_v11, %s6306_s6 }
 0x128   : > { %2961 = vrot.lane.b32.xlu1 %v6393_v10, %s6307_s7  ;;  %1033 = vrot.lane.b32.xlu0 %v6397_v11, %s6308_s8 }
 0x12c   : > { %3603 = vrot.lane.b32.xlu1 %v6393_v10, %s6309_s9  ;;  %1354 = vrot.lane.b32.xlu0 %v6397_v11, %s6310_s10 }
 0x130   : > { %4245 = vrot.lane.b32.xlu1 %v6393_v10, %s6311_s11  ;;  %1675 = vrot.lane.b32.xlu0 %v6397_v11, %s6312_s14 }
 0x134   : > { %4887 = vrot.lane.b32.xlu1 %v6393_v10, %s6313_s15  ;;  %1996 = vrot.lane.b32.xlu0 %v6397_v11, %s6314_s16 }
 0x138   : > { %2317 = vrot.lane.b32.xlu1 %v6397_v11, %s6305_s5  ;;  %2638 = vrot.lane.b32.xlu0 %v6397_v11, %s6315_s17 }
 0x13c   : > { %2959 = vrot.lane.b32.xlu1 %v6397_v11, %s6307_s7  ;;  %3280 = vrot.lane.b32.xlu0 %v6397_v11, %s6316_s18 }
 0x140   : > { %3601 = vrot.lane.b32.xlu1 %v6397_v11, %s6309_s9  ;;  %3922 = vrot.lane.b32.xlu0 %v6397_v11, %s6317_s19 }
 0x144   : > { %4243 = vrot.lane.b32.xlu1 %v6397_v11, %s6311_s11  ;;  %4564 = vrot.lane.b32.xlu0 %v6397_v11, %s6318_s20 }
 0x146   : > { %v6499_v14 = vpop.permute.xlu0 %2212  ;;  %v608_v15 = vpop.permute.xlu1 %607 }
 0x148   : > { %4885 = vrot.lane.b32.xlu1 %v6397_v11, %s6313_s15  ;;  %5206 = vrot.lane.b32.xlu0 %v6397_v11, %s6319_s21 }
 0x14a   : > { %v6505_v16 = vpop.permute.xlu0 %2854  ;;  %v6507_v17 = vpop.permute.xlu1 %928 }
 0x14c   : > { %2426 = vrot.lane.b32.xlu0 %v6405_v12, %s6305_s5  ;;  %821 = vrot.lane.b32.xlu1 %v6405_v12, %s6306_s6 }
 0x14e   : > { %v6513_v18 = vpop.permute.xlu0 %3496  ;;  %v6515_v19 = vpop.permute.xlu1 %1249 }
 0x150   : > { %3068 = vrot.lane.b32.xlu0 %v6405_v12, %s6307_s7  ;;  %1142 = vrot.lane.b32.xlu1 %v6405_v12, %s6308_s8 }
 0x152   : > { %v6521_v20 = vpop.permute.xlu0 %4138  ;;  %v6523_v21 = vpop.permute.xlu1 %1570 }
 0x154   : > { %3710 = vrot.lane.b32.xlu0 %v6405_v12, %s6309_s9  ;;  %1463 = vrot.lane.b32.xlu1 %v6405_v12, %s6310_s10 }
 0x156   : > { %v6529_v22 = vpop.permute.xlu0 %4780  ;;  %v6531_v23 = vpop.permute.xlu1 %1891 }
 0x158   : > { %4352 = vrot.lane.b32.xlu0 %v6405_v12, %s6311_s11  ;;  %1784 = vrot.lane.b32.xlu1 %v6405_v12, %s6312_s14 }
 0x15a   : > { %v6537_v24 = vpop.permute.xlu1 %2533  ;;  %v606_v25 = vpop.permute.xlu0 %605 }
 0x15b   : > { %6050 = vmatprep.mubr.msk.f32.mxu0 %vm175_vm0, %v606_v25 }
 0x15c   : > { %6051 = vmatmul.mubr.msk.f32.vlgmr.msra.gmra.mxu0 %vm175_vm0, %v608_v15  ;;  %4994 = vrot.lane.b32.xlu0 %v6405_v12, %s6313_s15 }
 0x15d   : > { %2105 = vrot.lane.b32.xlu1 %v6405_v12, %s6314_s16  ;;  %6059 = vmatpush3.msra.mxu0 %v6381_v7 }
 0x15e   : > { %v6546_v26 = vpop.permute.xlu1 %3175  ;;  %v927_v27 = vpop.permute.xlu0 %926  ;;  %6068 = vmatprep.subr.mxu0 %v6381_v7 }
 0x160   : > { %819 = vrot.lane.b32.xlu0 %v6409_v13, %s6306_s6 }
 0x161   : > { %2747 = vrot.lane.b32.xlu1 %v6405_v12, %s6315_s17 }
 0x162   : > { %v6553_v28 = vpop.permute.xlu1 %3817  ;;  %v6555_v29 = vpop.permute.xlu0 %1247 }
 0x164   : > { %1140 = vrot.lane.b32.xlu0 %v6409_v13, %s6308_s8 }
 0x165   : > { %3389 = vrot.lane.b32.xlu1 %v6405_v12, %s6316_s18 }
 0x166   : > { %v6561_v30 = vpop.permute.xlu1 %4459  ;;  %v6563_v31 = vpop.permute.xlu0 %1568 }
 0x168   : > { %1461 = vrot.lane.b32.xlu0 %v6409_v13, %s6310_s10 }
 0x169   : > { %4031 = vrot.lane.b32.xlu1 %v6405_v12, %s6317_s19 }
 0x16a   : > { %v6569_v32 = vpop.permute.xlu1 %5101  ;;  %v6571_v33 = vpop.permute.xlu0 %1889 }
 0x16b   : > { %8117 = vst [vmem:[#allocation2_spill] sm:$0xff] %v6569_v32 }
 0x16c   : > { %1782 = vrot.lane.b32.xlu0 %v6409_v13, %s6312_s14 }
 0x16d   : > { %4673 = vrot.lane.b32.xlu1 %v6405_v12, %s6318_s20 }
 0x16e   : > { %v6577_v34 = vpop.permute.xlu1 %2531  ;;  %v6579_v35 = vpop.permute.xlu0 %2210 }
 0x170   : > { %2103 = vrot.lane.b32.xlu0 %v6409_v13, %s6314_s16 }
 0x171   : > { %5315 = vrot.lane.b32.xlu1 %v6405_v12, %s6319_s21 }
 0x172   : > { %v6585_v36 = vpop.permute.xlu1 %3173  ;;  %v6587_v37 = vpop.permute.xlu0 %2852 }
 0x174   : > { %2424 = vrot.lane.b32.xlu0 %v6409_v13, %s6305_s5 }
 0x175   : > { %2745 = vrot.lane.b32.xlu1 %v6409_v13, %s6315_s17 }
 0x176   : > { %v6593_v38 = vpop.permute.xlu1 %3815  ;;  %v6595_v39 = vpop.permute.xlu0 %3494 }
 0x178   : > { %3066 = vrot.lane.b32.xlu0 %v6409_v13, %s6307_s7 }
 0x179   : > { %3387 = vrot.lane.b32.xlu1 %v6409_v13, %s6316_s18 }
 0x17a   : > { %v6601_v40 = vpop.permute.xlu1 %4457  ;;  %v6603_v41 = vpop.permute.xlu0 %4136 }
 0x17c   : > { %3708 = vrot.lane.b32.xlu0 %v6409_v13, %s6309_s9 }
 0x17d   : > { %4029 = vrot.lane.b32.xlu1 %v6409_v13, %s6317_s19 }
 0x17e   : > { %v6609_v42 = vpop.permute.xlu1 %5099  ;;  %v6611_v43 = vpop.permute.xlu0 %4778 }
 0x17f   : > { %8118 = vst [vmem:[#allocation3_spill] sm:$0xff] %v6609_v42 }
 0x180   : > { %4350 = vrot.lane.b32.xlu0 %v6409_v13, %s6311_s11 }
 0x181   : > { %4671 = vrot.lane.b32.xlu1 %v6409_v13, %s6318_s20 }
 0x182   : > { %v6617_v44 = vpop.permute.xlu0 %2640  ;;  %v715_v45 = vpop.permute.xlu1 %714 }
 0x184   : > { %4992 = vrot.lane.b32.xlu0 %v6409_v13, %s6313_s15 }
 0x185   : > { %5313 = vrot.lane.b32.xlu1 %v6409_v13, %s6319_s21 }
 0x186   : > { %v6623_v46 = vpop.permute.xlu0 %3282  ;;  %v6625_v47 = vpop.permute.xlu1 %1035 }
 0x18a   : > { %v6627_v48 = vpop.permute.xlu0 %3924  ;;  %v6629_v49 = vpop.permute.xlu1 %1356 }
 0x18e   : > { %v6631_v50 = vpop.permute.xlu0 %4566  ;;  %v6633_v51 = vpop.permute.xlu1 %1677 }
 0x192   : > { %v6636_v52 = vpop.permute.xlu0 %5208  ;;  %v6638_v53 = vpop.permute.xlu1 %1998 }
 0x193   : > { %8119 = vst [vmem:[#allocation4_spill] sm:$0xff] %v6636_v52 }
 0x196   : > { %v6645_v54 = vpop.permute.xlu1 %2319  ;;  %v713_v55 = vpop.permute.xlu0 %712 }
 0x197   : > { %v6037_v56 = vpop.f32.mrf.mxu1  ;;  %6055 = vmatprep.mubr.msk.f32.mxu1 %vm175_vm0, %v713_v55 }
 0x198   : > { %373 = vst.msk [vmem:[%s6643_s25 + $0x8] sm:$0xff] %vm371_vm1, %v6037_v56  ;;  %387 = vrot.lane.b32.xlu1 %v6037_v56, %s6312_s14  ;;  %378 = vrot.lane.b32.xlu0 %v6037_v56, %s6308_s8 }
 0x199   : > { %6056 = vmatmul.mubr.msk.f32.vlgmr.msra.gmra.mxu1 %vm175_vm0, %v715_v45  ;;  %v362_v57 = vpop.f32.mrf.mxu1 }
 0x19a   : > { %372 = vst.msk [vmem:[%s6643_s25] sm:$0xff] %vm371_vm1, %v362_v57  ;;  %6065 = vmatprep.mubr.msk.f32.mxu1 %vm175_vm0, %v927_v27  ;;  %v6656_v58 = vpop.permute.xlu1 %2961  ;;  %v1034_v59 = vpop.permute.xlu0 %1033  ;;  %6064 = vmatpush3.msra.mxu1 %v6381_v7 }
 0x19b   : > { %v6042_v60 = vpop.f32.mrf.mxu1  ;;  %6073 = vmatprep.subr.mxu1 %v6381_v7 }
 0x19c   : > { %385 = vrot.lane.b32.xlu1 %v362_v57, %s6312_s14  ;;  %376 = vrot.lane.b32.xlu0 %v362_v57, %s6308_s8  ;;  %5496 = vst.msk [vmem:[%s6643_s25 + $0x38] sm:$0xff] %vm371_vm1, %v6042_v60 }
 0x19d   : > { %6066 = vmatmul.mubr.msk.f32.vlgmr.msra.gmra.mxu1 %vm175_vm0, %v6507_v17  ;;  %v467_v61 = vpop.f32.mrf.mxu1 }
 0x19e   : > { %v6666_v62 = vpop.permute.xlu1 %3603  ;;  %v1355_v63 = vpop.permute.xlu0 %1354  ;;  %5495 = vst.msk [vmem:[%s6643_s25 + $0x30] sm:$0xff] %vm371_vm1, %v467_v61  ;;  %6074 = vmatpush3.msra.mxu1 %v6381_v7 }
 0x19f   : > { %6083 = vmatprep.subr.mxu1 %v6381_v7  ;;  %v6047_v0 = vpop.f32.mrf.mxu1 }
 0x1a0   : > { %483 = vrot.lane.b32.xlu1 %v6042_v60, %s6308_s8  ;;  %481 = vrot.lane.b32.xlu0 %v467_v61, %s6308_s8  ;;  %5504 = vst.msk [vmem:[%s6643_s25 + $0x68] sm:$0xff] %vm371_vm1, %v6047_v0 }
 0x1a1   : > { %v572_v1 = vpop.f32.mrf.mxu1 }
 0x1a2   : > { %v6676_v2 = vpop.permute.xlu1 %4245  ;;  %v1676_v3 = vpop.permute.xlu0 %1675  ;;  %5503 = vst.msk [vmem:[%s6643_s25 + $0x60] sm:$0xff] %vm371_vm1, %v572_v1 }
 0x1a4   : > { %492 = vrot.lane.b32.xlu1 %v6042_v60, %s6312_s14  ;;  %490 = vrot.lane.b32.xlu0 %v467_v61, %s6312_s14 }
 0x1a6   : > { %v6682_v4 = vpop.permute.xlu1 %4887  ;;  %v6684_v5 = vpop.permute.xlu0 %1996 }
 0x1a7   : > { %8120 = vst [vmem:[#allocation5_spill] sm:$0xff] %v6682_v4 }
 0x1a8   : > { %588 = vrot.lane.b32.xlu1 %v6047_v0, %s6308_s8  ;;  %586 = vrot.lane.b32.xlu0 %v572_v1, %s6308_s8 }
 0x1aa   : > { %v6688_v6 = vpop.permute.xlu1 %2317  ;;  %v6690_v8 = vpop.permute.xlu0 %2638 }
 0x1ac   : > { %597 = vrot.lane.b32.xlu1 %v6047_v0, %s6312_s14  ;;  %595 = vrot.lane.b32.xlu0 %v572_v1, %s6312_s14 }
 0x1ae   : > { %v6694_v9 = vpop.permute.xlu1 %2959  ;;  %v6696_v10 = vpop.permute.xlu0 %3280 }
 0x1b2   : > { %v6698_v11 = vpop.permute.xlu1 %3601  ;;  %v6700_v12 = vpop.permute.xlu0 %3922 }
 0x1b6   : > { %v6702_v13 = vpop.permute.xlu1 %4243  ;;  %v6704_v15 = vpop.permute.xlu0 %4564 }
 0x1ba   : > { %v6706_v17 = vpop.permute.xlu1 %4885  ;;  %v6708_v25 = vpop.permute.xlu0 %5206 }
 0x1bb   : > { %8121 = vst [vmem:[#allocation6_spill] sm:$0xff] %v6708_v25 }
 0x1be   : > { %v6710_v27 = vpop.permute.xlu0 %2426  ;;  %v822_v45 = vpop.permute.xlu1 %821 }
 0x1c2   : > { %v6712_v55 = vpop.permute.xlu0 %3068  ;;  %v1143_v56 = vpop.permute.xlu1 %1142 }
 0x1c6   : > { %v6714_v57 = vpop.permute.xlu0 %3710  ;;  %v1464_v60 = vpop.permute.xlu1 %1463 }
 0x1ca   : > { %v6716_v61 = vpop.permute.xlu0 %4352  ;;  %v1785_v0 = vpop.permute.xlu1 %1784 }
 0x1ce   : > { %v6718_v1 = vpop.permute.xlu0 %4994 }
 0x1cf   : > { %v2106_v52 = vpop.permute.xlu1 %2105 }
 0x1d2   : > { %v820_v32 = vpop.permute.xlu0 %819 }
 0x1d3   : > { %v6720_v42 = vpop.permute.xlu1 %2747  ;;  %6060 = vmatprep.mubr.msk.f32.mxu0 %vm175_vm0, %v820_v32 }
 0x1d4   : > { %6061 = vmatmul.mubr.msk.f32.vlgmr.msra.gmra.mxu0 %vm175_vm0, %v822_v45 }
 0x1d5   : > { %6070 = vmatprep.mubr.msk.f32.mxu0 %vm175_vm0, %v1034_v59  ;;  %6069 = vmatpush3.msra.mxu0 %v6381_v7 }
 0x1d6   : > { %v1141_v25 = vpop.permute.xlu0 %1140  ;;  %6078 = vmatprep.subr.mxu0 %v6381_v7 }
 0x1d7   : > { %v6727_v4 = vpop.permute.xlu1 %3389  ;;  %6075 = vmatprep.mubr.msk.f32.mxu1 %vm175_vm0, %v1141_v25 }
 0x1d8   : > { %6071 = vmatmul.mubr.msk.f32.vlgmr.msra.gmra.mxu0 %vm175_vm0, %v6625_v47  ;;  %6076 = vmatmul.mubr.msk.f32.vlgmr.msra.gmra.mxu1 %vm175_vm0, %v1143_v56 }
 0x1d9   : > { %6080 = vmatprep.mubr.msk.f32.mxu0 %vm175_vm0, %v6555_v29  ;;  %6085 = vmatprep.mubr.msk.f32.mxu1 %vm175_vm0, %v1355_v63 }
 0x1da   : > { %v1462_v32 = vpop.permute.xlu0 %1461  ;;  %6079 = vmatpush3.msra.mxu0 %v6381_v7  ;;  %6084 = vmatpush3.msra.mxu1 %v6381_v7 }
 0x1db   : > { %6088 = vmatprep.subr.mxu0 %v6381_v7  ;;  %6093 = vmatprep.subr.mxu1 %v6381_v7  ;;  %v6740_v59 = vpop.permute.xlu1 %4031 }
 0x1dc   : > { %6081 = vmatmul.mubr.msk.f32.vlgmr.msra.gmra.mxu0 %vm175_vm0, %v6515_v19  ;;  %6086 = vmatmul.mubr.msk.f32.vlgmr.msra.gmra.mxu1 %vm175_vm0, %v6629_v49  ;;  %v8123_v49 = vld [vmem:[#allocation3_spill] sm:$0xff] }
 0x1dd   : > { %6090 = vmatprep.mubr.msk.f32.mxu0 %vm175_vm0, %v1462_v32  ;;  %6095 = vmatprep.mubr.msk.f32.mxu1 %vm175_vm0, %v6563_v31 }
 0x1de   : > { %6089 = vmatpush3.msra.mxu0 %v6381_v7  ;;  %6094 = vmatpush3.msra.mxu1 %v6381_v7  ;;  %v1783_v29 = vpop.permute.xlu0 %1782 }
 0x1df   : > { %6098 = vmatprep.subr.mxu0 %v6381_v7  ;;  %6103 = vmatprep.subr.mxu1 %v6381_v7  ;;  %v6758_v19 = vpop.permute.xlu1 %4673 }
 0x1e0   : > { %6091 = vmatmul.mubr.msk.f32.vlgmr.msra.gmra.mxu0 %vm175_vm0, %v1464_v60  ;;  %6096 = vmatmul.mubr.msk.f32.vlgmr.msra.gmra.mxu1 %vm175_vm0, %v6523_v21 }
 0x1e1   : > { %6100 = vmatprep.mubr.msk.f32.mxu0 %vm175_vm0, %v1676_v3  ;;  %6105 = vmatprep.mubr.msk.f32.mxu1 %vm175_vm0, %v1783_v29 }
 0x1e2   : > { %6099 = vmatpush3.msra.mxu0 %v6381_v7  ;;  %6104 = vmatpush3.msra.mxu1 %v6381_v7  ;;  %v2104_v21 = vpop.permute.xlu0 %2103 }
 0x1e3   : > { %6108 = vmatprep.subr.mxu0 %v6381_v7  ;;  %6113 = vmatprep.subr.mxu1 %v6381_v7  ;;  %v6775_v31 = vpop.permute.xlu1 %5315 }
 0x1e4   : > { %6101 = vmatmul.mubr.msk.f32.vlgmr.msra.gmra.mxu0 %vm175_vm0, %v6633_v51  ;;  %6106 = vmatmul.mubr.msk.f32.vlgmr.msra.gmra.mxu1 %vm175_vm0, %v1785_v0  ;;  %v8125_v51 = vld [vmem:[#allocation2_spill] sm:$0xff] }
 0x1e5   : > { %6110 = vmatprep.mubr.msk.f32.mxu0 %vm175_vm0, %v6571_v33  ;;  %6115 = vmatprep.mubr.msk.f32.mxu1 %vm175_vm0, %v6684_v5 }
 0x1e6   : > { %6109 = vmatpush3.msra.mxu0 %v6381_v7  ;;  %6114 = vmatpush3.msra.mxu1 %v6381_v7  ;;  %v2425_v33 = vpop.permute.xlu0 %2424 }
 0x1e7   : > { %6118 = vmatprep.subr.mxu0 %v6381_v7  ;;  %6123 = vmatprep.subr.mxu1 %v6381_v7 }
 0x1e8   : > { %6111 = vmatmul.mubr.msk.f32.vlgmr.msra.gmra.mxu0 %vm175_vm0, %v6531_v23  ;;  %6116 = vmatmul.mubr.msk.f32.vlgmr.msra.gmra.mxu1 %vm175_vm0, %v6638_v53  ;;  %v2746_v23 = vpop.permute.xlu1 %2745 }
 0x1e9   : > { %6120 = vmatprep.mubr.msk.f32.mxu0 %vm175_vm0, %v2104_v21  ;;  %6125 = vmatprep.mubr.msk.f32.mxu1 %vm175_vm0, %v6579_v35 }
 0x1ea   : > { %6119 = vmatpush3.msra.mxu0 %v6381_v7  ;;  %6124 = vmatpush3.msra.mxu1 %v6381_v7  ;;  %v3067_v35 = vpop.permute.xlu0 %3066 }
 0x1eb   : > { %6128 = vmatprep.subr.mxu0 %v6381_v7  ;;  %6133 = vmatprep.subr.mxu1 %v6381_v7 }
 0x1ec   : > { %6121 = vmatmul.mubr.msk.f32.vlgmr.msra.gmra.mxu0 %vm175_vm0, %v2106_v52  ;;  %6126 = vmatmul.mubr.msk.f32.vlgmr.msra.gmra.mxu1 %vm175_vm0, %v6499_v14  ;;  %v3388_v14 = vpop.permute.xlu1 %3387  ;;  %v8126_v52 = vld [vmem:[#allocation4_spill] sm:$0xff] }
 0x1ed   : > { %6130 = vmatprep.mubr.msk.f32.mxu0 %vm175_vm0, %v6688_v6  ;;  %6135 = vmatprep.mubr.msk.f32.mxu1 %vm175_vm0, %v2425_v33 }
 0x1ee   : > { %6129 = vmatpush3.msra.mxu0 %v6381_v7  ;;  %6134 = vmatpush3.msra.mxu1 %v6381_v7 }
 0x1ef   : > { %6138 = vmatprep.subr.mxu0 %v6381_v7  ;;  %6143 = vmatprep.subr.mxu1 %v6381_v7 }
 0x1f0   : > { %6131 = vmatmul.mubr.msk.f32.vlgmr.msra.gmra.mxu0 %vm175_vm0, %v6645_v54  ;;  %6136 = vmatmul.mubr.msk.f32.vlgmr.msra.gmra.mxu1 %vm175_vm0, %v6710_v27 }
 0x1f1   : > { %6140 = vmatprep.mubr.msk.f32.mxu0 %vm175_vm0, %v6577_v34  ;;  %6145 = vmatprep.mubr.msk.f32.mxu1 %vm175_vm0, %v6690_v8  ;;  %v3709_v34 = vpop.permute.xlu0 %3708 }
 0x1f2   : > { %6139 = vmatpush3.msra.mxu0 %v6381_v7  ;;  %6144 = vmatpush3.msra.mxu1 %v6381_v7 }
 0x1f3   : > { %6148 = vmatprep.subr.mxu0 %v6381_v7  ;;  %6153 = vmatprep.subr.mxu1 %v6381_v7 }
 0x1f4   : > { %6141 = vmatmul.mubr.msk.f32.vlgmr.msra.gmra.mxu0 %vm175_vm0, %v6537_v24  ;;  %6146 = vmatmul.mubr.msk.f32.vlgmr.msra.gmra.mxu1 %vm175_vm0, %v6617_v44  ;;  %v4030_v24 = vpop.permute.xlu1 %4029 }
 0x1f5   : > { %6150 = vmatprep.mubr.msk.f32.mxu0 %vm175_vm0, %v2746_v23  ;;  %6155 = vmatprep.mubr.msk.f32.mxu1 %vm175_vm0, %v6587_v37  ;;  %v4351_v37 = vpop.permute.xlu0 %4350 }
 0x1f6   : > { %6149 = vmatpush3.msra.mxu0 %v6381_v7  ;;  %6154 = vmatpush3.msra.mxu1 %v6381_v7 }
 0x1f7   : > { %6158 = vmatprep.subr.mxu0 %v6381_v7  ;;  %6163 = vmatprep.subr.mxu1 %v6381_v7 }
 0x1f8   : > { %6151 = vmatmul.mubr.msk.f32.vlgmr.msra.gmra.mxu0 %vm175_vm0, %v6720_v42  ;;  %6156 = vmatmul.mubr.msk.f32.vlgmr.msra.gmra.mxu1 %vm175_vm0, %v6505_v16  ;;  %v6844_v16 = vpop.permute.xlu1 %4671 }
 0x1f9   : > { %6160 = vmatprep.mubr.msk.f32.mxu0 %vm175_vm0, %v6694_v9  ;;  %6165 = vmatprep.mubr.msk.f32.mxu1 %vm175_vm0, %v3067_v35 }
 0x1fa   : > { %6159 = vmatpush3.msra.mxu0 %v6381_v7  ;;  %6164 = vmatpush3.msra.mxu1 %v6381_v7 }
 0x1fb   : > { %6168 = vmatprep.subr.mxu0 %v6381_v7  ;;  %6173 = vmatprep.subr.mxu1 %v6381_v7 }
 0x1fc   : > { %6161 = vmatmul.mubr.msk.f32.vlgmr.msra.gmra.mxu0 %vm175_vm0, %v6656_v58  ;;  %6166 = vmatmul.mubr.msk.f32.vlgmr.msra.gmra.mxu1 %vm175_vm0, %v6712_v55 }
 0x1fd   : > { %6170 = vmatprep.mubr.msk.f32.mxu0 %vm175_vm0, %v6585_v36  ;;  %6175 = vmatprep.mubr.msk.f32.mxu1 %vm175_vm0, %v6696_v10  ;;  %v6866_v36 = vpop.permute.xlu0 %4992 }
 0x1fe   : > { %6169 = vmatpush3.msra.mxu0 %v6381_v7  ;;  %6174 = vmatpush3.msra.mxu1 %v6381_v7 }
 0x1ff   : > { %6178 = vmatprep.subr.mxu0 %v6381_v7  ;;  %6183 = vmatprep.subr.mxu1 %v6381_v7 }
 0x200   : > { %6171 = vmatmul.mubr.msk.f32.vlgmr.msra.gmra.mxu0 %vm175_vm0, %v6546_v26  ;;  %6176 = vmatmul.mubr.msk.f32.vlgmr.msra.gmra.mxu1 %vm175_vm0, %v6623_v46  ;;  %v6864_v26 = vpop.permute.xlu1 %5313 }
 0x201   : > { %6180 = vmatprep.mubr.msk.f32.mxu0 %vm175_vm0, %v3388_v14  ;;  %6185 = vmatprep.mubr.msk.f32.mxu1 %vm175_vm0, %v6595_v39 }
 0x202   : > { %6179 = vmatpush3.msra.mxu0 %v6381_v7  ;;  %6184 = vmatpush3.msra.mxu1 %v6381_v7 }
 0x203   : > { %6188 = vmatprep.subr.mxu0 %v6381_v7  ;;  %6193 = vmatprep.subr.mxu1 %v6381_v7 }
 0x204   : > { %6181 = vmatmul.mubr.msk.f32.vlgmr.msra.gmra.mxu0 %vm175_vm0, %v6727_v4  ;;  %6186 = vmatmul.mubr.msk.f32.vlgmr.msra.gmra.mxu1 %vm175_vm0, %v6513_v18 }
 0x205   : > { %6190 = vmatprep.mubr.msk.f32.mxu0 %vm175_vm0, %v6698_v11  ;;  %6195 = vmatprep.mubr.msk.f32.mxu1 %vm175_vm0, %v3709_v34 }
 0x206   : > { %6189 = vmatpush3.msra.mxu0 %v6381_v7  ;;  %6194 = vmatpush3.msra.mxu1 %v6381_v7 }
 0x207   : > { %6198 = vmatprep.subr.mxu0 %v6381_v7  ;;  %6203 = vmatprep.subr.mxu1 %v6381_v7 }
 0x208   : > { %6191 = vmatmul.mubr.msk.f32.vlgmr.msra.gmra.mxu0 %vm175_vm0, %v6666_v62  ;;  %6196 = vmatmul.mubr.msk.f32.vlgmr.msra.gmra.mxu1 %vm175_vm0, %v6714_v57 }
 0x209   : > { %6200 = vmatprep.mubr.msk.f32.mxu0 %vm175_vm0, %v6593_v38  ;;  %6205 = vmatprep.mubr.msk.f32.mxu1 %vm175_vm0, %v6700_v12 }
 0x20a   : > { %v388_v18 = vpop.permute.xlu1 %387  ;;  %v379_v39 = vpop.permute.xlu0 %378  ;;  %6199 = vmatpush3.msra.mxu0 %v6381_v7  ;;  %6204 = vmatpush3.msra.mxu1 %v6381_v7 }
 0x20b   : > { %5492 = vst.msk [vmem:[%s6643_s25 + $0x28] sm:$0xff] %vm371_vm1, %v388_v18  ;;  %5490 = vst.msk [vmem:[%s6643_s25 + $0x18] sm:$0xff] %vm371_vm1, %v379_v39  ;;  %6208 = vmatprep.subr.mxu0 %v6381_v7  ;;  %6213 = vmatprep.subr.mxu1 %v6381_v7 }
 0x20c   : > { %6201 = vmatmul.mubr.msk.f32.vlgmr.msra.gmra.mxu0 %vm175_vm0, %v6553_v28  ;;  %6206 = vmatmul.mubr.msk.f32.vlgmr.msra.gmra.mxu1 %vm175_vm0, %v6627_v48  ;;  %v8122_v48 = vld [vmem:[#allocation5_spill] sm:$0xff] }
 0x20d   : > { %6210 = vmatprep.mubr.msk.f32.mxu0 %vm175_vm0, %v4030_v24  ;;  %6215 = vmatprep.mubr.msk.f32.mxu1 %vm175_vm0, %v6603_v41 }
 0x20e   : > { %v386_v38 = vpop.permute.xlu1 %385  ;;  %v377_v42 = vpop.permute.xlu0 %376  ;;  %6209 = vmatpush3.msra.mxu0 %v6381_v7  ;;  %6214 = vmatpush3.msra.mxu1 %v6381_v7 }
 0x20f   : > { %5491 = vst.msk [vmem:[%s6643_s25 + $0x20] sm:$0xff] %vm371_vm1, %v386_v38  ;;  %5489 = vst.msk [vmem:[%s6643_s25 + $0x10] sm:$0xff] %vm371_vm1, %v377_v42  ;;  %6218 = vmatprep.subr.mxu0 %v6381_v7  ;;  %6223 = vmatprep.subr.mxu1 %v6381_v7 }
 0x210   : > { %6211 = vmatmul.mubr.msk.f32.vlgmr.msra.gmra.mxu0 %vm175_vm0, %v6740_v59  ;;  %6216 = vmatmul.mubr.msk.f32.vlgmr.msra.gmra.mxu1 %vm175_vm0, %v6521_v20 }
 0x211   : > { %6220 = vmatprep.mubr.msk.f32.mxu0 %vm175_vm0, %v6702_v13  ;;  %6225 = vmatprep.mubr.msk.f32.mxu1 %vm175_vm0, %v4351_v37 }
 0x212   : > { %6219 = vmatpush3.msra.mxu0 %v6381_v7  ;;  %6224 = vmatpush3.msra.mxu1 %v6381_v7  ;;  %v484_v28 = vpop.permute.xlu1 %483  ;;  %v482_v41 = vpop.permute.xlu0 %481 }
 0x213   : > { %6228 = vmatprep.subr.mxu0 %v6381_v7  ;;  %6233 = vmatprep.subr.mxu1 %v6381_v7  ;;  %5498 = vst.msk [vmem:[%s6643_s25 + $0x48] sm:$0xff] %vm371_vm1, %v484_v28  ;;  %5497 = vst.msk [vmem:[%s6643_s25 + $0x40] sm:$0xff] %vm371_vm1, %v482_v41 }
 0x214   : > { %6221 = vmatmul.mubr.msk.f32.vlgmr.msra.gmra.mxu0 %vm175_vm0, %v6676_v2  ;;  %6226 = vmatmul.mubr.msk.f32.vlgmr.msra.gmra.mxu1 %vm175_vm0, %v6716_v61 }
 0x215   : > { %6230 = vmatprep.mubr.msk.f32.mxu0 %vm175_vm0, %v6601_v40  ;;  %6235 = vmatprep.mubr.msk.f32.mxu1 %vm175_vm0, %v6704_v15 }
 0x216   : > { %6229 = vmatpush3.msra.mxu0 %v6381_v7  ;;  %6234 = vmatpush3.msra.mxu1 %v6381_v7  ;;  %v493_v20 = vpop.permute.xlu1 %492  ;;  %v491_v44 = vpop.permute.xlu0 %490 }
 0x217   : > { %6238 = vmatprep.subr.mxu0 %v6381_v7  ;;  %6243 = vmatprep.subr.mxu1 %v6381_v7  ;;  %5500 = vst.msk [vmem:[%s6643_s25 + $0x58] sm:$0xff] %vm371_vm1, %v493_v20  ;;  %5499 = vst.msk [vmem:[%s6643_s25 + $0x50] sm:$0xff] %vm371_vm1, %v491_v44 }
 0x218   : > { %6231 = vmatmul.mubr.msk.f32.vlgmr.msra.gmra.mxu0 %vm175_vm0, %v6561_v30  ;;  %6236 = vmatmul.mubr.msk.f32.vlgmr.msra.gmra.mxu1 %vm175_vm0, %v6631_v50  ;;  %v8124_v50 = vld [vmem:[#allocation6_spill] sm:$0xff] }
 0x219   : > { %6240 = vmatprep.mubr.msk.f32.mxu0 %vm175_vm0, %v6844_v16  ;;  %6245 = vmatprep.mubr.msk.f32.mxu1 %vm175_vm0, %v6611_v43 }
 0x21a   : > { %6239 = vmatpush3.msra.mxu0 %v6381_v7  ;;  %6244 = vmatpush3.msra.mxu1 %v6381_v7  ;;  %v589_v40 = vpop.permute.xlu1 %588  ;;  %v587_v46 = vpop.permute.xlu0 %586 }
 0x21b   : > { %6248 = vmatprep.subr.mxu0 %v6381_v7  ;;  %6253 = vmatprep.subr.mxu1 %v6381_v7  ;;  %5506 = vst.msk [vmem:[%s6643_s25 + $0x78] sm:$0xff] %vm371_vm1, %v589_v40  ;;  %5505 = vst.msk [vmem:[%s6643_s25 + $0x70] sm:$0xff] %vm371_vm1, %v587_v46 }
 0x21c   : > { %v6052_v30 = vpop.f32.mrf.mxu0  ;;  %6241 = vmatmul.mubr.msk.f32.vlgmr.msra.gmra.mxu0 %vm175_vm0, %v6758_v19  ;;  %6246 = vmatmul.mubr.msk.f32.vlgmr.msra.gmra.mxu1 %vm175_vm0, %v6529_v22 }
 0x21d   : > { %5512 = vst.msk [vmem:[%s6643_s25 + $0x98] sm:$0xff] %vm371_vm1, %v6052_v30  ;;  %6250 = vmatprep.mubr.msk.f32.mxu0 %vm175_vm0, %v6706_v17  ;;  %6255 = vmatprep.mubr.msk.f32.mxu1 %vm175_vm0, %v6866_v36 }
 0x21e   : > { %695 = vrot.lane.b32.xlu1 %v6052_v30, %s6308_s8  ;;  %v679_v43 = vpop.f32.mrf.mxu0  ;;  %6249 = vmatpush3.msra.mxu0 %v6381_v7  ;;  %v598_v47 = vpop.permute.xlu1 %597 }
 0x21f   : > { %5511 = vst.msk [vmem:[%s6643_s25 + $0x90] sm:$0xff] %vm371_vm1, %v679_v43  ;;  %6254 = vmatpush3.msra.mxu1 %v6381_v7  ;;  %693 = vrot.lane.b32.xlu0 %v679_v43, %s6308_s8  ;;  %5508 = vst.msk [vmem:[%s6643_s25 + $0x88] sm:$0xff] %vm371_vm1, %v598_v47  ;;  %v596_v22 = vpop.permute.xlu0 %595 }
 0x220   : > { %6251 = vmatmul.mubr.msk.f32.vlgmr.msra.gmra.mxu0 %vm175_vm0, %v8122_v48  ;;  %6256 = vmatmul.mubr.msk.f32.vlgmr.msra.gmra.mxu1 %vm175_vm0, %v6718_v1  ;;  %5507 = vst.msk [vmem:[%s6643_s25 + $0x80] sm:$0xff] %vm371_vm1, %v596_v22 }
 0x221   : > { %6260 = vmatprep.mubr.msk.f32.mxu0 %vm175_vm0, %v8123_v49  ;;  %6265 = vmatprep.mubr.msk.f32.mxu1 %vm175_vm0, %v8124_v50 }
 0x222   : > { %704 = vrot.lane.b32.xlu1 %v6052_v30, %s6312_s14  ;;  %6258 = vmatprep.subr.mxu0 %v6381_v7 }
 0x223   : > { %6263 = vmatprep.subr.mxu1 %v6381_v7  ;;  %6259 = vmatpush3.msra.mxu0 %v6381_v7 }
 0x224   : > { %6264 = vmatpush3.msra.mxu1 %v6381_v7  ;;  %702 = vrot.lane.b32.xlu0 %v679_v43, %s6312_s14 }
 0x225   : > { %6261 = vmatmul.mubr.msk.f32.vlgmr.msra.gmra.mxu0 %vm175_vm0, %v8125_v51  ;;  %6266 = vmatmul.mubr.msk.f32.vlgmr.msra.gmra.mxu1 %vm175_vm0, %v8126_v52 }
 0x226   : > { %6270 = vmatprep.mubr.msk.f32.mxu0 %vm175_vm0, %v6864_v26  ;;  %6268 = vmatprep.subr.mxu0 %v6381_v7 }
 0x227   : > { %6269 = vmatpush3.msra.mxu0 %v6381_v7 }
 0x229   : > { %6271 = vmatmul.mubr.msk.f32.vlgmr.msra.gmra.mxu0 %vm175_vm0, %v6775_v31 }
 0x259   : > { %v6057_v53 = vpop.f32.mrf.mxu1 }
 0x25a   : > { %5520 = vst.msk [vmem:[%s6643_s25 + $0xc8] sm:$0xff] %vm371_vm1, %v6057_v53  ;;  %802 = vrot.lane.b32.xlu1 %v6057_v53, %s6308_s8 }
 0x25b   : > { %v786_v54 = vpop.f32.mrf.mxu1 }
 0x25c   : > { %5519 = vst.msk [vmem:[%s6643_s25 + $0xc0] sm:$0xff] %vm371_vm1, %v786_v54  ;;  %800 = vrot.lane.b32.xlu0 %v786_v54, %s6308_s8 }
 0x25d   : > { %v6067_v58 = vpop.f32.mrf.mxu1 }
 0x25e   : > { %5536 = vst.msk [vmem:[%s6643_s25 + $0x128] sm:$0xff] %vm371_vm1, %v6067_v58  ;;  %811 = vrot.lane.b32.xlu1 %v6057_v53, %s6312_s14 }
 0x25f   : > { %v1000_v7 = vpop.f32.mrf.mxu1 }
 0x260   : > { %5535 = vst.msk [vmem:[%s6643_s25 + $0x120] sm:$0xff] %vm371_vm1, %v1000_v7  ;;  %809 = vrot.lane.b32.xlu0 %v786_v54, %s6312_s14 }
 0x290   : > { %v696_v62 = vpop.permute.xlu1 %695 }
 0x291   : > { %5514 = vst.msk [vmem:[%s6643_s25 + $0xa8] sm:$0xff] %vm371_vm1, %v696_v62  ;;  %v694_v63 = vpop.permute.xlu0 %693 }
 0x292   : > { %5513 = vst.msk [vmem:[%s6643_s25 + $0xa0] sm:$0xff] %vm371_vm1, %v694_v63 }
 0x294   : > { %v705_v2 = vpop.permute.xlu1 %704  ;;  %v6062_v3 = vpop.f32.mrf.mxu0 }
 0x295   : > { %5516 = vst.msk [vmem:[%s6643_s25 + $0xb8] sm:$0xff] %vm371_vm1, %v705_v2  ;;  %5528 = vst.msk [vmem:[%s6643_s25 + $0xf8] sm:$0xff] %vm371_vm1, %v6062_v3  ;;  %909 = vrot.lane.b32.xlu1 %v6062_v3, %s6308_s8 }
 0x296   : > { %v703_v4 = vpop.permute.xlu0 %702  ;;  %v893_v5 = vpop.f32.mrf.mxu0 }
 0x297   : > { %5515 = vst.msk [vmem:[%s6643_s25 + $0xb0] sm:$0xff] %vm371_vm1, %v703_v4  ;;  %5527 = vst.msk [vmem:[%s6643_s25 + $0xf0] sm:$0xff] %vm371_vm1, %v893_v5  ;;  %907 = vrot.lane.b32.xlu0 %v893_v5, %s6308_s8 }
 0x298   : > { %v6072_v6 = vpop.f32.mrf.mxu0  ;;  %v7020_v8 = vpop.f32.mrf.mxu1 }
 0x299   : > { %5544 = vst.msk [vmem:[%s6643_s25 + $0x158] sm:$0xff] %vm371_vm1, %v6072_v6  ;;  %5552 = vst.msk [vmem:[%s6643_s25 + $0x188] sm:$0xff] %vm371_vm1, %v7020_v8  ;;  %918 = vrot.lane.b32.xlu1 %v6062_v3, %s6312_s14 }
 0x29a   : > { %v1107_v9 = vpop.f32.mrf.mxu0  ;;  %v7028_v10 = vpop.f32.mrf.mxu1 }
 0x29b   : > { %5543 = vst.msk [vmem:[%s6643_s25 + $0x150] sm:$0xff] %vm371_vm1, %v1107_v9  ;;  %5551 = vst.msk [vmem:[%s6643_s25 + $0x180] sm:$0xff] %vm371_vm1, %v7028_v10  ;;  %916 = vrot.lane.b32.xlu0 %v893_v5, %s6312_s14 }
 0x29c   : > { %v7036_v11 = vpop.f32.mrf.mxu0  ;;  %v7038_v12 = vpop.f32.mrf.mxu1 }
 0x29d   : > { %5560 = vst.msk [vmem:[%s6643_s25 + $0x1b8] sm:$0xff] %vm371_vm1, %v7036_v11  ;;  %5568 = vst.msk [vmem:[%s6643_s25 + $0x1e8] sm:$0xff] %vm371_vm1, %v7038_v12  ;;  %1016 = vrot.lane.b32.xlu1 %v6067_v58, %s6308_s8 }
 0x29e   : > { %v7047_v13 = vpop.f32.mrf.mxu0  ;;  %v7049_v15 = vpop.f32.mrf.mxu1 }
 0x29f   : > { %5559 = vst.msk [vmem:[%s6643_s25 + $0x1b0] sm:$0xff] %vm371_vm1, %v7047_v13  ;;  %5567 = vst.msk [vmem:[%s6643_s25 + $0x1e0] sm:$0xff] %vm371_vm1, %v7049_v15  ;;  %1014 = vrot.lane.b32.xlu0 %v1000_v7, %s6308_s8 }
 0x2a0   : > { %v7058_v17 = vpop.f32.mrf.mxu0  ;;  %v7060_v25 = vpop.f32.mrf.mxu1 }
 0x2a1   : > { %5576 = vst.msk [vmem:[%s6643_s25 + $0x218] sm:$0xff] %vm371_vm1, %v7058_v17  ;;  %5584 = vst.msk [vmem:[%s6643_s25 + $0x248] sm:$0xff] %vm371_vm1, %v7060_v25  ;;  %1025 = vrot.lane.b32.xlu1 %v6067_v58, %s6312_s14 }
 0x2a2   : > { %v7069_v27 = vpop.f32.mrf.mxu0  ;;  %v7071_v45 = vpop.f32.mrf.mxu1 }
 0x2a3   : > { %5575 = vst.msk [vmem:[%s6643_s25 + $0x210] sm:$0xff] %vm371_vm1, %v7069_v27  ;;  %5583 = vst.msk [vmem:[%s6643_s25 + $0x240] sm:$0xff] %vm371_vm1, %v7071_v45  ;;  %1023 = vrot.lane.b32.xlu0 %v1000_v7, %s6312_s14 }
 0x2a4   : > { %v7080_v55 = vpop.f32.mrf.mxu0  ;;  %v7082_v56 = vpop.f32.mrf.mxu1 }
 0x2a5   : > { %5592 = vst.msk [vmem:[%s6643_s25 + $0x278] sm:$0xff] %vm371_vm1, %v7080_v55  ;;  %5600 = vst.msk [vmem:[%s6643_s25 + $0x2a8] sm:$0xff] %vm371_vm1, %v7082_v56  ;;  %1123 = vrot.lane.b32.xlu1 %v6072_v6, %s6308_s8 }
 0x2a6   : > { %v7091_v57 = vpop.f32.mrf.mxu0  ;;  %v7093_v60 = vpop.f32.mrf.mxu1 }
 0x2a7   : > { %5591 = vst.msk [vmem:[%s6643_s25 + $0x270] sm:$0xff] %vm371_vm1, %v7091_v57  ;;  %5599 = vst.msk [vmem:[%s6643_s25 + $0x2a0] sm:$0xff] %vm371_vm1, %v7093_v60  ;;  %1121 = vrot.lane.b32.xlu0 %v1107_v9, %s6308_s8 }
 0x2a8   : > { %v7102_v61 = vpop.f32.mrf.mxu0  ;;  %v7104_v0 = vpop.f32.mrf.mxu1 }
 0x2a9   : > { %5608 = vst.msk [vmem:[%s6643_s25 + $0x2d8] sm:$0xff] %vm371_vm1, %v7102_v61  ;;  %5616 = vst.msk [vmem:[%s6643_s25 + $0x308] sm:$0xff] %vm371_vm1, %v7104_v0  ;;  %1132 = vrot.lane.b32.xlu1 %v6072_v6, %s6312_s14 }
 0x2aa   : > { %v7113_v1 = vpop.f32.mrf.mxu0  ;;  %v7115_v32 = vpop.f32.mrf.mxu1 }
 0x2ab   : > { %5607 = vst.msk [vmem:[%s6643_s25 + $0x2d0] sm:$0xff] %vm371_vm1, %v7113_v1  ;;  %5615 = vst.msk [vmem:[%s6643_s25 + $0x300] sm:$0xff] %vm371_vm1, %v7115_v32  ;;  %1130 = vrot.lane.b32.xlu0 %v1107_v9, %s6312_s14 }
 0x2ac   : > { %v7124_v59 = vpop.f32.mrf.mxu0  ;;  %v7126_v29 = vpop.f32.mrf.mxu1 }
 0x2ad   : > { %5624 = vst.msk [vmem:[%s6643_s25 + $0x338] sm:$0xff] %vm371_vm1, %v7124_v59  ;;  %5632 = vst.msk [vmem:[%s6643_s25 + $0x368] sm:$0xff] %vm371_vm1, %v7126_v29  ;;  %1230 = vrot.lane.b32.xlu1 %v7020_v8, %s6308_s8 }
 0x2ae   : > { %v7136_v19 = vpop.f32.mrf.mxu0  ;;  %v7138_v21 = vpop.f32.mrf.mxu1 }
 0x2af   : > { %5623 = vst.msk [vmem:[%s6643_s25 + $0x330] sm:$0xff] %vm371_vm1, %v7136_v19  ;;  %5631 = vst.msk [vmem:[%s6643_s25 + $0x360] sm:$0xff] %vm371_vm1, %v7138_v21  ;;  %1228 = vrot.lane.b32.xlu0 %v7028_v10, %s6308_s8 }
 0x2b0   : > { %v7148_v31 = vpop.f32.mrf.mxu0  ;;  %v7150_v33 = vpop.f32.mrf.mxu1 }
 0x2b1   : > { %5640 = vst.msk [vmem:[%s6643_s25 + $0x398] sm:$0xff] %vm371_vm1, %v7148_v31  ;;  %5648 = vst.msk [vmem:[%s6643_s25 + $0x3c8] sm:$0xff] %vm371_vm1, %v7150_v33  ;;  %1239 = vrot.lane.b32.xlu1 %v7020_v8, %s6312_s14 }
 0x2b2   : > { %v7160_v23 = vpop.f32.mrf.mxu0  ;;  %v7162_v14 = vpop.f32.mrf.mxu1 }
 0x2b3   : > { %5639 = vst.msk [vmem:[%s6643_s25 + $0x390] sm:$0xff] %vm371_vm1, %v7160_v23  ;;  %5647 = vst.msk [vmem:[%s6643_s25 + $0x3c0] sm:$0xff] %vm371_vm1, %v7162_v14  ;;  %1237 = vrot.lane.b32.xlu0 %v7028_v10, %s6312_s14 }
 0x2b4   : > { %v7172_v35 = vpop.f32.mrf.mxu0  ;;  %v7174_v24 = vpop.f32.mrf.mxu1 }
 0x2b5   : > { %5656 = vst.msk [vmem:[%s6643_s25 + $0x3f8] sm:$0xff] %vm371_vm1, %v7172_v35  ;;  %5664 = vst.msk [vmem:[%s6643_s25 + $0x428] sm:$0xff] %vm371_vm1, %v7174_v24  ;;  %1337 = vrot.lane.b32.xlu1 %v7036_v11, %s6308_s8 }
 0x2b6   : > { %v7184_v34 = vpop.f32.mrf.mxu0  ;;  %v7186_v16 = vpop.f32.mrf.mxu1 }
 0x2b7   : > { %5655 = vst.msk [vmem:[%s6643_s25 + $0x3f0] sm:$0xff] %vm371_vm1, %v7184_v34  ;;  %5663 = vst.msk [vmem:[%s6643_s25 + $0x420] sm:$0xff] %vm371_vm1, %v7186_v16  ;;  %1335 = vrot.lane.b32.xlu0 %v7047_v13, %s6308_s8 }
 0x2b8   : > { %v7196_v37 = vpop.f32.mrf.mxu0  ;;  %v7198_v26 = vpop.f32.mrf.mxu1 }
 0x2b9   : > { %5672 = vst.msk [vmem:[%s6643_s25 + $0x458] sm:$0xff] %vm371_vm1, %v7196_v37  ;;  %5680 = vst.msk [vmem:[%s6643_s25 + $0x488] sm:$0xff] %vm371_vm1, %v7198_v26  ;;  %1346 = vrot.lane.b32.xlu1 %v7036_v11, %s6312_s14 }
 0x2ba   : > { %v7208_v36 = vpop.f32.mrf.mxu0  ;;  %v7210_v18 = vpop.f32.mrf.mxu1 }
 0x2bb   : > { %5671 = vst.msk [vmem:[%s6643_s25 + $0x450] sm:$0xff] %vm371_vm1, %v7208_v36  ;;  %5679 = vst.msk [vmem:[%s6643_s25 + $0x480] sm:$0xff] %vm371_vm1, %v7210_v18  ;;  %1344 = vrot.lane.b32.xlu0 %v7047_v13, %s6312_s14 }
 0x2bc   : > { %v7220_v39 = vpop.f32.mrf.mxu0  ;;  %v7222_v38 = vpop.f32.mrf.mxu1 }
 0x2bd   : > { %5688 = vst.msk [vmem:[%s6643_s25 + $0x4b8] sm:$0xff] %vm371_vm1, %v7220_v39  ;;  %5696 = vst.msk [vmem:[%s6643_s25 + $0x4e8] sm:$0xff] %vm371_vm1, %v7222_v38  ;;  %1444 = vrot.lane.b32.xlu1 %v7038_v12, %s6308_s8 }
 0x2be   : > { %v7232_v42 = vpop.f32.mrf.mxu0  ;;  %v7234_v28 = vpop.f32.mrf.mxu1 }
 0x2bf   : > { %5687 = vst.msk [vmem:[%s6643_s25 + $0x4b0] sm:$0xff] %vm371_vm1, %v7232_v42  ;;  %5695 = vst.msk [vmem:[%s6643_s25 + $0x4e0] sm:$0xff] %vm371_vm1, %v7234_v28  ;;  %1442 = vrot.lane.b32.xlu0 %v7049_v15, %s6308_s8 }
 0x2c0   : > { %v7244_v41 = vpop.f32.mrf.mxu0  ;;  %v7246_v20 = vpop.f32.mrf.mxu1 }
 0x2c1   : > { %5704 = vst.msk [vmem:[%s6643_s25 + $0x518] sm:$0xff] %vm371_vm1, %v7244_v41  ;;  %5712 = vst.msk [vmem:[%s6643_s25 + $0x548] sm:$0xff] %vm371_vm1, %v7246_v20  ;;  %1453 = vrot.lane.b32.xlu1 %v7038_v12, %s6312_s14 }
 0x2c2   : > { %v7256_v44 = vpop.f32.mrf.mxu0  ;;  %v7258_v40 = vpop.f32.mrf.mxu1 }
 0x2c3   : > { %5703 = vst.msk [vmem:[%s6643_s25 + $0x510] sm:$0xff] %vm371_vm1, %v7256_v44  ;;  %5711 = vst.msk [vmem:[%s6643_s25 + $0x540] sm:$0xff] %vm371_vm1, %v7258_v40  ;;  %1451 = vrot.lane.b32.xlu0 %v7049_v15, %s6312_s14 }
 0x2c4   : > { %v7268_v46 = vpop.f32.mrf.mxu0  ;;  %v7270_v30 = vpop.f32.mrf.mxu1 }
 0x2c5   : > { %5720 = vst.msk [vmem:[%s6643_s25 + $0x578] sm:$0xff] %vm371_vm1, %v7268_v46  ;;  %5728 = vst.msk [vmem:[%s6643_s25 + $0x5a8] sm:$0xff] %vm371_vm1, %v7270_v30  ;;  %1551 = vrot.lane.b32.xlu1 %v7058_v17, %s6308_s8 }
 0x2c6   : > { %v7280_v43 = vpop.f32.mrf.mxu0  ;;  %v7282_v47 = vpop.f32.mrf.mxu1 }
 0x2c7   : > { %5719 = vst.msk [vmem:[%s6643_s25 + $0x570] sm:$0xff] %vm371_vm1, %v7280_v43  ;;  %5727 = vst.msk [vmem:[%s6643_s25 + $0x5a0] sm:$0xff] %vm371_vm1, %v7282_v47  ;;  %1549 = vrot.lane.b32.xlu0 %v7069_v27, %s6308_s8 }
 0x2c8   : > { %v7292_v22 = vpop.f32.mrf.mxu0  ;;  %v7294_v48 = vpop.f32.mrf.mxu1 }
 0x2c9   : > { %5736 = vst.msk [vmem:[%s6643_s25 + $0x5d8] sm:$0xff] %vm371_vm1, %v7292_v22  ;;  %5744 = vst.msk [vmem:[%s6643_s25 + $0x608] sm:$0xff] %vm371_vm1, %v7294_v48  ;;  %1560 = vrot.lane.b32.xlu1 %v7058_v17, %s6312_s14 }
 0x2ca   : > { %v7304_v49 = vpop.f32.mrf.mxu0  ;;  %v7306_v50 = vpop.f32.mrf.mxu1 }
 0x2cb   : > { %5735 = vst.msk [vmem:[%s6643_s25 + $0x5d0] sm:$0xff] %vm371_vm1, %v7304_v49  ;;  %5743 = vst.msk [vmem:[%s6643_s25 + $0x600] sm:$0xff] %vm371_vm1, %v7306_v50  ;;  %1558 = vrot.lane.b32.xlu0 %v7069_v27, %s6312_s14 }
 0x2cc   : > { %v803_v51 = vpop.permute.xlu1 %802  ;;  %v7316_v52 = vpop.f32.mrf.mxu0 }
 0x2cd   : > { %5522 = vst.msk [vmem:[%s6643_s25 + $0xd8] sm:$0xff] %vm371_vm1, %v803_v51  ;;  %5752 = vst.msk [vmem:[%s6643_s25 + $0x638] sm:$0xff] %vm371_vm1, %v7316_v52  ;;  %v7323_v53 = vpop.f32.mrf.mxu1  ;;  %1658 = vrot.lane.b32.xlu1 %v7060_v25, %s6308_s8 }
 0x2ce   : > { %5760 = vst.msk [vmem:[%s6643_s25 + $0x668] sm:$0xff] %vm371_vm1, %v7323_v53  ;;  %v801_v54 = vpop.permute.xlu0 %800  ;;  %v7330_v58 = vpop.f32.mrf.mxu0 }
 0x2cf   : > { %5521 = vst.msk [vmem:[%s6643_s25 + $0xd0] sm:$0xff] %vm371_vm1, %v801_v54  ;;  %5751 = vst.msk [vmem:[%s6643_s25 + $0x630] sm:$0xff] %vm371_vm1, %v7330_v58  ;;  %v7337_v7 = vpop.f32.mrf.mxu1  ;;  %1656 = vrot.lane.b32.xlu0 %v7071_v45, %s6308_s8 }
 0x2d0   : > { %5759 = vst.msk [vmem:[%s6643_s25 + $0x660] sm:$0xff] %vm371_vm1, %v7337_v7  ;;  %v812_v62 = vpop.permute.xlu1 %811  ;;  %v7344_v63 = vpop.f32.mrf.mxu0 }
 0x2d1   : > { %5524 = vst.msk [vmem:[%s6643_s25 + $0xe8] sm:$0xff] %vm371_vm1, %v812_v62  ;;  %5768 = vst.msk [vmem:[%s6643_s25 + $0x698] sm:$0xff] %vm371_vm1, %v7344_v63  ;;  %v7351_v2 = vpop.f32.mrf.mxu1  ;;  %1667 = vrot.lane.b32.xlu1 %v7060_v25, %s6312_s14 }
 0x2d2   : > { %5776 = vst.msk [vmem:[%s6643_s25 + $0x6c8] sm:$0xff] %vm371_vm1, %v7351_v2  ;;  %v810_v3 = vpop.permute.xlu0 %809  ;;  %v7358_v4 = vpop.f32.mrf.mxu0 }
 0x2d3   : > { %5523 = vst.msk [vmem:[%s6643_s25 + $0xe0] sm:$0xff] %vm371_vm1, %v810_v3  ;;  %5767 = vst.msk [vmem:[%s6643_s25 + $0x690] sm:$0xff] %vm371_vm1, %v7358_v4  ;;  %v7365_v5 = vpop.f32.mrf.mxu1  ;;  %1665 = vrot.lane.b32.xlu0 %v7071_v45, %s6312_s14 }
 0x2d4   : > { %5775 = vst.msk [vmem:[%s6643_s25 + $0x6c0] sm:$0xff] %vm371_vm1, %v7365_v5  ;;  %v7372_v6 = vpop.f32.mrf.mxu0 }
 0x2d5   : > { %5784 = vst.msk [vmem:[%s6643_s25 + $0x6f8] sm:$0xff] %vm371_vm1, %v7372_v6  ;;  %v7377_v8 = vpop.f32.mrf.mxu1  ;;  %1765 = vrot.lane.b32.xlu1 %v7080_v55, %s6308_s8 }
 0x2d6   : > { %5792 = vst.msk [vmem:[%s6643_s25 + $0x728] sm:$0xff] %vm371_vm1, %v7377_v8  ;;  %v7384_v9 = vpop.f32.mrf.mxu0 }
 0x2d7   : > { %5783 = vst.msk [vmem:[%s6643_s25 + $0x6f0] sm:$0xff] %vm371_vm1, %v7384_v9  ;;  %v7389_v10 = vpop.f32.mrf.mxu1  ;;  %1763 = vrot.lane.b32.xlu0 %v7091_v57, %s6308_s8 }
 0x2d8   : > { %5791 = vst.msk [vmem:[%s6643_s25 + $0x720] sm:$0xff] %vm371_vm1, %v7389_v10  ;;  %v7396_v11 = vpop.f32.mrf.mxu0 }
 0x2d9   : > { %5800 = vst.msk [vmem:[%s6643_s25 + $0x758] sm:$0xff] %vm371_vm1, %v7396_v11  ;;  %v7401_v12 = vpop.f32.mrf.mxu1  ;;  %1774 = vrot.lane.b32.xlu1 %v7080_v55, %s6312_s14 }
 0x2da   : > { %5808 = vst.msk [vmem:[%s6643_s25 + $0x788] sm:$0xff] %vm371_vm1, %v7401_v12  ;;  %v7408_v13 = vpop.f32.mrf.mxu0 }
 0x2db   : > { %5799 = vst.msk [vmem:[%s6643_s25 + $0x750] sm:$0xff] %vm371_vm1, %v7408_v13  ;;  %v7413_v15 = vpop.f32.mrf.mxu1  ;;  %1772 = vrot.lane.b32.xlu0 %v7091_v57, %s6312_s14 }
 0x2dc   : > { %5807 = vst.msk [vmem:[%s6643_s25 + $0x780] sm:$0xff] %vm371_vm1, %v7413_v15  ;;  %v7420_v17 = vpop.f32.mrf.mxu0 }
 0x2dd   : > { %5816 = vst.msk [vmem:[%s6643_s25 + $0x7b8] sm:$0xff] %vm371_vm1, %v7420_v17  ;;  %v7425_v25 = vpop.f32.mrf.mxu1  ;;  %1872 = vrot.lane.b32.xlu1 %v7082_v56, %s6308_s8 }
 0x2de   : > { %5824 = vst.msk [vmem:[%s6643_s25 + $0x7e8] sm:$0xff] %vm371_vm1, %v7425_v25  ;;  %v7432_v27 = vpop.f32.mrf.mxu0 }
 0x2df   : > { %5815 = vst.msk [vmem:[%s6643_s25 + $0x7b0] sm:$0xff] %vm371_vm1, %v7432_v27  ;;  %v7437_v45 = vpop.f32.mrf.mxu1  ;;  %1870 = vrot.lane.b32.xlu0 %v7093_v60, %s6308_s8 }
 0x2e0   : > { %5823 = vst.msk [vmem:[%s6643_s25 + $0x7e0] sm:$0xff] %vm371_vm1, %v7437_v45  ;;  %v7444_v55 = vpop.f32.mrf.mxu0 }
 0x2e1   : > { %5832 = vst.msk [vmem:[%s6643_s25 + $0x818] sm:$0xff] %vm371_vm1, %v7444_v55  ;;  %v7449_v57 = vpop.f32.mrf.mxu1  ;;  %1881 = vrot.lane.b32.xlu1 %v7082_v56, %s6312_s14 }
 0x2e2   : > { %5840 = vst.msk [vmem:[%s6643_s25 + $0x848] sm:$0xff] %vm371_vm1, %v7449_v57  ;;  %v7456_v51 = vpop.f32.mrf.mxu0 }
 0x2e3   : > { %5831 = vst.msk [vmem:[%s6643_s25 + $0x810] sm:$0xff] %vm371_vm1, %v7456_v51  ;;  %v7461_v54 = vpop.f32.mrf.mxu1  ;;  %1879 = vrot.lane.b32.xlu0 %v7093_v60, %s6312_s14 }
 0x2e4   : > { %8127 = vst [vmem:[#allocation5_spill] sm:$0xff] %v7461_v54  ;;  %5839 = vst.msk [vmem:[%s6643_s25 + $0x840] sm:$0xff] %vm371_vm1, %v7461_v54 }
 0x2e5   : > { %v7468_v56 = vpop.f32.mrf.mxu0  ;;  %v7470_v62 = vpop.f32.mrf.mxu1  ;;  %1979 = vrot.lane.b32.xlu1 %v7102_v61, %s6308_s8 }
 0x2e6   : > { %8128 = vst [vmem:[#allocation3_spill] sm:$0xff] %v7470_v62  ;;  %5848 = vst.msk [vmem:[%s6643_s25 + $0x878] sm:$0xff] %vm371_vm1, %v7468_v56 }
 0x2e7   : > { %5856 = vst.msk [vmem:[%s6643_s25 + $0x8a8] sm:$0xff] %vm371_vm1, %v7470_v62  ;;  %v7480_v3 = vpop.f32.mrf.mxu0  ;;  %v7482_v60 = vpop.f32.mrf.mxu1  ;;  %1977 = vrot.lane.b32.xlu0 %v7113_v1, %s6308_s8 }
 0x2e8   : > { %5847 = vst.msk [vmem:[%s6643_s25 + $0x870] sm:$0xff] %vm371_vm1, %v7480_v3  ;;  %5855 = vst.msk [vmem:[%s6643_s25 + $0x8a0] sm:$0xff] %vm371_vm1, %v7482_v60 }
 0x2e9   : > { %v7492_v54 = vpop.f32.mrf.mxu0  ;;  %1988 = vrot.lane.b32.xlu1 %v7102_v61, %s6312_s14 }
 0x2ea   : > { %5864 = vst.msk [vmem:[%s6643_s25 + $0x8d8] sm:$0xff] %vm371_vm1, %v7492_v54 }
 0x2eb   : > { %v7499_v62 = vpop.f32.mrf.mxu0  ;;  %1986 = vrot.lane.b32.xlu0 %v7113_v1, %s6312_s14 }
 0x2ec   : > { %5863 = vst.msk [vmem:[%s6643_s25 + $0x8d0] sm:$0xff] %vm371_vm1, %v7499_v62 }
 0x2ed   : > { %2086 = vrot.lane.b32.xlu1 %v7104_v0, %s6308_s8 }
 0x2ef   : > { %2084 = vrot.lane.b32.xlu0 %v7115_v32, %s6308_s8 }
 0x2f1   : > { %2095 = vrot.lane.b32.xlu1 %v7104_v0, %s6312_s14 }
 0x2f3   : > { %2093 = vrot.lane.b32.xlu0 %v7115_v32, %s6312_s14 }
 0x2f5   : > { %2193 = vrot.lane.b32.xlu1 %v7124_v59, %s6308_s8 }
 0x2f7   : > { %2191 = vrot.lane.b32.xlu0 %v7136_v19, %s6308_s8 }
 0x2f9   : > { %2202 = vrot.lane.b32.xlu1 %v7124_v59, %s6312_s14 }
 0x2fb   : > { %2200 = vrot.lane.b32.xlu0 %v7136_v19, %s6312_s14 }
 0x2fd   : > { %2300 = vrot.lane.b32.xlu1 %v7126_v29, %s6308_s8 }
 0x2ff   : > { %2298 = vrot.lane.b32.xlu0 %v7138_v21, %s6308_s8 }
 0x301   : > { %2309 = vrot.lane.b32.xlu1 %v7126_v29, %s6312_s14 }
 0x303   : > { %2307 = vrot.lane.b32.xlu0 %v7138_v21, %s6312_s14 }
 0x305   : > { %2407 = vrot.lane.b32.xlu1 %v7148_v31, %s6308_s8 }
 0x307   : > { %v910_v61 = vpop.permute.xlu1 %909  ;;  %2405 = vrot.lane.b32.xlu0 %v7160_v23, %s6308_s8 }
 0x308   : > { %5530 = vst.msk [vmem:[%s6643_s25 + $0x108] sm:$0xff] %vm371_vm1, %v910_v61 }
 0x309   : > { %v908_v0 = vpop.permute.xlu0 %907  ;;  %2416 = vrot.lane.b32.xlu1 %v7148_v31, %s6312_s14 }
 0x30a   : > { %5529 = vst.msk [vmem:[%s6643_s25 + $0x100] sm:$0xff] %vm371_vm1, %v908_v0 }
 0x30b   : > { %v919_v1 = vpop.permute.xlu1 %918  ;;  %2414 = vrot.lane.b32.xlu0 %v7160_v23, %s6312_s14 }
 0x30c   : > { %5532 = vst.msk [vmem:[%s6643_s25 + $0x118] sm:$0xff] %vm371_vm1, %v919_v1 }
 0x30d   : > { %v917_v32 = vpop.permute.xlu0 %916  ;;  %2514 = vrot.lane.b32.xlu1 %v7150_v33, %s6308_s8 }
 0x30e   : > { %5531 = vst.msk [vmem:[%s6643_s25 + $0x110] sm:$0xff] %vm371_vm1, %v917_v32 }
 0x30f   : > { %v1017_v59 = vpop.permute.xlu1 %1016  ;;  %2512 = vrot.lane.b32.xlu0 %v7162_v14, %s6308_s8 }
 0x310   : > { %5538 = vst.msk [vmem:[%s6643_s25 + $0x138] sm:$0xff] %vm371_vm1, %v1017_v59 }
 0x311   : > { %v1015_v29 = vpop.permute.xlu0 %1014  ;;  %2523 = vrot.lane.b32.xlu1 %v7150_v33, %s6312_s14 }
 0x312   : > { %5537 = vst.msk [vmem:[%s6643_s25 + $0x130] sm:$0xff] %vm371_vm1, %v1015_v29 }
 0x313   : > { %v1026_v19 = vpop.permute.xlu1 %1025  ;;  %2521 = vrot.lane.b32.xlu0 %v7162_v14, %s6312_s14 }
 0x314   : > { %5540 = vst.msk [vmem:[%s6643_s25 + $0x148] sm:$0xff] %vm371_vm1, %v1026_v19 }
 0x315   : > { %v1024_v21 = vpop.permute.xlu0 %1023  ;;  %2621 = vrot.lane.b32.xlu1 %v7172_v35, %s6308_s8 }
 0x316   : > { %5539 = vst.msk [vmem:[%s6643_s25 + $0x140] sm:$0xff] %vm371_vm1, %v1024_v21 }
 0x317   : > { %v1124_v31 = vpop.permute.xlu1 %1123  ;;  %2619 = vrot.lane.b32.xlu0 %v7184_v34, %s6308_s8 }
 0x318   : > { %5546 = vst.msk [vmem:[%s6643_s25 + $0x168] sm:$0xff] %vm371_vm1, %v1124_v31 }
 0x319   : > { %v1122_v33 = vpop.permute.xlu0 %1121  ;;  %2630 = vrot.lane.b32.xlu1 %v7172_v35, %s6312_s14 }
 0x31a   : > { %5545 = vst.msk [vmem:[%s6643_s25 + $0x160] sm:$0xff] %vm371_vm1, %v1122_v33 }
 0x31b   : > { %v1133_v23 = vpop.permute.xlu1 %1132  ;;  %2628 = vrot.lane.b32.xlu0 %v7184_v34, %s6312_s14 }
 0x31c   : > { %5548 = vst.msk [vmem:[%s6643_s25 + $0x178] sm:$0xff] %vm371_vm1, %v1133_v23 }
 0x31d   : > { %v1131_v14 = vpop.permute.xlu0 %1130  ;;  %2728 = vrot.lane.b32.xlu1 %v7174_v24, %s6308_s8 }
 0x31e   : > { %5547 = vst.msk [vmem:[%s6643_s25 + $0x170] sm:$0xff] %vm371_vm1, %v1131_v14 }
 0x31f   : > { %v1231_v61 = vpop.permute.xlu1 %1230  ;;  %2726 = vrot.lane.b32.xlu0 %v7186_v16, %s6308_s8 }
 0x320   : > { %5554 = vst.msk [vmem:[%s6643_s25 + $0x198] sm:$0xff] %vm371_vm1, %v1231_v61 }
 0x321   : > { %v1229_v35 = vpop.permute.xlu0 %1228  ;;  %2737 = vrot.lane.b32.xlu1 %v7174_v24, %s6312_s14 }
 0x322   : > { %5553 = vst.msk [vmem:[%s6643_s25 + $0x190] sm:$0xff] %vm371_vm1, %v1229_v35 }
 0x323   : > { %v1240_v34 = vpop.permute.xlu1 %1239  ;;  %2735 = vrot.lane.b32.xlu0 %v7186_v16, %s6312_s14 }
 0x324   : > { %5556 = vst.msk [vmem:[%s6643_s25 + $0x1a8] sm:$0xff] %vm371_vm1, %v1240_v34 }
 0x325   : > { %v1238_v0 = vpop.permute.xlu0 %1237  ;;  %2835 = vrot.lane.b32.xlu1 %v7196_v37, %s6308_s8 }
 0x326   : > { %5555 = vst.msk [vmem:[%s6643_s25 + $0x1a0] sm:$0xff] %vm371_vm1, %v1238_v0 }
 0x327   : > { %v1338_v1 = vpop.permute.xlu1 %1337  ;;  %2833 = vrot.lane.b32.xlu0 %v7208_v36, %s6308_s8 }
 0x328   : > { %5562 = vst.msk [vmem:[%s6643_s25 + $0x1c8] sm:$0xff] %vm371_vm1, %v1338_v1 }
 0x329   : > { %v1336_v24 = vpop.permute.xlu0 %1335  ;;  %2844 = vrot.lane.b32.xlu1 %v7196_v37, %s6312_s14 }
 0x32a   : > { %5561 = vst.msk [vmem:[%s6643_s25 + $0x1c0] sm:$0xff] %vm371_vm1, %v1336_v24 }
 0x32b   : > { %v1347_v16 = vpop.permute.xlu1 %1346  ;;  %2842 = vrot.lane.b32.xlu0 %v7208_v36, %s6312_s14 }
 0x32c   : > { %5564 = vst.msk [vmem:[%s6643_s25 + $0x1d8] sm:$0xff] %vm371_vm1, %v1347_v16 }
 0x32d   : > { %v1345_v32 = vpop.permute.xlu0 %1344  ;;  %2942 = vrot.lane.b32.xlu1 %v7198_v26, %s6308_s8 }
 0x32e   : > { %5563 = vst.msk [vmem:[%s6643_s25 + $0x1d0] sm:$0xff] %vm371_vm1, %v1345_v32 }
 0x32f   : > { %v1445_v59 = vpop.permute.xlu1 %1444  ;;  %2940 = vrot.lane.b32.xlu0 %v7210_v18, %s6308_s8 }
 0x330   : > { %5570 = vst.msk [vmem:[%s6643_s25 + $0x1f8] sm:$0xff] %vm371_vm1, %v1445_v59 }
 0x331   : > { %v1443_v37 = vpop.permute.xlu0 %1442  ;;  %2951 = vrot.lane.b32.xlu1 %v7198_v26, %s6312_s14 }
 0x332   : > { %5569 = vst.msk [vmem:[%s6643_s25 + $0x1f0] sm:$0xff] %vm371_vm1, %v1443_v37 }
 0x333   : > { %v1454_v36 = vpop.permute.xlu1 %1453  ;;  %2949 = vrot.lane.b32.xlu0 %v7210_v18, %s6312_s14 }
 0x334   : > { %5572 = vst.msk [vmem:[%s6643_s25 + $0x208] sm:$0xff] %vm371_vm1, %v1454_v36 }
 0x335   : > { %v1452_v29 = vpop.permute.xlu0 %1451  ;;  %3049 = vrot.lane.b32.xlu1 %v7220_v39, %s6308_s8 }
 0x336   : > { %5571 = vst.msk [vmem:[%s6643_s25 + $0x200] sm:$0xff] %vm371_vm1, %v1452_v29 }
 0x337   : > { %v1552_v19 = vpop.permute.xlu1 %1551  ;;  %3047 = vrot.lane.b32.xlu0 %v7232_v42, %s6308_s8 }
 0x338   : > { %5578 = vst.msk [vmem:[%s6643_s25 + $0x228] sm:$0xff] %vm371_vm1, %v1552_v19 }
 0x339   : > { %v1550_v26 = vpop.permute.xlu0 %1549  ;;  %3058 = vrot.lane.b32.xlu1 %v7220_v39, %s6312_s14 }
 0x33a   : > { %5577 = vst.msk [vmem:[%s6643_s25 + $0x220] sm:$0xff] %vm371_vm1, %v1550_v26 }
 0x33b   : > { %v1561_v18 = vpop.permute.xlu1 %1560  ;;  %3056 = vrot.lane.b32.xlu0 %v7232_v42, %s6312_s14 }
 0x33c   : > { %5580 = vst.msk [vmem:[%s6643_s25 + $0x238] sm:$0xff] %vm371_vm1, %v1561_v18 }
 0x33d   : > { %v1559_v21 = vpop.permute.xlu0 %1558  ;;  %3156 = vrot.lane.b32.xlu1 %v7222_v38, %s6308_s8 }
 0x33e   : > { %5579 = vst.msk [vmem:[%s6643_s25 + $0x230] sm:$0xff] %vm371_vm1, %v1559_v21 }
 0x33f   : > { %v1659_v31 = vpop.permute.xlu1 %1658  ;;  %3154 = vrot.lane.b32.xlu0 %v7234_v28, %s6308_s8 }
 0x340   : > { %5586 = vst.msk [vmem:[%s6643_s25 + $0x258] sm:$0xff] %vm371_vm1, %v1659_v31 }
 0x341   : > { %v1657_v39 = vpop.permute.xlu0 %1656  ;;  %3165 = vrot.lane.b32.xlu1 %v7222_v38, %s6312_s14 }
 0x342   : > { %5585 = vst.msk [vmem:[%s6643_s25 + $0x250] sm:$0xff] %vm371_vm1, %v1657_v39 }
 0x343   : > { %v1668_v42 = vpop.permute.xlu1 %1667  ;;  %3163 = vrot.lane.b32.xlu0 %v7234_v28, %s6312_s14 }
 0x344   : > { %5588 = vst.msk [vmem:[%s6643_s25 + $0x268] sm:$0xff] %vm371_vm1, %v1668_v42 }
 0x345   : > { %v1666_v33 = vpop.permute.xlu0 %1665  ;;  %3263 = vrot.lane.b32.xlu1 %v7244_v41, %s6308_s8 }
 0x346   : > { %5587 = vst.msk [vmem:[%s6643_s25 + $0x260] sm:$0xff] %vm371_vm1, %v1666_v33 }
 0x347   : > { %v1766_v23 = vpop.permute.xlu1 %1765  ;;  %3261 = vrot.lane.b32.xlu0 %v7256_v44, %s6308_s8 }
 0x348   : > { %5594 = vst.msk [vmem:[%s6643_s25 + $0x288] sm:$0xff] %vm371_vm1, %v1766_v23 }
 0x349   : > { %v1764_v38 = vpop.permute.xlu0 %1763  ;;  %3272 = vrot.lane.b32.xlu1 %v7244_v41, %s6312_s14 }
 0x34a   : > { %5593 = vst.msk [vmem:[%s6643_s25 + $0x280] sm:$0xff] %vm371_vm1, %v1764_v38 }
 0x34b   : > { %v1775_v28 = vpop.permute.xlu1 %1774  ;;  %3270 = vrot.lane.b32.xlu0 %v7256_v44, %s6312_s14 }
 0x34c   : > { %5596 = vst.msk [vmem:[%s6643_s25 + $0x298] sm:$0xff] %vm371_vm1, %v1775_v28 }
 0x34d   : > { %v1773_v14 = vpop.permute.xlu0 %1772  ;;  %3370 = vrot.lane.b32.xlu1 %v7246_v20, %s6308_s8 }
 0x34e   : > { %5595 = vst.msk [vmem:[%s6643_s25 + $0x290] sm:$0xff] %vm371_vm1, %v1773_v14 }
 0x34f   : > { %v1873_v61 = vpop.permute.xlu1 %1872  ;;  %3368 = vrot.lane.b32.xlu0 %v7258_v40, %s6308_s8 }
 0x350   : > { %5602 = vst.msk [vmem:[%s6643_s25 + $0x2b8] sm:$0xff] %vm371_vm1, %v1873_v61 }
 0x351   : > { %v1871_v41 = vpop.permute.xlu0 %1870  ;;  %3379 = vrot.lane.b32.xlu1 %v7246_v20, %s6312_s14 }
 0x352   : > { %5601 = vst.msk [vmem:[%s6643_s25 + $0x2b0] sm:$0xff] %vm371_vm1, %v1871_v41 }
 0x353   : > { %v1882_v44 = vpop.permute.xlu1 %1881  ;;  %3377 = vrot.lane.b32.xlu0 %v7258_v40, %s6312_s14 }
 0x354   : > { %5604 = vst.msk [vmem:[%s6643_s25 + $0x2c8] sm:$0xff] %vm371_vm1, %v1882_v44 }
 0x355   : > { %v1880_v35 = vpop.permute.xlu0 %1879  ;;  %3477 = vrot.lane.b32.xlu1 %v7268_v46, %s6308_s8 }
 0x356   : > { %5603 = vst.msk [vmem:[%s6643_s25 + $0x2c0] sm:$0xff] %vm371_vm1, %v1880_v35 }
 0x357   : > { %v1980_v34 = vpop.permute.xlu1 %1979  ;;  %3475 = vrot.lane.b32.xlu0 %v7280_v43, %s6308_s8 }
 0x358   : > { %5610 = vst.msk [vmem:[%s6643_s25 + $0x2e8] sm:$0xff] %vm371_vm1, %v1980_v34 }
 0x359   : > { %v1978_v20 = vpop.permute.xlu0 %1977  ;;  %3486 = vrot.lane.b32.xlu1 %v7268_v46, %s6312_s14 }
 0x35a   : > { %5609 = vst.msk [vmem:[%s6643_s25 + $0x2e0] sm:$0xff] %vm371_vm1, %v1978_v20 }
 0x35b   : > { %v1989_v40 = vpop.permute.xlu1 %1988  ;;  %3484 = vrot.lane.b32.xlu0 %v7280_v43, %s6312_s14 }
 0x35c   : > { %5612 = vst.msk [vmem:[%s6643_s25 + $0x2f8] sm:$0xff] %vm371_vm1, %v1989_v40 }
 0x35d   : > { %v1987_v0 = vpop.permute.xlu0 %1986  ;;  %3584 = vrot.lane.b32.xlu1 %v7270_v30, %s6308_s8 }
 0x35e   : > { %5611 = vst.msk [vmem:[%s6643_s25 + $0x2f0] sm:$0xff] %vm371_vm1, %v1987_v0 }
 0x35f   : > { %v2087_v1 = vpop.permute.xlu1 %2086  ;;  %3582 = vrot.lane.b32.xlu0 %v7282_v47, %s6308_s8 }
 0x360   : > { %5618 = vst.msk [vmem:[%s6643_s25 + $0x318] sm:$0xff] %vm371_vm1, %v2087_v1 }
 0x361   : > { %v2085_v46 = vpop.permute.xlu0 %2084  ;;  %3593 = vrot.lane.b32.xlu1 %v7270_v30, %s6312_s14 }
 0x362   : > { %5617 = vst.msk [vmem:[%s6643_s25 + $0x310] sm:$0xff] %vm371_vm1, %v2085_v46 }
 0x363   : > { %v2096_v43 = vpop.permute.xlu1 %2095  ;;  %3591 = vrot.lane.b32.xlu0 %v7282_v47, %s6312_s14 }
 0x364   : > { %5620 = vst.msk [vmem:[%s6643_s25 + $0x328] sm:$0xff] %vm371_vm1, %v2096_v43 }
 0x365   : > { %v2094_v24 = vpop.permute.xlu0 %2093  ;;  %3691 = vrot.lane.b32.xlu1 %v7292_v22, %s6308_s8 }
 0x366   : > { %5619 = vst.msk [vmem:[%s6643_s25 + $0x320] sm:$0xff] %vm371_vm1, %v2094_v24 }
 0x367   : > { %v2194_v16 = vpop.permute.xlu1 %2193  ;;  %3689 = vrot.lane.b32.xlu0 %v7304_v49, %s6308_s8 }
 0x368   : > { %5626 = vst.msk [vmem:[%s6643_s25 + $0x348] sm:$0xff] %vm371_vm1, %v2194_v16 }
 0x369   : > { %v2192_v30 = vpop.permute.xlu0 %2191  ;;  %3700 = vrot.lane.b32.xlu1 %v7292_v22, %s6312_s14 }
 0x36a   : > { %5625 = vst.msk [vmem:[%s6643_s25 + $0x340] sm:$0xff] %vm371_vm1, %v2192_v30 }
 0x36b   : > { %v2203_v47 = vpop.permute.xlu1 %2202  ;;  %3698 = vrot.lane.b32.xlu0 %v7304_v49, %s6312_s14 }
 0x36c   : > { %5628 = vst.msk [vmem:[%s6643_s25 + $0x358] sm:$0xff] %vm371_vm1, %v2203_v47  ;;  %v8130_v47 = vld [vmem:[#allocation3_spill] sm:$0xff] }
 0x36d   : > { %v2201_v32 = vpop.permute.xlu0 %2200  ;;  %3798 = vrot.lane.b32.xlu1 %v7294_v48, %s6308_s8 }
 0x36e   : > { %5627 = vst.msk [vmem:[%s6643_s25 + $0x350] sm:$0xff] %vm371_vm1, %v2201_v32 }
 0x36f   : > { %v2301_v59 = vpop.permute.xlu1 %2300  ;;  %3796 = vrot.lane.b32.xlu0 %v7306_v50, %s6308_s8 }
 0x370   : > { %5634 = vst.msk [vmem:[%s6643_s25 + $0x378] sm:$0xff] %vm371_vm1, %v2301_v59 }
 0x371   : > { %v2299_v22 = vpop.permute.xlu0 %2298  ;;  %3807 = vrot.lane.b32.xlu1 %v7294_v48, %s6312_s14 }
 0x372   : > { %5633 = vst.msk [vmem:[%s6643_s25 + $0x370] sm:$0xff] %vm371_vm1, %v2299_v22 }
 0x373   : > { %v2310_v49 = vpop.permute.xlu1 %2309  ;;  %3805 = vrot.lane.b32.xlu0 %v7306_v50, %s6312_s14 }
 0x374   : > { %5636 = vst.msk [vmem:[%s6643_s25 + $0x388] sm:$0xff] %vm371_vm1, %v2310_v49 }
 0x375   : > { %v2308_v37 = vpop.permute.xlu0 %2307  ;;  %3905 = vrot.lane.b32.xlu1 %v7316_v52, %s6308_s8 }
 0x376   : > { %5635 = vst.msk [vmem:[%s6643_s25 + $0x380] sm:$0xff] %vm371_vm1, %v2308_v37 }
 0x377   : > { %v2408_v36 = vpop.permute.xlu1 %2407  ;;  %3903 = vrot.lane.b32.xlu0 %v7330_v58, %s6308_s8 }
 0x378   : > { %5642 = vst.msk [vmem:[%s6643_s25 + $0x3a8] sm:$0xff] %vm371_vm1, %v2408_v36 }
 0x379   : > { %v2406_v48 = vpop.permute.xlu0 %2405  ;;  %3914 = vrot.lane.b32.xlu1 %v7316_v52, %s6312_s14 }
 0x37a   : > { %5641 = vst.msk [vmem:[%s6643_s25 + $0x3a0] sm:$0xff] %vm371_vm1, %v2406_v48 }
 0x37b   : > { %v2417_v50 = vpop.permute.xlu1 %2416  ;;  %3912 = vrot.lane.b32.xlu0 %v7330_v58, %s6312_s14 }
 0x37c   : > { %5644 = vst.msk [vmem:[%s6643_s25 + $0x3b8] sm:$0xff] %vm371_vm1, %v2417_v50 }
 0x37d   : > { %v2415_v29 = vpop.permute.xlu0 %2414  ;;  %4012 = vrot.lane.b32.xlu1 %v7323_v53, %s6308_s8 }
 0x37e   : > { %5643 = vst.msk [vmem:[%s6643_s25 + $0x3b0] sm:$0xff] %vm371_vm1, %v2415_v29 }
 0x37f   : > { %v2515_v19 = vpop.permute.xlu1 %2514  ;;  %4010 = vrot.lane.b32.xlu0 %v7337_v7, %s6308_s8 }
 0x380   : > { %5650 = vst.msk [vmem:[%s6643_s25 + $0x3d8] sm:$0xff] %vm371_vm1, %v2515_v19 }
 0x381   : > { %v2513_v52 = vpop.permute.xlu0 %2512  ;;  %4021 = vrot.lane.b32.xlu1 %v7323_v53, %s6312_s14 }
 0x382   : > { %5649 = vst.msk [vmem:[%s6643_s25 + $0x3d0] sm:$0xff] %vm371_vm1, %v2513_v52 }
 0x383   : > { %v2524_v58 = vpop.permute.xlu1 %2523  ;;  %4019 = vrot.lane.b32.xlu0 %v7337_v7, %s6312_s14 }
 0x384   : > { %5652 = vst.msk [vmem:[%s6643_s25 + $0x3e8] sm:$0xff] %vm371_vm1, %v2524_v58 }
 0x385   : > { %v2522_v26 = vpop.permute.xlu0 %2521  ;;  %4119 = vrot.lane.b32.xlu1 %v7344_v63, %s6308_s8 }
 0x386   : > { %5651 = vst.msk [vmem:[%s6643_s25 + $0x3e0] sm:$0xff] %vm371_vm1, %v2522_v26 }
 0x387   : > { %v2622_v18 = vpop.permute.xlu1 %2621  ;;  %4117 = vrot.lane.b32.xlu0 %v7358_v4, %s6308_s8 }
 0x388   : > { %5658 = vst.msk [vmem:[%s6643_s25 + $0x408] sm:$0xff] %vm371_vm1, %v2622_v18 }
 0x389   : > { %v2620_v53 = vpop.permute.xlu0 %2619  ;;  %4128 = vrot.lane.b32.xlu1 %v7344_v63, %s6312_s14 }
 0x38a   : > { %5657 = vst.msk [vmem:[%s6643_s25 + $0x400] sm:$0xff] %vm371_vm1, %v2620_v53 }
 0x38b   : > { %v2631_v7 = vpop.permute.xlu1 %2630  ;;  %4126 = vrot.lane.b32.xlu0 %v7358_v4, %s6312_s14 }
 0x38c   : > { %5660 = vst.msk [vmem:[%s6643_s25 + $0x418] sm:$0xff] %vm371_vm1, %v2631_v7 }
 0x38d   : > { %v2629_v21 = vpop.permute.xlu0 %2628  ;;  %4226 = vrot.lane.b32.xlu1 %v7351_v2, %s6308_s8 }
 0x38e   : > { %5659 = vst.msk [vmem:[%s6643_s25 + $0x410] sm:$0xff] %vm371_vm1, %v2629_v21 }
 0x38f   : > { %v2729_v31 = vpop.permute.xlu1 %2728  ;;  %4224 = vrot.lane.b32.xlu0 %v7365_v5, %s6308_s8 }
 0x390   : > { %5666 = vst.msk [vmem:[%s6643_s25 + $0x438] sm:$0xff] %vm371_vm1, %v2729_v31 }
 0x391   : > { %v2727_v63 = vpop.permute.xlu0 %2726  ;;  %4235 = vrot.lane.b32.xlu1 %v7351_v2, %s6312_s14 }
 0x392   : > { %5665 = vst.msk [vmem:[%s6643_s25 + $0x430] sm:$0xff] %vm371_vm1, %v2727_v63 }
 0x393   : > { %v2738_v4 = vpop.permute.xlu1 %2737  ;;  %4233 = vrot.lane.b32.xlu0 %v7365_v5, %s6312_s14 }
 0x394   : > { %5668 = vst.msk [vmem:[%s6643_s25 + $0x448] sm:$0xff] %vm371_vm1, %v2738_v4 }
 0x395   : > { %v2736_v39 = vpop.permute.xlu0 %2735  ;;  %4333 = vrot.lane.b32.xlu1 %v7372_v6, %s6308_s8 }
 0x396   : > { %5667 = vst.msk [vmem:[%s6643_s25 + $0x440] sm:$0xff] %vm371_vm1, %v2736_v39 }
 0x397   : > { %v2836_v42 = vpop.permute.xlu1 %2835  ;;  %4331 = vrot.lane.b32.xlu0 %v7384_v9, %s6308_s8 }
 0x398   : > { %5674 = vst.msk [vmem:[%s6643_s25 + $0x468] sm:$0xff] %vm371_vm1, %v2836_v42 }
 0x399   : > { %v2834_v2 = vpop.permute.xlu0 %2833  ;;  %4342 = vrot.lane.b32.xlu1 %v7372_v6, %s6312_s14 }
 0x39a   : > { %5673 = vst.msk [vmem:[%s6643_s25 + $0x460] sm:$0xff] %vm371_vm1, %v2834_v2 }
 0x39b   : > { %v2845_v5 = vpop.permute.xlu1 %2844  ;;  %4340 = vrot.lane.b32.xlu0 %v7384_v9, %s6312_s14 }
 0x39c   : > { %5676 = vst.msk [vmem:[%s6643_s25 + $0x478] sm:$0xff] %vm371_vm1, %v2845_v5 }
 0x39d   : > { %v2843_v33 = vpop.permute.xlu0 %2842  ;;  %4440 = vrot.lane.b32.xlu1 %v7377_v8, %s6308_s8 }
 0x39e   : > { %5675 = vst.msk [vmem:[%s6643_s25 + $0x470] sm:$0xff] %vm371_vm1, %v2843_v33 }
 0x39f   : > { %v2943_v23 = vpop.permute.xlu1 %2942  ;;  %4438 = vrot.lane.b32.xlu0 %v7389_v10, %s6308_s8 }
 0x3a0   : > { %5682 = vst.msk [vmem:[%s6643_s25 + $0x498] sm:$0xff] %vm371_vm1, %v2943_v23 }
 0x3a1   : > { %v2941_v6 = vpop.permute.xlu0 %2940  ;;  %4449 = vrot.lane.b32.xlu1 %v7377_v8, %s6312_s14 }
 0x3a2   : > { %5681 = vst.msk [vmem:[%s6643_s25 + $0x490] sm:$0xff] %vm371_vm1, %v2941_v6 }
 0x3a3   : > { %v2952_v9 = vpop.permute.xlu1 %2951  ;;  %4447 = vrot.lane.b32.xlu0 %v7389_v10, %s6312_s14 }
 0x3a4   : > { %5684 = vst.msk [vmem:[%s6643_s25 + $0x4a8] sm:$0xff] %vm371_vm1, %v2952_v9 }
 0x3a5   : > { %v2950_v38 = vpop.permute.xlu0 %2949  ;;  %4547 = vrot.lane.b32.xlu1 %v7396_v11, %s6308_s8 }
 0x3a6   : > { %5683 = vst.msk [vmem:[%s6643_s25 + $0x4a0] sm:$0xff] %vm371_vm1, %v2950_v38 }
 0x3a7   : > { %v3050_v28 = vpop.permute.xlu1 %3049  ;;  %4545 = vrot.lane.b32.xlu0 %v7408_v13, %s6308_s8 }
 0x3a8   : > { %5690 = vst.msk [vmem:[%s6643_s25 + $0x4c8] sm:$0xff] %vm371_vm1, %v3050_v28 }
 0x3a9   : > { %v3048_v8 = vpop.permute.xlu0 %3047  ;;  %4556 = vrot.lane.b32.xlu1 %v7396_v11, %s6312_s14 }
 0x3aa   : > { %5689 = vst.msk [vmem:[%s6643_s25 + $0x4c0] sm:$0xff] %vm371_vm1, %v3048_v8 }
 0x3ab   : > { %v3059_v10 = vpop.permute.xlu1 %3058  ;;  %4554 = vrot.lane.b32.xlu0 %v7408_v13, %s6312_s14 }
 0x3ac   : > { %5692 = vst.msk [vmem:[%s6643_s25 + $0x4d8] sm:$0xff] %vm371_vm1, %v3059_v10 }
 0x3ad   : > { %v3057_v14 = vpop.permute.xlu0 %3056  ;;  %4654 = vrot.lane.b32.xlu1 %v7401_v12, %s6308_s8 }
 0x3ae   : > { %5691 = vst.msk [vmem:[%s6643_s25 + $0x4d0] sm:$0xff] %vm371_vm1, %v3057_v14 }
 0x3af   : > { %v3157_v61 = vpop.permute.xlu1 %3156  ;;  %4652 = vrot.lane.b32.xlu0 %v7413_v15, %s6308_s8 }
 0x3b0   : > { %5698 = vst.msk [vmem:[%s6643_s25 + $0x4f8] sm:$0xff] %vm371_vm1, %v3157_v61 }
 0x3b1   : > { %v3155_v11 = vpop.permute.xlu0 %3154  ;;  %4663 = vrot.lane.b32.xlu1 %v7401_v12, %s6312_s14 }
 0x3b2   : > { %5697 = vst.msk [vmem:[%s6643_s25 + $0x4f0] sm:$0xff] %vm371_vm1, %v3155_v11 }
 0x3b3   : > { %v3166_v13 = vpop.permute.xlu1 %3165  ;;  %4661 = vrot.lane.b32.xlu0 %v7413_v15, %s6312_s14 }
 0x3b4   : > { %5700 = vst.msk [vmem:[%s6643_s25 + $0x508] sm:$0xff] %vm371_vm1, %v3166_v13 }
 0x3b5   : > { %v3164_v41 = vpop.permute.xlu0 %3163  ;;  %4761 = vrot.lane.b32.xlu1 %v7420_v17, %s6308_s8 }
 0x3b6   : > { %5699 = vst.msk [vmem:[%s6643_s25 + $0x500] sm:$0xff] %vm371_vm1, %v3164_v41 }
 0x3b7   : > { %v3264_v44 = vpop.permute.xlu1 %3263  ;;  %4759 = vrot.lane.b32.xlu0 %v7432_v27, %s6308_s8 }
 0x3b8   : > { %5706 = vst.msk [vmem:[%s6643_s25 + $0x528] sm:$0xff] %vm371_vm1, %v3264_v44 }
 0x3b9   : > { %v3262_v12 = vpop.permute.xlu0 %3261  ;;  %4770 = vrot.lane.b32.xlu1 %v7420_v17, %s6312_s14 }
 0x3ba   : > { %5705 = vst.msk [vmem:[%s6643_s25 + $0x520] sm:$0xff] %vm371_vm1, %v3262_v12 }
 0x3bb   : > { %v3273_v15 = vpop.permute.xlu1 %3272  ;;  %4768 = vrot.lane.b32.xlu0 %v7432_v27, %s6312_s14 }
 0x3bc   : > { %5708 = vst.msk [vmem:[%s6643_s25 + $0x538] sm:$0xff] %vm371_vm1, %v3273_v15 }
 0x3bd   : > { %v3271_v35 = vpop.permute.xlu0 %3270  ;;  %4868 = vrot.lane.b32.xlu1 %v7425_v25, %s6308_s8 }
 0x3be   : > { %5707 = vst.msk [vmem:[%s6643_s25 + $0x530] sm:$0xff] %vm371_vm1, %v3271_v35 }
 0x3bf   : > { %v3371_v34 = vpop.permute.xlu1 %3370  ;;  %4866 = vrot.lane.b32.xlu0 %v7437_v45, %s6308_s8 }
 0x3c0   : > { %5714 = vst.msk [vmem:[%s6643_s25 + $0x558] sm:$0xff] %vm371_vm1, %v3371_v34 }
 0x3c1   : > { %v3369_v17 = vpop.permute.xlu0 %3368  ;;  %4877 = vrot.lane.b32.xlu1 %v7425_v25, %s6312_s14 }
 0x3c2   : > { %5713 = vst.msk [vmem:[%s6643_s25 + $0x550] sm:$0xff] %vm371_vm1, %v3369_v17 }
 0x3c3   : > { %v3380_v27 = vpop.permute.xlu1 %3379  ;;  %4875 = vrot.lane.b32.xlu0 %v7437_v45, %s6312_s14 }
 0x3c4   : > { %5716 = vst.msk [vmem:[%s6643_s25 + $0x568] sm:$0xff] %vm371_vm1, %v3380_v27 }
 0x3c5   : > { %v3378_v20 = vpop.permute.xlu0 %3377  ;;  %4975 = vrot.lane.b32.xlu1 %v7444_v55, %s6308_s8 }
 0x3c6   : > { %5715 = vst.msk [vmem:[%s6643_s25 + $0x560] sm:$0xff] %vm371_vm1, %v3378_v20 }
 0x3c7   : > { %v3478_v40 = vpop.permute.xlu1 %3477  ;;  %4973 = vrot.lane.b32.xlu0 %v7456_v51, %s6308_s8 }
 0x3c8   : > { %5722 = vst.msk [vmem:[%s6643_s25 + $0x588] sm:$0xff] %vm371_vm1, %v3478_v40 }
 0x3c9   : > { %v3476_v25 = vpop.permute.xlu0 %3475  ;;  %4984 = vrot.lane.b32.xlu1 %v7444_v55, %s6312_s14  ;;  %v8129_v55 = vld [vmem:[#allocation5_spill] sm:$0xff] }
 0x3ca   : > { %5721 = vst.msk [vmem:[%s6643_s25 + $0x580] sm:$0xff] %vm371_vm1, %v3476_v25 }
 0x3cb   : > { %v3487_v45 = vpop.permute.xlu1 %3486  ;;  %4982 = vrot.lane.b32.xlu0 %v7456_v51, %s6312_s14 }
 0x3cc   : > { %5724 = vst.msk [vmem:[%s6643_s25 + $0x598] sm:$0xff] %vm371_vm1, %v3487_v45 }
 0x3cd   : > { %v3485_v0 = vpop.permute.xlu0 %3484  ;;  %5082 = vrot.lane.b32.xlu1 %v7449_v57, %s6308_s8 }
 0x3ce   : > { %5723 = vst.msk [vmem:[%s6643_s25 + $0x590] sm:$0xff] %vm371_vm1, %v3485_v0 }
 0x3cf   : > { %v3585_v1 = vpop.permute.xlu1 %3584  ;;  %5080 = vrot.lane.b32.xlu0 %v8129_v55, %s6308_s8 }
 0x3d0   : > { %5730 = vst.msk [vmem:[%s6643_s25 + $0x5b8] sm:$0xff] %vm371_vm1, %v3585_v1 }
 0x3d1   : > { %v3583_v46 = vpop.permute.xlu0 %3582  ;;  %5091 = vrot.lane.b32.xlu1 %v7449_v57, %s6312_s14 }
 0x3d2   : > { %5729 = vst.msk [vmem:[%s6643_s25 + $0x5b0] sm:$0xff] %vm371_vm1, %v3583_v46 }
 0x3d3   : > { %v3594_v51 = vpop.permute.xlu1 %3593  ;;  %5089 = vrot.lane.b32.xlu0 %v8129_v55, %s6312_s14 }
 0x3d4   : > { %5732 = vst.msk [vmem:[%s6643_s25 + $0x5c8] sm:$0xff] %vm371_vm1, %v3594_v51 }
 0x3d5   : > { %v3592_v43 = vpop.permute.xlu0 %3591  ;;  %5189 = vrot.lane.b32.xlu1 %v7468_v56, %s6308_s8 }
 0x3d6   : > { %5731 = vst.msk [vmem:[%s6643_s25 + $0x5c0] sm:$0xff] %vm371_vm1, %v3592_v43 }
 0x3d7   : > { %v3692_v24 = vpop.permute.xlu1 %3691  ;;  %5187 = vrot.lane.b32.xlu0 %v7480_v3, %s6308_s8 }
 0x3d8   : > { %5738 = vst.msk [vmem:[%s6643_s25 + $0x5e8] sm:$0xff] %vm371_vm1, %v3692_v24 }
 0x3d9   : > { %v3690_v57 = vpop.permute.xlu0 %3689  ;;  %5198 = vrot.lane.b32.xlu1 %v7468_v56, %s6312_s14 }
 0x3da   : > { %5737 = vst.msk [vmem:[%s6643_s25 + $0x5e0] sm:$0xff] %vm371_vm1, %v3690_v57 }
 0x3db   : > { %v3701_v16 = vpop.permute.xlu1 %3700  ;;  %5196 = vrot.lane.b32.xlu0 %v7480_v3, %s6312_s14 }
 0x3dc   : > { %5740 = vst.msk [vmem:[%s6643_s25 + $0x5f8] sm:$0xff] %vm371_vm1, %v3701_v16 }
 0x3dd   : > { %v3699_v30 = vpop.permute.xlu0 %3698  ;;  %5296 = vrot.lane.b32.xlu1 %v8130_v47, %s6308_s8 }
 0x3de   : > { %5739 = vst.msk [vmem:[%s6643_s25 + $0x5f0] sm:$0xff] %vm371_vm1, %v3699_v30 }
 0x3df   : > { %v3799_v32 = vpop.permute.xlu1 %3798  ;;  %5294 = vrot.lane.b32.xlu0 %v7482_v60, %s6308_s8 }
 0x3e0   : > { %5746 = vst.msk [vmem:[%s6643_s25 + $0x618] sm:$0xff] %vm371_vm1, %v3799_v32 }
 0x3e1   : > { %v3797_v56 = vpop.permute.xlu0 %3796  ;;  %5305 = vrot.lane.b32.xlu1 %v8130_v47, %s6312_s14 }
 0x3e2   : > { %5745 = vst.msk [vmem:[%s6643_s25 + $0x610] sm:$0xff] %vm371_vm1, %v3797_v56 }
 0x3e3   : > { %v3808_v3 = vpop.permute.xlu1 %3807  ;;  %5303 = vrot.lane.b32.xlu0 %v7482_v60, %s6312_s14 }
 0x3e4   : > { %5748 = vst.msk [vmem:[%s6643_s25 + $0x628] sm:$0xff] %vm371_vm1, %v3808_v3 }
 0x3e5   : > { %v3806_v59 = vpop.permute.xlu0 %3805  ;;  %5403 = vrot.lane.b32.xlu1 %v7492_v54, %s6308_s8 }
 0x3e6   : > { %5747 = vst.msk [vmem:[%s6643_s25 + $0x620] sm:$0xff] %vm371_vm1, %v3806_v59 }
 0x3e7   : > { %v3906_v22 = vpop.permute.xlu1 %3905  ;;  %5401 = vrot.lane.b32.xlu0 %v7499_v62, %s6308_s8 }
 0x3e8   : > { %5754 = vst.msk [vmem:[%s6643_s25 + $0x648] sm:$0xff] %vm371_vm1, %v3906_v22 }
 0x3e9   : > { %v3904_v49 = vpop.permute.xlu0 %3903  ;;  %5412 = vrot.lane.b32.xlu1 %v7492_v54, %s6312_s14 }
 0x3ea   : > { %5753 = vst.msk [vmem:[%s6643_s25 + $0x640] sm:$0xff] %vm371_vm1, %v3904_v49 }
 0x3eb   : > { %v3915_v60 = vpop.permute.xlu1 %3914  ;;  %5410 = vrot.lane.b32.xlu0 %v7499_v62, %s6312_s14 }
 0x3ec   : > { %5756 = vst.msk [vmem:[%s6643_s25 + $0x658] sm:$0xff] %vm371_vm1, %v3915_v60 }
 0x3ed   : > { %v3913_v37 = vpop.permute.xlu0 %3912 }
 0x3ee   : > { %5755 = vst.msk [vmem:[%s6643_s25 + $0x650] sm:$0xff] %vm371_vm1, %v3913_v37 }
 0x3ef   : > { %v4013_v36 = vpop.permute.xlu1 %4012 }
 0x3f0   : > { %5762 = vst.msk [vmem:[%s6643_s25 + $0x678] sm:$0xff] %vm371_vm1, %v4013_v36 }
 0x3f1   : > { %v4011_v54 = vpop.permute.xlu0 %4010 }
 0x3f2   : > { %5761 = vst.msk [vmem:[%s6643_s25 + $0x670] sm:$0xff] %vm371_vm1, %v4011_v54 }
 0x3f3   : > { %v4022_v48 = vpop.permute.xlu1 %4021 }
 0x3f4   : > { %5764 = vst.msk [vmem:[%s6643_s25 + $0x688] sm:$0xff] %vm371_vm1, %v4022_v48 }
 0x3f5   : > { %v4020_v62 = vpop.permute.xlu0 %4019 }
 0x3f6   : > { %5763 = vst.msk [vmem:[%s6643_s25 + $0x680] sm:$0xff] %vm371_vm1, %v4020_v62 }
 0x3f7   : > { %v4120_v50 = vpop.permute.xlu1 %4119 }
 0x3f8   : > { %5770 = vst.msk [vmem:[%s6643_s25 + $0x6a8] sm:$0xff] %vm371_vm1, %v4120_v50 }
 0x3f9   : > { %v4118_v29 = vpop.permute.xlu0 %4117 }
 0x3fa   : > { %5769 = vst.msk [vmem:[%s6643_s25 + $0x6a0] sm:$0xff] %vm371_vm1, %v4118_v29 }
 0x3fb   : > { %v4129_v19 = vpop.permute.xlu1 %4128 }
 0x3fc   : > { %5772 = vst.msk [vmem:[%s6643_s25 + $0x6b8] sm:$0xff] %vm371_vm1, %v4129_v19 }
 0x3fd   : > { %v4127_v52 = vpop.permute.xlu0 %4126 }
 0x3fe   : > { %5771 = vst.msk [vmem:[%s6643_s25 + $0x6b0] sm:$0xff] %vm371_vm1, %v4127_v52 }
 0x3ff   : > { %v4227_v58 = vpop.permute.xlu1 %4226 }
 0x400   : > { %5778 = vst.msk [vmem:[%s6643_s25 + $0x6d8] sm:$0xff] %vm371_vm1, %v4227_v58 }
 0x401   : > { %v4225_v26 = vpop.permute.xlu0 %4224 }
 0x402   : > { %5777 = vst.msk [vmem:[%s6643_s25 + $0x6d0] sm:$0xff] %vm371_vm1, %v4225_v26 }
 0x403   : > { %v4236_v18 = vpop.permute.xlu1 %4235 }
 0x404   : > { %5780 = vst.msk [vmem:[%s6643_s25 + $0x6e8] sm:$0xff] %vm371_vm1, %v4236_v18 }
 0x405   : > { %v4234_v53 = vpop.permute.xlu0 %4233 }
 0x406   : > { %5779 = vst.msk [vmem:[%s6643_s25 + $0x6e0] sm:$0xff] %vm371_vm1, %v4234_v53 }
 0x407   : > { %v4334_v7 = vpop.permute.xlu1 %4333 }
 0x408   : > { %5786 = vst.msk [vmem:[%s6643_s25 + $0x708] sm:$0xff] %vm371_vm1, %v4334_v7 }
 0x409   : > { %v4332_v21 = vpop.permute.xlu0 %4331 }
 0x40a   : > { %5785 = vst.msk [vmem:[%s6643_s25 + $0x700] sm:$0xff] %vm371_vm1, %v4332_v21 }
 0x40b   : > { %v4343_v31 = vpop.permute.xlu1 %4342 }
 0x40c   : > { %5788 = vst.msk [vmem:[%s6643_s25 + $0x718] sm:$0xff] %vm371_vm1, %v4343_v31 }
 0x40d   : > { %v4341_v63 = vpop.permute.xlu0 %4340 }
 0x40e   : > { %5787 = vst.msk [vmem:[%s6643_s25 + $0x710] sm:$0xff] %vm371_vm1, %v4341_v63 }
 0x40f   : > { %v4441_v4 = vpop.permute.xlu1 %4440 }
 0x410   : > { %5794 = vst.msk [vmem:[%s6643_s25 + $0x738] sm:$0xff] %vm371_vm1, %v4441_v4 }
 0x411   : > { %v4439_v39 = vpop.permute.xlu0 %4438 }
 0x412   : > { %5793 = vst.msk [vmem:[%s6643_s25 + $0x730] sm:$0xff] %vm371_vm1, %v4439_v39 }
 0x413   : > { %v4450_v42 = vpop.permute.xlu1 %4449 }
 0x414   : > { %5796 = vst.msk [vmem:[%s6643_s25 + $0x748] sm:$0xff] %vm371_vm1, %v4450_v42 }
 0x415   : > { %v4448_v2 = vpop.permute.xlu0 %4447 }
 0x416   : > { %5795 = vst.msk [vmem:[%s6643_s25 + $0x740] sm:$0xff] %vm371_vm1, %v4448_v2 }
 0x417   : > { %v4548_v5 = vpop.permute.xlu1 %4547 }
 0x418   : > { %5802 = vst.msk [vmem:[%s6643_s25 + $0x768] sm:$0xff] %vm371_vm1, %v4548_v5 }
 0x419   : > { %v4546_v33 = vpop.permute.xlu0 %4545 }
 0x41a   : > { %5801 = vst.msk [vmem:[%s6643_s25 + $0x760] sm:$0xff] %vm371_vm1, %v4546_v33 }
 0x41b   : > { %v4557_v23 = vpop.permute.xlu1 %4556 }
 0x41c   : > { %5804 = vst.msk [vmem:[%s6643_s25 + $0x778] sm:$0xff] %vm371_vm1, %v4557_v23 }
 0x41d   : > { %v4555_v6 = vpop.permute.xlu0 %4554 }
 0x41e   : > { %5803 = vst.msk [vmem:[%s6643_s25 + $0x770] sm:$0xff] %vm371_vm1, %v4555_v6 }
 0x41f   : > { %v4655_v9 = vpop.permute.xlu1 %4654 }
 0x420   : > { %5810 = vst.msk [vmem:[%s6643_s25 + $0x798] sm:$0xff] %vm371_vm1, %v4655_v9 }
 0x421   : > { %v4653_v38 = vpop.permute.xlu0 %4652 }
 0x422   : > { %5809 = vst.msk [vmem:[%s6643_s25 + $0x790] sm:$0xff] %vm371_vm1, %v4653_v38 }
 0x423   : > { %v4664_v28 = vpop.permute.xlu1 %4663 }
 0x424   : > { %5812 = vst.msk [vmem:[%s6643_s25 + $0x7a8] sm:$0xff] %vm371_vm1, %v4664_v28 }
 0x425   : > { %v4662_v8 = vpop.permute.xlu0 %4661 }
 0x426   : > { %5811 = vst.msk [vmem:[%s6643_s25 + $0x7a0] sm:$0xff] %vm371_vm1, %v4662_v8 }
 0x427   : > { %v4762_v10 = vpop.permute.xlu1 %4761 }
 0x428   : > { %5818 = vst.msk [vmem:[%s6643_s25 + $0x7c8] sm:$0xff] %vm371_vm1, %v4762_v10 }
 0x429   : > { %v4760_v14 = vpop.permute.xlu0 %4759 }
 0x42a   : > { %5817 = vst.msk [vmem:[%s6643_s25 + $0x7c0] sm:$0xff] %vm371_vm1, %v4760_v14 }
 0x42b   : > { %v4771_v61 = vpop.permute.xlu1 %4770 }
 0x42c   : > { %5820 = vst.msk [vmem:[%s6643_s25 + $0x7d8] sm:$0xff] %vm371_vm1, %v4771_v61 }
 0x42d   : > { %v4769_v11 = vpop.permute.xlu0 %4768 }
 0x42e   : > { %5819 = vst.msk [vmem:[%s6643_s25 + $0x7d0] sm:$0xff] %vm371_vm1, %v4769_v11 }
 0x42f   : > { %v4869_v13 = vpop.permute.xlu1 %4868 }
 0x430   : > { %5826 = vst.msk [vmem:[%s6643_s25 + $0x7f8] sm:$0xff] %vm371_vm1, %v4869_v13 }
 0x431   : > { %v4867_v41 = vpop.permute.xlu0 %4866 }
 0x432   : > { %5825 = vst.msk [vmem:[%s6643_s25 + $0x7f0] sm:$0xff] %vm371_vm1, %v4867_v41 }
 0x433   : > { %v4878_v44 = vpop.permute.xlu1 %4877 }
 0x434   : > { %5828 = vst.msk [vmem:[%s6643_s25 + $0x808] sm:$0xff] %vm371_vm1, %v4878_v44 }
 0x435   : > { %v4876_v12 = vpop.permute.xlu0 %4875 }
 0x436   : > { %5827 = vst.msk [vmem:[%s6643_s25 + $0x800] sm:$0xff] %vm371_vm1, %v4876_v12 }
 0x437   : > { %v4976_v15 = vpop.permute.xlu1 %4975 }
 0x438   : > { %5834 = vst.msk [vmem:[%s6643_s25 + $0x828] sm:$0xff] %vm371_vm1, %v4976_v15 }
 0x439   : > { %v4974_v35 = vpop.permute.xlu0 %4973 }
 0x43a   : > { %5833 = vst.msk [vmem:[%s6643_s25 + $0x820] sm:$0xff] %vm371_vm1, %v4974_v35 }
 0x43b   : > { %v4985_v34 = vpop.permute.xlu1 %4984 }
 0x43c   : > { %5836 = vst.msk [vmem:[%s6643_s25 + $0x838] sm:$0xff] %vm371_vm1, %v4985_v34 }
 0x43d   : > { %v4983_v17 = vpop.permute.xlu0 %4982 }
 0x43e   : > { %5835 = vst.msk [vmem:[%s6643_s25 + $0x830] sm:$0xff] %vm371_vm1, %v4983_v17 }
 0x43f   : > { %v5083_v27 = vpop.permute.xlu1 %5082 }
 0x440   : > { %5842 = vst.msk [vmem:[%s6643_s25 + $0x858] sm:$0xff] %vm371_vm1, %v5083_v27 }
 0x441   : > { %v5081_v20 = vpop.permute.xlu0 %5080 }
 0x442   : > { %5841 = vst.msk [vmem:[%s6643_s25 + $0x850] sm:$0xff] %vm371_vm1, %v5081_v20 }
 0x443   : > { %v5092_v40 = vpop.permute.xlu1 %5091 }
 0x444   : > { %5844 = vst.msk [vmem:[%s6643_s25 + $0x868] sm:$0xff] %vm371_vm1, %v5092_v40 }
 0x445   : > { %v5090_v25 = vpop.permute.xlu0 %5089 }
 0x446   : > { %5843 = vst.msk [vmem:[%s6643_s25 + $0x860] sm:$0xff] %vm371_vm1, %v5090_v25 }
 0x447   : > { %v5190_v45 = vpop.permute.xlu1 %5189 }
 0x448   : > { %5850 = vst.msk [vmem:[%s6643_s25 + $0x888] sm:$0xff] %vm371_vm1, %v5190_v45 }
 0x449   : > { %v5188_v0 = vpop.permute.xlu0 %5187 }
 0x44a   : > { %5849 = vst.msk [vmem:[%s6643_s25 + $0x880] sm:$0xff] %vm371_vm1, %v5188_v0 }
 0x44b   : > { %v5199_v1 = vpop.permute.xlu1 %5198 }
 0x44c   : > { %5852 = vst.msk [vmem:[%s6643_s25 + $0x898] sm:$0xff] %vm371_vm1, %v5199_v1 }
 0x44d   : > { %v5197_v55 = vpop.permute.xlu0 %5196 }
 0x44e   : > { %5851 = vst.msk [vmem:[%s6643_s25 + $0x890] sm:$0xff] %vm371_vm1, %v5197_v55 }
 0x44f   : > { %v5297_v46 = vpop.permute.xlu1 %5296 }
 0x450   : > { %5858 = vst.msk [vmem:[%s6643_s25 + $0x8b8] sm:$0xff] %vm371_vm1, %v5297_v46 }
 0x451   : > { %v5295_v51 = vpop.permute.xlu0 %5294 }
 0x452   : > { %5857 = vst.msk [vmem:[%s6643_s25 + $0x8b0] sm:$0xff] %vm371_vm1, %v5295_v51 }
 0x453   : > { %v5306_v43 = vpop.permute.xlu1 %5305 }
 0x454   : > { %5860 = vst.msk [vmem:[%s6643_s25 + $0x8c8] sm:$0xff] %vm371_vm1, %v5306_v43 }
 0x455   : > { %v5304_v24 = vpop.permute.xlu0 %5303 }
 0x456   : > { %5859 = vst.msk [vmem:[%s6643_s25 + $0x8c0] sm:$0xff] %vm371_vm1, %v5304_v24 }
 0x457   : > { %v5404_v57 = vpop.permute.xlu1 %5403 }
 0x458   : > { %5866 = vst.msk [vmem:[%s6643_s25 + $0x8e8] sm:$0xff] %vm371_vm1, %v5404_v57 }
 0x459   : > { %v5402_v16 = vpop.permute.xlu0 %5401 }
 0x45a   : > { %5865 = vst.msk [vmem:[%s6643_s25 + $0x8e0] sm:$0xff] %vm371_vm1, %v5402_v16 }
 0x45b   : > { %v5413_v30 = vpop.permute.xlu1 %5412 }
 0x45c   : > { %5868 = vst.msk [vmem:[%s6643_s25 + $0x8f8] sm:$0xff] %vm371_vm1, %v5413_v30 }
 0x45d   : > { %v5411_v47 = vpop.permute.xlu0 %5410 }
 0x45e   : > { %5867 = vst.msk [vmem:[%s6643_s25 + $0x8f0] sm:$0xff] %vm371_vm1, %v5411_v47 }
 0x45f PF: > { %s13_s12 = sadd.s32 1, %s6303_s12  }
 0x460   : > { %p10_p4 = scmp.ge.s32.totalorder %s13_s12, 4  }
 0x462   :  { %12 = sbr.rel (!%p10_p4) target bundleno = 1 (0x1), region = 205 }

// kernel: decoder_forward.9
= control target key start
LH: loop header
LB: loop body
LE: loop exit
PB: predicated region body
PF: predicated region fallthrough
CT: control target
= control target key end

     0   :  { %s370_s12 = smov 0   ;;  %s393_s0 = inlined_call_operand.vmem [shape: f32[2,8,256], index: 0, kind: input, shape index: {}]   ;;  %s394_s1 = inlined_call_operand.vmem [shape: f32[3,8], index: 1, kind: input, shape index: {}]   ;;  %s395_s2 = inlined_call_operand.vmem [shape: f32[3,1], index: 2, kind: input, shape index: {}]   ;;  %s396_s3 = inlined_call_operand.vmem [shape: f32[2,3,256], index: 3, kind: output, shape index: {}]  }
   0x1 LB: > { %s315_s13 = sadd.s32 4294967295, %s346_s12   ;;  %p319_p0 = scmp.ge.s32.totalorder %s346_s12, 1  ;;  %s346_s12 = sphi %s370_s12, %s13_s12  }
   0x2   : > { %p137_p1 = scmp.lt.s32.totalorder %s346_s12, 3 }
   0x4   : > { %p138_p2 = pnand %p319_p0, %p137_p1 }
   0x5   : > { %p161_p3 = scmp.lt.s32.totalorder (!%p138_p2), %s315_s13, 1 }
   0x6   : > { %141 = sbr.rel (%p138_p2) target bundleno = 217 (0xd9), region = 32 }
   0xb   : > { %v348_v0 = vmov 0.0   ;;  %v349_v1 = vmov 0   ;;  %v174_v2 = vld [vmem:[%s395_s2] sm:$0x7]  ;;  %s398_s13 = smov (!%p161_p3, %s315_s13), 1  ;;  %vm180_vm0 = vcmask 64512  }
   0xc   : > { %248 = vmatprep.mubr.f32.mxu0 %v348_v0  ;;  %339 = vset.pattern.permute.xlu0 %v349_v1  ;;  %s327_s16 = sshll.u32 %s398_s13, 4  ;;  %v171_v5 = vld [vmem:[%s394_s1] sm:$0x7]  ;;  %s328_s22 = sshll.u32 %s398_s13, 3 }
   0xd   : > { %177 = vperm.xlu0 %339, %v174_v2   ;;  %s165_s19 = scalar_lea.vmem %s393_s0, %s327_s16  ;;  %s170_s25 = scalar_lea.vmem %s396_s3, %s328_s22 }
   0xe   : > { %v173_v3 = vld [vmem:[%s165_s19 + $0x8] sm:$0xff]  ;;  %v172_v4 = vld [vmem:[%s165_s19] sm:$0xff] }
   0xf   : > { %214 = vmatprep.subr.mxu0 %v173_v3 }
  0x10   : > { %215 = vmatpush1.msra.mxu0 %v172_v4 }
  0x11   : > { %324 = vmatmul.mubr.msk.f32.vlgmr.msra.gmra.mxu0 %vm180_vm0, %v171_v5 }
  0x88   : > { %v178_v6 = vpop.permute.xlu0 %177 }
  0xd1   : > { %v250_v7 = vpop.f32.mrf.mxu0 }
  0xd2   : > { %v251_v9 = vadd.f32 %v250_v7, %v178_v6 }
  0xd3   : > { %v252_v8 = vpop.f32.mrf.mxu0 }
  0xd4   : > { %v253_v10 = vadd.f32 %v252_v8, %v178_v6 }
  0xd6   : > { %v257_v11 = vcombine.low %v251_v9, %v253_v10 }
  0xd8   : > { %259 = vst [vmem:[%s170_s25] sm:$0x77] %v257_v11 }
  0xd9 PF: > { %s13_s12 = sadd.s32 1, %s346_s12  }
  0xda   : > { %p10_p4 = scmp.ge.s32.totalorder %s13_s12, 4  }
  0xdc   :  { %12 = sbr.rel (!%p10_p4) target bundleno = 1 (0x1), region = 62 }

</bundles_post_ra>
